<compile_context>
chip_gen: v7x
topology: tpu7x:2x2x1
jax: 0.10.0
libtpu: 0.0.40
codegen_flags: <defaults>
</compile_context>

<pallas_src>
import jax
import jax.numpy as jnp
from jax import lax
from jax.experimental import pallas as pl
from jax.experimental.pallas import tpu as pltpu

EPS = 1e-5  # CCBN eps


# ----------------------------------------------------------------------------
# VMEM budget helpers
# ----------------------------------------------------------------------------
_VMEM_LIMIT_CACHE = None


def _vmem_limit_bytes():
    """Scoped-VMEM limit: ~96 MiB on 128 MiB parts (v5e/v6e), ~48 MiB on v7x."""
    global _VMEM_LIMIT_CACHE
    if _VMEM_LIMIT_CACHE is None:
        try:
            info = pltpu.get_tpu_info()
            cap = int(getattr(info, "vmem_capacity_bytes", 64 * 1024 * 1024))
        except Exception:
            cap = 64 * 1024 * 1024  # conservative fallback (smallest = v7x per-TC)
        _VMEM_LIMIT_CACHE = max(32 * 1024 * 1024,
                                min((cap * 3) // 4, 100 * 1024 * 1024))
    return _VMEM_LIMIT_CACHE


def _kernel1_step_bytes(t_m, W, Cin, C1, n_k):
    kw = (4 // n_k) * Cin
    tin = (t_m + n_k) * W
    tw = t_m * W
    b = 2 * 2 * tin * kw * 2              # xA, xB double-buffered (bf16)
    b += 2 * 2 * 4 * tw * C1 * 2          # ya, yg double-buffered (bf16)
    b += 2 * 2 * 4 * n_k * kw * C1 * 2    # wa, wg double-buffered (bf16)
    b += 3 * tw * C1 * 4                  # f32 accumulators + cast temporaries
    b += tw * kw * 2                      # one operand slice materialized
    return b


def _pick_row_tile(H, W, Cin, C1, n_k, budget):
    valid = [t for t in range(1, H + 1)
             if H % t == 0 and (t == H or (t * W) % 8 == 0)]
    fitting = [t for t in valid
               if _kernel1_step_bytes(t, W, Cin, C1, n_k) <= budget]
    return max(fitting) if fitting else min(valid)


def _kernel2_step_bytes(t, C1):
    b = 3 * 2 * 4 * t * C1 * 2            # ya, yg, out blocks double-buffered (bf16)
    b += 3 * 4 * t * C1 * 4               # f32 temporaries
    return b


def _pick_hw_tile(HW, C1, budget):
    valid = [t for t in range(1, HW + 1)
             if HW % t == 0 and (t == HW or t % 8 == 0)]
    fitting = [t for t in valid if _kernel2_step_bytes(t, C1) <= budget]
    return max(fitting) if fitting else min(valid)


# ----------------------------------------------------------------------------
# Sub-pixel weight construction (wrapper-side, plain JAX)
#
#   conv3x3(pad1(nearest2x(X)))[2m+si, 2n+sj]
#       = sum_{sr,sc in {0,1}}  Xpad[m+si+sr, n+sj+sc] . Weff[si,sj,sr,sc]
#   where Xpad is the ORIGINAL input zero-padded by 1 and Weff sums the 3x3
#   taps that land on each source pixel.
# ----------------------------------------------------------------------------
_TAP_GROUPS = {0: ((0,), (1, 2)), 1: ((0, 1), (2,))}


def build_subpixel_weights(w_hwio):
    """w_hwio: (3,3,Cin,Cout) -> (4,4,Cin,Cout) indexed [si*2+sj, sr*2+sc]."""
    subs = []
    for si in (0, 1):
        for sj in (0, 1):
            shifts = []
            for sr in (0, 1):
                for sc in (0, 1):
                    acc = jnp.zeros_like(w_hwio[0, 0])
                    for ky in _TAP_GROUPS[si][sr]:
                        for kx in _TAP_GROUPS[sj][sc]:
                            acc = acc + w_hwio[ky, kx]
                    shifts.append(acc)
            subs.append(jnp.stack(shifts, axis=0))
    return jnp.stack(subs, axis=0)  # (4, 4, Cin, Cout)


# ----------------------------------------------------------------------------
# Kernel 1: fused upsample+pad+conv (K-merged sub-pixel matmuls, MXU) + BN partials
# ----------------------------------------------------------------------------
def _conv_stats_kernel(xa_ref, xb_ref, wa_ref, wg_ref, ya_ref, yg_ref, st_ref):
    """One (sample, row-tile) grid step.
       xa/xb : (1, 1, (t_m+n_k)*W, Kw)  partial-im2col operands (bf16), col pair 0/1
       wa/wg : (4, n_k, Kw, C1)         sub-pixel tap-merged weights (bf16), GLU halves
       ya/yg : (1, 4, t_m*W, C1)        conv output (bf16), sub-pixel-blocked layout
       st    : (1, 1, 4, C1)            [sum_a, sumsq_a, sum_g, sumsq_g] (f32)"""
    TW = ya_ref.shape[2]
    C1 = ya_ref.shape[3]
    n_k = wa_ref.shape[1]
    Tin = xa_ref.shape[2]
    W = (Tin - TW) // n_k

    s_a = jnp.zeros((1, C1), jnp.float32)
    q_a = jnp.zeros((1, C1), jnp.float32)
    s_g = jnp.zeros((1, C1), jnp.float32)
    q_g = jnp.zeros((1, C1), jnp.float32)

    for si in (0, 1):
        for sj in (0, 1):
            sub = si * 2 + sj
            src = xa_ref if sj == 0 else xb_ref
            # All column/tap shifts live in the K axis (wrapper im2col); the only
            # in-kernel addressing is a static, sublane-aligned row slice.
            x0 = src[0, 0, si * W: si * W + TW, :]
            acc_a = jnp.dot(x0, wa_ref[sub, 0], preferred_element_type=jnp.float32)
            acc_g = jnp.dot(x0, wg_ref[sub, 0], preferred_element_type=jnp.float32)
            for j in range(1, n_k):
                off = (si + j) * W
                xj = src[0, 0, off: off + TW, :]
                acc_a = acc_a + jnp.dot(xj, wa_ref[sub, j],
                                        preferred_element_type=jnp.float32)
                acc_g = acc_g + jnp.dot(xj, wg_ref[sub, j],
                                        preferred_element_type=jnp.float32)
            ya_ref[0, sub] = acc_a.astype(ya_ref.dtype)
            yg_ref[0, sub] = acc_g.astype(yg_ref.dtype)
            # BN partial sums from the f32 accumulators (pre bf16 cast).
            s_a = s_a + jnp.sum(acc_a, axis=0, keepdims=True)
            q_a = q_a + jnp.sum(acc_a * acc_a, axis=0, keepdims=True)
            s_g = s_g + jnp.sum(acc_g, axis=0, keepdims=True)
            q_g = q_g + jnp.sum(acc_g * acc_g, axis=0, keepdims=True)

    st_ref[0, 0, 0:1, :] = s_a
    st_ref[0, 0, 1:2, :] = q_a
    st_ref[0, 0, 2:3, :] = s_g
    st_ref[0, 0, 3:4, :] = q_g


def conv_subpixel_stats(xA, xB, wa, wg, *, H, W, t_m, vmem_limit):
    N = xA.shape[0]
    n_mt = H // t_m
    Kw = xA.shape[-1]
    n_k = wa.shape[1]
    C1 = wa.shape[-1]
    TW = t_m * W
    Tin = (t_m + n_k) * W
    return pl.pallas_call(
        _conv_stats_kernel,
        out_shape=(
            jax.ShapeDtypeStruct((N, 4, H * W, C1), jnp.bfloat16),
            jax.ShapeDtypeStruct((N, 4, H * W, C1), jnp.bfloat16),
            jax.ShapeDtypeStruct((N, n_mt, 4, C1), jnp.float32),
        ),
        grid_spec=pltpu.PrefetchScalarGridSpec(
            num_scalar_prefetch=0,
            grid=(N, n_mt),
            in_specs=[
                pl.BlockSpec((1, 1, Tin, Kw), lambda n, k: (n, k, 0, 0)),
                pl.BlockSpec((1, 1, Tin, Kw), lambda n, k: (n, k, 0, 0)),
                # TODO(synk): grid-invariant weights could be single-buffered
                # (pipeline_mode=pl.Buffered(1)) for extra VMEM headroom.
                pl.BlockSpec((4, n_k, Kw, C1), lambda n, k: (0, 0, 0, 0)),
                pl.BlockSpec((4, n_k, Kw, C1), lambda n, k: (0, 0, 0, 0)),
            ],
            out_specs=(
                pl.BlockSpec((1, 4, TW, C1), lambda n, k: (n, 0, k, 0)),
                pl.BlockSpec((1, 4, TW, C1), lambda n, k: (n, 0, k, 0)),
                pl.BlockSpec((1, 1, 4, C1), lambda n, k: (n, k, 0, 0)),
            ),
        ),
        compiler_params=pltpu.CompilerParams(
            dimension_semantics=("parallel", "parallel"),
            vmem_limit_bytes=vmem_limit),
    )(xA, xB, wa, wg)


# ----------------------------------------------------------------------------
# Kernel 2: folded BN + CCBN scale/shift + GLU (pure elementwise, bf16 out)
# ----------------------------------------------------------------------------
def _bn_glu_kernel(ya_ref, yg_ref, ss_ref, o_ref):
    """ya/yg: (1,4,t_hw,C1) bf16; ss: (1,4,C1) f32 [scale_a, shift_a, scale_g, shift_g]."""
    sca = ss_ref[0, 0:1, :]
    sha = ss_ref[0, 1:2, :]
    scg = ss_ref[0, 2:3, :]
    shg = ss_ref[0, 3:4, :]
    a = ya_ref[0].astype(jnp.float32) * sca + sha
    g = yg_ref[0].astype(jnp.float32) * scg + shg
    o_ref[0] = (a * jax.nn.sigmoid(g)).astype(o_ref.dtype)


def bn_glu(ya, yg, ss, *, vmem_limit):
    N, S, HW, C1 = ya.shape               # S == 4 sub-pixel positions
    budget = (vmem_limit * 3) // 5
    t_hw = _pick_hw_tile(HW, C1, budget)
    return pl.pallas_call(
        _bn_glu_kernel,
        out_shape=jax.ShapeDtypeStruct((N, S, HW, C1), jnp.bfloat16),
        grid_spec=pltpu.PrefetchScalarGridSpec(
            num_scalar_prefetch=0,
            grid=(N, HW // t_hw),
            in_specs=[
                pl.BlockSpec((1, S, t_hw, C1), lambda n, t: (n, 0, t, 0)),
                pl.BlockSpec((1, S, t_hw, C1), lambda n, t: (n, 0, t, 0)),
                pl.BlockSpec((1, 4, C1), lambda n, t: (n, 0, 0)),
            ],
            out_specs=pl.BlockSpec((1, S, t_hw, C1), lambda n, t: (n, 0, t, 0)),
        ),
        compiler_params=pltpu.CompilerParams(
            dimension_semantics=("parallel", "parallel"),
            vmem_limit_bytes=vmem_limit),
    )(ya, yg, ss)


# ----------------------------------------------------------------------------
# Parameters (spectral norm approximated by power iteration — plain JAX glue)
# ----------------------------------------------------------------------------
def _spectral_normalize(w, key, n_iter=5):
    mat = w.reshape(w.shape[0], -1).astype(jnp.float32)
    u = jax.random.normal(key, (mat.shape[0],), jnp.float32)
    u = u / (jnp.linalg.norm(u) + 1e-12)
    v = mat.T @ u
    for _ in range(n_iter):
        v = mat.T @ u
        v = v / (jnp.linalg.norm(v) + 1e-12)
        u = mat @ v
        u = u / (jnp.linalg.norm(u) + 1e-12)
    sigma = u @ (mat @ v)
    return (w / sigma).astype(w.dtype)


def init_params(key, in_planes, out_planes, z_dim):
    C2 = 2 * out_planes
    ks = jax.random.split(key, 8)
    conv_w = _spectral_normalize(
        0.2 * jax.random.normal(ks[0], (C2, in_planes, 3, 3), jnp.float32), ks[1])
    gain_w = _spectral_normalize(
        0.2 * jax.random.normal(ks[2], (C2, z_dim), jnp.float32), ks[3])
    bias_w = _spectral_normalize(
        0.2 * jax.random.normal(ks[4], (C2, z_dim), jnp.float32), ks[5])
    gain_b = 0.1 * jax.random.normal(ks[6], (C2,), jnp.float32)
    bias_b = 0.1 * jax.random.normal(ks[7], (C2,), jnp.float32)
    return dict(conv_w=conv_w, gain_w=gain_w, gain_b=gain_b,
                bias_w=bias_w, bias_b=bias_b)


# ----------------------------------------------------------------------------
# Forward wrapper: NCHW in -> NCHW out (training-mode BN statistics)
# ----------------------------------------------------------------------------
def upblock_smallcond_forward(x_nchw, c, P):
    """x_nchw: (N, in_planes, H, W), c: (N, z_dim) -> (N, out_planes, 2H, 2W) f32.
    # TODO(synk): eval-mode BatchNorm (running statistics) is not implemented."""
    N, Cin, H, W = map(int, x_nchw.shape)
    C2 = int(P["conv_w"].shape[0])
    C1 = C2 // 2

    vmem_limit = _vmem_limit_bytes()
    budget = (vmem_limit * 3) // 5

    # K-merge factor: full 4*Cin merge when Cin is small (MXU K under-filled),
    # otherwise a 2*Cin column-pair merge (already saturates K, half the im2col bytes).
    n_k = 1 if Cin < 128 else 2
    Kw = (4 // n_k) * Cin

    # Wrapper-side partial im2col (bf16): column (and optionally row) shifts are
    # materialized here so kernel 1 never slices a misaligned sublane/lane axis.
    x = jnp.transpose(x_nchw, (0, 2, 3, 1)).astype(jnp.bfloat16)      # NHWC bf16
    xp = jnp.pad(x, ((0, 0), (1, 1), (1, 1), (0, 0)))                 # (N,H+2,W+2,Cin)

    def col_pair(p):
        cc = jnp.concatenate([xp[:, :, p:p + W, :],
                              xp[:, :, p + 1:p + 1 + W, :]], axis=-1)  # (N,H+2,W,2Cin)
        if n_k == 1:   # fold the row pair into K as well -> (N, H+1, W, 4Cin)
            cc = jnp.concatenate([cc[:, :H + 1], cc[:, 1:]], axis=-1)
        return cc

    t_m = _pick_row_tile(H, W, Cin, C1, n_k, budget)
    n_mt = H // t_m

    def row_tiles(base):   # (N, H+n_k, W, Kw) -> (N, n_mt, (t_m+n_k)*W, Kw) with halo
        idx = jnp.arange(n_mt)[:, None] * t_m + jnp.arange(t_m + n_k)[None, :]
        xt = base[:, idx]
        return xt.reshape(N, n_mt, (t_m + n_k) * W, Kw)

    xA = row_tiles(col_pair(0))   # column pair (0,1)  -> sj = 0
    xB = row_tiles(col_pair(1))   # column pair (1,2)  -> sj = 1

    # OIHW -> HWIO, sub-pixel tap sums, reshape to the merged-K layout, GLU halves.
    w_hwio = jnp.transpose(P["conv_w"], (2, 3, 1, 0))        # (3,3,Cin,C2)
    weff = build_subpixel_weights(w_hwio)                    # (4,4,Cin,C2)
    wk = weff.reshape(4, n_k, Kw, C2)
    wa = wk[..., :C1].astype(jnp.bfloat16)
    wg = wk[..., C1:].astype(jnp.bfloat16)

    ya, yg, st = conv_subpixel_stats(xA, xB, wa, wg, H=H, W=W, t_m=t_m,
                                     vmem_limit=vmem_limit)

    # Training-mode BN stats (biased var) from packed per-tile partial sums.
    # NOTE: one-pass E[x^2]-E[x]^2 with a clamp; post-conv (no-bias) activations
    # have |mean| << std so the cancellation is benign.
    tot = jnp.sum(st, axis=(0, 1))                           # (4, C1)
    cnt = jnp.float32(N * 4 * H * W)
    mean_a = tot[0] / cnt
    mean_g = tot[2] / cnt
    var_a = jnp.maximum(tot[1] / cnt - mean_a * mean_a, 0.0)
    var_g = jnp.maximum(tot[3] / cnt - mean_g * mean_g, 0.0)
    inv_a = lax.rsqrt(var_a + EPS)
    inv_g = lax.rsqrt(var_g + EPS)

    # CCBN: gain = 1 + Linear_g(c), bias = Linear_b(c); fold BN + gain/bias into
    # one per-sample per-channel scale/shift, packed as a single (N,4,C1) input.
    gain = 1.0 + c @ P["gain_w"].T + P["gain_b"]             # (N, C2)
    bias = c @ P["bias_w"].T + P["bias_b"]                   # (N, C2)
    scale_a = gain[:, :C1] * inv_a
    scale_g = gain[:, C1:] * inv_g
    shift_a = bias[:, :C1] - mean_a * scale_a
    shift_g = bias[:, C1:] - mean_g * scale_g
    ss = jnp.stack([scale_a, shift_a, scale_g, shift_g], axis=1).astype(jnp.float32)

    o_blk = bn_glu(ya, yg, ss, vmem_limit=vmem_limit)        # (N,4,HW,C1) bf16

    # Sub-pixel de-interleave + NHWC->NCHW + f32 cast fused into ONE XLA transpose.
    # (A channels-last consumer could take o_blk reshaped directly and skip this.)
    # TODO(synk): for C1 < 128 a transposed (C1-on-sublane) layout would avoid
    # lane-masked stores; not implemented since realistic C1 >= 128.
    o = o_blk.reshape(N, 2, 2, H, W, C1)                     # (N, si, sj, H, W, C1)
    o = jnp.transpose(o, (0, 5, 3, 1, 4, 2)).astype(jnp.float32)  # (N, C1, H, si, W, sj)
    return o.reshape(N, C1, 2 * H, 2 * W)


# ----------------------------------------------------------------------------
# Pure-JAX f32 reference (numerical sanity check only)
# ----------------------------------------------------------------------------
def _ref_forward(x_nchw, c, P):
    x = jnp.repeat(jnp.repeat(x_nchw, 2, axis=2), 2, axis=3).astype(jnp.float32)
    y = lax.conv_general_dilated(x, P["conv_w"], (1, 1), ((1, 1), (1, 1)),
                                 dimension_numbers=("NCHW", "OIHW", "NCHW"),
                                 precision=lax.Precision.HIGHEST)
    mean = jnp.mean(y, axis=(0, 2, 3), keepdims=True)
    var = jnp.mean((y - mean) ** 2, axis=(0, 2, 3), keepdims=True)
    yn = (y - mean) / jnp.sqrt(var + EPS)
    gain = 1.0 + c @ P["gain_w"].T + P["gain_b"]
    bias = c @ P["bias_w"].T + P["bias_b"]
    z = yn * gain[:, :, None, None] + bias[:, :, None, None]
    C1 = z.shape[1] // 2
    return z[:, :C1] * jax.nn.sigmoid(z[:, C1:])


if __name__ == "__main__":
    N, in_planes, out_planes, z_dim, H, W = 2, 4, 4, 8, 16, 16
    key = jax.random.PRNGKey(0)
    kx, kc, kp = jax.random.split(key, 3)
    x = jax.random.normal(kx, (N, in_planes, H, W), jnp.float32)
    c = jax.random.normal(kc, (N, z_dim), jnp.float32)
    P = init_params(kp, in_planes, out_planes, z_dim)

    fwd = jax.jit(upblock_smallcond_forward)
    out = jax.block_until_ready(fwd(x, c, P))
    assert out.shape == (N, out_planes, 2 * H, 2 * W), out.shape

    ref = jax.block_until_ready(_ref_forward(x, c, P))
    err = float(jnp.max(jnp.abs(out - ref)))
    # Tolerance reflects bf16 MXU operands, bf16 conv intermediates and the
    # bf16 kernel-2 output compared against a pure-f32 reference.
    assert jnp.allclose(out, ref, atol=3e-2, rtol=3e-2), err

    print("KERNEL_OK")
</pallas_src>

<mosaic_0001>
module attributes {stable_mosaic.version = 11 : i64} {
  func.func @_conv_stats_kernel(%arg0: i32, %arg1: i32, %arg2: memref<1x1x272x16xbf16, #tpu.memory_space<vmem>>, %arg3: memref<1x1x272x16xbf16, #tpu.memory_space<vmem>>, %arg4: memref<4x1x16x4xbf16, #tpu.memory_space<vmem>>, %arg5: memref<4x1x16x4xbf16, #tpu.memory_space<vmem>>, %arg6: memref<1x4x256x4xbf16, #tpu.memory_space<vmem>>, %arg7: memref<1x4x256x4xbf16, #tpu.memory_space<vmem>>, %arg8: memref<1x1x4x4xf32, #tpu.memory_space<vmem>>) attributes {dimension_semantics = [#tpu.dimension_semantics<parallel>, #tpu.dimension_semantics<parallel>], iteration_bounds = array<i64: 2, 1>, scalar_prefetch = 0 : i64, scratch_operands = 0 : i64, tpu.core_type = #tpu.core_type<tc>, window_params = [{transform_indices = @transform_0, window_bounds = array<i64: 1, 1, 272, 16>}, {transform_indices = @transform_1, window_bounds = array<i64: 1, 1, 272, 16>}, {pipeline_mode = #tpu.pipeline_mode<synchronous>, transform_indices = @transform_2, window_bounds = array<i64: 4, 1, 16, 4>}, {pipeline_mode = #tpu.pipeline_mode<synchronous>, transform_indices = @transform_3, window_bounds = array<i64: 4, 1, 16, 4>}, {transform_indices = @transform_4, window_bounds = array<i64: 1, 4, 256, 4>}, {transform_indices = @transform_5, window_bounds = array<i64: 1, 4, 256, 4>}, {transform_indices = @transform_6, window_bounds = array<i64: 1, 1, 4, 4>}]} {
    %cst = arith.constant 0.000000e+00 : f32
    %0 = vector.broadcast %cst : f32 to vector<1x4xf32>
    %cst_0 = arith.constant 0.000000e+00 : f32
    %1 = vector.broadcast %cst_0 : f32 to vector<1x4xf32>
    %cst_1 = arith.constant 0.000000e+00 : f32
    %2 = vector.broadcast %cst_1 : f32 to vector<1x4xf32>
    %cst_2 = arith.constant 0.000000e+00 : f32
    %3 = vector.broadcast %cst_2 : f32 to vector<1x4xf32>
    %c0 = arith.constant 0 : index
    %c0_3 = arith.constant 0 : index
    %c0_4 = arith.constant 0 : index
    %c0_5 = arith.constant 0 : index
    %4 = vector.load %arg2[%c0, %c0_3, %c0_4, %c0_5] : memref<1x1x272x16xbf16, #tpu.memory_space<vmem>>, vector<1x1x256x16xbf16>
    %5 = vector.shape_cast %4 : vector<1x1x256x16xbf16> to vector<256x16xbf16>
    %c0_6 = arith.constant 0 : index
    %c0_7 = arith.constant 0 : index
    %c0_8 = arith.constant 0 : index
    %c0_9 = arith.constant 0 : index
    %6 = vector.load %arg4[%c0_6, %c0_7, %c0_8, %c0_9] : memref<4x1x16x4xbf16, #tpu.memory_space<vmem>>, vector<1x1x16x4xbf16>
    %7 = vector.shape_cast %6 : vector<1x1x16x4xbf16> to vector<16x4xbf16>
    %cst_10 = arith.constant dense<0.000000e+00> : vector<256x4xf32>
    %8 = tpu.matmul %5, %7, %cst_10 {dimension_numbers = #tpu.dot_dimension_numbers<[1], [0], [0], [1], [0, 0, 1, 1], [], []>} : vector<256x16xbf16>, vector<16x4xbf16>, vector<256x4xf32> -> vector<256x4xf32>
    %c0_11 = arith.constant 0 : index
    %c0_12 = arith.constant 0 : index
    %c0_13 = arith.constant 0 : index
    %c0_14 = arith.constant 0 : index
    %9 = vector.load %arg5[%c0_11, %c0_12, %c0_13, %c0_14] : memref<4x1x16x4xbf16, #tpu.memory_space<vmem>>, vector<1x1x16x4xbf16>
    %10 = vector.shape_cast %9 : vector<1x1x16x4xbf16> to vector<16x4xbf16>
    %cst_15 = arith.constant dense<0.000000e+00> : vector<256x4xf32>
    %11 = tpu.matmul %5, %10, %cst_15 {dimension_numbers = #tpu.dot_dimension_numbers<[1], [0], [0], [1], [0, 0, 1, 1], [], []>} : vector<256x16xbf16>, vector<16x4xbf16>, vector<256x4xf32> -> vector<256x4xf32>
    %12 = arith.truncf %8 : vector<256x4xf32> to vector<256x4xbf16>
    %c0_16 = arith.constant 0 : index
    %c0_17 = arith.constant 0 : index
    %c0_18 = arith.constant 0 : index
    %c0_19 = arith.constant 0 : index
    %13 = vector.load %arg6[%c0_16, %c0_17, %c0_18, %c0_19] : memref<1x4x256x4xbf16, #tpu.memory_space<vmem>>, vector<1x1x256x4xbf16>
    %14 = vector.shape_cast %13 : vector<1x1x256x4xbf16> to vector<256x4xbf16>
    %15 = vector.shape_cast %12 : vector<256x4xbf16> to vector<1x1x256x4xbf16>
    tpu.vector_store %arg6[%c0_16, %c0_17, %c0_18, %c0_19], %15 {strides = array<i32>} : memref<1x4x256x4xbf16, #tpu.memory_space<vmem>>, vector<1x1x256x4xbf16>,
    %16 = arith.truncf %11 : vector<256x4xf32> to vector<256x4xbf16>
    %c0_20 = arith.constant 0 : index
    %c0_21 = arith.constant 0 : index
    %c0_22 = arith.constant 0 : index
    %c0_23 = arith.constant 0 : index
    %17 = vector.load %arg7[%c0_20, %c0_21, %c0_22, %c0_23] : memref<1x4x256x4xbf16, #tpu.memory_space<vmem>>, vector<1x1x256x4xbf16>
    %18 = vector.shape_cast %17 : vector<1x1x256x4xbf16> to vector<256x4xbf16>
    %19 = vector.shape_cast %16 : vector<256x4xbf16> to vector<1x1x256x4xbf16>
    tpu.vector_store %arg7[%c0_20, %c0_21, %c0_22, %c0_23], %19 {strides = array<i32>} : memref<1x4x256x4xbf16, #tpu.memory_space<vmem>>, vector<1x1x256x4xbf16>,
    %cst_24 = arith.constant dense<0.000000e+00> : vector<4xf32>
    %20 = vector.multi_reduction <add>, %8, %cst_24 [0] : vector<256x4xf32> to vector<4xf32>
    %21 = vector.shape_cast %20 : vector<4xf32> to vector<1x4xf32>
    %22 = arith.addf %0, %21 : vector<1x4xf32>
    %23 = arith.mulf %8, %8 : vector<256x4xf32>
    %cst_25 = arith.constant dense<0.000000e+00> : vector<4xf32>
    %24 = vector.multi_reduction <add>, %23, %cst_25 [0] : vector<256x4xf32> to vector<4xf32>
    %25 = vector.shape_cast %24 : vector<4xf32> to vector<1x4xf32>
    %26 = arith.addf %1, %25 : vector<1x4xf32>
    %cst_26 = arith.constant dense<0.000000e+00> : vector<4xf32>
    %27 = vector.multi_reduction <add>, %11, %cst_26 [0] : vector<256x4xf32> to vector<4xf32>
    %28 = vector.shape_cast %27 : vector<4xf32> to vector<1x4xf32>
    %29 = arith.addf %2, %28 : vector<1x4xf32>
    %30 = arith.mulf %11, %11 : vector<256x4xf32>
    %cst_27 = arith.constant dense<0.000000e+00> : vector<4xf32>
    %31 = vector.multi_reduction <add>, %30, %cst_27 [0] : vector<256x4xf32> to vector<4xf32>
    %32 = vector.shape_cast %31 : vector<4xf32> to vector<1x4xf32>
    %33 = arith.addf %3, %32 : vector<1x4xf32>
    %c0_28 = arith.constant 0 : index
    %c0_29 = arith.constant 0 : index
    %c0_30 = arith.constant 0 : index
    %c0_31 = arith.constant 0 : index
    %34 = vector.load %arg3[%c0_28, %c0_29, %c0_30, %c0_31] : memref<1x1x272x16xbf16, #tpu.memory_space<vmem>>, vector<1x1x256x16xbf16>
    %35 = vector.shape_cast %34 : vector<1x1x256x16xbf16> to vector<256x16xbf16>
    %c1 = arith.constant 1 : index
    %c0_32 = arith.constant 0 : index
    %c0_33 = arith.constant 0 : index
    %c0_34 = arith.constant 0 : index
    %36 = vector.load %arg4[%c1, %c0_32, %c0_33, %c0_34] : memref<4x1x16x4xbf16, #tpu.memory_space<vmem>>, vector<1x1x16x4xbf16>
    %37 = vector.shape_cast %36 : vector<1x1x16x4xbf16> to vector<16x4xbf16>
    %cst_35 = arith.constant dense<0.000000e+00> : vector<256x4xf32>
    %38 = tpu.matmul %35, %37, %cst_35 {dimension_numbers = #tpu.dot_dimension_numbers<[1], [0], [0], [1], [0, 0, 1, 1], [], []>} : vector<256x16xbf16>, vector<16x4xbf16>, vector<256x4xf32> -> vector<256x4xf32>
    %c1_36 = arith.constant 1 : index
    %c0_37 = arith.constant 0 : index
    %c0_38 = arith.constant 0 : index
    %c0_39 = arith.constant 0 : index
    %39 = vector.load %arg5[%c1_36, %c0_37, %c0_38, %c0_39] : memref<4x1x16x4xbf16, #tpu.memory_space<vmem>>, vector<1x1x16x4xbf16>
    %40 = vector.shape_cast %39 : vector<1x1x16x4xbf16> to vector<16x4xbf16>
    %cst_40 = arith.constant dense<0.000000e+00> : vector<256x4xf32>
    %41 = tpu.matmul %35, %40, %cst_40 {dimension_numbers = #tpu.dot_dimension_numbers<[1], [0], [0], [1], [0, 0, 1, 1], [], []>} : vector<256x16xbf16>, vector<16x4xbf16>, vector<256x4xf32> -> vector<256x4xf32>
    %42 = arith.truncf %38 : vector<256x4xf32> to vector<256x4xbf16>
    %c0_41 = arith.constant 0 : index
    %c1_42 = arith.constant 1 : index
    %c0_43 = arith.constant 0 : index
    %c0_44 = arith.constant 0 : index
    %43 = vector.load %arg6[%c0_41, %c1_42, %c0_43, %c0_44] : memref<1x4x256x4xbf16, #tpu.memory_space<vmem>>, vector<1x1x256x4xbf16>
    %44 = vector.shape_cast %43 : vector<1x1x256x4xbf16> to vector<256x4xbf16>
    %45 = vector.shape_cast %42 : vector<256x4xbf16> to vector<1x1x256x4xbf16>
    tpu.vector_store %arg6[%c0_41, %c1_42, %c0_43, %c0_44], %45 {strides = array<i32>} : memref<1x4x256x4xbf16, #tpu.memory_space<vmem>>, vector<1x1x256x4xbf16>,
    %46 = arith.truncf %41 : vector<256x4xf32> to vector<256x4xbf16>
    %c0_45 = arith.constant 0 : index
    %c1_46 = arith.constant 1 : index
    %c0_47 = arith.constant 0 : index
    %c0_48 = arith.constant 0 : index
    %47 = vector.load %arg7[%c0_45, %c1_46, %c0_47, %c0_48] : memref<1x4x256x4xbf16, #tpu.memory_space<vmem>>, vector<1x1x256x4xbf16>
    %48 = vector.shape_cast %47 : vector<1x1x256x4xbf16> to vector<256x4xbf16>
    %49 = vector.shape_cast %46 : vector<256x4xbf16> to vector<1x1x256x4xbf16>
    tpu.vector_store %arg7[%c0_45, %c1_46, %c0_47, %c0_48], %49 {strides = array<i32>} : memref<1x4x256x4xbf16, #tpu.memory_space<vmem>>, vector<1x1x256x4xbf16>,
    %cst_49 = arith.constant dense<0.000000e+00> : vector<4xf32>
    %50 = vector.multi_reduction <add>, %38, %cst_49 [0] : vector<256x4xf32> to vector<4xf32>
    %51 = vector.shape_cast %50 : vector<4xf32> to vector<1x4xf32>
    %52 = arith.addf %22, %51 : vector<1x4xf32>
    %53 = arith.mulf %38, %38 : vector<256x4xf32>
    %cst_50 = arith.constant dense<0.000000e+00> : vector<4xf32>
    %54 = vector.multi_reduction <add>, %53, %cst_50 [0] : vector<256x4xf32> to vector<4xf32>
    %55 = vector.shape_cast %54 : vector<4xf32> to vector<1x4xf32>
    %56 = arith.addf %26, %55 : vector<1x4xf32>
    %cst_51 = arith.constant dense<0.000000e+00> : vector<4xf32>
    %57 = vector.multi_reduction <add>, %41, %cst_51 [0] : vector<256x4xf32> to vector<4xf32>
    %58 = vector.shape_cast %57 : vector<4xf32> to vector<1x4xf32>
    %59 = arith.addf %29, %58 : vector<1x4xf32>
    %60 = arith.mulf %41, %41 : vector<256x4xf32>
    %cst_52 = arith.constant dense<0.000000e+00> : vector<4xf32>
    %61 = vector.multi_reduction <add>, %60, %cst_52 [0] : vector<256x4xf32> to vector<4xf32>
    %62 = vector.shape_cast %61 : vector<4xf32> to vector<1x4xf32>
    %63 = arith.addf %33, %62 : vector<1x4xf32>
    %c0_53 = arith.constant 0 : index
    %c0_54 = arith.constant 0 : index
    %c16 = arith.constant 16 : index
    %c0_55 = arith.constant 0 : index
    %64 = vector.load %arg2[%c0_53, %c0_54, %c16, %c0_55] : memref<1x1x272x16xbf16, #tpu.memory_space<vmem>>, vector<1x1x256x16xbf16>
    %65 = vector.shape_cast %64 : vector<1x1x256x16xbf16> to vector<256x16xbf16>
    %c2 = arith.constant 2 : index
    %c0_56 = arith.constant 0 : index
    %c0_57 = arith.constant 0 : index
    %c0_58 = arith.constant 0 : index
    %66 = vector.load %arg4[%c2, %c0_56, %c0_57, %c0_58] : memref<4x1x16x4xbf16, #tpu.memory_space<vmem>>, vector<1x1x16x4xbf16>
    %67 = vector.shape_cast %66 : vector<1x1x16x4xbf16> to vector<16x4xbf16>
    %cst_59 = arith.constant dense<0.000000e+00> : vector<256x4xf32>
    %68 = tpu.matmul %65, %67, %cst_59 {dimension_numbers = #tpu.dot_dimension_numbers<[1], [0], [0], [1], [0, 0, 1, 1], [], []>} : vector<256x16xbf16>, vector<16x4xbf16>, vector<256x4xf32> -> vector<256x4xf32>
    %c2_60 = arith.constant 2 : index
    %c0_61 = arith.constant 0 : index
    %c0_62 = arith.constant 0 : index
    %c0_63 = arith.constant 0 : index
    %69 = vector.load %arg5[%c2_60, %c0_61, %c0_62, %c0_63] : memref<4x1x16x4xbf16, #tpu.memory_space<vmem>>, vector<1x1x16x4xbf16>
    %70 = vector.shape_cast %69 : vector<1x1x16x4xbf16> to vector<16x4xbf16>
    %cst_64 = arith.constant dense<0.000000e+00> : vector<256x4xf32>
    %71 = tpu.matmul %65, %70, %cst_64 {dimension_numbers = #tpu.dot_dimension_numbers<[1], [0], [0], [1], [0, 0, 1, 1], [], []>} : vector<256x16xbf16>, vector<16x4xbf16>, vector<256x4xf32> -> vector<256x4xf32>
    %72 = arith.truncf %68 : vector<256x4xf32> to vector<256x4xbf16>
    %c0_65 = arith.constant 0 : index
    %c2_66 = arith.constant 2 : index
    %c0_67 = arith.constant 0 : index
    %c0_68 = arith.constant 0 : index
    %73 = vector.load %arg6[%c0_65, %c2_66, %c0_67, %c0_68] : memref<1x4x256x4xbf16, #tpu.memory_space<vmem>>, vector<1x1x256x4xbf16>
    %74 = vector.shape_cast %73 : vector<1x1x256x4xbf16> to vector<256x4xbf16>
    %75 = vector.shape_cast %72 : vector<256x4xbf16> to vector<1x1x256x4xbf16>
    tpu.vector_store %arg6[%c0_65, %c2_66, %c0_67, %c0_68], %75 {strides = array<i32>} : memref<1x4x256x4xbf16, #tpu.memory_space<vmem>>, vector<1x1x256x4xbf16>,
    %76 = arith.truncf %71 : vector<256x4xf32> to vector<256x4xbf16>
    %c0_69 = arith.constant 0 : index
    %c2_70 = arith.constant 2 : index
    %c0_71 = arith.constant 0 : index
    %c0_72 = arith.constant 0 : index
    %77 = vector.load %arg7[%c0_69, %c2_70, %c0_71, %c0_72] : memref<1x4x256x4xbf16, #tpu.memory_space<vmem>>, vector<1x1x256x4xbf16>
    %78 = vector.shape_cast %77 : vector<1x1x256x4xbf16> to vector<256x4xbf16>
    %79 = vector.shape_cast %76 : vector<256x4xbf16> to vector<1x1x256x4xbf16>
    tpu.vector_store %arg7[%c0_69, %c2_70, %c0_71, %c0_72], %79 {strides = array<i32>} : memref<1x4x256x4xbf16, #tpu.memory_space<vmem>>, vector<1x1x256x4xbf16>,
    %cst_73 = arith.constant dense<0.000000e+00> : vector<4xf32>
    %80 = vector.multi_reduction <add>, %68, %cst_73 [0] : vector<256x4xf32> to vector<4xf32>
    %81 = vector.shape_cast %80 : vector<4xf32> to vector<1x4xf32>
    %82 = arith.addf %52, %81 : vector<1x4xf32>
    %83 = arith.mulf %68, %68 : vector<256x4xf32>
    %cst_74 = arith.constant dense<0.000000e+00> : vector<4xf32>
    %84 = vector.multi_reduction <add>, %83, %cst_74 [0] : vector<256x4xf32> to vector<4xf32>
    %85 = vector.shape_cast %84 : vector<4xf32> to vector<1x4xf32>
    %86 = arith.addf %56, %85 : vector<1x4xf32>
    %cst_75 = arith.constant dense<0.000000e+00> : vector<4xf32>
    %87 = vector.multi_reduction <add>, %71, %cst_75 [0] : vector<256x4xf32> to vector<4xf32>
    %88 = vector.shape_cast %87 : vector<4xf32> to vector<1x4xf32>
    %89 = arith.addf %59, %88 : vector<1x4xf32>
    %90 = arith.mulf %71, %71 : vector<256x4xf32>
    %cst_76 = arith.constant dense<0.000000e+00> : vector<4xf32>
    %91 = vector.multi_reduction <add>, %90, %cst_76 [0] : vector<256x4xf32> to vector<4xf32>
    %92 = vector.shape_cast %91 : vector<4xf32> to vector<1x4xf32>
    %93 = arith.addf %63, %92 : vector<1x4xf32>
    %c0_77 = arith.constant 0 : index
    %c0_78 = arith.constant 0 : index
    %c16_79 = arith.constant 16 : index
    %c0_80 = arith.constant 0 : index
    %94 = vector.load %arg3[%c0_77, %c0_78, %c16_79, %c0_80] : memref<1x1x272x16xbf16, #tpu.memory_space<vmem>>, vector<1x1x256x16xbf16>
    %95 = vector.shape_cast %94 : vector<1x1x256x16xbf16> to vector<256x16xbf16>
    %c3 = arith.constant 3 : index
    %c0_81 = arith.constant 0 : index
    %c0_82 = arith.constant 0 : index
    %c0_83 = arith.constant 0 : index
    %96 = vector.load %arg4[%c3, %c0_81, %c0_82, %c0_83] : memref<4x1x16x4xbf16, #tpu.memory_space<vmem>>, vector<1x1x16x4xbf16>
    %97 = vector.shape_cast %96 : vector<1x1x16x4xbf16> to vector<16x4xbf16>
    %cst_84 = arith.constant dense<0.000000e+00> : vector<256x4xf32>
    %98 = tpu.matmul %95, %97, %cst_84 {dimension_numbers = #tpu.dot_dimension_numbers<[1], [0], [0], [1], [0, 0, 1, 1], [], []>} : vector<256x16xbf16>, vector<16x4xbf16>, vector<256x4xf32> -> vector<256x4xf32>
    %c3_85 = arith.constant 3 : index
    %c0_86 = arith.constant 0 : index
    %c0_87 = arith.constant 0 : index
    %c0_88 = arith.constant 0 : index
    %99 = vector.load %arg5[%c3_85, %c0_86, %c0_87, %c0_88] : memref<4x1x16x4xbf16, #tpu.memory_space<vmem>>, vector<1x1x16x4xbf16>
    %100 = vector.shape_cast %99 : vector<1x1x16x4xbf16> to vector<16x4xbf16>
    %cst_89 = arith.constant dense<0.000000e+00> : vector<256x4xf32>
    %101 = tpu.matmul %95, %100, %cst_89 {dimension_numbers = #tpu.dot_dimension_numbers<[1], [0], [0], [1], [0, 0, 1, 1], [], []>} : vector<256x16xbf16>, vector<16x4xbf16>, vector<256x4xf32> -> vector<256x4xf32>
    %102 = arith.truncf %98 : vector<256x4xf32> to vector<256x4xbf16>
    %c0_90 = arith.constant 0 : index
    %c3_91 = arith.constant 3 : index
    %c0_92 = arith.constant 0 : index
    %c0_93 = arith.constant 0 : index
    %103 = vector.load %arg6[%c0_90, %c3_91, %c0_92, %c0_93] : memref<1x4x256x4xbf16, #tpu.memory_space<vmem>>, vector<1x1x256x4xbf16>
    %104 = vector.shape_cast %103 : vector<1x1x256x4xbf16> to vector<256x4xbf16>
    %105 = vector.shape_cast %102 : vector<256x4xbf16> to vector<1x1x256x4xbf16>
    tpu.vector_store %arg6[%c0_90, %c3_91, %c0_92, %c0_93], %105 {strides = array<i32>} : memref<1x4x256x4xbf16, #tpu.memory_space<vmem>>, vector<1x1x256x4xbf16>,
    %106 = arith.truncf %101 : vector<256x4xf32> to vector<256x4xbf16>
    %c0_94 = arith.constant 0 : index
    %c3_95 = arith.constant 3 : index
    %c0_96 = arith.constant 0 : index
    %c0_97 = arith.constant 0 : index
    %107 = vector.load %arg7[%c0_94, %c3_95, %c0_96, %c0_97] : memref<1x4x256x4xbf16, #tpu.memory_space<vmem>>, vector<1x1x256x4xbf16>
    %108 = vector.shape_cast %107 : vector<1x1x256x4xbf16> to vector<256x4xbf16>
    %109 = vector.shape_cast %106 : vector<256x4xbf16> to vector<1x1x256x4xbf16>
    tpu.vector_store %arg7[%c0_94, %c3_95, %c0_96, %c0_97], %109 {strides = array<i32>} : memref<1x4x256x4xbf16, #tpu.memory_space<vmem>>, vector<1x1x256x4xbf16>,
    %cst_98 = arith.constant dense<0.000000e+00> : vector<4xf32>
    %110 = vector.multi_reduction <add>, %98, %cst_98 [0] : vector<256x4xf32> to vector<4xf32>
    %111 = vector.shape_cast %110 : vector<4xf32> to vector<1x4xf32>
    %112 = arith.addf %82, %111 : vector<1x4xf32>
    %113 = arith.mulf %98, %98 : vector<256x4xf32>
    %cst_99 = arith.constant dense<0.000000e+00> : vector<4xf32>
    %114 = vector.multi_reduction <add>, %113, %cst_99 [0] : vector<256x4xf32> to vector<4xf32>
    %115 = vector.shape_cast %114 : vector<4xf32> to vector<1x4xf32>
    %116 = arith.addf %86, %115 : vector<1x4xf32>
    %cst_100 = arith.constant dense<0.000000e+00> : vector<4xf32>
    %117 = vector.multi_reduction <add>, %101, %cst_100 [0] : vector<256x4xf32> to vector<4xf32>
    %118 = vector.shape_cast %117 : vector<4xf32> to vector<1x4xf32>
    %119 = arith.addf %89, %118 : vector<1x4xf32>
    %120 = arith.mulf %101, %101 : vector<256x4xf32>
    %cst_101 = arith.constant dense<0.000000e+00> : vector<4xf32>
    %121 = vector.multi_reduction <add>, %120, %cst_101 [0] : vector<256x4xf32> to vector<4xf32>
    %122 = vector.shape_cast %121 : vector<4xf32> to vector<1x4xf32>
    %123 = arith.addf %93, %122 : vector<1x4xf32>
    %c0_102 = arith.constant 0 : index
    %c0_103 = arith.constant 0 : index
    %c0_104 = arith.constant 0 : index
    %c0_105 = arith.constant 0 : index
    %124 = vector.load %arg8[%c0_102, %c0_103, %c0_104, %c0_105] : memref<1x1x4x4xf32, #tpu.memory_space<vmem>>, vector<1x1x1x4xf32>
    %125 = vector.shape_cast %124 : vector<1x1x1x4xf32> to vector<1x4xf32>
    %126 = vector.shape_cast %112 : vector<1x4xf32> to vector<1x1x1x4xf32>
    tpu.vector_store %arg8[%c0_102, %c0_103, %c0_104, %c0_105], %126 {strides = array<i32>} : memref<1x1x4x4xf32, #tpu.memory_space<vmem>>, vector<1x1x1x4xf32>,
    %c0_106 = arith.constant 0 : index
    %c0_107 = arith.constant 0 : index
    %c1_108 = arith.constant 1 : index
    %c0_109 = arith.constant 0 : index
    %127 = vector.load %arg8[%c0_106, %c0_107, %c1_108, %c0_109] : memref<1x1x4x4xf32, #tpu.memory_space<vmem>>, vector<1x1x1x4xf32>
    %128 = vector.shape_cast %127 : vector<1x1x1x4xf32> to vector<1x4xf32>
    %129 = vector.shape_cast %116 : vector<1x4xf32> to vector<1x1x1x4xf32>
    tpu.vector_store %arg8[%c0_106, %c0_107, %c1_108, %c0_109], %129 {strides = array<i32>} : memref<1x1x4x4xf32, #tpu.memory_space<vmem>>, vector<1x1x1x4xf32>,
    %c0_110 = arith.constant 0 : index
    %c0_111 = arith.constant 0 : index
    %c2_112 = arith.constant 2 : index
    %c0_113 = arith.constant 0 : index
    %130 = vector.load %arg8[%c0_110, %c0_111, %c2_112, %c0_113] : memref<1x1x4x4xf32, #tpu.memory_space<vmem>>, vector<1x1x1x4xf32>
    %131 = vector.shape_cast %130 : vector<1x1x1x4xf32> to vector<1x4xf32>
    %132 = vector.shape_cast %119 : vector<1x4xf32> to vector<1x1x1x4xf32>
    tpu.vector_store %arg8[%c0_110, %c0_111, %c2_112, %c0_113], %132 {strides = array<i32>} : memref<1x1x4x4xf32, #tpu.memory_space<vmem>>, vector<1x1x1x4xf32>,
    %c0_114 = arith.constant 0 : index
    %c0_115 = arith.constant 0 : index
    %c3_116 = arith.constant 3 : index
    %c0_117 = arith.constant 0 : index
    %133 = vector.load %arg8[%c0_114, %c0_115, %c3_116, %c0_117] : memref<1x1x4x4xf32, #tpu.memory_space<vmem>>, vector<1x1x1x4xf32>
    %134 = vector.shape_cast %133 : vector<1x1x1x4xf32> to vector<1x4xf32>
    %135 = vector.shape_cast %123 : vector<1x4xf32> to vector<1x1x1x4xf32>
    tpu.vector_store %arg8[%c0_114, %c0_115, %c3_116, %c0_117], %135 {strides = array<i32>} : memref<1x1x4x4xf32, #tpu.memory_space<vmem>>, vector<1x1x1x4xf32>,
    return
  }
  func.func @transform_0(%arg0: i32, %arg1: i32) -> (i32, i32, i32, i32) {
    %c0_i32 = arith.constant 0 : i32
    %c0_i32_0 = arith.constant 0 : i32
    %c0_i32_1 = arith.constant 0 : i32
    return %arg0, %arg1, %c0_i32, %c0_i32_0 : i32, i32, i32, i32
  }
  func.func @transform_1(%arg0: i32, %arg1: i32) -> (i32, i32, i32, i32) {
    %c0_i32 = arith.constant 0 : i32
    %c0_i32_0 = arith.constant 0 : i32
    %c0_i32_1 = arith.constant 0 : i32
    return %arg0, %arg1, %c0_i32, %c0_i32_0 : i32, i32, i32, i32
  }
  func.func @transform_2(%arg0: i32, %arg1: i32) -> (i32, i32, i32, i32) {
    %c0_i32 = arith.constant 0 : i32
    %c0_i32_0 = arith.constant 0 : i32
    %c0_i32_1 = arith.constant 0 : i32
    %c0_i32_2 = arith.constant 0 : i32
    %c0_i32_3 = arith.constant 0 : i32
    return %c0_i32, %c0_i32_0, %c0_i32_1, %c0_i32_2 : i32, i32, i32, i32
  }
  func.func @transform_3(%arg0: i32, %arg1: i32) -> (i32, i32, i32, i32) {
    %c0_i32 = arith.constant 0 : i32
    %c0_i32_0 = arith.constant 0 : i32
    %c0_i32_1 = arith.constant 0 : i32
    %c0_i32_2 = arith.constant 0 : i32
    %c0_i32_3 = arith.constant 0 : i32
    return %c0_i32, %c0_i32_0, %c0_i32_1, %c0_i32_2 : i32, i32, i32, i32
  }
  func.func @transform_4(%arg0: i32, %arg1: i32) -> (i32, i32, i32, i32) {
    %c0_i32 = arith.constant 0 : i32
    %c0_i32_0 = arith.constant 0 : i32
    %c0_i32_1 = arith.constant 0 : i32
    return %arg0, %c0_i32, %arg1, %c0_i32_0 : i32, i32, i32, i32
  }
  func.func @transform_5(%arg0: i32, %arg1: i32) -> (i32, i32, i32, i32) {
    %c0_i32 = arith.constant 0 : i32
    %c0_i32_0 = arith.constant 0 : i32
    %c0_i32_1 = arith.constant 0 : i32
    return %arg0, %c0_i32, %arg1, %c0_i32_0 : i32, i32, i32, i32
  }
  func.func @transform_6(%arg0: i32, %arg1: i32) -> (i32, i32, i32, i32) {
    %c0_i32 = arith.constant 0 : i32
    %c0_i32_0 = arith.constant 0 : i32
    %c0_i32_1 = arith.constant 0 : i32
    return %arg0, %arg1, %c0_i32, %c0_i32_0 : i32, i32, i32, i32
  }
}

module attributes {stable_mosaic.version = 11 : i64} {
  func.func @_bn_glu_kernel(%arg0: i32, %arg1: i32, %arg2: memref<1x4x256x4xbf16, #tpu.memory_space<vmem>>, %arg3: memref<1x4x256x4xbf16, #tpu.memory_space<vmem>>, %arg4: memref<1x4x4xf32, #tpu.memory_space<vmem>>, %arg5: memref<1x4x256x4xbf16, #tpu.memory_space<vmem>>) attributes {dimension_semantics = [#tpu.dimension_semantics<parallel>, #tpu.dimension_semantics<parallel>], iteration_bounds = array<i64: 2, 1>, scalar_prefetch = 0 : i64, scratch_operands = 0 : i64, tpu.core_type = #tpu.core_type<tc>, window_params = [{transform_indices = @transform_0, window_bounds = array<i64: 1, 4, 256, 4>}, {transform_indices = @transform_1, window_bounds = array<i64: 1, 4, 256, 4>}, {transform_indices = @transform_2, window_bounds = array<i64: 1, 4, 4>}, {transform_indices = @transform_3, window_bounds = array<i64: 1, 4, 256, 4>}]} {
    %c0 = arith.constant 0 : index
    %c0_0 = arith.constant 0 : index
    %c0_1 = arith.constant 0 : index
    %0 = vector.load %arg4[%c0, %c0_0, %c0_1] : memref<1x4x4xf32, #tpu.memory_space<vmem>>, vector<1x1x4xf32>
    %1 = vector.shape_cast %0 : vector<1x1x4xf32> to vector<1x4xf32>
    %c0_2 = arith.constant 0 : index
    %c1 = arith.constant 1 : index
    %c0_3 = arith.constant 0 : index
    %2 = vector.load %arg4[%c0_2, %c1, %c0_3] : memref<1x4x4xf32, #tpu.memory_space<vmem>>, vector<1x1x4xf32>
    %3 = vector.shape_cast %2 : vector<1x1x4xf32> to vector<1x4xf32>
    %c0_4 = arith.constant 0 : index
    %c2 = arith.constant 2 : index
    %c0_5 = arith.constant 0 : index
    %4 = vector.load %arg4[%c0_4, %c2, %c0_5] : memref<1x4x4xf32, #tpu.memory_space<vmem>>, vector<1x1x4xf32>
    %5 = vector.shape_cast %4 : vector<1x1x4xf32> to vector<1x4xf32>
    %c0_6 = arith.constant 0 : index
    %c3 = arith.constant 3 : index
    %c0_7 = arith.constant 0 : index
    %6 = vector.load %arg4[%c0_6, %c3, %c0_7] : memref<1x4x4xf32, #tpu.memory_space<vmem>>, vector<1x1x4xf32>
    %7 = vector.shape_cast %6 : vector<1x1x4xf32> to vector<1x4xf32>
    %c0_8 = arith.constant 0 : index
    %c0_9 = arith.constant 0 : index
    %c0_10 = arith.constant 0 : index
    %c0_11 = arith.constant 0 : index
    %8 = vector.load %arg2[%c0_8, %c0_9, %c0_10, %c0_11] : memref<1x4x256x4xbf16, #tpu.memory_space<vmem>>, vector<1x4x256x4xbf16>
    %9 = vector.shape_cast %8 : vector<1x4x256x4xbf16> to vector<4x256x4xbf16>
    %10 = arith.extf %9 : vector<4x256x4xbf16> to vector<4x256x4xf32>
    %11 = vector.shape_cast %1 : vector<1x4xf32> to vector<1x1x4xf32>
    %12 = vector.broadcast %11 : vector<1x1x4xf32> to vector<4x256x4xf32>
    %13 = arith.mulf %10, %12 : vector<4x256x4xf32>
    %14 = vector.shape_cast %3 : vector<1x4xf32> to vector<1x1x4xf32>
    %15 = vector.broadcast %14 : vector<1x1x4xf32> to vector<4x256x4xf32>
    %16 = arith.addf %13, %15 : vector<4x256x4xf32>
    %c0_12 = arith.constant 0 : index
    %c0_13 = arith.constant 0 : index
    %c0_14 = arith.constant 0 : index
    %c0_15 = arith.constant 0 : index
    %17 = vector.load %arg3[%c0_12, %c0_13, %c0_14, %c0_15] : memref<1x4x256x4xbf16, #tpu.memory_space<vmem>>, vector<1x4x256x4xbf16>
    %18 = vector.shape_cast %17 : vector<1x4x256x4xbf16> to vector<4x256x4xbf16>
    %19 = arith.extf %18 : vector<4x256x4xbf16> to vector<4x256x4xf32>
    %20 = vector.shape_cast %5 : vector<1x4xf32> to vector<1x1x4xf32>
    %21 = vector.broadcast %20 : vector<1x1x4xf32> to vector<4x256x4xf32>
    %22 = arith.mulf %19, %21 : vector<4x256x4xf32>
    %23 = vector.shape_cast %7 : vector<1x4xf32> to vector<1x1x4xf32>
    %24 = vector.broadcast %23 : vector<1x1x4xf32> to vector<4x256x4xf32>
    %25 = arith.addf %22, %24 : vector<4x256x4xf32>
    %26 = arith.negf %25 : vector<4x256x4xf32>
    %27 = math.exp %26 : vector<4x256x4xf32>
    %cst = arith.constant 1.000000e+00 : f32
    %28 = vector.broadcast %cst : f32 to vector<4x256x4xf32>
    %29 = arith.addf %28, %27 : vector<4x256x4xf32>
    %30 = arith.divf %28, %29 : vector<4x256x4xf32>
    %31 = arith.mulf %16, %30 : vector<4x256x4xf32>
    %32 = arith.truncf %31 : vector<4x256x4xf32> to vector<4x256x4xbf16>
    %c0_16 = arith.constant 0 : index
    %c0_17 = arith.constant 0 : index
    %c0_18 = arith.constant 0 : index
    %c0_19 = arith.constant 0 : index
    %33 = vector.load %arg5[%c0_16, %c0_17, %c0_18, %c0_19] : memref<1x4x256x4xbf16, #tpu.memory_space<vmem>>, vector<1x4x256x4xbf16>
    %34 = vector.shape_cast %33 : vector<1x4x256x4xbf16> to vector<4x256x4xbf16>
    %35 = vector.shape_cast %32 : vector<4x256x4xbf16> to vector<1x4x256x4xbf16>
    tpu.vector_store %arg5[%c0_16, %c0_17, %c0_18, %c0_19], %35 {strides = array<i32>} : memref<1x4x256x4xbf16, #tpu.memory_space<vmem>>, vector<1x4x256x4xbf16>,
    return
  }
  func.func @transform_0(%arg0: i32, %arg1: i32) -> (i32, i32, i32, i32) {
    %c0_i32 = arith.constant 0 : i32
    %c0_i32_0 = arith.constant 0 : i32
    %c0_i32_1 = arith.constant 0 : i32
    return %arg0, %c0_i32, %arg1, %c0_i32_0 : i32, i32, i32, i32
  }
  func.func @transform_1(%arg0: i32, %arg1: i32) -> (i32, i32, i32, i32) {
    %c0_i32 = arith.constant 0 : i32
    %c0_i32_0 = arith.constant 0 : i32
    %c0_i32_1 = arith.constant 0 : i32
    return %arg0, %c0_i32, %arg1, %c0_i32_0 : i32, i32, i32, i32
  }
  func.func @transform_2(%arg0: i32, %arg1: i32) -> (i32, i32, i32) {
    %c0_i32 = arith.constant 0 : i32
    %c0_i32_0 = arith.constant 0 : i32
    %c0_i32_1 = arith.constant 0 : i32
    return %arg0, %c0_i32, %c0_i32_0 : i32, i32, i32
  }
  func.func @transform_3(%arg0: i32, %arg1: i32) -> (i32, i32, i32, i32) {
    %c0_i32 = arith.constant 0 : i32
    %c0_i32_0 = arith.constant 0 : i32
    %c0_i32_1 = arith.constant 0 : i32
    return %arg0, %c0_i32, %arg1, %c0_i32_0 : i32, i32, i32, i32
  }
}

</mosaic_0001>

<bundles_post_ra>
// kernel: upblock_smallcond_forward.3
= control target key start
LH: loop header
LB: loop body
LE: loop exit
PB: predicated region body
PF: predicated region fallthrough
CT: control target
= control target key end

     0   :  { %s4596_s12 = smov 0   ;;  %s4598_s13 = smov 0   ;;  %s5705_s0 = inlined_call_operand.vmem [shape: bf16[2,4,256,4], index: 0, kind: input, shape index: {}]   ;;  %s5706_s1 = inlined_call_operand.vmem [shape: bf16[2,4,256,4], index: 1, kind: input, shape index: {}]   ;;  %s5707_s2 = inlined_call_operand.vmem [shape: f32[2,4,4], index: 2, kind: input, shape index: {}]   ;;  %s5708_s3 = inlined_call_operand.vmem [shape: bf16[2,4,256,4], index: 3, kind: output, shape index: {}]  }
   0x1   :  { %s4600_s14 = smov 0  }
   0x2 LB: > { %s25_s15 = sadd.s32 1, %s4570_s13  ;;  %p2965_p0 = scmp.ge.s32.totalorder %s4574_s14, 1  ;;  %s4574_s14 = sphi %s4600_s14, %s13_s14   ;;  %s4570_s13 = sphi %s4598_s13, %s5710_s13   ;;  %s4566_s12 = sphi %s4596_s12, %s5709_s12  }
   0x3   : > { %p27_p1 = scmp.ge.s32.totalorder %s25_s15, 2  ;;  %p184_p2 = scmp.lt.s32.totalorder %s4574_s14, 3 }
   0x5   : > { %s5712_s15 = smov (%p27_p1, %s25_s15), 0  ;;  %p185_p3 = pnand %p2965_p0, %p184_p2 }
   0x6   : > { %p230_p4 = scmp.lt.s32.totalorder (!%p185_p3), %s4566_s12, 1  ;;  %vm2715_vm0 = vcmask (!%p185_p3), 27648  }
   0x7   : > { %188 = sbr.rel (%p185_p3) target bundleno = 421 (0x1a5), region = 32 }
   0xe   : > { %s5714_s12 = smov (!%p230_p4, %s4566_s12), 1 }
   0xf   : > { %s4614_s16 = sshll.u32 %s5714_s12, 9  ;;  %s2970_s17 = sshll.u32 %s5714_s12, 2 }
  0x10   : > { %s4620_s20 = scalar_lea.vmem %s5706_s1, %s4614_s16  ;;  %s4625_s23 = scalar_lea.vmem %s5707_s2, %s2970_s17 }
  0x11   : > { %v3623_v0 = vld [vmem:[%s4620_s20] sm:$0xff]   ;;  %v3941_v5 = vld [vmem:[%s4620_s20 + $0x8] sm:$0xff]   ;;  %s4639_s26 = scalar_lea.vmem %s5705_s0, %s4614_s16  ;;  %v3942_v10 = vld [vmem:[%s4620_s20 + $0x10] sm:$0xff]   ;;  %s4722_s29 = scalar_lea.vmem %s5708_s3, %s4614_s16 }
  0x12   : > { %v4629_v1 = vld [vmem:[%s4625_s23 + $0x2] ss:$0 sm:$0xff]  ;;  %v3624_v2 = vunpack.c.l.bf16 %v3623_v0  ;;  %v3625_v3 = vunpack.c.h.bf16 %v3623_v0  ;;  %v4632_v4 = vld [vmem:[%s4625_s23 + $0x3] ss:$0 sm:$0xff]  ;;  %v3628_v8 = vunpack.c.l.bf16 %v3941_v5  ;;  %v3629_v9 = vunpack.c.h.bf16 %v3941_v5  ;;  %v3878_v19 = vld [vmem:[%s4639_s26 + $0x8] sm:$0xff]  }
  0x13   : > { %v3367_v13 = vld [vmem:[%s4639_s26] sm:$0xff]   ;;  %v3632_v18 = vunpack.c.l.bf16 %v3942_v10  ;;  %v3633_v22 = vunpack.c.h.bf16 %v3942_v10  ;;  %v3943_v25 = vld [vmem:[%s4620_s20 + $0x18] sm:$0xff]   ;;  %v3372_v30 = vunpack.c.l.bf16 %v3878_v19  ;;  %v3373_v33 = vunpack.c.h.bf16 %v3878_v19  ;;  %v3879_v40 = vld [vmem:[%s4639_s26 + $0x10] sm:$0xff]  }
  0x14   : > { %v1047_v6 = vmul.f32 %v3624_v2, %v4629_v1  ;;  %v1048_v7 = vmul.f32 %v3625_v3, %v4629_v1  ;;  %v1049_v14 = vmul.f32 %v3628_v8, %v4629_v1  ;;  %v1050_v15 = vmul.f32 %v3629_v9, %v4629_v1  ;;  %v4655_v29 = vld [vmem:[%s4625_s23] ss:$0 sm:$0xff]  ;;  %v4666_v43 = vld [vmem:[%s4625_s23 + $0x1] ss:$0 sm:$0xff]  ;;  %v3945_v50 = vld [vmem:[%s4620_s20 + $0x28] sm:$0xff]  }
  0x15   : > { %v3368_v23 = vunpack.c.l.bf16 %v3367_v13  ;;  %v1051_v24 = vmul.f32 %v3632_v18, %v4629_v1  ;;  %v3369_v26 = vunpack.c.h.bf16 %v3367_v13  ;;  %v1052_v32 = vmul.f32 %v3633_v22, %v4629_v1  ;;  %v3944_v35 = vld [vmem:[%s4620_s20 + $0x20] sm:$0xff]   ;;  %v3880_v60 = vld [vmem:[%s4639_s26 + $0x18] sm:$0xff]  }
  0x16   : > { %v1179_v11 = vadd.f32 %v4632_v4, %v1047_v6  ;;  %v1180_v12 = vadd.f32 %v4632_v4, %v1048_v7  ;;  %v1181_v20 = vadd.f32 %v4632_v4, %v1049_v14  ;;  %v1182_v21 = vadd.f32 %v4632_v4, %v1050_v15  ;;  %v3946_v14 = vld [vmem:[%s4620_s20 + $0x30] sm:$0xff]  }
  0x17   : > { %v1183_v31 = vadd.f32 %v4632_v4, %v1051_v24  ;;  %v3636_v34 = vunpack.c.l.bf16 %v3943_v25  ;;  %v1184_v37 = vadd.f32 %v4632_v4, %v1052_v32  ;;  %v527_v38 = vmul.f32 %v3368_v23, %v4655_v29 }
  0x18   : > { %v2977_v16 = vmul.f32 -1.442695, %v1179_v11  ;;  %v2978_v17 = vmul.f32 -1.442695, %v1180_v12  ;;  %v2979_v27 = vmul.f32 -1.442695, %v1181_v20  ;;  %v528_v39 = vmul.f32 %v3369_v26, %v4655_v29 }
  0x19   : > { %v2980_v28 = vmul.f32 -1.442695, %v1182_v21  ;;  %v2981_v36 = vmul.f32 -1.442695, %v1183_v31  ;;  %v1053_v41 = vmul.f32 %v3636_v34, %v4629_v1  ;;  %v3637_v42 = vunpack.c.h.bf16 %v3943_v25 }
  0x1a   : > { %4028 = vpow2.f32 %v2977_v16  ;;  %v529_v44 = vmul.f32 %v3372_v30, %v4655_v29  ;;  %v2982_v45 = vmul.f32 -1.442695, %v1184_v37  ;;  %v3640_v46 = vunpack.c.l.bf16 %v3944_v35 }
  0x1b   : > { %4030 = vpow2.f32 %v2978_v17  ;;  %v530_v47 = vmul.f32 %v3373_v33, %v4655_v29  ;;  %v1185_v48 = vadd.f32 %v4632_v4, %v1053_v41  ;;  %v1054_v49 = vmul.f32 %v3637_v42, %v4629_v1 }
  0x1c   : > { %4032 = vpow2.f32 %v2979_v27  ;;  %v3376_v51 = vunpack.c.l.bf16 %v3879_v40  ;;  %v1055_v52 = vmul.f32 %v3640_v46, %v4629_v1  ;;  %v3641_v53 = vunpack.c.h.bf16 %v3944_v35  ;;  %v3947_v35 = vld [vmem:[%s4620_s20 + $0x38] sm:$0xff]  }
  0x1d   : > { %4034 = vpow2.f32 %v2980_v28  ;;  %v4675_v54 = vadd.f32 %v4666_v43, %v527_v38  ;;  %v4678_v55 = vadd.f32 %v4666_v43, %v528_v39  ;;  %v2983_v56 = vmul.f32 -1.442695, %v1185_v48  ;;  %v3881_v28 = vld [vmem:[%s4639_s26 + $0x20] sm:$0xff]  }
  0x1e   : > { %4036 = vpow2.f32 %v2981_v36  ;;  %v1186_v57 = vadd.f32 %v4632_v4, %v1054_v49  ;;  %v4682_v59 = vadd.f32 %v4666_v43, %v529_v44  ;;  %v1187_v61 = vadd.f32 %v4632_v4, %v1055_v52 }
  0x1f   : > { %4038 = vpow2.f32 %v2982_v45  ;;  %v1056_v62 = vmul.f32 %v3641_v53, %v4629_v1  ;;  %v3644_v63 = vunpack.c.l.bf16 %v3945_v50  ;;  %v3377_v3 = vunpack.c.h.bf16 %v3879_v40 }
  0x20   : > { %4040 = vpow2.f32 %v2983_v56  ;;  %v2984_v5 = vmul.f32 -1.442695, %v1186_v57  ;;  %v531_v7 = vmul.f32 %v3376_v51, %v4655_v29  ;;  %v4691_v11 = vadd.f32 %v4666_v43, %v530_v47 }
  0x21   : > { %v1188_v8 = vadd.f32 %v4632_v4, %v1056_v62  ;;  %v1057_v9 = vmul.f32 %v3644_v63, %v4629_v1  ;;  %v3380_v12 = vunpack.c.l.bf16 %v3880_v60  ;;  %v3645_v13 = vunpack.c.h.bf16 %v3945_v50 }
  0x22   : > { %v2985_v17 = vmul.f32 -1.442695, %v1187_v61  ;;  %v532_v20 = vmul.f32 %v3377_v3, %v4655_v29  ;;  %v4698_v23 = vadd.f32 %v4666_v43, %v531_v7  ;;  %v3648_v25 = vunpack.c.l.bf16 %v3946_v14 }
  0x23   : > { %v1189_v18 = vadd.f32 %v4632_v4, %v1057_v9  ;;  %v1058_v21 = vmul.f32 %v3645_v13, %v4629_v1  ;;  %v2986_v24 = vmul.f32 -1.442695, %v1188_v8  ;;  %v3381_v27 = vunpack.c.h.bf16 %v3880_v60 }
  0x24   : > { %v4029_v58 = vpop.eup %4028  ;;  %v533_v32 = vmul.f32 %v3380_v12, %v4655_v29  ;;  %v1059_v34 = vmul.f32 %v3648_v25, %v4629_v1  ;;  %v3649_v38 = vunpack.c.h.bf16 %v3946_v14  ;;  %v4706_v39 = vadd.f32 %v4666_v43, %v532_v20  ;;  %v3948_v12 = vld [vmem:[%s4620_s20 + $0x40] sm:$0xff]  }
  0x25   : > { %v4031_v0 = vpop.eup %4030  ;;  %v1691_v2 = vadd.f32 1.0, %v4029_v58  ;;  %v1190_v30 = vadd.f32 %v4632_v4, %v1058_v21  ;;  %v2987_v33 = vmul.f32 -1.442695, %v1189_v18  ;;  %v3384_v40 = vunpack.c.l.bf16 %v3881_v28 }
  0x26   : > { %v1692_v6 = vadd.f32 1.0, %v4031_v0  ;;  %v4033_v10 = vpop.eup %4032  ;;  %v1191_v41 = vadd.f32 %v4632_v4, %v1059_v34  ;;  %v534_v44 = vmul.f32 %v3381_v27, %v4655_v29  ;;  %v1060_v45 = vmul.f32 %v3649_v38, %v4629_v1 }
  0x27   : > { %4042 = vrcp.f32 %v1691_v2  ;;  %v4035_v15 = vpop.eup %4034  ;;  %v1693_v16 = vadd.f32 1.0, %v4033_v10  ;;  %v2988_v37 = vmul.f32 -1.442695, %v1190_v30  ;;  %v3652_v46 = vunpack.c.l.bf16 %v3947_v35 }
  0x28   : > { %4044 = vrcp.f32 %v1692_v6  ;;  %v1694_v19 = vadd.f32 1.0, %v4035_v15  ;;  %v4037_v22 = vpop.eup %4036  ;;  %v3385_v48 = vunpack.c.h.bf16 %v3881_v28  ;;  %v2989_v49 = vmul.f32 -1.442695, %v1191_v41  ;;  %v4730_v6 = vld [vmem:[%s4639_s26 + $0x28] sm:$0xff]  }
  0x29   : > { %4046 = vpow2.f32 %v2984_v5  ;;  %v1695_v26 = vadd.f32 1.0, %v4037_v22  ;;  %v4039_v31 = vpop.eup %4038  ;;  %v4712_v51 = vadd.f32 %v4666_v43, %v533_v32  ;;  %v1192_v52 = vadd.f32 %v4632_v4, %v1060_v45 }
  0x2a   : > { %4048 = vrcp.f32 %v1693_v16  ;;  %v1696_v36 = vadd.f32 1.0, %v4039_v31  ;;  %v4041_v42 = vpop.eup %4040  ;;  %v1061_v53 = vmul.f32 %v3652_v46, %v4629_v1  ;;  %v535_v58 = vmul.f32 %v3384_v40, %v4655_v29 }
  0x2b   : > { %4050 = vrcp.f32 %v1694_v19  ;;  %v1697_v47 = vadd.f32 1.0, %v4041_v42  ;;  %v3653_v60 = vunpack.c.h.bf16 %v3947_v35  ;;  %v4726_v63 = vadd.f32 %v4666_v43, %v534_v44 }
  0x2c   : > { %4052 = vpow2.f32 %v2985_v17  ;;  %v2990_v0 = vmul.f32 -1.442695, %v1192_v52  ;;  %v536_v5 = vmul.f32 %v3385_v48, %v4655_v29  ;;  %v1193_v7 = vadd.f32 %v4632_v4, %v1061_v53  ;;  %v4765_v48 = vld [vmem:[%s4639_s26 + $0x38] sm:$0xff]  }
  0x2d   : > { %4054 = vrcp.f32 %v1695_v26  ;;  %v1062_v10 = vmul.f32 %v3653_v60, %v4629_v1  ;;  %v4740_v15 = vadd.f32 %v4666_v43, %v535_v58  ;;  %v3388_v19 = vunpack.c.l.bf16 %v4730_v6 }
  0x2e   : > { %4056 = vpow2.f32 %v2986_v24  ;;  %v2991_v16 = vmul.f32 -1.442695, %v1193_v7  ;;  %v3883_v24 = vld [vmem:[%s4639_s26 + $0x30] sm:$0xff]   ;;  %v3656_v25 = vunpack.c.l.bf16 %v3948_v12  ;;  %v4751_v27 = vadd.f32 %v4666_v43, %v536_v5 }
  0x2f   : > { %4058 = vrcp.f32 %v1696_v36  ;;  %v1194_v20 = vadd.f32 %v4632_v4, %v1062_v10  ;;  %v3657_v38 = vunpack.c.h.bf16 %v3948_v12  ;;  %v3393_v52 = vunpack.c.h.bf16 %v3883_v24 }
  0x30   : > { %4060 = vpow2.f32 %v2987_v33  ;;  %v3389_v33 = vunpack.c.h.bf16 %v4730_v6  ;;  %v1063_v34 = vmul.f32 %v3656_v25, %v4629_v1  ;;  %v3397_v25 = vunpack.c.h.bf16 %v4765_v48 }
  0x31   : > { %v4043_v50 = vpop.eup %4042  ;;  %4062 = vpow2.f32 %v2988_v37  ;;  %v2992_v30 = vmul.f32 -1.442695, %v1194_v20  ;;  %v3392_v37 = vunpack.c.l.bf16 %v3883_v24  ;;  %v3885_v20 = vld [vmem:[%s4639_s26 + $0x40] sm:$0xff]  }
  0x32   : > { %v4045_v56 = vpop.eup %4044  ;;  %v2075_v57 = vmul.f32 %v4043_v50, %v4675_v54  ;;  %4064 = vrcp.f32 %v1697_v47  ;;  %v1195_v44 = vadd.f32 %v4632_v4, %v1063_v34  ;;  %v537_v47 = vmul.f32 %v3388_v19, %v4655_v29 }
  0x33   : > { %v4047_v61 = vpop.eup %4046  ;;  %v2076_v62 = vmul.f32 %v4045_v56, %v4678_v55  ;;  %4066 = vpow2.f32 %v2989_v49  ;;  %v1064_v49 = vmul.f32 %v3657_v38, %v4629_v1  ;;  %v538_v58 = vmul.f32 %v3389_v33, %v4655_v29 }
  0x34   : > { %v4049_v54 = vpop.eup %4048  ;;  %v3238_v2 = vpack.c.bf16 %v2075_v57, %v2075_v57  ;;  %v1698_v3 = vadd.f32 1.0, %v4047_v61  ;;  %4068 = vpow2.f32 %v2990_v0  ;;  %v2993_v53 = vmul.f32 -1.442695, %v1195_v44 }
  0x35   : > { %v4051_v8 = vpop.eup %4050  ;;  %v3239_v9 = vpack.c.bf16 %v2076_v62, %v2076_v62  ;;  %v2077_v55 = vmul.f32 %v4049_v54, %v4682_v59  ;;  %v539_v62 = vmul.f32 %v3392_v37, %v4655_v29  ;;  %v3396_v54 = vunpack.c.l.bf16 %v4765_v48  ;;  %v4804_v48 = vld [vmem:[%s4639_s26 + $0x48] sm:$0xff]  }
  0x36   : > { %v4053_v13 = vpop.eup %4052  ;;  %2716 = vst.msk [vmem:[%s4722_s29] sm:$0xf] %vm2715_vm0, %v3238_v2  ;;  %v2078_v14 = vmul.f32 %v4051_v8, %v4691_v11  ;;  %4070 = vrcp.f32 %v1698_v3  ;;  %v669_v7 = vadd.f32 %v4666_v43, %v537_v47  ;;  %v540_v8 = vmul.f32 %v3393_v52, %v4655_v29 }
  0x37   : > { %v4055_v17 = vpop.eup %4054  ;;  %2717 = vst.msk [vmem:[%s4722_s29 + $0x4] sm:$0xf] %vm2715_vm0, %v3239_v9  ;;  %v3240_v59 = vpack.c.bf16 %v2077_v55, %v2077_v55  ;;  %v1699_v18 = vadd.f32 1.0, %v4053_v13  ;;  %4072 = vpow2.f32 %v2991_v16  ;;  %v3950_v55 = vld [vmem:[%s4620_s20 + $0x50] sm:$0xff]   ;;  %v670_v16 = vadd.f32 %v4666_v43, %v538_v58 }
  0x38   : > { %v4057_v21 = vpop.eup %4056  ;;  %v3241_v22 = vpack.c.bf16 %v2078_v14, %v2078_v14  ;;  %v2079_v11 = vmul.f32 %v4055_v17, %v4698_v23  ;;  %v671_v17 = vadd.f32 %v4666_v43, %v539_v62  ;;  %v541_v19 = vmul.f32 %v3396_v54, %v4655_v29 }
  0x39   : > { %v4059_v26 = vpop.eup %4058  ;;  %2718 = vst.msk [vmem:[%s4722_s29 + $0x8] sm:$0xf] %vm2715_vm0, %v3240_v59  ;;  %4074 = vrcp.f32 %v1699_v18  ;;  %v1700_v28 = vadd.f32 1.0, %v4057_v21  ;;  %v542_v44 = vmul.f32 %v3397_v25, %v4655_v29  ;;  %v3404_v54 = vunpack.c.l.bf16 %v4804_v48 }
  0x3a   : > { %v4061_v31 = vpop.eup %4060  ;;  %2719 = vst.msk [vmem:[%s4722_s29 + $0xc] sm:$0xf] %vm2715_vm0, %v3241_v22  ;;  %v3242_v32 = vpack.c.bf16 %v2079_v11, %v2079_v11  ;;  %v2080_v23 = vmul.f32 %v4059_v26, %v4706_v39  ;;  %v3949_v39 = vld [vmem:[%s4620_s20 + $0x48] sm:$0xff]   ;;  %v3664_v22 = vunpack.c.l.bf16 %v3950_v55  ;;  %v673_v38 = vadd.f32 %v4666_v43, %v541_v19 }
  0x3b   : > { %v4063_v35 = vpop.eup %4062  ;;  %4076 = vrcp.f32 %v1700_v28  ;;  %v1701_v36 = vadd.f32 1.0, %v4061_v31  ;;  %v3660_v60 = vunpack.c.l.bf16 %v3949_v39  ;;  %v3661_v9 = vunpack.c.h.bf16 %v3949_v39 }
  0x3c   : > { %v4065_v40 = vpop.eup %4064  ;;  %2720 = vst.msk [vmem:[%s4722_s29 + $0x10] sm:$0xf] %vm2715_vm0, %v3242_v32  ;;  %v3243_v41 = vpack.c.bf16 %v2080_v23, %v2080_v23  ;;  %v1702_v42 = vadd.f32 1.0, %v4063_v35  ;;  %4078 = vpow2.f32 %v2992_v30  ;;  %v672_v30 = vadd.f32 %v4666_v43, %v540_v8 }
  0x3d   : > { %v4067_v45 = vpop.eup %4066  ;;  %v2081_v46 = vmul.f32 %v4065_v40, %v4712_v51  ;;  %4080 = vrcp.f32 %v1701_v36  ;;  %v1196_v51 = vadd.f32 %v4632_v4, %v1064_v49  ;;  %v1065_v5 = vmul.f32 %v3660_v60, %v4629_v1  ;;  %v3951_v36 = vld [vmem:[%s4620_s20 + $0x58] sm:$0xff]  }
  0x3e   : > { %2721 = vst.msk [vmem:[%s4722_s29 + $0x14] sm:$0xf] %vm2715_vm0, %v3243_v41  ;;  %4082 = vrcp.f32 %v1702_v42  ;;  %v1703_v50 = vadd.f32 1.0, %v4067_v45  ;;  %v4069_v56 = vpop.eup %4068  ;;  %v1066_v59 = vmul.f32 %v3661_v9, %v4629_v1  ;;  %v1067_v32 = vmul.f32 %v3664_v22, %v4629_v1 }
  0x3f   : > { %v3244_v57 = vpack.c.bf16 %v2081_v46, %v2081_v46  ;;  %v1704_v0 = vadd.f32 1.0, %v4069_v56  ;;  %v2994_v3 = vmul.f32 -1.442695, %v1196_v51  ;;  %v3400_v35 = vunpack.c.l.bf16 %v3885_v20 }
  0x40   : > { %v4071_v61 = vpop.eup %4070  ;;  %4084 = vrcp.f32 %v1703_v50  ;;  %v1198_v26 = vadd.f32 %v4632_v4, %v1066_v59  ;;  %v1199_v40 = vadd.f32 %v4632_v4, %v1067_v32  ;;  %v3665_v39 = vunpack.c.h.bf16 %v3950_v55 }
  0x41   : > { %2722 = vst.msk [vmem:[%s4722_s29 + $0x18] sm:$0xf] %vm2715_vm0, %v3244_v57  ;;  %v2082_v2 = vmul.f32 %v4071_v61, %v4726_v63  ;;  %4086 = vpow2.f32 %v2993_v53  ;;  %v4073_v6 = vpop.eup %4072  ;;  %v1197_v63 = vadd.f32 %v4632_v4, %v1065_v5  ;;  %v3668_v50 = vunpack.c.l.bf16 %v3951_v36 }
  0x42   : > { %4088 = vrcp.f32 %v1704_v0  ;;  %v1705_v13 = vadd.f32 1.0, %v4073_v6  ;;  %v2997_v49 = vmul.f32 -1.442695, %v1199_v40  ;;  %v543_v53 = vmul.f32 %v3400_v35, %v4655_v29 }
  0x43   : > { %v4075_v10 = vpop.eup %4074  ;;  %v3245_v12 = vpack.c.bf16 %v2082_v2, %v2082_v2  ;;  %4090 = vpow2.f32 %v2994_v3  ;;  %v2995_v21 = vmul.f32 -1.442695, %v1197_v63  ;;  %v3401_v57 = vunpack.c.h.bf16 %v3885_v20  ;;  %v3952_v3 = vld [vmem:[%s4620_s20 + $0x60] sm:$0xff]   ;;  %v3887_v20 = vld [vmem:[%s4639_s26 + $0x50] sm:$0xff]  }
  0x44   : > { %v2083_v14 = vmul.f32 %v4075_v10, %v4740_v15  ;;  %4092 = vrcp.f32 %v1705_v13  ;;  %v1068_v58 = vmul.f32 %v3665_v39, %v4629_v1  ;;  %v1069_v62 = vmul.f32 %v3668_v50, %v4629_v1  ;;  %v3954_v50 = vld [vmem:[%s4620_s20 + $0x70] sm:$0xff]  }
  0x45   : > { %v4077_v18 = vpop.eup %4076  ;;  %2723 = vst.msk [vmem:[%s4722_s29 + $0x1c] sm:$0xf] %vm2715_vm0, %v3245_v12  ;;  %4094 = vpow2.f32 %v2995_v21  ;;  %v3669_v9 = vunpack.c.h.bf16 %v3951_v36  ;;  %v544_v10 = vmul.f32 %v3401_v57, %v4655_v29  ;;  %v675_v63 = vadd.f32 %v4666_v43, %v543_v53 }
  0x46   : > { %v4079_v11 = vpop.eup %4078  ;;  %v3246_v24 = vpack.c.bf16 %v2083_v14, %v2083_v14  ;;  %v2084_v15 = vmul.f32 %v4077_v18, %v4751_v27  ;;  %v2996_v27 = vmul.f32 -1.442695, %v1198_v26  ;;  %v1200_v2 = vadd.f32 %v4632_v4, %v1068_v58 }
  0x47   : > { %v4081_v28 = vpop.eup %4080  ;;  %v1706_v31 = vadd.f32 1.0, %v4079_v11  ;;  %v1201_v8 = vadd.f32 %v4632_v4, %v1069_v62  ;;  %v545_v18 = vmul.f32 %v3404_v54, %v4655_v29  ;;  %v3405_v22 = vunpack.c.h.bf16 %v4804_v48 }
  0x48   : > { %v4083_v23 = vpop.eup %4082  ;;  %2724 = vst.msk [vmem:[%s4722_s29 + $0x20] sm:$0xf] %vm2715_vm0, %v3246_v24  ;;  %v3247_v33 = vpack.c.bf16 %v2084_v15, %v2084_v15  ;;  %v2085_v34 = vmul.f32 %v4081_v28, %v669_v7  ;;  %v674_v7 = vadd.f32 %v4666_v43, %v542_v44  ;;  %v2998_v12 = vmul.f32 -1.442695, %v1200_v2  ;;  %v3953_v15 = vld [vmem:[%s4620_s20 + $0x68] sm:$0xff]  }
  0x49   : > { %v2086_v37 = vmul.f32 %v4083_v23, %v670_v16  ;;  %4096 = vrcp.f32 %v1706_v31  ;;  %v2999_v14 = vmul.f32 -1.442695, %v1201_v8  ;;  %v1070_v16 = vmul.f32 %v3669_v9, %v4629_v1  ;;  %v4835_v23 = vld [vmem:[%s4639_s26 + $0x58] sm:$0xff]  }
  0x4a   : > { %v4085_v41 = vpop.eup %4084  ;;  %2725 = vst.msk [vmem:[%s4722_s29 + $0x24] sm:$0xf] %vm2715_vm0, %v3247_v33  ;;  %v3248_v42 = vpack.c.bf16 %v2085_v34, %v2085_v34  ;;  %4098 = vpow2.f32 %v2996_v27  ;;  %v676_v28 = vadd.f32 %v4666_v43, %v544_v10  ;;  %v3408_v32 = vunpack.c.l.bf16 %v3887_v20 }
  0x4b   : > { %v4087_v45 = vpop.eup %4086  ;;  %v3249_v46 = vpack.c.bf16 %v2086_v37, %v2086_v37  ;;  %v2087_v47 = vmul.f32 %v4085_v41, %v671_v17  ;;  %4100 = vpow2.f32 %v2997_v49  ;;  %v3672_v17 = vunpack.c.l.bf16 %v3952_v3 }
  0x4c   : > { %v4089_v52 = vpop.eup %4088  ;;  %2726 = vst.msk [vmem:[%s4722_s29 + $0x28] sm:$0xf] %vm2715_vm0, %v3248_v42  ;;  %v1707_v56 = vadd.f32 1.0, %v4087_v45  ;;  %v1202_v11 = vadd.f32 %v4632_v4, %v1070_v16  ;;  %v3409_v27 = vunpack.c.h.bf16 %v3887_v20  ;;  %v3676_v37 = vunpack.c.l.bf16 %v3953_v15  ;;  %v3955_v20 = vld [vmem:[%s4620_s20 + $0x78] sm:$0xff]  }
  0x4d   : > { %v4091_v51 = vpop.eup %4090  ;;  %2727 = vst.msk [vmem:[%s4722_s29 + $0x2c] sm:$0xf] %vm2715_vm0, %v3249_v46  ;;  %v3250_v60 = vpack.c.bf16 %v2087_v47, %v2087_v47  ;;  %v2088_v61 = vmul.f32 %v4089_v52, %v672_v30  ;;  %v1071_v24 = vmul.f32 %v3672_v17, %v4629_v1  ;;  %v3673_v30 = vunpack.c.h.bf16 %v3952_v3 }
  0x4e   : > { %4102 = vrcp.f32 %v1707_v56  ;;  %v1708_v0 = vadd.f32 1.0, %v4091_v51  ;;  %v4093_v5 = vpop.eup %4092  ;;  %v3000_v33 = vmul.f32 -1.442695, %v1202_v11  ;;  %v677_v40 = vadd.f32 %v4666_v43, %v545_v18 }
  0x4f   : > { %2728 = vst.msk [vmem:[%s4722_s29 + $0x30] sm:$0xf] %vm2715_vm0, %v3250_v60  ;;  %v3251_v6 = vpack.c.bf16 %v2088_v61, %v2088_v61  ;;  %v2089_v55 = vmul.f32 %v4093_v5, %v673_v38  ;;  %v4095_v13 = vpop.eup %4094  ;;  %v1203_v34 = vadd.f32 %v4632_v4, %v1071_v24  ;;  %v1072_v36 = vmul.f32 %v3673_v30, %v4629_v1  ;;  %v3890_v24 = vld [vmem:[%s4639_s26 + $0x68] sm:$0xff]  }
  0x50   : > { %4104 = vrcp.f32 %v1708_v0  ;;  %v1709_v19 = vadd.f32 1.0, %v4095_v13  ;;  %v546_v41 = vmul.f32 %v3405_v22, %v4655_v29  ;;  %v3412_v45 = vunpack.c.l.bf16 %v4835_v23 }
  0x51   : > { %2729 = vst.msk [vmem:[%s4722_s29 + $0x34] sm:$0xf] %vm2715_vm0, %v3251_v6  ;;  %v3252_v59 = vpack.c.bf16 %v2089_v55, %v2089_v55  ;;  %4106 = vpow2.f32 %v2998_v12  ;;  %v3001_v42 = vmul.f32 -1.442695, %v1203_v34  ;;  %v1204_v46 = vadd.f32 %v4632_v4, %v1072_v36  ;;  %v3889_v12 = vld [vmem:[%s4639_s26 + $0x60] sm:$0xff]  }
  0x52   : > { %4108 = vpow2.f32 %v2999_v14  ;;  %v547_v48 = vmul.f32 %v3408_v32, %v4655_v29  ;;  %v1073_v49 = vmul.f32 %v3676_v37, %v4629_v1  ;;  %v548_v53 = vmul.f32 %v3409_v27, %v4655_v29 }
  0x53   : > { %v4097_v21 = vpop.eup %4096  ;;  %2730 = vst.msk [vmem:[%s4722_s29 + $0x38] sm:$0xf] %vm2715_vm0, %v3252_v59  ;;  %4110 = vrcp.f32 %v1709_v19  ;;  %v3002_v56 = vmul.f32 -1.442695, %v1204_v46  ;;  %v3677_v57 = vunpack.c.h.bf16 %v3953_v15  ;;  %v678_v60 = vadd.f32 %v4666_v43, %v546_v41 }
  0x54   : > { %v4099_v25 = vpop.eup %4098  ;;  %v2090_v26 = vmul.f32 %v4097_v21, %v674_v7  ;;  %v1205_v61 = vadd.f32 %v4632_v4, %v1073_v49  ;;  %v549_v0 = vmul.f32 %v3412_v45, %v4655_v29  ;;  %v3680_v2 = vunpack.c.l.bf16 %v3954_v50 }
  0x55   : > { %v1710_v31 = vadd.f32 1.0, %v4099_v25  ;;  %v4101_v38 = vpop.eup %4100  ;;  %v1074_v54 = vmul.f32 %v3677_v57, %v4629_v1  ;;  %v679_v6 = vadd.f32 %v4666_v43, %v547_v48  ;;  %v4857_v55 = vadd.f32 %v4666_v43, %v548_v53 }
  0x56   : > { %v3253_v35 = vpack.c.bf16 %v2090_v26, %v2090_v26  ;;  %v1711_v39 = vadd.f32 1.0, %v4101_v38  ;;  %v3003_v8 = vmul.f32 -1.442695, %v1205_v61  ;;  %v3413_v16 = vunpack.c.h.bf16 %v4835_v23 }
  0x57   : > { %4112 = vrcp.f32 %v1710_v31  ;;  %v1206_v13 = vadd.f32 %v4632_v4, %v1074_v54  ;;  %v3681_v17 = vunpack.c.h.bf16 %v3954_v50  ;;  %v681_v59 = vadd.f32 %v4666_v43, %v549_v0 }
  0x58   : > { %v4103_v44 = vpop.eup %4102  ;;  %2731 = vst.msk [vmem:[%s4722_s29 + $0x3c] sm:$0xf] %vm2715_vm0, %v3253_v35  ;;  %4114 = vpow2.f32 %v3000_v33  ;;  %v3416_v11 = vunpack.c.l.bf16 %v3889_v12  ;;  %v550_v32 = vmul.f32 %v3413_v16, %v4655_v29  ;;  %v3684_v34 = vunpack.c.l.bf16 %v3955_v20 }
  0x59   : > { %v2091_v47 = vmul.f32 %v4103_v44, %v675_v63  ;;  %4116 = vpow2.f32 %v3001_v42  ;;  %v1075_v63 = vmul.f32 %v3680_v2, %v4629_v1  ;;  %v3004_v18 = vmul.f32 -1.442695, %v1206_v13  ;;  %v3956_v42 = vld [vmem:[%s4620_s20 + $0x80] sm:$0xff]  }
  0x5a   : > { %v4105_v52 = vpop.eup %4104  ;;  %4118 = vrcp.f32 %v1711_v39  ;;  %v1076_v15 = vmul.f32 %v3681_v17, %v4629_v1  ;;  %v3420_v37 = vunpack.c.l.bf16 %v3890_v24  ;;  %v1077_v41 = vmul.f32 %v3684_v34, %v4629_v1 }
  0x5b   : > { %v3254_v58 = vpack.c.bf16 %v2091_v47, %v2091_v47  ;;  %v2092_v51 = vmul.f32 %v4105_v52, %v676_v28  ;;  %v4107_v62 = vpop.eup %4106  ;;  %4120 = vpow2.f32 %v3002_v56  ;;  %v1207_v19 = vadd.f32 %v4632_v4, %v1075_v63 }
  0x5c   : > { %v4109_v3 = vpop.eup %4108  ;;  %v1712_v7 = vadd.f32 1.0, %v4107_v62  ;;  %v3417_v28 = vunpack.c.h.bf16 %v3889_v12  ;;  %v1208_v33 = vadd.f32 %v4632_v4, %v1076_v15  ;;  %v551_v39 = vmul.f32 %v3416_v11, %v4655_v29 }
  0x5d   : > { %2732 = vst.msk [vmem:[%s4722_s29 + $0x40] sm:$0xf] %vm2715_vm0, %v3254_v58  ;;  %v3255_v5 = vpack.c.bf16 %v2092_v51, %v2092_v51  ;;  %v4111_v9 = vpop.eup %4110  ;;  %v1713_v10 = vadd.f32 1.0, %v4109_v3  ;;  %v3005_v30 = vmul.f32 -1.442695, %v1207_v19  ;;  %v3685_v46 = vunpack.c.h.bf16 %v3955_v20 }
  0x5e   : > { %v2093_v14 = vmul.f32 %v4111_v9, %v677_v40  ;;  %4122 = vrcp.f32 %v1712_v7  ;;  %v3006_v40 = vmul.f32 -1.442695, %v1208_v33  ;;  %v552_v45 = vmul.f32 %v3417_v28, %v4655_v29  ;;  %v3891_v7 = vld [vmem:[%s4639_s26 + $0x70] sm:$0xff]   ;;  %v3957_v9 = vld [vmem:[%s4620_s20 + $0x88] sm:$0xff]  }
  0x5f   : > { %2733 = vst.msk [vmem:[%s4722_s29 + $0x44] sm:$0xf] %vm2715_vm0, %v3255_v5  ;;  %4124 = vrcp.f32 %v1713_v10  ;;  %v1209_v49 = vadd.f32 %v4632_v4, %v1077_v41  ;;  %v682_v50 = vadd.f32 %v4666_v43, %v550_v32  ;;  %v3421_v52 = vunpack.c.h.bf16 %v3890_v24 }
  0x60   : > { %v3256_v22 = vpack.c.bf16 %v2093_v14, %v2093_v14  ;;  %4126 = vpow2.f32 %v3003_v8  ;;  %v1078_v53 = vmul.f32 %v3685_v46, %v4629_v1  ;;  %v3688_v56 = vunpack.c.l.bf16 %v3956_v42 }
  0x61   : > { %v4113_v21 = vpop.eup %4112  ;;  %4128 = vpow2.f32 %v3004_v18  ;;  %v553_v58 = vmul.f32 %v3420_v37, %v4655_v29  ;;  %v3007_v51 = vmul.f32 -1.442695, %v1209_v49  ;;  %v683_v0 = vadd.f32 %v4666_v43, %v551_v39  ;;  %v3958_v37 = vld [vmem:[%s4620_s20 + $0x90] sm:$0xff]  }
  0x62   : > { %v4115_v25 = vpop.eup %4114  ;;  %v2094_v26 = vmul.f32 %v4113_v21, %v678_v60  ;;  %2734 = vst.msk [vmem:[%s4722_s29 + $0x48] sm:$0xf] %vm2715_vm0, %v3256_v22  ;;  %4130 = vpow2.f32 %v3005_v30  ;;  %v3689_v60 = vunpack.c.h.bf16 %v3956_v42  ;;  %v1210_v54 = vadd.f32 %v4632_v4, %v1078_v53 }
  0x63   : > { %v4117_v31 = vpop.eup %4116  ;;  %v1714_v23 = vadd.f32 1.0, %v4115_v25  ;;  %v1079_v2 = vmul.f32 %v3688_v56, %v4629_v1  ;;  %v554_v13 = vmul.f32 %v3421_v52, %v4655_v29  ;;  %v4896_v16 = vadd.f32 %v4666_v43, %v553_v58  ;;  %v3893_v58 = vld [vmem:[%s4639_s26 + $0x80] sm:$0xff]  }
  0x64   : > { %v4119_v35 = vpop.eup %4118  ;;  %v3257_v27 = vpack.c.bf16 %v2094_v26, %v2094_v26  ;;  %v1715_v36 = vadd.f32 1.0, %v4117_v31  ;;  %v1080_v8 = vmul.f32 %v3689_v60, %v4629_v1  ;;  %v3008_v63 = vmul.f32 -1.442695, %v1210_v54  ;;  %v4928_v54 = vld [vmem:[%s4625_s23 + $0x3] ss:$0 sm:$0xff] }
  0x65   : > { %v2095_v38 = vmul.f32 %v4119_v35, %v679_v6  ;;  %4132 = vrcp.f32 %v1714_v23  ;;  %v4121_v44 = vpop.eup %4120  ;;  %v684_v6 = vadd.f32 %v4666_v43, %v552_v45  ;;  %v1211_v18 = vadd.f32 %v4632_v4, %v1079_v2 }
  0x66   : > { %2735 = vst.msk [vmem:[%s4722_s29 + $0x4c] sm:$0xf] %vm2715_vm0, %v3257_v27  ;;  %4134 = vrcp.f32 %v1715_v36  ;;  %v1716_v48 = vadd.f32 1.0, %v4121_v44  ;;  %v3424_v20 = vunpack.c.l.bf16 %v3891_v7  ;;  %v1212_v21 = vadd.f32 %v4632_v4, %v1080_v8 }
  0x67   : > { %v3258_v47 = vpack.c.bf16 %v2095_v38, %v2095_v38  ;;  %4136 = vpow2.f32 %v3006_v40  ;;  %v3692_v22 = vunpack.c.l.bf16 %v3957_v9  ;;  %v3425_v15 = vunpack.c.h.bf16 %v3891_v7 }
  0x68   : > { %v4123_v57 = vpop.eup %4122  ;;  %4138 = vrcp.f32 %v1716_v48  ;;  %v3009_v25 = vmul.f32 -1.442695, %v1211_v18  ;;  %v3010_v31 = vmul.f32 -1.442695, %v1212_v21  ;;  %v555_v27 = vmul.f32 %v3424_v20, %v4655_v29 }
  0x69   : > { %2736 = vst.msk [vmem:[%s4722_s29 + $0x50] sm:$0xf] %vm2715_vm0, %v3258_v47  ;;  %v4125_v61 = vpop.eup %4124  ;;  %v2096_v62 = vmul.f32 %v4123_v57, %v4857_v55  ;;  %4140 = vpow2.f32 %v3007_v51  ;;  %v1081_v34 = vmul.f32 %v3692_v22, %v4629_v1  ;;  %v556_v41 = vmul.f32 %v3425_v15, %v4655_v29 }
  0x6a   : > { %v4127_v3 = vpop.eup %4126  ;;  %v2097_v5 = vmul.f32 %v4125_v61, %v681_v59  ;;  %v3892_v59 = vld [vmem:[%s4639_s26 + $0x78] sm:$0xff]   ;;  %v3693_v45 = vunpack.c.h.bf16 %v3957_v9  ;;  %v3696_v49 = vunpack.c.l.bf16 %v3958_v37  ;;  %v686_v52 = vadd.f32 %v4666_v43, %v554_v13 }
  0x6b   : > { %v4129_v10 = vpop.eup %4128  ;;  %v3259_v12 = vpack.c.bf16 %v2096_v62, %v2096_v62  ;;  %v1717_v55 = vadd.f32 1.0, %v4127_v3  ;;  %v3428_v30 = vunpack.c.l.bf16 %v3892_v59  ;;  %v3429_v33 = vunpack.c.h.bf16 %v3892_v59 }
  0x6c   : > { %v3260_v14 = vpack.c.bf16 %v2097_v5, %v2097_v5  ;;  %v1718_v17 = vadd.f32 1.0, %v4129_v10  ;;  %v4131_v19 = vpop.eup %4130  ;;  %v1213_v42 = vadd.f32 %v4632_v4, %v1081_v34  ;;  %v1082_v56 = vmul.f32 %v3693_v45, %v4629_v1  ;;  %v4951_v34 = vld [vmem:[%s4625_s23] ss:$0 sm:$0xff] }
  0x6d   : > { %2737 = vst.msk [vmem:[%s4722_s29 + $0x54] sm:$0xf] %vm2715_vm0, %v3259_v12  ;;  %4142 = vrcp.f32 %v1717_v55  ;;  %v1719_v24 = vadd.f32 1.0, %v4131_v19  ;;  %v557_v39 = vmul.f32 %v3428_v30, %v4655_v29  ;;  %v558_v47 = vmul.f32 %v3429_v33, %v4655_v29  ;;  %v3959_v29 = vld [vmem:[%s4620_s20 + $0x98] sm:$0xff]  }
  0x6e   : > { %2738 = vst.msk [vmem:[%s4722_s29 + $0x58] sm:$0xf] %vm2715_vm0, %v3260_v14  ;;  %4144 = vrcp.f32 %v1718_v17  ;;  %v3011_v48 = vmul.f32 -1.442695, %v1213_v42  ;;  %v687_v57 = vadd.f32 %v4666_v43, %v555_v27  ;;  %v1083_v51 = vmul.f32 %v3696_v49, %v4629_v1 }
  0x6f   : > { %v4133_v11 = vpop.eup %4132  ;;  %4146 = vpow2.f32 %v3008_v63  ;;  %v688_v62 = vadd.f32 %v4666_v43, %v556_v41  ;;  %v1214_v2 = vadd.f32 %v4928_v54, %v1082_v56  ;;  %v3432_v12 = vunpack.c.l.bf16 %v3893_v58  ;;  %v3895_v41 = vld [vmem:[%s4639_s26 + $0x90] sm:$0xff]  }
  0x70   : > { %v4135_v26 = vpop.eup %4134  ;;  %v2098_v28 = vmul.f32 %v4133_v11, %v682_v50  ;;  %4148 = vrcp.f32 %v1719_v24  ;;  %v3697_v50 = vunpack.c.h.bf16 %v3958_v37  ;;  %v1215_v7 = vadd.f32 %v4928_v54, %v1083_v51  ;;  %v4941_v24 = vld [vmem:[%s4625_s23 + $0x2] ss:$0 sm:$0xff] }
  0x71   : > { %v4137_v32 = vpop.eup %4136  ;;  %v2099_v23 = vmul.f32 %v4135_v26, %v683_v0  ;;  %4150 = vpow2.f32 %v3009_v25  ;;  %v689_v0 = vadd.f32 %v4666_v43, %v557_v39  ;;  %v3012_v55 = vmul.f32 -1.442695, %v1214_v2  ;;  %v3960_v25 = vld [vmem:[%s4620_s20 + $0xa0] sm:$0xff]  }
  0x72   : > { %v3261_v35 = vpack.c.bf16 %v2098_v28, %v2098_v28  ;;  %v1720_v36 = vadd.f32 1.0, %v4137_v32  ;;  %v4139_v38 = vpop.eup %4138  ;;  %4152 = vpow2.f32 %v3010_v31  ;;  %v1084_v60 = vmul.f32 %v3697_v50, %v4629_v1  ;;  %v3894_v1 = vld [vmem:[%s4639_s26 + $0x88] sm:$0xff]  }
  0x73   : > { %v3262_v40 = vpack.c.bf16 %v2099_v23, %v2099_v23  ;;  %v2100_v44 = vmul.f32 %v4139_v38, %v684_v6  ;;  %v4141_v46 = vpop.eup %4140  ;;  %v4933_v6 = vadd.f32 %v4666_v43, %v558_v47  ;;  %v3700_v13 = vunpack.c.l.bf16 %v3959_v29 }
  0x74   : > { %2739 = vst.msk [vmem:[%s4722_s29 + $0x5c] sm:$0xf] %vm2715_vm0, %v3261_v35  ;;  %4154 = vrcp.f32 %v1720_v36  ;;  %v1721_v53 = vadd.f32 1.0, %v4141_v46  ;;  %v1216_v8 = vadd.f32 %v4928_v54, %v1084_v60  ;;  %v3013_v43 = vmul.f32 -1.442695, %v1215_v7 }
  0x75   : > { %2740 = vst.msk [vmem:[%s4722_s29 + $0x60] sm:$0xf] %vm2715_vm0, %v3262_v40  ;;  %v3263_v4 = vpack.c.bf16 %v2100_v44, %v2100_v44  ;;  %4156 = vpow2.f32 %v3011_v48  ;;  %v3436_v20 = vunpack.c.l.bf16 %v3894_v1  ;;  %v1085_v15 = vmul.f32 %v4941_v24, %v3700_v13 }
  0x76   : > { %4158 = vrcp.f32 %v1721_v53  ;;  %v3014_v11 = vmul.f32 -1.442695, %v1216_v8  ;;  %v3701_v31 = vunpack.c.h.bf16 %v3959_v29  ;;  %v3437_v23 = vunpack.c.h.bf16 %v3894_v1  ;;  %v3896_v8 = vld [vmem:[%s4639_s26 + $0x98] sm:$0xff]  }
  0x77   : > { %v4143_v61 = vpop.eup %4142  ;;  %2741 = vst.msk [vmem:[%s4722_s29 + $0x64] sm:$0xf] %vm2715_vm0, %v3263_v4  ;;  %4160 = vpow2.f32 %v3012_v55  ;;  %v1217_v33 = vadd.f32 %v4928_v54, %v1085_v15  ;;  %v559_v35 = vmul.f32 %v4951_v34, %v3432_v12  ;;  %v3704_v36 = vunpack.c.l.bf16 %v3960_v25  ;;  %v3961_v4 = vld [vmem:[%s4620_s20 + $0xa8] sm:$0xff]  }
  0x78   : > { %v4145_v3 = vpop.eup %4144  ;;  %v2101_v5 = vmul.f32 %v4143_v61, %v4896_v16  ;;  %v3433_v16 = vunpack.c.h.bf16 %v3893_v58  ;;  %v1086_v27 = vmul.f32 %v4941_v24, %v3701_v31  ;;  %v561_v39 = vmul.f32 %v4951_v34, %v3436_v20  ;;  %v4966_v58 = vld [vmem:[%s4625_s23 + $0x1] ss:$0 sm:$0xff] }
  0x79   : > { %v4147_v9 = vpop.eup %4146  ;;  %v2102_v10 = vmul.f32 %v4145_v3, %v686_v52  ;;  %v3015_v42 = vmul.f32 -1.442695, %v1217_v33  ;;  %v1087_v47 = vmul.f32 %v4941_v24, %v3704_v36  ;;  %v562_v49 = vmul.f32 %v4951_v34, %v3437_v23 }
  0x7a   : > { %v4149_v63 = vpop.eup %4148  ;;  %v3264_v14 = vpack.c.bf16 %v2101_v5, %v2101_v5  ;;  %v1722_v17 = vadd.f32 1.0, %v4147_v9  ;;  %v560_v40 = vmul.f32 %v4951_v34, %v3433_v16  ;;  %v1218_v46 = vadd.f32 %v4928_v54, %v1086_v27 }
  0x7b   : > { %v4151_v59 = vpop.eup %4150  ;;  %v3265_v18 = vpack.c.bf16 %v2102_v10, %v2102_v10  ;;  %v2103_v19 = vmul.f32 %v4149_v63, %v687_v57  ;;  %v3705_v50 = vunpack.c.h.bf16 %v3960_v25  ;;  %v3440_v52 = vunpack.c.l.bf16 %v3895_v41 }
  0x7c   : > { %v4153_v21 = vpop.eup %4152  ;;  %2742 = vst.msk [vmem:[%s4722_s29 + $0x68] sm:$0xf] %vm2715_vm0, %v3264_v14  ;;  %4162 = vrcp.f32 %v1722_v17  ;;  %v1723_v22 = vadd.f32 1.0, %v4151_v59  ;;  %v3016_v53 = vmul.f32 -1.442695, %v1218_v46  ;;  %v1219_v56 = vadd.f32 %v4928_v54, %v1087_v47 }
  0x7d   : > { %2743 = vst.msk [vmem:[%s4722_s29 + $0x6c] sm:$0xf] %vm2715_vm0, %v3265_v18  ;;  %v3266_v28 = vpack.c.bf16 %v2103_v19, %v2103_v19  ;;  %v1724_v30 = vadd.f32 1.0, %v4153_v21  ;;  %4164 = vpow2.f32 %v3013_v43  ;;  %v691_v51 = vadd.f32 %v4966_v58, %v559_v35  ;;  %v3962_v21 = vld [vmem:[%s4620_s20 + $0xb0] sm:$0xff]  }
  0x7e   : > { %v4155_v26 = vpop.eup %4154  ;;  %4166 = vrcp.f32 %v1723_v22  ;;  %v3441_v60 = vunpack.c.h.bf16 %v3895_v41  ;;  %v1088_v29 = vmul.f32 %v4941_v24, %v3705_v50  ;;  %v3708_v2 = vunpack.c.l.bf16 %v3961_v4 }
  0x7f   : > { %v2104_v32 = vmul.f32 %v4155_v26, %v688_v62  ;;  %2744 = vst.msk [vmem:[%s4722_s29 + $0x70] sm:$0xf] %vm2715_vm0, %v3266_v28  ;;  %4168 = vrcp.f32 %v1724_v30  ;;  %v4157_v37 = vpop.eup %4156  ;;  %v692_v62 = vadd.f32 %v4966_v58, %v560_v40  ;;  %v693_v5 = vadd.f32 %v4966_v58, %v561_v39 }
  0x80   : > { %4170 = vpow2.f32 %v3014_v11  ;;  %v4159_v44 = vpop.eup %4158  ;;  %v1725_v45 = vadd.f32 1.0, %v4157_v37  ;;  %v4975_v1 = vadd.f32 %v4966_v58, %v562_v49  ;;  %v1220_v9 = vadd.f32 %v4928_v54, %v1088_v29  ;;  %v3897_v37 = vld [vmem:[%s4639_s26 + $0xa0] sm:$0xff]  }
  0x81   : > { %v3267_v38 = vpack.c.bf16 %v2104_v32, %v2104_v32  ;;  %v2105_v48 = vmul.f32 %v4159_v44, %v689_v0  ;;  %4172 = vpow2.f32 %v3015_v42  ;;  %v4161_v61 = vpop.eup %4160  ;;  %v3017_v0 = vmul.f32 -1.442695, %v1219_v56  ;;  %v3963_v44 = vld [vmem:[%s4620_s20 + $0xb8] sm:$0xff]   ;;  %v3898_v56 = vld [vmem:[%s4639_s26 + $0xa8] sm:$0xff]  }
  0x82   : > { %4174 = vrcp.f32 %v1725_v45  ;;  %v1726_v7 = vadd.f32 1.0, %v4161_v61  ;;  %v563_v55 = vmul.f32 %v4951_v34, %v3440_v52  ;;  %v1089_v13 = vmul.f32 %v4941_v24, %v3708_v2 }
  0x83   : > { %2745 = vst.msk [vmem:[%s4722_s29 + $0x74] sm:$0xf] %vm2715_vm0, %v3267_v38  ;;  %v3268_v57 = vpack.c.bf16 %v2105_v48, %v2105_v48  ;;  %4176 = vpow2.f32 %v3016_v53  ;;  %v564_v17 = vmul.f32 %v4951_v34, %v3441_v60  ;;  %v3018_v16 = vmul.f32 -1.442695, %v1220_v9 }
  0x84   : > { %4178 = vpow2.f32 %v3017_v0  ;;  %v3444_v19 = vunpack.c.l.bf16 %v3896_v8  ;;  %v1221_v20 = vadd.f32 %v4928_v54, %v1089_v13  ;;  %v3445_v11 = vunpack.c.h.bf16 %v3896_v8 }
  0x85   : > { %2746 = vst.msk [vmem:[%s4722_s29 + $0x78] sm:$0xf] %vm2715_vm0, %v3268_v57  ;;  %4180 = vrcp.f32 %v1726_v7  ;;  %v3709_v15 = vunpack.c.h.bf16 %v3961_v4  ;;  %v695_v32 = vadd.f32 %v4966_v58, %v563_v55  ;;  %v3712_v33 = vunpack.c.l.bf16 %v3962_v21 }
  0x86   : > { %v4163_v3 = vpop.eup %4162  ;;  %v3019_v28 = vmul.f32 -1.442695, %v1221_v20  ;;  %v565_v27 = vmul.f32 %v4951_v34, %v3444_v19  ;;  %v3713_v38 = vunpack.c.h.bf16 %v3962_v21  ;;  %v566_v41 = vmul.f32 %v4951_v34, %v3445_v11 }
  0x87   : > { %v4165_v10 = vpop.eup %4164  ;;  %v2106_v12 = vmul.f32 %v4163_v3, %v4933_v6  ;;  %v1090_v23 = vmul.f32 %v4941_v24, %v3709_v15  ;;  %v696_v45 = vadd.f32 %v4966_v58, %v564_v17  ;;  %v1091_v46 = vmul.f32 %v4941_v24, %v3712_v33 }
  0x88   : > { %v4167_v63 = vpop.eup %4166  ;;  %v1727_v14 = vadd.f32 1.0, %v4165_v10  ;;  %v1092_v47 = vmul.f32 %v4941_v24, %v3713_v38  ;;  %v3448_v50 = vunpack.c.l.bf16 %v3897_v37  ;;  %v697_v53 = vadd.f32 %v4966_v58, %v565_v27 }
  0x89   : > { %v4169_v43 = vpop.eup %4168  ;;  %v3269_v59 = vpack.c.bf16 %v2106_v12, %v2106_v12  ;;  %v2107_v18 = vmul.f32 %v4167_v63, %v691_v51  ;;  %v1222_v42 = vadd.f32 %v4928_v54, %v1090_v23  ;;  %v1223_v57 = vadd.f32 %v4928_v54, %v1091_v46  ;;  %v3964_v12 = vld [vmem:[%s4620_s20 + $0xc0] sm:$0xff]  }
  0x8a   : > { %v4171_v6 = vpop.eup %4170  ;;  %v2108_v22 = vmul.f32 %v4169_v43, %v692_v62  ;;  %4182 = vrcp.f32 %v1727_v14  ;;  %v1224_v51 = vadd.f32 %v4928_v54, %v1092_v47  ;;  %v3716_v60 = vunpack.c.l.bf16 %v3963_v44 }
  0x8b   : > { %2747 = vst.msk [vmem:[%s4722_s29 + $0x7c] sm:$0xf] %vm2715_vm0, %v3269_v59  ;;  %v3270_v25 = vpack.c.bf16 %v2107_v18, %v2107_v18  ;;  %v1728_v26 = vadd.f32 1.0, %v4171_v6  ;;  %4184 = vpow2.f32 %v3018_v16  ;;  %v4173_v30 = vpop.eup %4172  ;;  %v3020_v4 = vmul.f32 -1.442695, %v1222_v42 }
  0x8c   : > { %v3271_v31 = vpack.c.bf16 %v2108_v22, %v2108_v22  ;;  %v4175_v35 = vpop.eup %4174  ;;  %v1729_v36 = vadd.f32 1.0, %v4173_v30  ;;  %v698_v61 = vadd.f32 %v4966_v58, %v566_v41  ;;  %v3449_v0 = vunpack.c.h.bf16 %v3897_v37 }
  0x8d   : > { %2748 = vst.msk [vmem:[%s4722_s29 + $0x80] sm:$0xf] %vm2715_vm0, %v3270_v25  ;;  %4186 = vrcp.f32 %v1728_v26  ;;  %v2109_v40 = vmul.f32 %v4175_v35, %v693_v5  ;;  %v4177_v39 = vpop.eup %4176  ;;  %v3021_v3 = vmul.f32 -1.442695, %v1223_v57  ;;  %v3022_v5 = vmul.f32 -1.442695, %v1224_v51 }
  0x8e   : > { %2749 = vst.msk [vmem:[%s4722_s29 + $0x84] sm:$0xf] %vm2715_vm0, %v3271_v31  ;;  %4188 = vpow2.f32 %v3019_v28  ;;  %v1730_v49 = vadd.f32 1.0, %v4177_v39  ;;  %v4179_v52 = vpop.eup %4178  ;;  %v567_v8 = vmul.f32 %v4951_v34, %v3448_v50  ;;  %v3452_v9 = vunpack.c.l.bf16 %v3898_v56  ;;  %v3899_v28 = vld [vmem:[%s4639_s26 + $0xb0] sm:$0xff]   ;;  %v3965_v35 = vld [vmem:[%s4620_s20 + $0xc8] sm:$0xff]  }
  0x8f   : > { %4190 = vrcp.f32 %v1729_v36  ;;  %v3272_v48 = vpack.c.bf16 %v2109_v40, %v2109_v40  ;;  %v4181_v29 = vpop.eup %4180  ;;  %v1731_v62 = vadd.f32 1.0, %v4179_v52  ;;  %v1093_v10 = vmul.f32 %v4941_v24, %v3716_v60  ;;  %v5028_v36 = vld [vmem:[%s4639_s26 + $0xb8] sm:$0xff]  }
  0x90   : > { %4192 = vrcp.f32 %v1730_v49  ;;  %v2110_v2 = vmul.f32 %v4181_v29, %v4975_v1  ;;  %v3717_v14 = vunpack.c.h.bf16 %v3963_v44  ;;  %v568_v17 = vmul.f32 %v4951_v34, %v3449_v0 }
  0x91   : > { %2750 = vst.msk [vmem:[%s4722_s29 + $0x88] sm:$0xf] %vm2715_vm0, %v3272_v48  ;;  %4194 = vpow2.f32 %v3020_v4  ;;  %v1225_v16 = vadd.f32 %v4928_v54, %v1093_v10  ;;  %v3453_v18 = vunpack.c.h.bf16 %v3898_v56  ;;  %v3720_v20 = vunpack.c.l.bf16 %v3964_v12 }
  0x92   : > { %4196 = vrcp.f32 %v1731_v62  ;;  %v3273_v13 = vpack.c.bf16 %v2110_v2, %v2110_v2  ;;  %v1094_v19 = vmul.f32 %v4941_v24, %v3717_v14  ;;  %v569_v22 = vmul.f32 %v4951_v34, %v3452_v9  ;;  %v3901_v14 = vld [vmem:[%s4639_s26 + $0xc0] sm:$0xff]  }
  0x93   : > { %4198 = vpow2.f32 %v3021_v3  ;;  %v3023_v11 = vmul.f32 -1.442695, %v1225_v16  ;;  %v699_v25 = vadd.f32 %v4966_v58, %v567_v8  ;;  %v1095_v31 = vmul.f32 %v4941_v24, %v3720_v20  ;;  %v3966_v8 = vld [vmem:[%s4620_s20 + $0xd0] sm:$0xff]  }
  0x94   : > { %v4183_v7 = vpop.eup %4182  ;;  %4200 = vpow2.f32 %v3022_v5  ;;  %2751 = vst.msk [vmem:[%s4722_s29 + $0x8c] sm:$0xf] %vm2715_vm0, %v3273_v13  ;;  %v1226_v30 = vadd.f32 %v4928_v54, %v1094_v19  ;;  %v700_v33 = vadd.f32 %v4966_v58, %v568_v17  ;;  %v570_v27 = vmul.f32 %v4951_v34, %v3453_v18 }
  0x95   : > { %v4185_v55 = vpop.eup %4184  ;;  %v2111_v63 = vmul.f32 %v4183_v7, %v695_v32  ;;  %v1227_v38 = vadd.f32 %v4928_v54, %v1095_v31  ;;  %v701_v42 = vadd.f32 %v4966_v58, %v569_v22  ;;  %v3456_v44 = vunpack.c.l.bf16 %v3899_v28 }
  0x96   : > { %v1732_v1 = vadd.f32 1.0, %v4185_v55  ;;  %v3024_v37 = vmul.f32 -1.442695, %v1226_v30  ;;  %v3721_v39 = vunpack.c.h.bf16 %v3964_v12  ;;  %v3724_v48 = vunpack.c.l.bf16 %v3965_v35 }
  0x97   : > { %v4187_v43 = vpop.eup %4186  ;;  %v3274_v59 = vpack.c.bf16 %v2111_v63, %v2111_v63  ;;  %v3025_v47 = vmul.f32 -1.442695, %v1227_v38  ;;  %v3457_v4 = vunpack.c.h.bf16 %v3899_v28  ;;  %v3460_v52 = vunpack.c.l.bf16 %v5028_v36 }
  0x98   : > { %v4189_v21 = vpop.eup %4188  ;;  %v2112_v6 = vmul.f32 %v4187_v43, %v696_v45  ;;  %4202 = vrcp.f32 %v1732_v1  ;;  %v1097_v60 = vmul.f32 %v4941_v24, %v3724_v48  ;;  %v702_v3 = vadd.f32 %v4966_v58, %v570_v27 }
  0x99   : > { %v4191_v15 = vpop.eup %4190  ;;  %2752 = vst.msk [vmem:[%s4722_s29 + $0x90] sm:$0xf] %vm2715_vm0, %v3274_v59  ;;  %v1733_v26 = vadd.f32 1.0, %v4189_v21  ;;  %4204 = vpow2.f32 %v3023_v11  ;;  %v572_v10 = vmul.f32 %v4951_v34, %v3457_v4  ;;  %v3725_v55 = vunpack.c.h.bf16 %v3965_v35 }
  0x9a   : > { %v3275_v32 = vpack.c.bf16 %v2112_v6, %v2112_v6  ;;  %v2113_v23 = vmul.f32 %v4191_v15, %v697_v53  ;;  %v4193_v40 = vpop.eup %4192  ;;  %v1096_v53 = vmul.f32 %v4941_v24, %v3721_v39  ;;  %v1229_v7 = vadd.f32 %v4928_v54, %v1097_v60 }
  0x9b   : > { %4206 = vrcp.f32 %v1733_v26  ;;  %v4195_v45 = vpop.eup %4194  ;;  %v2114_v46 = vmul.f32 %v4193_v40, %v698_v61  ;;  %v571_v61 = vmul.f32 %v4951_v34, %v3456_v44  ;;  %v573_v63 = vmul.f32 %v4951_v34, %v3460_v52 }
  0x9c   : > { %2753 = vst.msk [vmem:[%s4722_s29 + $0x94] sm:$0xf] %vm2715_vm0, %v3275_v32  ;;  %v3276_v41 = vpack.c.bf16 %v2113_v23, %v2113_v23  ;;  %4208 = vpow2.f32 %v3024_v37  ;;  %v4197_v49 = vpop.eup %4196  ;;  %v1734_v50 = vadd.f32 1.0, %v4195_v45  ;;  %v1228_v0 = vadd.f32 %v4928_v54, %v1096_v53 }
  0x9d   : > { %v4199_v56 = vpop.eup %4198  ;;  %v3277_v57 = vpack.c.bf16 %v2114_v46, %v2114_v46  ;;  %v2115_v51 = vmul.f32 %v4197_v49, %v699_v25  ;;  %4210 = vpow2.f32 %v3025_v47  ;;  %v3027_v17 = vmul.f32 -1.442695, %v1229_v7  ;;  %v3967_v25 = vld [vmem:[%s4620_s20 + $0xd8] sm:$0xff]  }
  0x9e   : > { %2754 = vst.msk [vmem:[%s4722_s29 + $0x98] sm:$0xf] %vm2715_vm0, %v3276_v41  ;;  %v4201_v29 = vpop.eup %4200  ;;  %4212 = vrcp.f32 %v1734_v50  ;;  %v1735_v62 = vadd.f32 1.0, %v4199_v56  ;;  %v3026_v12 = vmul.f32 -1.442695, %v1228_v0  ;;  %v703_v16 = vadd.f32 %v4966_v58, %v571_v61 }
  0x9f   : > { %2755 = vst.msk [vmem:[%s4722_s29 + $0x9c] sm:$0xf] %vm2715_vm0, %v3277_v57  ;;  %v3278_v2 = vpack.c.bf16 %v2115_v51, %v2115_v51  ;;  %v1736_v5 = vadd.f32 1.0, %v4201_v29  ;;  %v1098_v43 = vmul.f32 %v4941_v24, %v3725_v55  ;;  %v3728_v59 = vunpack.c.l.bf16 %v3966_v8 }
  0xa0   : > { %4214 = vrcp.f32 %v1735_v62  ;;  %v3461_v21 = vunpack.c.h.bf16 %v5028_v36  ;;  %v3464_v22 = vunpack.c.l.bf16 %v3901_v14  ;;  %v704_v28 = vadd.f32 %v4966_v58, %v572_v10 }
  0xa1   : > { %2756 = vst.msk [vmem:[%s4722_s29 + $0xa0] sm:$0xf] %vm2715_vm0, %v3278_v2  ;;  %4216 = vrcp.f32 %v1736_v5  ;;  %v1230_v11 = vadd.f32 %v4928_v54, %v1098_v43  ;;  %v1099_v15 = vmul.f32 %v4941_v24, %v3728_v59  ;;  %v705_v30 = vadd.f32 %v4966_v58, %v573_v63  ;;  %v3968_v2 = vld [vmem:[%s4620_s20 + $0xe0] sm:$0xff]  }
  0xa2   : > { %v4203_v9 = vpop.eup %4202  ;;  %4218 = vpow2.f32 %v3026_v12  ;;  %v3729_v31 = vunpack.c.h.bf16 %v3966_v8  ;;  %v574_v37 = vmul.f32 %v4951_v34, %v3461_v21  ;;  %v3465_v38 = vunpack.c.h.bf16 %v3901_v14 }
  0xa3   : > { %v2116_v13 = vmul.f32 %v4203_v9, %v700_v33  ;;  %v4205_v1 = vpop.eup %4204  ;;  %4220 = vpow2.f32 %v3027_v17  ;;  %v3902_v33 = vld [vmem:[%s4639_s26 + $0xc8] sm:$0xff]   ;;  %v3028_v35 = vmul.f32 -1.442695, %v1230_v11  ;;  %v1231_v27 = vadd.f32 %v4928_v54, %v1099_v15 }
  0xa4   : > { %v1737_v20 = vadd.f32 1.0, %v4205_v1  ;;  %v1100_v40 = vmul.f32 %v4941_v24, %v3729_v31  ;;  %v3732_v41 = vunpack.c.l.bf16 %v3967_v25  ;;  %v575_v44 = vmul.f32 %v4951_v34, %v3464_v22 }
  0xa5   : > { %v4207_v18 = vpop.eup %4206  ;;  %v3279_v19 = vpack.c.bf16 %v2116_v13, %v2116_v13  ;;  %v3029_v45 = vmul.f32 -1.442695, %v1231_v27  ;;  %v3468_v47 = vunpack.c.l.bf16 %v3902_v33  ;;  %v3469_v50 = vunpack.c.h.bf16 %v3902_v33 }
  0xa6   : > { %v2117_v6 = vmul.f32 %v4207_v18, %v701_v42  ;;  %v4209_v26 = vpop.eup %4208  ;;  %4222 = vrcp.f32 %v1737_v20  ;;  %v1232_v48 = vadd.f32 %v4928_v54, %v1100_v40  ;;  %v1101_v4 = vmul.f32 %v4941_v24, %v3732_v41  ;;  %v3969_v18 = vld [vmem:[%s4620_s20 + $0xe8] sm:$0xff]  }
  0xa7   : > { %2757 = vst.msk [vmem:[%s4722_s29 + $0xa4] sm:$0xf] %vm2715_vm0, %v3279_v19  ;;  %v1738_v23 = vadd.f32 1.0, %v4209_v26  ;;  %v4211_v36 = vpop.eup %4210  ;;  %v3733_v52 = vunpack.c.h.bf16 %v3967_v25  ;;  %v576_v61 = vmul.f32 %v4951_v34, %v3465_v38  ;;  %v577_v8 = vmul.f32 %v4951_v34, %v3468_v47 }
  0xa8   : > { %v3280_v32 = vpack.c.bf16 %v2117_v6, %v2117_v6  ;;  %v4213_v42 = vpop.eup %4212  ;;  %v1739_v39 = vadd.f32 1.0, %v4211_v36  ;;  %v3030_v51 = vmul.f32 -1.442695, %v1232_v48  ;;  %v1233_v62 = vadd.f32 %v4928_v54, %v1101_v4 }
  0xa9   : > { %4224 = vrcp.f32 %v1738_v23  ;;  %v2118_v46 = vmul.f32 %v4213_v42, %v702_v3  ;;  %v1102_v0 = vmul.f32 %v4941_v24, %v3733_v52  ;;  %v706_v63 = vadd.f32 %v4966_v58, %v574_v37 }
  0xaa   : > { %2758 = vst.msk [vmem:[%s4722_s29 + $0xa8] sm:$0xf] %vm2715_vm0, %v3280_v32  ;;  %4226 = vpow2.f32 %v3028_v35  ;;  %v4215_v49 = vpop.eup %4214  ;;  %v3031_v12 = vmul.f32 -1.442695, %v1233_v62  ;;  %v578_v14 = vmul.f32 %v4951_v34, %v3469_v50  ;;  %v3736_v17 = vunpack.c.l.bf16 %v3968_v2 }
  0xab   : > { %4228 = vrcp.f32 %v1739_v39  ;;  %v4217_v53 = vpop.eup %4216  ;;  %v3281_v56 = vpack.c.bf16 %v2118_v46, %v2118_v46  ;;  %v2119_v57 = vmul.f32 %v4215_v49, %v703_v16  ;;  %v1234_v55 = vadd.f32 %v4928_v54, %v1102_v0  ;;  %v3903_v16 = vld [vmem:[%s4639_s26 + $0xd0] sm:$0xff]  }
  0xac   : > { %4230 = vpow2.f32 %v3029_v45  ;;  %v4219_v60 = vpop.eup %4218  ;;  %v2120_v29 = vmul.f32 %v4217_v53, %v704_v28  ;;  %v3737_v59 = vunpack.c.h.bf16 %v3968_v2  ;;  %v707_v19 = vadd.f32 %v4966_v58, %v575_v44  ;;  %v3970_v46 = vld [vmem:[%s4620_s20 + $0xf0] sm:$0xff]  }
  0xad   : > { %v4221_v3 = vpop.eup %4220  ;;  %2759 = vst.msk [vmem:[%s4722_s29 + $0xac] sm:$0xf] %vm2715_vm0, %v3281_v56  ;;  %v3282_v5 = vpack.c.bf16 %v2119_v57, %v2119_v57  ;;  %v1740_v7 = vadd.f32 1.0, %v4219_v60  ;;  %4232 = vpow2.f32 %v3030_v51  ;;  %v3032_v43 = vmul.f32 -1.442695, %v1234_v55  ;;  %v5109_v51 = vld [vmem:[%s4639_s26 + $0xe0] sm:$0xff]  }
  0xae   : > { %v3283_v9 = vpack.c.bf16 %v2120_v29, %v2120_v29  ;;  %v1741_v10 = vadd.f32 1.0, %v4221_v3  ;;  %v708_v20 = vadd.f32 %v4966_v58, %v576_v61  ;;  %v1103_v21 = vmul.f32 %v4941_v24, %v3736_v17 }
  0xaf   : > { %2760 = vst.msk [vmem:[%s4722_s29 + $0xb0] sm:$0xf] %vm2715_vm0, %v3282_v5  ;;  %4234 = vrcp.f32 %v1740_v7  ;;  %v709_v11 = vadd.f32 %v4966_v58, %v577_v8  ;;  %v1104_v15 = vmul.f32 %v4941_v24, %v3737_v59  ;;  %v3472_v28 = vunpack.c.l.bf16 %v3903_v16 }
  0xb0   : > { %v4223_v13 = vpop.eup %4222  ;;  %2761 = vst.msk [vmem:[%s4722_s29 + $0xb4] sm:$0xf] %vm2715_vm0, %v3283_v9  ;;  %4236 = vrcp.f32 %v1741_v10  ;;  %v1235_v31 = vadd.f32 %v4928_v54, %v1103_v21  ;;  %v3740_v32 = vunpack.c.l.bf16 %v3969_v18  ;;  %v5096_v33 = vadd.f32 %v4966_v58, %v578_v14 }
  0xb1   : > { %v2121_v1 = vmul.f32 %v4223_v13, %v705_v30  ;;  %4238 = vpow2.f32 %v3031_v12  ;;  %v3904_v30 = vld [vmem:[%s4639_s26 + $0xd8] sm:$0xff]   ;;  %v3473_v27 = vunpack.c.h.bf16 %v3903_v16  ;;  %v1236_v36 = vadd.f32 %v4928_v54, %v1104_v15 }
  0xb2   : > { %4240 = vpow2.f32 %v3032_v43  ;;  %v3033_v41 = vmul.f32 -1.442695, %v1235_v31  ;;  %v1105_v42 = vmul.f32 %v4941_v24, %v3740_v32  ;;  %v3476_v39 = vunpack.c.l.bf16 %v3904_v30 }
  0xb3   : > { %v4225_v6 = vpop.eup %4224  ;;  %v3284_v22 = vpack.c.bf16 %v2121_v1, %v2121_v1  ;;  %v3034_v45 = vmul.f32 -1.442695, %v1236_v36  ;;  %v3477_v49 = vunpack.c.h.bf16 %v3904_v30  ;;  %v579_v4 = vmul.f32 %v4951_v34, %v3472_v28 }
  0xb4   : > { %v4227_v25 = vpop.eup %4226  ;;  %v2122_v26 = vmul.f32 %v4225_v6, %v706_v63  ;;  %v1237_v50 = vadd.f32 %v4928_v54, %v1105_v42  ;;  %v3741_v53 = vunpack.c.h.bf16 %v3969_v18  ;;  %v580_v57 = vmul.f32 %v4951_v34, %v3473_v27  ;;  %v3971_v63 = vld [vmem:[%s4620_s20 + $0xf8] sm:$0xff]  }
  0xb5   : > { %v4229_v23 = vpop.eup %4228  ;;  %2762 = vst.msk [vmem:[%s4722_s29 + $0xb8] sm:$0xf] %vm2715_vm0, %v3284_v22  ;;  %v1742_v35 = vadd.f32 1.0, %v4227_v25  ;;  %v3744_v29 = vunpack.c.l.bf16 %v3970_v46  ;;  %v581_v0 = vmul.f32 %v4951_v34, %v3476_v39  ;;  %v582_v7 = vmul.f32 %v4951_v34, %v3477_v49 }
  0xb6   : > { %v4231_v37 = vpop.eup %4230  ;;  %v3285_v38 = vpack.c.bf16 %v2122_v26, %v2122_v26  ;;  %v2123_v40 = vmul.f32 %v4229_v23, %v707_v19  ;;  %v3035_v60 = vmul.f32 -1.442695, %v1237_v50  ;;  %v1106_v2 = vmul.f32 %v4941_v24, %v3741_v53 }
  0xb7   : > { %4242 = vrcp.f32 %v1742_v35  ;;  %v1743_v44 = vadd.f32 1.0, %v4231_v37  ;;  %v4233_v47 = vpop.eup %4232  ;;  %v1107_v8 = vmul.f32 %v4941_v24, %v3744_v29  ;;  %v3480_v55 = vunpack.c.l.bf16 %v5109_v51 }
  0xb8   : > { %2763 = vst.msk [vmem:[%s4722_s29 + $0xbc] sm:$0xf] %vm2715_vm0, %v3285_v38  ;;  %v3286_v48 = vpack.c.bf16 %v2123_v40, %v2123_v40  ;;  %4244 = vpow2.f32 %v3033_v41  ;;  %v1744_v52 = vadd.f32 1.0, %v4233_v47  ;;  %v1238_v13 = vadd.f32 %v4928_v54, %v1106_v2  ;;  %v5135_v41 = vld [vmem:[%s4639_s26 + $0xf0] sm:$0xff]  }
  0xb9   : > { %4246 = vrcp.f32 %v1743_v44  ;;  %v4235_v56 = vpop.eup %4234  ;;  %v711_v17 = vadd.f32 %v4966_v58, %v579_v4  ;;  %v1239_v16 = vadd.f32 %v4928_v54, %v1107_v8  ;;  %v712_v43 = vadd.f32 %v4966_v58, %v580_v57  ;;  %v3972_v44 = vld [vmem:[%s4620_s20 + $0x100] sm:$0xff]  }
  0xba   : > { %2764 = vst.msk [vmem:[%s4722_s29 + $0xc0] sm:$0xf] %vm2715_vm0, %v3286_v48  ;;  %4248 = vpow2.f32 %v3034_v45  ;;  %v4237_v61 = vpop.eup %4236  ;;  %v2124_v62 = vmul.f32 %v4235_v56, %v708_v20  ;;  %v3036_v59 = vmul.f32 -1.442695, %v1238_v13  ;;  %v3745_v18 = vunpack.c.h.bf16 %v3970_v46  ;;  %v3906_v20 = vld [vmem:[%s4639_s26 + $0xe8] sm:$0xff]  }
  0xbb   : > { %4250 = vrcp.f32 %v1744_v52  ;;  %v4239_v3 = vpop.eup %4238  ;;  %v2125_v5 = vmul.f32 %v4237_v61, %v709_v11  ;;  %v713_v19 = vadd.f32 %v4966_v58, %v581_v0  ;;  %v3037_v21 = vmul.f32 -1.442695, %v1239_v16  ;;  %v3973_v13 = vld [vmem:[%s4620_s20 + $0x108] sm:$0xff]  }
  0xbc   : > { %4252 = vpow2.f32 %v3035_v60  ;;  %v4241_v9 = vpop.eup %4240  ;;  %v3287_v10 = vpack.c.bf16 %v2124_v62, %v2124_v62  ;;  %v1745_v12 = vadd.f32 1.0, %v4239_v3  ;;  %v3748_v6 = vunpack.c.l.bf16 %v3971_v63 }
  0xbd   : > { %v3288_v14 = vpack.c.bf16 %v2125_v5, %v2125_v5  ;;  %v1746_v1 = vadd.f32 1.0, %v4241_v9  ;;  %v714_v11 = vadd.f32 %v4966_v58, %v582_v7  ;;  %v583_v15 = vmul.f32 %v4951_v34, %v3480_v55 }
  0xbe   : > { %2765 = vst.msk [vmem:[%s4722_s29 + $0xc4] sm:$0xf] %vm2715_vm0, %v3287_v10  ;;  %4254 = vrcp.f32 %v1745_v12  ;;  %v1108_v25 = vmul.f32 %v4941_v24, %v3745_v18  ;;  %v1109_v30 = vmul.f32 %v4941_v24, %v3748_v6  ;;  %v3749_v31 = vunpack.c.h.bf16 %v3971_v63 }
  0xbf   : > { %2766 = vst.msk [vmem:[%s4722_s29 + $0xc8] sm:$0xf] %vm2715_vm0, %v3288_v14  ;;  %4256 = vrcp.f32 %v1746_v1  ;;  %v3481_v35 = vunpack.c.h.bf16 %v5109_v51  ;;  %v3484_v27 = vunpack.c.l.bf16 %v3906_v20  ;;  %v3485_v46 = vunpack.c.h.bf16 %v3906_v20 }
  0xc0   : > { %4258 = vpow2.f32 %v3036_v59  ;;  %v1240_v36 = vadd.f32 %v4928_v54, %v1108_v25  ;;  %v1241_v42 = vadd.f32 %v4928_v54, %v1109_v30  ;;  %v3488_v56 = vunpack.c.l.bf16 %v5135_v41 }
  0xc1   : > { %v4243_v22 = vpop.eup %4242  ;;  %4260 = vpow2.f32 %v3037_v21  ;;  %v3752_v57 = vunpack.c.l.bf16 %v3972_v44  ;;  %v584_v60 = vmul.f32 %v4951_v34, %v3481_v35  ;;  %v715_v62 = vadd.f32 %v4966_v58, %v583_v15  ;;  %v3908_v21 = vld [vmem:[%s4639_s26 + $0xf8] sm:$0xff]  }
  0xc2   : > { %v4245_v26 = vpop.eup %4244  ;;  %v2126_v28 = vmul.f32 %v4243_v22, %v5096_v33  ;;  %v1110_v33 = vmul.f32 %v4941_v24, %v3749_v31  ;;  %v3038_v47 = vmul.f32 -1.442695, %v1240_v36  ;;  %v3039_v4 = vmul.f32 -1.442695, %v1241_v42  ;;  %v3909_v31 = vld [vmem:[%s4639_s26 + $0x100] sm:$0xff]  }
  0xc3   : > { %v4247_v32 = vpop.eup %4246  ;;  %v1747_v23 = vadd.f32 1.0, %v4245_v26  ;;  %v1111_v0 = vmul.f32 %v4941_v24, %v3752_v57  ;;  %v3753_v2 = vunpack.c.h.bf16 %v3972_v44  ;;  %v585_v7 = vmul.f32 %v4951_v34, %v3484_v27 }
  0xc4   : > { %v4249_v37 = vpop.eup %4248  ;;  %v3289_v38 = vpack.c.bf16 %v2126_v28, %v2126_v28  ;;  %v2127_v40 = vmul.f32 %v4247_v32, %v711_v17  ;;  %v1242_v52 = vadd.f32 %v4928_v54, %v1110_v33  ;;  %v586_v8 = vmul.f32 %v4951_v34, %v3485_v46 }
  0xc5   : > { %v4251_v39 = vpop.eup %4250  ;;  %4262 = vrcp.f32 %v1747_v23  ;;  %v1748_v45 = vadd.f32 1.0, %v4249_v37  ;;  %v587_v12 = vmul.f32 %v4951_v34, %v3488_v56  ;;  %v1243_v55 = vadd.f32 %v4928_v54, %v1111_v0 }
  0xc6   : > { %v4253_v48 = vpop.eup %4252  ;;  %2767 = vst.msk [vmem:[%s4722_s29 + $0xcc] sm:$0xf] %vm2715_vm0, %v3289_v38  ;;  %v3290_v49 = vpack.c.bf16 %v2127_v40, %v2127_v40  ;;  %v2128_v50 = vmul.f32 %v4251_v39, %v712_v43  ;;  %v3040_v29 = vmul.f32 -1.442695, %v1242_v52  ;;  %v716_v17 = vadd.f32 %v4966_v58, %v584_v60  ;;  %v3975_v60 = vld [vmem:[%s4620_s20 + $0x118] sm:$0xff]  }
  0xc7   : > { %4264 = vrcp.f32 %v1748_v45  ;;  %v1749_v53 = vadd.f32 1.0, %v4253_v48  ;;  %v1112_v16 = vmul.f32 %v4941_v24, %v3753_v2  ;;  %v3489_v18 = vunpack.c.h.bf16 %v5135_v41 }
  0xc8   : > { %2768 = vst.msk [vmem:[%s4722_s29 + $0xd0] sm:$0xf] %vm2715_vm0, %v3290_v49  ;;  %v3291_v51 = vpack.c.bf16 %v2128_v50, %v2128_v50  ;;  %4266 = vpow2.f32 %v3038_v47  ;;  %v4255_v61 = vpop.eup %4254  ;;  %v717_v20 = vadd.f32 %v4966_v58, %v585_v7  ;;  %v3756_v22 = vunpack.c.l.bf16 %v3973_v13 }
  0xc9   : > { %4268 = vrcp.f32 %v1749_v53  ;;  %v4257_v3 = vpop.eup %4256  ;;  %v2129_v5 = vmul.f32 %v4255_v61, %v713_v19  ;;  %v3041_v19 = vmul.f32 -1.442695, %v1243_v55  ;;  %v1244_v6 = vadd.f32 %v4928_v54, %v1112_v16  ;;  %v5182_v61 = vld [vmem:[%s4625_s23 + $0x3] ss:$0 sm:$0xff] }
  0xca   : > { %2769 = vst.msk [vmem:[%s4722_s29 + $0xd4] sm:$0xf] %vm2715_vm0, %v3291_v51  ;;  %4270 = vpow2.f32 %v3039_v4  ;;  %v4259_v9 = vpop.eup %4258  ;;  %v2130_v10 = vmul.f32 %v4257_v3, %v714_v11  ;;  %v3974_v11 = vld [vmem:[%s4620_s20 + $0x110] sm:$0xff]   ;;  %v718_v25 = vadd.f32 %v4966_v58, %v586_v8  ;;  %v719_v26 = vadd.f32 %v4966_v58, %v587_v12  ;;  %v3910_v8 = vld [vmem:[%s4639_s26 + $0x108] sm:$0xff]  }
  0xcb   : > { %4272 = vpow2.f32 %v3040_v29  ;;  %v4261_v63 = vpop.eup %4260  ;;  %v3292_v14 = vpack.c.bf16 %v2129_v5, %v2129_v5  ;;  %v1750_v1 = vadd.f32 1.0, %v4259_v9  ;;  %v3757_v28 = vunpack.c.h.bf16 %v3973_v13 }
  0xcc   : > { %v3293_v43 = vpack.c.bf16 %v2130_v10, %v2130_v10  ;;  %v1751_v59 = vadd.f32 1.0, %v4261_v63  ;;  %v3042_v32 = vmul.f32 -1.442695, %v1244_v6  ;;  %v1113_v23 = vmul.f32 %v4941_v24, %v3756_v22 }
  0xcd   : > { %2770 = vst.msk [vmem:[%s4722_s29 + $0xd8] sm:$0xf] %vm2715_vm0, %v3292_v14  ;;  %4274 = vrcp.f32 %v1750_v1  ;;  %v588_v27 = vmul.f32 %v4951_v34, %v3489_v18  ;;  %v3492_v36 = vunpack.c.l.bf16 %v3908_v21  ;;  %v1114_v37 = vmul.f32 %v4941_v24, %v3757_v28  ;;  %v3911_v28 = vld [vmem:[%s4639_s26 + $0x110] sm:$0xff]  }
  0xce   : > { %2771 = vst.msk [vmem:[%s4722_s29 + $0xdc] sm:$0xf] %vm2715_vm0, %v3293_v43  ;;  %4276 = vrcp.f32 %v1751_v59  ;;  %v3760_v38 = vunpack.c.l.bf16 %v3974_v11  ;;  %v1245_v33 = vadd.f32 %v4928_v54, %v1113_v23  ;;  %v3493_v45 = vunpack.c.h.bf16 %v3908_v21 }
  0xcf   : > { %v4263_v15 = vpop.eup %4262  ;;  %4278 = vpow2.f32 %v3041_v19  ;;  %v3496_v46 = vunpack.c.l.bf16 %v3909_v31  ;;  %v1246_v47 = vadd.f32 %v4928_v54, %v1114_v37  ;;  %v3497_v57 = vunpack.c.h.bf16 %v3909_v31  ;;  %v5206_v31 = vld [vmem:[%s4625_s23 + $0x2] ss:$0 sm:$0xff]  ;;  %v5212_v37 = vld [vmem:[%s4625_s23] ss:$0 sm:$0xff] }
  0xd0   : > { %v2131_v30 = vmul.f32 %v4263_v15, %v715_v62  ;;  %4280 = vpow2.f32 %v3042_v32  ;;  %v3043_v4 = vmul.f32 -1.442695, %v1245_v33  ;;  %v1115_v52 = vmul.f32 %v4941_v24, %v3760_v38 }
  0xd1   : > { %v4265_v35 = vpop.eup %4264  ;;  %v3044_v51 = vmul.f32 -1.442695, %v1246_v47  ;;  %v720_v0 = vadd.f32 %v4966_v58, %v588_v27  ;;  %v589_v2 = vmul.f32 %v4951_v34, %v3492_v36  ;;  %v3761_v3 = vunpack.c.h.bf16 %v3974_v11 }
  0xd2   : > { %v4267_v40 = vpop.eup %4266  ;;  %v3294_v41 = vpack.c.bf16 %v2131_v30, %v2131_v30  ;;  %v2132_v42 = vmul.f32 %v4265_v35, %v716_v17  ;;  %v1247_v62 = vadd.f32 %v5182_v61, %v1115_v52  ;;  %v590_v7 = vmul.f32 %v4951_v34, %v3493_v45 }
  0xd3   : > { %v4269_v44 = vpop.eup %4268  ;;  %v1752_v39 = vadd.f32 1.0, %v4267_v40  ;;  %v3764_v10 = vunpack.c.l.bf16 %v3975_v60  ;;  %v591_v13 = vmul.f32 %v4951_v34, %v3496_v46  ;;  %v1116_v63 = vmul.f32 %v4941_v24, %v3761_v3 }
  0xd4   : > { %v4271_v48 = vpop.eup %4270  ;;  %2772 = vst.msk [vmem:[%s4722_s29 + $0xe0] sm:$0xf] %vm2715_vm0, %v3294_v41  ;;  %v3295_v49 = vpack.c.bf16 %v2132_v42, %v2132_v42  ;;  %v2133_v50 = vmul.f32 %v4269_v44, %v717_v20  ;;  %v3045_v9 = vmul.f32 -1.442695, %v1247_v62  ;;  %v592_v1 = vmul.f32 %v4951_v34, %v3497_v57  ;;  %v3976_v20 = vld [vmem:[%s4620_s20 + $0x120] sm:$0xff]   ;;  %v3977_v57 = vld [vmem:[%s4620_s20 + $0x128] sm:$0xff]  }
  0xd5   : > { %v4273_v53 = vpop.eup %4272  ;;  %4282 = vrcp.f32 %v1752_v39  ;;  %v1753_v56 = vadd.f32 1.0, %v4271_v48  ;;  %v1117_v16 = vmul.f32 %v4941_v24, %v3764_v10  ;;  %v3500_v18 = vunpack.c.l.bf16 %v3910_v8 }
  0xd6   : > { %2773 = vst.msk [vmem:[%s4722_s29 + $0xe4] sm:$0xf] %vm2715_vm0, %v3295_v49  ;;  %v3296_v54 = vpack.c.bf16 %v2133_v50, %v2133_v50  ;;  %v1754_v29 = vadd.f32 1.0, %v4273_v53  ;;  %4284 = vpow2.f32 %v3043_v4  ;;  %v1248_v19 = vadd.f32 %v5182_v61, %v1116_v63 }
  0xd7   : > { %4286 = vrcp.f32 %v1753_v56  ;;  %v4275_v5 = vpop.eup %4274  ;;  %v721_v22 = vadd.f32 %v4966_v58, %v589_v2  ;;  %v1249_v11 = vadd.f32 %v5182_v61, %v1117_v16  ;;  %v3765_v15 = vunpack.c.h.bf16 %v3975_v60 }
  0xd8   : > { %2774 = vst.msk [vmem:[%s4722_s29 + $0xe8] sm:$0xf] %vm2715_vm0, %v3296_v54  ;;  %4288 = vrcp.f32 %v1754_v29  ;;  %v4277_v12 = vpop.eup %4276  ;;  %v2134_v55 = vmul.f32 %v4275_v5, %v718_v25  ;;  %v722_v24 = vadd.f32 %v4966_v58, %v590_v7  ;;  %v3046_v25 = vmul.f32 -1.442695, %v1248_v19  ;;  %v5227_v5 = vld [vmem:[%s4625_s23 + $0x1] ss:$0 sm:$0xff] }
  0xd9   : > { %4290 = vpow2.f32 %v3044_v51  ;;  %v4279_v14 = vpop.eup %4278  ;;  %v2135_v17 = vmul.f32 %v4277_v12, %v719_v26  ;;  %v3501_v26 = vunpack.c.h.bf16 %v3910_v8  ;;  %v3047_v30 = vmul.f32 -1.442695, %v1249_v11  ;;  %v3912_v8 = vld [vmem:[%s4639_s26 + $0x118] sm:$0xff]   ;;  %v3978_v12 = vld [vmem:[%s4620_s20 + $0x130] sm:$0xff]  }
  0xda   : > { %4292 = vpow2.f32 %v3045_v9  ;;  %v3297_v43 = vpack.c.bf16 %v2134_v55, %v2134_v55  ;;  %v1755_v59 = vadd.f32 1.0, %v4279_v14  ;;  %v4281_v21 = vpop.eup %4280  ;;  %v1118_v32 = vmul.f32 %v5206_v31, %v3765_v15 }
  0xdb   : > { %v3298_v6 = vpack.c.bf16 %v2135_v17, %v2135_v17  ;;  %v1756_v34 = vadd.f32 1.0, %v4281_v21  ;;  %v3768_v23 = vunpack.c.l.bf16 %v3976_v20  ;;  %v723_v27 = vadd.f32 %v4966_v58, %v591_v13 }
  0xdc   : > { %2775 = vst.msk [vmem:[%s4722_s29 + $0xec] sm:$0xf] %vm2715_vm0, %v3297_v43  ;;  %4294 = vrcp.f32 %v1755_v59  ;;  %v724_v36 = vadd.f32 %v4966_v58, %v592_v1  ;;  %v593_v38 = vmul.f32 %v5212_v37, %v3500_v18  ;;  %v1250_v42 = vadd.f32 %v5182_v61, %v1118_v32 }
  0xdd   : > { %2776 = vst.msk [vmem:[%s4722_s29 + $0xf0] sm:$0xf] %vm2715_vm0, %v3298_v6  ;;  %4296 = vrcp.f32 %v1756_v34  ;;  %v3769_v33 = vunpack.c.h.bf16 %v3976_v20  ;;  %v3504_v45 = vunpack.c.l.bf16 %v3911_v28  ;;  %v1119_v46 = vmul.f32 %v5206_v31, %v3768_v23 }
  0xde   : > { %4298 = vpow2.f32 %v3046_v25  ;;  %v594_v49 = vmul.f32 %v5212_v37, %v3501_v26  ;;  %v3048_v50 = vmul.f32 -1.442695, %v1250_v42  ;;  %v3505_v53 = vunpack.c.h.bf16 %v3911_v28  ;;  %v3913_v26 = vld [vmem:[%s4639_s26 + $0x120] sm:$0xff]  }
  0xdf   : > { %v4283_v35 = vpop.eup %4282  ;;  %4300 = vpow2.f32 %v3047_v30  ;;  %v1251_v56 = vadd.f32 %v5182_v61, %v1119_v46  ;;  %v1120_v29 = vmul.f32 %v5206_v31, %v3769_v33  ;;  %v725_v7 = vadd.f32 %v5227_v5, %v593_v38 }
  0xe0   : > { %v4285_v40 = vpop.eup %4284  ;;  %v2136_v41 = vmul.f32 %v4283_v35, %v720_v0  ;;  %v595_v0 = vmul.f32 %v5212_v37, %v3504_v45  ;;  %v3772_v10 = vunpack.c.l.bf16 %v3977_v57  ;;  %v726_v13 = vadd.f32 %v5227_v5, %v594_v49 }
  0xe1   : > { %v4287_v44 = vpop.eup %4286  ;;  %v1757_v39 = vadd.f32 1.0, %v4285_v40  ;;  %v3049_v3 = vmul.f32 -1.442695, %v1251_v56  ;;  %v1252_v9 = vadd.f32 %v5182_v61, %v1120_v29  ;;  %v596_v63 = vmul.f32 %v5212_v37, %v3505_v53 }
  0xe2   : > { %v4289_v58 = vpop.eup %4288  ;;  %v3299_v47 = vpack.c.bf16 %v2136_v41, %v2136_v41  ;;  %v2137_v48 = vmul.f32 %v4287_v44, %v721_v22  ;;  %v3773_v14 = vunpack.c.h.bf16 %v3977_v57  ;;  %v1121_v16 = vmul.f32 %v5206_v31, %v3772_v10 }
  0xe3   : > { %v4291_v4 = vpop.eup %4290  ;;  %v2138_v52 = vmul.f32 %v4289_v58, %v722_v24  ;;  %4302 = vrcp.f32 %v1757_v39  ;;  %v3050_v1 = vmul.f32 -1.442695, %v1252_v9  ;;  %v727_v59 = vadd.f32 %v5227_v5, %v595_v0  ;;  %v3979_v58 = vld [vmem:[%s4620_s20 + $0x138] sm:$0xff]  }
  0xe4   : > { %v4293_v51 = vpop.eup %4292  ;;  %2777 = vst.msk [vmem:[%s4722_s29 + $0xf4] sm:$0xf] %vm2715_vm0, %v3299_v47  ;;  %v3300_v60 = vpack.c.bf16 %v2137_v48, %v2137_v48  ;;  %v1758_v54 = vadd.f32 1.0, %v4291_v4  ;;  %4304 = vpow2.f32 %v3048_v50  ;;  %v3508_v18 = vunpack.c.l.bf16 %v3912_v8  ;;  %v3914_v50 = vld [vmem:[%s4639_s26 + $0x128] sm:$0xff]  }
  0xe5   : > { %v3301_v62 = vpack.c.bf16 %v2138_v52, %v2138_v52  ;;  %v1759_v2 = vadd.f32 1.0, %v4293_v51  ;;  %v1122_v19 = vmul.f32 %v5206_v31, %v3773_v14  ;;  %v3776_v20 = vunpack.c.l.bf16 %v3978_v12 }
  0xe6   : > { %2778 = vst.msk [vmem:[%s4722_s29 + $0xf8] sm:$0xf] %vm2715_vm0, %v3300_v60  ;;  %4306 = vrcp.f32 %v1758_v54  ;;  %v4295_v55 = vpop.eup %4294  ;;  %v1253_v11 = vadd.f32 %v5182_v61, %v1121_v16  ;;  %v5242_v24 = vadd.f32 %v5227_v5, %v596_v63  ;;  %v3509_v25 = vunpack.c.h.bf16 %v3912_v8 }
  0xe7   : > { %2779 = vst.msk [vmem:[%s4722_s29 + $0xfc] sm:$0xf] %vm2715_vm0, %v3301_v62  ;;  %4308 = vrcp.f32 %v1759_v2  ;;  %v2139_v17 = vmul.f32 %v4295_v55, %v723_v27  ;;  %v4297_v43 = vpop.eup %4296  ;;  %v1254_v28 = vadd.f32 %v5182_v61, %v1122_v19  ;;  %v1123_v35 = vmul.f32 %v5206_v31, %v3776_v20  ;;  %v3980_v62 = vld [vmem:[%s4620_s20 + $0x140] sm:$0xff]  }
  0xe8   : > { %4310 = vpow2.f32 %v3049_v3  ;;  %v4299_v21 = vpop.eup %4298  ;;  %v2140_v22 = vmul.f32 %v4297_v43, %v724_v36  ;;  %v3051_v23 = vmul.f32 -1.442695, %v1253_v11  ;;  %v597_v36 = vmul.f32 %v5212_v37, %v3508_v18 }
  0xe9   : > { %v3302_v6 = vpack.c.bf16 %v2139_v17, %v2139_v17  ;;  %4312 = vpow2.f32 %v3050_v1  ;;  %v4301_v15 = vpop.eup %4300  ;;  %v1760_v34 = vadd.f32 1.0, %v4299_v21  ;;  %v3052_v38 = vmul.f32 -1.442695, %v1254_v28  ;;  %v3915_v1 = vld [vmem:[%s4639_s26 + $0x130] sm:$0xff]  }
  0xea   : > { %v3303_v30 = vpack.c.bf16 %v2140_v22, %v2140_v22  ;;  %v1761_v32 = vadd.f32 1.0, %v4301_v15  ;;  %v3777_v40 = vunpack.c.h.bf16 %v3978_v12  ;;  %v3512_v33 = vunpack.c.l.bf16 %v3913_v26 }
  0xeb   : > { %2780 = vst.msk [vmem:[%s4722_s29 + $0x100] sm:$0xf] %vm2715_vm0, %v3302_v6  ;;  %4314 = vrcp.f32 %v1760_v34  ;;  %v1255_v44 = vadd.f32 %v5182_v61, %v1123_v35  ;;  %v598_v39 = vmul.f32 %v5212_v37, %v3509_v25  ;;  %v3513_v49 = vunpack.c.h.bf16 %v3913_v26 }
  0xec   : > { %2781 = vst.msk [vmem:[%s4722_s29 + $0x104] sm:$0xf] %vm2715_vm0, %v3303_v30  ;;  %4316 = vrcp.f32 %v1761_v32  ;;  %v1124_v46 = vmul.f32 %v5206_v31, %v3777_v40  ;;  %v729_v56 = vadd.f32 %v5227_v5, %v597_v36  ;;  %v599_v54 = vmul.f32 %v5212_v37, %v3512_v33  ;;  %v3981_v36 = vld [vmem:[%s4620_s20 + $0x148] sm:$0xff]  }
  0xed   : > { %v4303_v27 = vpop.eup %4302  ;;  %4318 = vpow2.f32 %v3051_v23  ;;  %v3053_v4 = vmul.f32 -1.442695, %v1255_v44  ;;  %v3780_v29 = vunpack.c.l.bf16 %v3979_v58  ;;  %v3516_v3 = vunpack.c.l.bf16 %v3914_v50 }
  0xee   : > { %v4305_v41 = vpop.eup %4304  ;;  %v2141_v42 = vmul.f32 %v4303_v27, %v725_v7  ;;  %4320 = vpow2.f32 %v3052_v38  ;;  %v1256_v57 = vadd.f32 %v5182_v61, %v1124_v46  ;;  %v600_v10 = vmul.f32 %v5212_v37, %v3513_v49 }
  0xef   : > { %v1762_v45 = vadd.f32 1.0, %v4305_v41  ;;  %v1125_v12 = vmul.f32 %v5206_v31, %v3780_v29  ;;  %v3781_v55 = vunpack.c.h.bf16 %v3979_v58  ;;  %v3784_v14 = vunpack.c.l.bf16 %v3980_v62 }
  0xf0   : > { %v4307_v47 = vpop.eup %4306  ;;  %v3304_v48 = vpack.c.bf16 %v2141_v42, %v2141_v42  ;;  %v3054_v7 = vmul.f32 -1.442695, %v1256_v57  ;;  %v731_v17 = vadd.f32 %v5227_v5, %v599_v54  ;;  %v601_v18 = vmul.f32 %v5212_v37, %v3516_v3 }
  0xf1   : > { %v4309_v52 = vpop.eup %4308  ;;  %v2142_v53 = vmul.f32 %v4307_v47, %v726_v13  ;;  %4322 = vrcp.f32 %v1762_v45  ;;  %v730_v13 = vadd.f32 %v5227_v5, %v598_v39  ;;  %v1257_v16 = vadd.f32 %v5182_v61, %v1125_v12  ;;  %v3916_v47 = vld [vmem:[%s4639_s26 + $0x138] sm:$0xff]  }
  0xf2   : > { %v4311_v51 = vpop.eup %4310  ;;  %2782 = vst.msk [vmem:[%s4722_s29 + $0x108] sm:$0xf] %vm2715_vm0, %v3304_v48  ;;  %v2143_v60 = vmul.f32 %v4309_v52, %v727_v59  ;;  %4324 = vpow2.f32 %v3053_v4  ;;  %v1126_v43 = vmul.f32 %v5206_v31, %v3781_v55  ;;  %v3517_v19 = vunpack.c.h.bf16 %v3914_v50 }
  0xf3   : > { %v3305_v0 = vpack.c.bf16 %v2142_v53, %v2142_v53  ;;  %v1763_v2 = vadd.f32 1.0, %v4311_v51  ;;  %v4313_v8 = vpop.eup %4312  ;;  %v1127_v20 = vmul.f32 %v5206_v31, %v3784_v14  ;;  %v732_v22 = vadd.f32 %v5227_v5, %v600_v10 }
  0xf4   : > { %v3306_v9 = vpack.c.bf16 %v2143_v60, %v2143_v60  ;;  %v1764_v63 = vadd.f32 1.0, %v4313_v8  ;;  %v3055_v11 = vmul.f32 -1.442695, %v1257_v16  ;;  %v1258_v15 = vadd.f32 %v5182_v61, %v1126_v43 }
  0xf5   : > { %2783 = vst.msk [vmem:[%s4722_s29 + $0x10c] sm:$0xf] %vm2715_vm0, %v3305_v0  ;;  %4326 = vrcp.f32 %v1763_v2  ;;  %v4315_v59 = vpop.eup %4314  ;;  %v3520_v26 = vunpack.c.l.bf16 %v3915_v1  ;;  %v1259_v28 = vadd.f32 %v5182_v61, %v1127_v20  ;;  %v3785_v30 = vunpack.c.h.bf16 %v3980_v62  ;;  %v3982_v62 = vld [vmem:[%s4620_s20 + $0x150] sm:$0xff]  }
  0xf6   : > { %2784 = vst.msk [vmem:[%s4722_s29 + $0x110] sm:$0xf] %vm2715_vm0, %v3306_v9  ;;  %4328 = vpow2.f32 %v3054_v7  ;;  %v4317_v21 = vpop.eup %4316  ;;  %v2144_v6 = vmul.f32 %v4315_v59, %v5242_v24  ;;  %v3056_v27 = vmul.f32 -1.442695, %v1258_v15  ;;  %v5282_v40 = vadd.f32 %v5227_v5, %v601_v18  ;;  %v5300_v7 = vld [vmem:[%s4639_s26 + $0x140] sm:$0xff]   ;;  %v3983_v18 = vld [vmem:[%s4620_s20 + $0x158] sm:$0xff]  }
  0xf7   : > { %4330 = vrcp.f32 %v1764_v63  ;;  %v4319_v34 = vpop.eup %4318  ;;  %v2145_v25 = vmul.f32 %v4317_v21, %v729_v56  ;;  %v602_v41 = vmul.f32 %v5212_v37, %v3517_v19  ;;  %v3057_v39 = vmul.f32 -1.442695, %v1259_v28 }
  0xf8   : > { %v4321_v32 = vpop.eup %4320  ;;  %v3307_v23 = vpack.c.bf16 %v2144_v6, %v2144_v6  ;;  %v1765_v35 = vadd.f32 1.0, %v4319_v34  ;;  %4332 = vpow2.f32 %v3055_v11  ;;  %v1128_v45 = vmul.f32 %v5206_v31, %v3785_v30 }
  0xf9   : > { %v3308_v38 = vpack.c.bf16 %v2145_v25, %v2145_v25  ;;  %v1766_v42 = vadd.f32 1.0, %v4321_v32  ;;  %v3521_v58 = vunpack.c.h.bf16 %v3915_v1  ;;  %v3788_v48 = vunpack.c.l.bf16 %v3981_v36 }
  0xfa   : > { %2785 = vst.msk [vmem:[%s4722_s29 + $0x114] sm:$0xf] %vm2715_vm0, %v3307_v23  ;;  %4334 = vrcp.f32 %v1765_v35  ;;  %v603_v50 = vmul.f32 %v5212_v37, %v3520_v26  ;;  %v1260_v4 = vadd.f32 %v5182_v61, %v1128_v45  ;;  %v734_v53 = vadd.f32 %v5227_v5, %v602_v41 }
  0xfb   : > { %v4323_v24 = vpop.eup %4322  ;;  %2786 = vst.msk [vmem:[%s4722_s29 + $0x118] sm:$0xf] %vm2715_vm0, %v3308_v38  ;;  %4336 = vrcp.f32 %v1766_v42  ;;  %v1129_v56 = vmul.f32 %v5206_v31, %v3788_v48  ;;  %v3789_v57 = vunpack.c.h.bf16 %v3981_v36  ;;  %v3524_v54 = vunpack.c.l.bf16 %v3916_v47 }
  0xfc   : > { %v4325_v33 = vpop.eup %4324  ;;  %v2146_v44 = vmul.f32 %v4323_v24, %v730_v13  ;;  %4338 = vpow2.f32 %v3056_v27  ;;  %v3058_v29 = vmul.f32 -1.442695, %v1260_v4  ;;  %v604_v2 = vmul.f32 %v5212_v37, %v3521_v58 }
  0xfd   : > { %v1767_v46 = vadd.f32 1.0, %v4325_v33  ;;  %v1261_v8 = vadd.f32 %v5182_v61, %v1129_v56  ;;  %v1130_v9 = vmul.f32 %v5206_v31, %v3789_v57  ;;  %v3525_v55 = vunpack.c.h.bf16 %v3916_v47 }
  0xfe   : > { %v3309_v49 = vpack.c.bf16 %v2146_v44, %v2146_v44  ;;  %v3792_v14 = vunpack.c.l.bf16 %v3982_v62  ;;  %v605_v16 = vmul.f32 %v5212_v37, %v3524_v54  ;;  %v3528_v43 = vunpack.c.l.bf16 %v5300_v7 }
  0xff   : > { %v4327_v52 = vpop.eup %4326  ;;  %4340 = vrcp.f32 %v1767_v46  ;;  %v3059_v13 = vmul.f32 -1.442695, %v1261_v8  ;;  %v1262_v63 = vadd.f32 %v5182_v61, %v1130_v9  ;;  %v3793_v59 = vunpack.c.h.bf16 %v3982_v62 }
 0x100   : > { %v4329_v51 = vpop.eup %4328  ;;  %2787 = vst.msk [vmem:[%s4722_s29 + $0x11c] sm:$0xf] %vm2715_vm0, %v3309_v49  ;;  %v2147_v60 = vmul.f32 %v4327_v52, %v731_v17  ;;  %4342 = vpow2.f32 %v3057_v39  ;;  %v1131_v21 = vmul.f32 %v5206_v31, %v3792_v14  ;;  %v736_v11 = vadd.f32 %v5227_v5, %v604_v2  ;;  %v3918_v39 = vld [vmem:[%s4639_s26 + $0x148] sm:$0xff]  }
 0x101   : > { %v4331_v0 = vpop.eup %4330  ;;  %v1768_v3 = vadd.f32 1.0, %v4329_v51  ;;  %4344 = vpow2.f32 %v3058_v29  ;;  %v3060_v20 = vmul.f32 -1.442695, %v1262_v63  ;;  %v606_v15 = vmul.f32 %v5212_v37, %v3525_v55  ;;  %v3919_v29 = vld [vmem:[%s4639_s26 + $0x150] sm:$0xff]  }
 0x102   : > { %v3310_v10 = vpack.c.bf16 %v2147_v60, %v2147_v60  ;;  %v2148_v12 = vmul.f32 %v4331_v0, %v732_v22  ;;  %v4333_v17 = vpop.eup %4332  ;;  %v735_v22 = vadd.f32 %v5227_v5, %v603_v50  ;;  %v1132_v34 = vmul.f32 %v5206_v31, %v3793_v59 }
 0x103   : > { %4346 = vrcp.f32 %v1768_v3  ;;  %v1769_v19 = vadd.f32 1.0, %v4333_v17  ;;  %v1263_v28 = vadd.f32 %v5182_v61, %v1131_v21  ;;  %v3796_v30 = vunpack.c.l.bf16 %v3983_v18 }
 0x104   : > { %2788 = vst.msk [vmem:[%s4722_s29 + $0x120] sm:$0xf] %vm2715_vm0, %v3310_v10  ;;  %v3311_v1 = vpack.c.bf16 %v2148_v12, %v2148_v12  ;;  %4348 = vpow2.f32 %v3059_v13  ;;  %v4335_v6 = vpop.eup %4334  ;;  %v737_v35 = vadd.f32 %v5227_v5, %v605_v16  ;;  %v1264_v27 = vadd.f32 %v5182_v61, %v1132_v34 }
 0x105   : > { %v4337_v25 = vpop.eup %4336  ;;  %v2149_v26 = vmul.f32 %v4335_v6, %v5282_v40  ;;  %4350 = vrcp.f32 %v1769_v19  ;;  %v607_v41 = vmul.f32 %v5212_v37, %v3528_v43  ;;  %v3061_v40 = vmul.f32 -1.442695, %v1263_v28 }
 0x106   : > { %2789 = vst.msk [vmem:[%s4722_s29 + $0x124] sm:$0xf] %vm2715_vm0, %v3311_v1  ;;  %v4339_v32 = vpop.eup %4338  ;;  %v2150_v23 = vmul.f32 %v4337_v25, %v734_v53  ;;  %4352 = vpow2.f32 %v3060_v20  ;;  %v3062_v45 = vmul.f32 -1.442695, %v1264_v27  ;;  %v1133_v46 = vmul.f32 %v5206_v31, %v3796_v30  ;;  %v3984_v53 = vld [vmem:[%s4620_s20 + $0x160] sm:$0xff]   ;;  %v3985_v1 = vld [vmem:[%s4620_s20 + $0x168] sm:$0xff]  }
 0x107   : > { %v3312_v24 = vpack.c.bf16 %v2149_v26, %v2149_v26  ;;  %v1770_v38 = vadd.f32 1.0, %v4339_v32  ;;  %v738_v58 = vadd.f32 %v5227_v5, %v606_v15  ;;  %v3529_v48 = vunpack.c.h.bf16 %v5300_v7  ;;  %v3920_v26 = vld [vmem:[%s4639_s26 + $0x158] sm:$0xff]  }
 0x108   : > { %v3313_v33 = vpack.c.bf16 %v2150_v23, %v2150_v23  ;;  %v1265_v4 = vadd.f32 %v5182_v61, %v1133_v46  ;;  %v3797_v52 = vunpack.c.h.bf16 %v3983_v18  ;;  %v739_v57 = vadd.f32 %v5227_v5, %v607_v41 }
 0x109   : > { %v4341_v36 = vpop.eup %4340  ;;  %2790 = vst.msk [vmem:[%s4722_s29 + $0x128] sm:$0xf] %vm2715_vm0, %v3312_v24  ;;  %4354 = vrcp.f32 %v1770_v38  ;;  %v3532_v60 = vunpack.c.l.bf16 %v3918_v39  ;;  %v608_v3 = vmul.f32 %v5212_v37, %v3529_v48  ;;  %v3533_v7 = vunpack.c.h.bf16 %v3918_v39 }
 0x10a   : > { %v4343_v42 = vpop.eup %4342  ;;  %v2151_v44 = vmul.f32 %v4341_v36, %v735_v22  ;;  %2791 = vst.msk [vmem:[%s4722_s29 + $0x12c] sm:$0xf] %vm2715_vm0, %v3313_v33  ;;  %4356 = vpow2.f32 %v3061_v40  ;;  %v3063_v62 = vmul.f32 -1.442695, %v1265_v4  ;;  %v1134_v0 = vmul.f32 %v5206_v31, %v3797_v52 }
 0x10b   : > { %v1771_v47 = vadd.f32 1.0, %v4343_v42  ;;  %v4345_v49 = vpop.eup %4344  ;;  %v3800_v8 = vunpack.c.l.bf16 %v3984_v53  ;;  %v609_v13 = vmul.f32 %v5212_v37, %v3532_v60  ;;  %v3536_v63 = vunpack.c.l.bf16 %v3919_v29 }
 0x10c   : > { %v3314_v50 = vpack.c.bf16 %v2151_v44, %v2151_v44  ;;  %v1772_v51 = vadd.f32 1.0, %v4345_v49  ;;  %v1266_v12 = vadd.f32 %v5182_v61, %v1134_v0  ;;  %v3801_v17 = vunpack.c.h.bf16 %v3984_v53  ;;  %v3986_v49 = vld [vmem:[%s4620_s20 + $0x170] sm:$0xff]  }
 0x10d   : > { %v4347_v56 = vpop.eup %4346  ;;  %4358 = vrcp.f32 %v1771_v47  ;;  %v1135_v14 = vmul.f32 %v5206_v31, %v3800_v8  ;;  %v3537_v59 = vunpack.c.h.bf16 %v3919_v29  ;;  %v740_v19 = vadd.f32 %v5227_v5, %v608_v3 }
 0x10e   : > { %2792 = vst.msk [vmem:[%s4722_s29 + $0x130] sm:$0xf] %vm2715_vm0, %v3314_v50  ;;  %v2152_v54 = vmul.f32 %v4347_v56, %v736_v11  ;;  %4360 = vpow2.f32 %v3062_v45  ;;  %v4349_v2 = vpop.eup %4348  ;;  %v3064_v18 = vmul.f32 -1.442695, %v1266_v12  ;;  %v1136_v6 = vmul.f32 %v5206_v31, %v3801_v17 }
 0x10f   : > { %4362 = vrcp.f32 %v1772_v51  ;;  %v1773_v10 = vadd.f32 1.0, %v4349_v2  ;;  %v4351_v55 = vpop.eup %4350  ;;  %v1267_v21 = vadd.f32 %v5182_v61, %v1135_v14  ;;  %v610_v11 = vmul.f32 %v5212_v37, %v3533_v7 }
 0x110   : > { %v3315_v9 = vpack.c.bf16 %v2152_v54, %v2152_v54  ;;  %4364 = vpow2.f32 %v3063_v62  ;;  %v4353_v16 = vpop.eup %4352  ;;  %v2153_v43 = vmul.f32 %v4351_v55, %v737_v35  ;;  %v3804_v15 = vunpack.c.l.bf16 %v3985_v1  ;;  %v3921_v62 = vld [vmem:[%s4639_s26 + $0x160] sm:$0xff]  }
 0x111   : > { %4366 = vrcp.f32 %v1773_v10  ;;  %v1774_v20 = vadd.f32 1.0, %v4353_v16  ;;  %v741_v25 = vadd.f32 %v5227_v5, %v609_v13  ;;  %v3065_v28 = vmul.f32 -1.442695, %v1267_v21  ;;  %v3987_v13 = vld [vmem:[%s4620_s20 + $0x178] sm:$0xff]  }
 0x112   : > { %2793 = vst.msk [vmem:[%s4722_s29 + $0x134] sm:$0xf] %vm2715_vm0, %v3315_v9  ;;  %v3316_v22 = vpack.c.bf16 %v2153_v43, %v2153_v43  ;;  %4368 = vpow2.f32 %v3064_v18  ;;  %v1268_v30 = vadd.f32 %v5182_v61, %v1136_v6  ;;  %v611_v35 = vmul.f32 %v5212_v37, %v3536_v63 }
 0x113   : > { %v4355_v34 = vpop.eup %4354  ;;  %4370 = vrcp.f32 %v1774_v20  ;;  %v612_v27 = vmul.f32 %v5212_v37, %v3537_v59  ;;  %v1137_v36 = vmul.f32 %v5206_v31, %v3804_v15  ;;  %v3805_v40 = vunpack.c.h.bf16 %v3985_v1  ;;  %v3922_v59 = vld [vmem:[%s4639_s26 + $0x168] sm:$0xff]  }
 0x114   : > { %v4357_v32 = vpop.eup %4356  ;;  %2794 = vst.msk [vmem:[%s4722_s29 + $0x138] sm:$0xf] %vm2715_vm0, %v3316_v22  ;;  %v2154_v23 = vmul.f32 %v4355_v34, %v738_v58  ;;  %4372 = vpow2.f32 %v3065_v28  ;;  %v3066_v41 = vmul.f32 -1.442695, %v1268_v30  ;;  %v3540_v39 = vunpack.c.l.bf16 %v3920_v26 }
 0x115   : > { %v1775_v38 = vadd.f32 1.0, %v4357_v32  ;;  %v1269_v45 = vadd.f32 %v5182_v61, %v1137_v36  ;;  %v3541_v47 = vunpack.c.h.bf16 %v3920_v26  ;;  %v1138_v48 = vmul.f32 %v5206_v31, %v3805_v40 }
 0x116   : > { %v3317_v33 = vpack.c.bf16 %v2154_v23, %v2154_v23  ;;  %v742_v56 = vadd.f32 %v5227_v5, %v610_v11  ;;  %v613_v29 = vmul.f32 %v5212_v37, %v3540_v39  ;;  %v3808_v0 = vunpack.c.l.bf16 %v3986_v49 }
 0x117   : > { %v4359_v24 = vpop.eup %4358  ;;  %4374 = vrcp.f32 %v1775_v38  ;;  %v3067_v53 = vmul.f32 -1.442695, %v1269_v45  ;;  %v1270_v51 = vadd.f32 %v5182_v61, %v1138_v48  ;;  %v614_v3 = vmul.f32 %v5212_v37, %v3541_v47 }
 0x118   : > { %v4361_v42 = vpop.eup %4360  ;;  %v2155_v44 = vmul.f32 %v4359_v24, %v739_v57  ;;  %2795 = vst.msk [vmem:[%s4722_s29 + $0x13c] sm:$0xf] %vm2715_vm0, %v3317_v33  ;;  %4376 = vpow2.f32 %v3066_v41  ;;  %v743_v9 = vadd.f32 %v5227_v5, %v611_v35  ;;  %v744_v10 = vadd.f32 %v5227_v5, %v612_v27  ;;  %v5388_v24 = vld [vmem:[%s4639_s26 + $0x170] sm:$0xff]  }
 0x119   : > { %v4363_v46 = vpop.eup %4362  ;;  %v1776_v58 = vadd.f32 1.0, %v4361_v42  ;;  %v3068_v7 = vmul.f32 -1.442695, %v1270_v51  ;;  %v1139_v12 = vmul.f32 %v5206_v31, %v3808_v0  ;;  %v3809_v55 = vunpack.c.h.bf16 %v3986_v49 }
 0x11a   : > { %v4365_v50 = vpop.eup %4364  ;;  %v3318_v4 = vpack.c.bf16 %v2155_v44, %v2155_v44  ;;  %v2156_v52 = vmul.f32 %v4363_v46, %v740_v19  ;;  %v3544_v1 = vunpack.c.l.bf16 %v3921_v62  ;;  %v3545_v43 = vunpack.c.h.bf16 %v3921_v62  ;;  %v3988_v44 = vld [vmem:[%s4620_s20 + $0x180] sm:$0xff]  }
 0x11b   : > { %4378 = vrcp.f32 %v1776_v58  ;;  %v1777_v57 = vadd.f32 1.0, %v4365_v50  ;;  %v4367_v60 = vpop.eup %4366  ;;  %v1271_v18 = vadd.f32 %v5182_v61, %v1139_v12  ;;  %v1140_v19 = vmul.f32 %v5206_v31, %v3809_v55 }
 0x11c   : > { %2796 = vst.msk [vmem:[%s4722_s29 + $0x140] sm:$0xf] %vm2715_vm0, %v3318_v4  ;;  %v3319_v54 = vpack.c.bf16 %v2156_v52, %v2156_v52  ;;  %4380 = vpow2.f32 %v3067_v53  ;;  %v2157_v2 = vmul.f32 %v4367_v60, %v741_v25  ;;  %v4369_v8 = vpop.eup %4368  ;;  %v745_v21 = vadd.f32 %v5227_v5, %v613_v29  ;;  %v3989_v29 = vld [vmem:[%s4620_s20 + $0x188] sm:$0xff]  }
 0x11d   : > { %4382 = vrcp.f32 %v1777_v57  ;;  %v4371_v63 = vpop.eup %4370  ;;  %v1778_v17 = vadd.f32 1.0, %v4369_v8  ;;  %v746_v6 = vadd.f32 %v5227_v5, %v614_v3  ;;  %v3812_v22 = vunpack.c.l.bf16 %v3987_v13 }
 0x11e   : > { %2797 = vst.msk [vmem:[%s4722_s29 + $0x144] sm:$0xf] %vm2715_vm0, %v3319_v54  ;;  %v3320_v14 = vpack.c.bf16 %v2157_v2, %v2157_v2  ;;  %4384 = vpow2.f32 %v3068_v7  ;;  %v2158_v16 = vmul.f32 %v4371_v63, %v742_v56  ;;  %v4373_v20 = vpop.eup %4372  ;;  %v3069_v34 = vmul.f32 -1.442695, %v1271_v18 }
 0x11f   : > { %4386 = vrcp.f32 %v1778_v17  ;;  %v1779_v15 = vadd.f32 1.0, %v4373_v20  ;;  %v1272_v25 = vadd.f32 %v5182_v61, %v1140_v19  ;;  %v615_v28 = vmul.f32 %v5212_v37, %v3544_v1 }
 0x120   : > { %2798 = vst.msk [vmem:[%s4722_s29 + $0x148] sm:$0xf] %vm2715_vm0, %v3320_v14  ;;  %v3321_v11 = vpack.c.bf16 %v2158_v16, %v2158_v16  ;;  %v3548_v30 = vunpack.c.l.bf16 %v3922_v59  ;;  %v1141_v32 = vmul.f32 %v5206_v31, %v3812_v22  ;;  %v3813_v23 = vunpack.c.h.bf16 %v3987_v13 }
 0x121   : > { %v4375_v26 = vpop.eup %4374  ;;  %4388 = vrcp.f32 %v1779_v15  ;;  %v616_v36 = vmul.f32 %v5212_v37, %v3545_v43  ;;  %v3070_v38 = vmul.f32 -1.442695, %v1272_v25  ;;  %v3549_v42 = vunpack.c.h.bf16 %v3922_v59 }
 0x122   : > { %v4377_v35 = vpop.eup %4376  ;;  %2799 = vst.msk [vmem:[%s4722_s29 + $0x14c] sm:$0xf] %vm2715_vm0, %v3321_v11  ;;  %v2159_v27 = vmul.f32 %v4375_v26, %v743_v9  ;;  %4390 = vpow2.f32 %v3069_v34  ;;  %v1273_v33 = vadd.f32 %v5182_v61, %v1141_v32  ;;  %v1142_v58 = vmul.f32 %v5206_v31, %v3813_v23 }
 0x123   : > { %v1780_v40 = vadd.f32 1.0, %v4377_v35  ;;  %4392 = vpow2.f32 %v3070_v38  ;;  %v3552_v49 = vunpack.c.l.bf16 %v5388_v24  ;;  %v3816_v56 = vunpack.c.l.bf16 %v3988_v44  ;;  %v5424_v35 = vld [vmem:[%s4639_s26 + $0x180] sm:$0xff]  }
 0x124   : > { %v3322_v45 = vpack.c.bf16 %v2159_v27, %v2159_v27  ;;  %v3071_v50 = vmul.f32 -1.442695, %v1273_v33  ;;  %v1274_v53 = vadd.f32 %v5182_v61, %v1142_v58  ;;  %v617_v51 = vmul.f32 %v5212_v37, %v3548_v30 }
 0x125   : > { %v4379_v41 = vpop.eup %4378  ;;  %4394 = vrcp.f32 %v1780_v40  ;;  %v618_v60 = vmul.f32 %v5212_v37, %v3549_v42  ;;  %v3817_v54 = vunpack.c.h.bf16 %v3988_v44  ;;  %v747_v7 = vadd.f32 %v5227_v5, %v615_v28  ;;  %v3990_v28 = vld [vmem:[%s4620_s20 + $0x190] sm:$0xff]  }
 0x126   : > { %v4381_v39 = vpop.eup %4380  ;;  %v2160_v46 = vmul.f32 %v4379_v41, %v744_v10  ;;  %2800 = vst.msk [vmem:[%s4722_s29 + $0x150] sm:$0xf] %vm2715_vm0, %v3322_v45  ;;  %v3072_v2 = vmul.f32 -1.442695, %v1274_v53  ;;  %v1143_v8 = vmul.f32 %v5206_v31, %v3816_v56  ;;  %v619_v12 = vmul.f32 %v5212_v37, %v3552_v49  ;;  %v3991_v53 = vld [vmem:[%s4620_s20 + $0x198] sm:$0xff]  }
 0x127   : > { %v4383_v47 = vpop.eup %4382  ;;  %v1781_v48 = vadd.f32 1.0, %v4381_v39  ;;  %v1144_v9 = vmul.f32 %v5206_v31, %v3817_v54  ;;  %v3820_v55 = vunpack.c.l.bf16 %v3989_v29  ;;  %v748_v13 = vadd.f32 %v5227_v5, %v616_v36 }
 0x128   : > { %v3323_v4 = vpack.c.bf16 %v2160_v46, %v2160_v46  ;;  %v2161_v52 = vmul.f32 %v4383_v47, %v745_v21  ;;  %v4385_v57 = vpop.eup %4384  ;;  %v1275_v63 = vadd.f32 %v5182_v61, %v1143_v8  ;;  %v749_v16 = vadd.f32 %v5227_v5, %v617_v51  ;;  %v3924_v21 = vld [vmem:[%s4639_s26 + $0x178] sm:$0xff]  }
 0x129   : > { %4396 = vrcp.f32 %v1781_v48  ;;  %v1782_v0 = vadd.f32 1.0, %v4385_v57  ;;  %v4387_v3 = vpop.eup %4386  ;;  %v1276_v14 = vadd.f32 %v5182_v61, %v1144_v9  ;;  %v750_v43 = vadd.f32 %v5227_v5, %v618_v60  ;;  %v5439_v60 = vld [vmem:[%s4625_s23 + $0x3] ss:$0 sm:$0xff] }
 0x12a   : > { %2801 = vst.msk [vmem:[%s4722_s29 + $0x154] sm:$0xf] %vm2715_vm0, %v3323_v4  ;;  %v3324_v62 = vpack.c.bf16 %v2161_v52, %v2161_v52  ;;  %4398 = vpow2.f32 %v3071_v50  ;;  %v2162_v10 = vmul.f32 %v4387_v3, %v746_v6  ;;  %v1145_v59 = vmul.f32 %v5206_v31, %v3820_v55  ;;  %v3992_v55 = vld [vmem:[%s4620_s20 + $0x1a0] sm:$0xff]  }
 0x12b   : > { %4400 = vrcp.f32 %v1782_v0  ;;  %v4389_v17 = vpop.eup %4388  ;;  %v3553_v20 = vunpack.c.h.bf16 %v5388_v24  ;;  %v3073_v6 = vmul.f32 -1.442695, %v1275_v63  ;;  %v3821_v22 = vunpack.c.h.bf16 %v3989_v29 }
 0x12c   : > { %2802 = vst.msk [vmem:[%s4722_s29 + $0x158] sm:$0xf] %vm2715_vm0, %v3324_v62  ;;  %4402 = vpow2.f32 %v3072_v2  ;;  %v3325_v1 = vpack.c.bf16 %v2162_v10, %v2162_v10  ;;  %v4391_v18 = vpop.eup %4390  ;;  %v2163_v19 = vmul.f32 %v4389_v17, %v747_v7  ;;  %v5419_v15 = vadd.f32 %v5227_v5, %v619_v12  ;;  %v3926_v17 = vld [vmem:[%s4639_s26 + $0x188] sm:$0xff]  }
 0x12d   : > { %v4393_v11 = vpop.eup %4392  ;;  %v1783_v34 = vadd.f32 1.0, %v4391_v18  ;;  %v3074_v25 = vmul.f32 -1.442695, %v1276_v14  ;;  %v1277_v26 = vadd.f32 %v5182_v61, %v1145_v59  ;;  %4404 = vpow2.f32 %v3073_v6 }
 0x12e   : > { %2803 = vst.msk [vmem:[%s4722_s29 + $0x15c] sm:$0xf] %vm2715_vm0, %v3325_v1  ;;  %v3326_v32 = vpack.c.bf16 %v2163_v19, %v2163_v19  ;;  %v1784_v23 = vadd.f32 1.0, %v4393_v11  ;;  %v1146_v27 = vmul.f32 %v5206_v31, %v3821_v22  ;;  %v3556_v24 = vunpack.c.l.bf16 %v3924_v21 }
 0x12f   : > { %v4395_v30 = vpop.eup %4394  ;;  %4406 = vrcp.f32 %v1783_v34  ;;  %v3075_v38 = vmul.f32 -1.442695, %v1277_v26  ;;  %v3557_v40 = vunpack.c.h.bf16 %v3924_v21  ;;  %v3824_v33 = vunpack.c.l.bf16 %v3990_v28 }
 0x130   : > { %v2164_v36 = vmul.f32 %v4395_v30, %v748_v13  ;;  %2804 = vst.msk [vmem:[%s4722_s29 + $0x160] sm:$0xf] %vm2715_vm0, %v3326_v32  ;;  %4408 = vrcp.f32 %v1784_v23  ;;  %v1278_v42 = vadd.f32 %v5182_v61, %v1146_v27  ;;  %v3560_v46 = vunpack.c.l.bf16 %v5424_v35 }
 0x131   : > { %4410 = vpow2.f32 %v3074_v25  ;;  %v1147_v48 = vmul.f32 %v5206_v31, %v3824_v33  ;;  %v620_v61 = vmul.f32 %v5212_v37, %v3553_v20  ;;  %v621_v4 = vmul.f32 %v5212_v37, %v3556_v24 }
 0x132   : > { %v3327_v39 = vpack.c.bf16 %v2164_v36, %v2164_v36  ;;  %4412 = vpow2.f32 %v3075_v38  ;;  %v3076_v47 = vmul.f32 -1.442695, %v1278_v42  ;;  %v3825_v52 = vunpack.c.h.bf16 %v3990_v28  ;;  %v5464_v28 = vld [vmem:[%s4639_s26 + $0x190] sm:$0xff]  }
 0x133   : > { %v4397_v41 = vpop.eup %4396  ;;  %v622_v51 = vmul.f32 %v5212_v37, %v3557_v40  ;;  %v1279_v54 = vadd.f32 %v5439_v60, %v1147_v48  ;;  %v623_v62 = vmul.f32 %v5212_v37, %v3560_v46  ;;  %v3561_v3 = vunpack.c.h.bf16 %v5424_v35  ;;  %v5472_v40 = vld [vmem:[%s4625_s23 + $0x2] ss:$0 sm:$0xff] }
 0x134   : > { %v4399_v44 = vpop.eup %4398  ;;  %v2165_v45 = vmul.f32 %v4397_v41, %v749_v16  ;;  %2805 = vst.msk [vmem:[%s4722_s29 + $0x164] sm:$0xf] %vm2715_vm0, %v3327_v39  ;;  %v1148_v0 = vmul.f32 %v5206_v31, %v3825_v52  ;;  %v3828_v8 = vunpack.c.l.bf16 %v3991_v53  ;;  %v752_v9 = vadd.f32 %v5227_v5, %v620_v61 }
 0x135   : > { %v1785_v58 = vadd.f32 1.0, %v4399_v44  ;;  %v4401_v49 = vpop.eup %4400  ;;  %v3077_v7 = vmul.f32 -1.442695, %v1279_v54  ;;  %v3829_v12 = vunpack.c.h.bf16 %v3991_v53  ;;  %v753_v63 = vadd.f32 %v5227_v5, %v621_v4 }
 0x136   : > { %v3328_v50 = vpack.c.bf16 %v2165_v45, %v2165_v45  ;;  %v4403_v56 = vpop.eup %4402  ;;  %v2166_v57 = vmul.f32 %v4401_v49, %v750_v43  ;;  %v1280_v10 = vadd.f32 %v5439_v60, %v1148_v0  ;;  %v754_v14 = vadd.f32 %v5227_v5, %v622_v51  ;;  %v5478_v45 = vld [vmem:[%s4625_s23] ss:$0 sm:$0xff] }
 0x137   : > { %4414 = vrcp.f32 %v1785_v58  ;;  %v1786_v29 = vadd.f32 1.0, %v4403_v56  ;;  %v4405_v13 = vpop.eup %4404  ;;  %v1149_v1 = vmul.f32 %v5206_v31, %v3828_v8  ;;  %v5457_v43 = vadd.f32 %v5227_v5, %v623_v62  ;;  %v3928_v8 = vld [vmem:[%s4639_s26 + $0x198] sm:$0xff]  }
 0x138   : > { %2806 = vst.msk [vmem:[%s4722_s29 + $0x168] sm:$0xf] %vm2715_vm0, %v3328_v50  ;;  %4416 = vpow2.f32 %v3076_v47  ;;  %v3329_v2 = vpack.c.bf16 %v2166_v57, %v2166_v57  ;;  %v1787_v59 = vadd.f32 1.0, %v4405_v13  ;;  %v3078_v18 = vmul.f32 -1.442695, %v1280_v10 }
 0x139   : > { %4418 = vrcp.f32 %v1786_v29  ;;  %v4407_v16 = vpop.eup %4406  ;;  %v1150_v19 = vmul.f32 %v5206_v31, %v3829_v12  ;;  %v624_v6 = vmul.f32 %v5212_v37, %v3561_v3  ;;  %v1281_v22 = vadd.f32 %v5439_v60, %v1149_v1  ;;  %v3993_v37 = vld [vmem:[%s4620_s20 + $0x1a8] sm:$0xff]   ;;  %v5495_v12 = vld [vmem:[%s4625_s23 + $0x1] ss:$0 sm:$0xff] }
 0x13a   : > { %2807 = vst.msk [vmem:[%s4722_s29 + $0x16c] sm:$0xf] %vm2715_vm0, %v3329_v2  ;;  %4420 = vpow2.f32 %v3077_v7  ;;  %v4409_v20 = vpop.eup %4408  ;;  %v2167_v21 = vmul.f32 %v4407_v16, %v5419_v15  ;;  %v3832_v11 = vunpack.c.l.bf16 %v3992_v55  ;;  %v3564_v26 = vunpack.c.l.bf16 %v3926_v17  ;;  %v3994_v2 = vld [vmem:[%s4620_s20 + $0x1b0] sm:$0xff]   ;;  %v3929_v1 = vld [vmem:[%s4639_s26 + $0x1a0] sm:$0xff]  }
 0x13b   : > { %v4411_v34 = vpop.eup %4410  ;;  %v2168_v25 = vmul.f32 %v4409_v20, %v752_v9  ;;  %4422 = vrcp.f32 %v1787_v59  ;;  %v1282_v30 = vadd.f32 %v5439_v60, %v1150_v19  ;;  %v3079_v15 = vmul.f32 -1.442695, %v1281_v22 }
 0x13c   : > { %v4413_v31 = vpop.eup %4412  ;;  %v3330_v32 = vpack.c.bf16 %v2167_v21, %v2167_v21  ;;  %v1788_v23 = vadd.f32 1.0, %v4411_v34  ;;  %4424 = vpow2.f32 %v3078_v18  ;;  %v3565_v36 = vunpack.c.h.bf16 %v3926_v17 }
 0x13d   : > { %v3331_v35 = vpack.c.bf16 %v2168_v25, %v2168_v25  ;;  %v1789_v27 = vadd.f32 1.0, %v4413_v31  ;;  %v3080_v24 = vmul.f32 -1.442695, %v1282_v30  ;;  %v3568_v41 = vunpack.c.l.bf16 %v5464_v28 }
 0x13e   : > { %2808 = vst.msk [vmem:[%s4722_s29 + $0x170] sm:$0xf] %vm2715_vm0, %v3330_v32  ;;  %4426 = vrcp.f32 %v1788_v23  ;;  %v1151_v42 = vmul.f32 %v5472_v40, %v3832_v11  ;;  %v3833_v33 = vunpack.c.h.bf16 %v3992_v55  ;;  %v625_v46 = vmul.f32 %v5478_v45, %v3564_v26 }
 0x13f   : > { %2809 = vst.msk [vmem:[%s4722_s29 + $0x174] sm:$0xf] %vm2715_vm0, %v3331_v35  ;;  %4428 = vrcp.f32 %v1789_v27  ;;  %v3836_v58 = vunpack.c.l.bf16 %v3993_v37  ;;  %v756_v47 = vadd.f32 %v5227_v5, %v624_v6  ;;  %v626_v4 = vmul.f32 %v5478_v45, %v3565_v36 }
 0x140   : > { %4430 = vpow2.f32 %v3079_v15  ;;  %v1283_v49 = vadd.f32 %v5439_v60, %v1151_v42  ;;  %v1152_v52 = vmul.f32 %v5472_v40, %v3833_v33  ;;  %v627_v57 = vmul.f32 %v5478_v45, %v3568_v41 }
 0x141   : > { %v4415_v38 = vpop.eup %4414  ;;  %4432 = vpow2.f32 %v3080_v24  ;;  %v757_v54 = vadd.f32 %v5227_v5, %v625_v46  ;;  %v1153_v0 = vmul.f32 %v5472_v40, %v3836_v58  ;;  %v3569_v7 = vunpack.c.h.bf16 %v5464_v28  ;;  %v3995_v24 = vld [vmem:[%s4620_s20 + $0x1b8] sm:$0xff]   ;;  %v5516_v46 = vld [vmem:[%s4639_s26 + $0x1a8] sm:$0xff]  }
 0x142   : > { %v4417_v44 = vpop.eup %4416  ;;  %v2169_v39 = vmul.f32 %v4415_v38, %v753_v63  ;;  %v3081_v51 = vmul.f32 -1.442695, %v1283_v49  ;;  %v1284_v62 = vadd.f32 %v5439_v60, %v1152_v52  ;;  %v3837_v9 = vunpack.c.h.bf16 %v3993_v37 }
 0x143   : > { %v1790_v48 = vadd.f32 1.0, %v4417_v44  ;;  %v4419_v50 = vpop.eup %4418  ;;  %v758_v55 = vadd.f32 %v5495_v12, %v626_v4  ;;  %v1285_v13 = vadd.f32 %v5439_v60, %v1153_v0  ;;  %v759_v17 = vadd.f32 %v5495_v12, %v627_v57 }
 0x144   : > { %v3332_v61 = vpack.c.bf16 %v2169_v39, %v2169_v39  ;;  %v4421_v53 = vpop.eup %4420  ;;  %v2170_v56 = vmul.f32 %v4419_v50, %v754_v14  ;;  %v3082_v5 = vmul.f32 -1.442695, %v1284_v62  ;;  %v1154_v16 = vmul.f32 %v5472_v40, %v3837_v9 }
 0x145   : > { %4434 = vrcp.f32 %v1790_v48  ;;  %v1791_v29 = vadd.f32 1.0, %v4421_v53  ;;  %v4423_v10 = vpop.eup %4422  ;;  %v3840_v59 = vunpack.c.l.bf16 %v3994_v2  ;;  %v3572_v19 = vunpack.c.l.bf16 %v3928_v8 }
 0x146   : > { %2810 = vst.msk [vmem:[%s4722_s29 + $0x178] sm:$0xf] %vm2715_vm0, %v3332_v61  ;;  %v3333_v3 = vpack.c.bf16 %v2170_v56, %v2170_v56  ;;  %4436 = vpow2.f32 %v3081_v51  ;;  %v4425_v63 = vpop.eup %4424  ;;  %v2171_v14 = vmul.f32 %v4423_v10, %v5457_v43  ;;  %v3083_v20 = vmul.f32 -1.442695, %v1285_v13 }
 0x147   : > { %4438 = vrcp.f32 %v1791_v29  ;;  %v1792_v18 = vadd.f32 1.0, %v4425_v63  ;;  %v628_v22 = vmul.f32 %v5478_v45, %v3569_v7  ;;  %v1286_v11 = vadd.f32 %v5439_v60, %v1154_v16 }
 0x148   : > { %2811 = vst.msk [vmem:[%s4722_s29 + $0x17c] sm:$0xf] %vm2715_vm0, %v3333_v3  ;;  %4440 = vpow2.f32 %v3082_v5  ;;  %v4427_v21 = vpop.eup %4426  ;;  %v3334_v6 = vpack.c.bf16 %v2171_v14, %v2171_v14  ;;  %v1155_v34 = vmul.f32 %v5472_v40, %v3840_v59  ;;  %v3573_v26 = vunpack.c.h.bf16 %v3928_v8  ;;  %v3996_v3 = vld [vmem:[%s4620_s20 + $0x1c0] sm:$0xff]  }
 0x149   : > { %v4429_v43 = vpop.eup %4428  ;;  %v2172_v25 = vmul.f32 %v4427_v21, %v756_v47  ;;  %4442 = vrcp.f32 %v1792_v18  ;;  %v3576_v28 = vunpack.c.l.bf16 %v3929_v1  ;;  %v3084_v32 = vmul.f32 -1.442695, %v1286_v11 }
 0x14a   : > { %v4431_v30 = vpop.eup %4430  ;;  %2812 = vst.msk [vmem:[%s4722_s29 + $0x180] sm:$0xf] %vm2715_vm0, %v3334_v6  ;;  %v2173_v31 = vmul.f32 %v4429_v43, %v757_v54  ;;  %4444 = vpow2.f32 %v3083_v20  ;;  %v1287_v23 = vadd.f32 %v5439_v60, %v1155_v34  ;;  %v629_v35 = vmul.f32 %v5478_v45, %v3572_v19  ;;  %v5541_v20 = vld [vmem:[%s4639_s26 + $0x1b0] sm:$0xff]   ;;  %v3997_v43 = vld [vmem:[%s4620_s20 + $0x1c8] sm:$0xff]  }
 0x14b   : > { %v4433_v15 = vpop.eup %4432  ;;  %v3335_v37 = vpack.c.bf16 %v2172_v25, %v2172_v25  ;;  %v1793_v27 = vadd.f32 1.0, %v4431_v30  ;;  %v3841_v36 = vunpack.c.h.bf16 %v3994_v2  ;;  %4446 = vpow2.f32 %v3084_v32 }
 0x14c   : > { %v3336_v41 = vpack.c.bf16 %v2173_v31, %v2173_v31  ;;  %v1794_v42 = vadd.f32 1.0, %v4433_v15  ;;  %v3085_v33 = vmul.f32 -1.442695, %v1287_v23  ;;  %v3577_v39 = vunpack.c.h.bf16 %v3929_v1 }
 0x14d   : > { %2813 = vst.msk [vmem:[%s4722_s29 + $0x184] sm:$0xf] %vm2715_vm0, %v3335_v37  ;;  %4448 = vrcp.f32 %v1793_v27  ;;  %v1156_v58 = vmul.f32 %v5472_v40, %v3841_v36  ;;  %v630_v48 = vmul.f32 %v5478_v45, %v3573_v26  ;;  %v631_v49 = vmul.f32 %v5478_v45, %v3576_v28 }
 0x14e   : > { %2814 = vst.msk [vmem:[%s4722_s29 + $0x188] sm:$0xf] %vm2715_vm0, %v3336_v41  ;;  %4450 = vrcp.f32 %v1794_v42  ;;  %v3844_v50 = vunpack.c.l.bf16 %v3995_v24  ;;  %v760_v57 = vadd.f32 %v5495_v12, %v628_v22  ;;  %v3580_v51 = vunpack.c.l.bf16 %v5516_v46 }
 0x14f   : > { %v4435_v38 = vpop.eup %4434  ;;  %4452 = vpow2.f32 %v3085_v33  ;;  %v1288_v53 = vadd.f32 %v5439_v60, %v1156_v58  ;;  %v632_v62 = vmul.f32 %v5478_v45, %v3577_v39  ;;  %v3845_v2 = vunpack.c.h.bf16 %v3995_v24 }
 0x150   : > { %v2174_v44 = vmul.f32 %v4435_v38, %v758_v55  ;;  %v4437_v47 = vpop.eup %4436  ;;  %v1157_v54 = vmul.f32 %v5472_v40, %v3844_v50  ;;  %v761_v8 = vadd.f32 %v5495_v12, %v629_v35  ;;  %v762_v5 = vadd.f32 %v5495_v12, %v630_v48 }
 0x151   : > { %v4439_v61 = vpop.eup %4438  ;;  %v1795_v52 = vadd.f32 1.0, %v4437_v47  ;;  %v3086_v0 = vmul.f32 -1.442695, %v1288_v53  ;;  %v763_v13 = vadd.f32 %v5495_v12, %v631_v49  ;;  %v1158_v63 = vmul.f32 %v5472_v40, %v3845_v2 }
 0x152   : > { %v3337_v4 = vpack.c.bf16 %v2174_v44, %v2174_v44  ;;  %v2175_v56 = vmul.f32 %v4439_v61, %v759_v17  ;;  %v4441_v29 = vpop.eup %4440  ;;  %v1289_v10 = vadd.f32 %v5439_v60, %v1157_v54  ;;  %v3848_v16 = vunpack.c.l.bf16 %v3996_v3 }
 0x153   : > { %4454 = vrcp.f32 %v1795_v52  ;;  %v1796_v9 = vadd.f32 1.0, %v4441_v29  ;;  %v4443_v55 = vpop.eup %4442  ;;  %v764_v59 = vadd.f32 %v5495_v12, %v632_v62  ;;  %v633_v18 = vmul.f32 %v5478_v45, %v3580_v51 }
 0x154   : > { %2815 = vst.msk [vmem:[%s4722_s29 + $0x18c] sm:$0xf] %vm2715_vm0, %v3337_v4  ;;  %v3338_v7 = vpack.c.bf16 %v2175_v56, %v2175_v56  ;;  %4456 = vpow2.f32 %v3086_v0  ;;  %v4445_v14 = vpop.eup %4444  ;;  %v2176_v17 = vmul.f32 %v4443_v55, %v760_v57  ;;  %v3087_v1 = vmul.f32 -1.442695, %v1289_v10  ;;  %v3998_v56 = vld [vmem:[%s4620_s20 + $0x1d0] sm:$0xff]  }
 0x155   : > { %4458 = vrcp.f32 %v1796_v9  ;;  %v1797_v19 = vadd.f32 1.0, %v4445_v14  ;;  %v1290_v21 = vadd.f32 %v5439_v60, %v1158_v63  ;;  %v4447_v6 = vpop.eup %4446  ;;  %v1159_v11 = vmul.f32 %v5472_v40, %v3848_v16 }
 0x156   : > { %2816 = vst.msk [vmem:[%s4722_s29 + $0x190] sm:$0xf] %vm2715_vm0, %v3338_v7  ;;  %v3339_v22 = vpack.c.bf16 %v2176_v17, %v2176_v17  ;;  %4460 = vpow2.f32 %v3087_v1  ;;  %v3849_v34 = vunpack.c.h.bf16 %v3996_v3  ;;  %v3581_v26 = vunpack.c.h.bf16 %v5516_v46  ;;  %v3932_v46 = vld [vmem:[%s4639_s26 + $0x1b8] sm:$0xff]  }
 0x157   : > { %v4449_v25 = vpop.eup %4448  ;;  %4462 = vrcp.f32 %v1797_v19  ;;  %v1798_v28 = vadd.f32 1.0, %v4447_v6  ;;  %v3088_v30 = vmul.f32 -1.442695, %v1290_v21  ;;  %v3584_v23 = vunpack.c.l.bf16 %v5541_v20  ;;  %v3999_v6 = vld [vmem:[%s4620_s20 + $0x1d8] sm:$0xff]  }
 0x158   : > { %v4451_v31 = vpop.eup %4450  ;;  %2817 = vst.msk [vmem:[%s4722_s29 + $0x194] sm:$0xf] %vm2715_vm0, %v3339_v22  ;;  %v2177_v32 = vmul.f32 %v4449_v25, %v761_v8  ;;  %v1291_v15 = vadd.f32 %v5439_v60, %v1159_v11  ;;  %v1160_v37 = vmul.f32 %v5472_v40, %v3849_v34  ;;  %v765_v36 = vadd.f32 %v5495_v12, %v633_v18 }
 0x159   : > { %v4453_v35 = vpop.eup %4452  ;;  %v2178_v27 = vmul.f32 %v4451_v31, %v762_v5  ;;  %4464 = vrcp.f32 %v1798_v28  ;;  %v3852_v24 = vunpack.c.l.bf16 %v3997_v43  ;;  %v634_v39 = vmul.f32 %v5478_v45, %v3581_v26 }
 0x15a   : > { %v3340_v38 = vpack.c.bf16 %v2177_v32, %v2177_v32  ;;  %v1799_v41 = vadd.f32 1.0, %v4453_v35  ;;  %4466 = vpow2.f32 %v3088_v30  ;;  %v3089_v42 = vmul.f32 -1.442695, %v1291_v15 }
 0x15b   : > { %v3341_v44 = vpack.c.bf16 %v2178_v27, %v2178_v27  ;;  %v1292_v58 = vadd.f32 %v5439_v60, %v1160_v37  ;;  %v1161_v47 = vmul.f32 %v5472_v40, %v3852_v24  ;;  %v635_v49 = vmul.f32 %v5478_v45, %v3584_v23 }
 0x15c   : > { %2818 = vst.msk [vmem:[%s4722_s29 + $0x198] sm:$0xf] %vm2715_vm0, %v3340_v38  ;;  %4468 = vrcp.f32 %v1799_v41  ;;  %v3853_v50 = vunpack.c.h.bf16 %v3997_v43  ;;  %v3585_v4 = vunpack.c.h.bf16 %v5541_v20  ;;  %v3588_v29 = vunpack.c.l.bf16 %v3932_v46  ;;  %v3933_v20 = vld [vmem:[%s4639_s26 + $0x1c0] sm:$0xff]  }
 0x15d   : > { %v4455_v33 = vpop.eup %4454  ;;  %2819 = vst.msk [vmem:[%s4722_s29 + $0x19c] sm:$0xf] %vm2715_vm0, %v3341_v44  ;;  %4470 = vpow2.f32 %v3089_v42  ;;  %v3090_v52 = vmul.f32 -1.442695, %v1292_v58  ;;  %v1293_v53 = vadd.f32 %v5439_v60, %v1161_v47  ;;  %v3589_v2 = vunpack.c.h.bf16 %v3932_v46 }
 0x15e   : > { %v2179_v48 = vmul.f32 %v4455_v33, %v763_v13  ;;  %v4457_v61 = vpop.eup %4456  ;;  %v1162_v62 = vmul.f32 %v5472_v40, %v3853_v50  ;;  %v766_v8 = vadd.f32 %v5495_v12, %v634_v39  ;;  %v3856_v10 = vunpack.c.l.bf16 %v3998_v56 }
 0x15f   : > { %v4459_v57 = vpop.eup %4458  ;;  %v1800_v54 = vadd.f32 1.0, %v4457_v61  ;;  %4472 = vpow2.f32 %v3090_v52  ;;  %v3091_v3 = vmul.f32 -1.442695, %v1293_v53  ;;  %v636_v13 = vmul.f32 %v5478_v45, %v3585_v4  ;;  %v4000_v61 = vld [vmem:[%s4620_s20 + $0x1e0] sm:$0xff]  }
 0x160   : > { %v3342_v51 = vpack.c.bf16 %v2179_v48, %v2179_v48  ;;  %v2180_v0 = vmul.f32 %v4459_v57, %v764_v59  ;;  %v4461_v7 = vpop.eup %4460  ;;  %v1294_v9 = vadd.f32 %v5439_v60, %v1162_v62  ;;  %v767_v17 = vadd.f32 %v5495_v12, %v635_v49 }
 0x161   : > { %4474 = vrcp.f32 %v1800_v54  ;;  %v4463_v55 = vpop.eup %4462  ;;  %v1801_v63 = vadd.f32 1.0, %v4461_v7  ;;  %v1163_v16 = vmul.f32 %v5472_v40, %v3856_v10  ;;  %v637_v18 = vmul.f32 %v5478_v45, %v3588_v29  ;;  %v5601_v10 = vld [vmem:[%s4639_s26 + $0x1d0] sm:$0xff]  }
 0x162   : > { %2820 = vst.msk [vmem:[%s4722_s29 + $0x1a0] sm:$0xf] %vm2715_vm0, %v3342_v51  ;;  %v3343_v5 = vpack.c.bf16 %v2180_v0, %v2180_v0  ;;  %4476 = vpow2.f32 %v3091_v3  ;;  %v2181_v14 = vmul.f32 %v4463_v55, %v765_v36  ;;  %v3092_v1 = vmul.f32 -1.442695, %v1294_v9  ;;  %v3934_v36 = vld [vmem:[%s4639_s26 + $0x1c8] sm:$0xff]  }
 0x163   : > { %v4465_v59 = vpop.eup %4464  ;;  %4478 = vrcp.f32 %v1801_v63  ;;  %v638_v19 = vmul.f32 %v5478_v45, %v3589_v2  ;;  %v3857_v21 = vunpack.c.h.bf16 %v3998_v56  ;;  %v1295_v43 = vadd.f32 %v5439_v60, %v1163_v16 }
 0x164   : > { %2821 = vst.msk [vmem:[%s4722_s29 + $0x1a4] sm:$0xf] %vm2715_vm0, %v3343_v5  ;;  %v4467_v22 = vpop.eup %4466  ;;  %v3344_v11 = vpack.c.bf16 %v2181_v14, %v2181_v14  ;;  %v2182_v34 = vmul.f32 %v4465_v59, %v766_v8  ;;  %4480 = vpow2.f32 %v3092_v1  ;;  %v768_v25 = vadd.f32 %v5495_v12, %v636_v13  ;;  %v4001_v5 = vld [vmem:[%s4620_s20 + $0x1e8] sm:$0xff]  }
 0x165   : > { %v1802_v26 = vadd.f32 1.0, %v4467_v22  ;;  %v1164_v28 = vmul.f32 %v5472_v40, %v3857_v21  ;;  %v3592_v32 = vunpack.c.l.bf16 %v3933_v20  ;;  %v3093_v23 = vmul.f32 -1.442695, %v1295_v43 }
 0x166   : > { %v4469_v30 = vpop.eup %4468  ;;  %2822 = vst.msk [vmem:[%s4722_s29 + $0x1a8] sm:$0xf] %vm2715_vm0, %v3344_v11  ;;  %v3345_v31 = vpack.c.bf16 %v2182_v34, %v2182_v34  ;;  %v3860_v15 = vunpack.c.l.bf16 %v3999_v6  ;;  %v769_v27 = vadd.f32 %v5495_v12, %v637_v18  ;;  %v770_v38 = vadd.f32 %v5495_v12, %v638_v19 }
 0x167   : > { %v4471_v37 = vpop.eup %4470  ;;  %v2183_v35 = vmul.f32 %v4469_v30, %v767_v17  ;;  %4482 = vrcp.f32 %v1802_v26  ;;  %v1296_v24 = vadd.f32 %v5439_v60, %v1164_v28  ;;  %v3593_v39 = vunpack.c.h.bf16 %v3933_v20 }
 0x168   : > { %2823 = vst.msk [vmem:[%s4722_s29 + $0x1ac] sm:$0xf] %vm2715_vm0, %v3345_v31  ;;  %v1803_v41 = vadd.f32 1.0, %v4471_v37  ;;  %4484 = vpow2.f32 %v3093_v23  ;;  %v1165_v42 = vmul.f32 %v5472_v40, %v3860_v15  ;;  %v3861_v58 = vunpack.c.h.bf16 %v3999_v6 }
 0x169   : > { %v4473_v33 = vpop.eup %4472  ;;  %v3346_v44 = vpack.c.bf16 %v2183_v35, %v2183_v35  ;;  %v3094_v46 = vmul.f32 -1.442695, %v1296_v24  ;;  %v3596_v49 = vunpack.c.l.bf16 %v3934_v36  ;;  %v639_v53 = vmul.f32 %v5478_v45, %v3592_v32 }
 0x16a   : > { %4486 = vrcp.f32 %v1803_v41  ;;  %v1804_v48 = vadd.f32 1.0, %v4473_v33  ;;  %v1297_v50 = vadd.f32 %v5439_v60, %v1165_v42  ;;  %v1166_v56 = vmul.f32 %v5472_v40, %v3861_v58 }
 0x16b   : > { %v4475_v47 = vpop.eup %4474  ;;  %2824 = vst.msk [vmem:[%s4722_s29 + $0x1b0] sm:$0xf] %vm2715_vm0, %v3346_v44  ;;  %4488 = vpow2.f32 %v3094_v46  ;;  %v3597_v51 = vunpack.c.h.bf16 %v3934_v36  ;;  %v640_v0 = vmul.f32 %v5478_v45, %v3593_v39  ;;  %v3864_v3 = vunpack.c.l.bf16 %v4000_v61  ;;  %v3936_v36 = vld [vmem:[%s4639_s26 + $0x1d8] sm:$0xff]  }
 0x16c   : > { %v4477_v4 = vpop.eup %4476  ;;  %v2184_v52 = vmul.f32 %v4475_v47, %v768_v25  ;;  %4490 = vrcp.f32 %v1804_v48  ;;  %v3095_v54 = vmul.f32 -1.442695, %v1297_v50  ;;  %v1298_v2 = vadd.f32 %v5439_v60, %v1166_v56 }
 0x16d   : > { %v1805_v57 = vadd.f32 1.0, %v4477_v4  ;;  %v4479_v29 = vpop.eup %4478  ;;  %v641_v9 = vmul.f32 %v5478_v45, %v3596_v49  ;;  %v3865_v55 = vunpack.c.h.bf16 %v4000_v61  ;;  %v1167_v14 = vmul.f32 %v5472_v40, %v3864_v3 }
 0x16e   : > { %v3347_v62 = vpack.c.bf16 %v2184_v52, %v2184_v52  ;;  %v4481_v7 = vpop.eup %4480  ;;  %v2185_v8 = vmul.f32 %v4479_v29, %v769_v27  ;;  %v3096_v63 = vmul.f32 -1.442695, %v1298_v2  ;;  %v771_v1 = vadd.f32 %v5495_v12, %v639_v53  ;;  %v4003_v2 = vld [vmem:[%s4620_s20 + $0x1f8] sm:$0xff]  }
 0x16f   : > { %4492 = vrcp.f32 %v1805_v57  ;;  %v1806_v13 = vadd.f32 1.0, %v4481_v7  ;;  %v642_v16 = vmul.f32 %v5478_v45, %v3597_v51  ;;  %v1168_v59 = vmul.f32 %v5472_v40, %v3865_v55 }
 0x170   : > { %2825 = vst.msk [vmem:[%s4722_s29 + $0x1b4] sm:$0xf] %vm2715_vm0, %v3347_v62  ;;  %4494 = vpow2.f32 %v3095_v54  ;;  %v3348_v17 = vpack.c.bf16 %v2185_v8, %v2185_v8  ;;  %v3600_v19 = vunpack.c.l.bf16 %v5601_v10  ;;  %v1299_v20 = vadd.f32 %v5439_v60, %v1167_v14 }
 0x171   : > { %v4483_v18 = vpop.eup %4482  ;;  %4496 = vrcp.f32 %v1806_v13  ;;  %v3868_v21 = vunpack.c.l.bf16 %v4001_v5  ;;  %v772_v11 = vadd.f32 %v5495_v12, %v640_v0  ;;  %v1300_v34 = vadd.f32 %v5439_v60, %v1168_v59 }
 0x172   : > { %v4485_v6 = vpop.eup %4484  ;;  %2826 = vst.msk [vmem:[%s4722_s29 + $0x1b8] sm:$0xf] %vm2715_vm0, %v3348_v17  ;;  %v2186_v22 = vmul.f32 %v4483_v18, %v770_v38  ;;  %4498 = vpow2.f32 %v3096_v63  ;;  %v773_v43 = vadd.f32 %v5495_v12, %v641_v9  ;;  %v3097_v26 = vmul.f32 -1.442695, %v1299_v20  ;;  %v4002_v38 = vld [vmem:[%s4620_s20 + $0x1f0] sm:$0xff]  }
 0x173   : > { %v1807_v25 = vadd.f32 1.0, %v4485_v6  ;;  %v1169_v28 = vmul.f32 %v5472_v40, %v3868_v21  ;;  %v774_v32 = vadd.f32 %v5495_v12, %v642_v16  ;;  %v3098_v23 = vmul.f32 -1.442695, %v1300_v34  ;;  %v3937_v16 = vld [vmem:[%s4639_s26 + $0x1e0] sm:$0xff]  }
 0x174   : > { %v4487_v30 = vpop.eup %4486  ;;  %v3349_v31 = vpack.c.bf16 %v2186_v22, %v2186_v22  ;;  %v3869_v15 = vunpack.c.h.bf16 %v4001_v5  ;;  %v643_v27 = vmul.f32 %v5478_v45, %v3600_v19  ;;  %v3601_v42 = vunpack.c.h.bf16 %v5601_v10 }
 0x175   : > { %v4489_v37 = vpop.eup %4488  ;;  %v2187_v35 = vmul.f32 %v4487_v30, %v771_v1  ;;  %4500 = vrcp.f32 %v1807_v25  ;;  %v1301_v24 = vadd.f32 %v5439_v60, %v1169_v28  ;;  %v3604_v48 = vunpack.c.l.bf16 %v3936_v36 }
 0x176   : > { %v4491_v41 = vpop.eup %4490  ;;  %2827 = vst.msk [vmem:[%s4722_s29 + $0x1bc] sm:$0xf] %vm2715_vm0, %v3349_v31  ;;  %v1808_v33 = vadd.f32 1.0, %v4489_v37  ;;  %4502 = vpow2.f32 %v3097_v26  ;;  %v1170_v44 = vmul.f32 %v5472_v40, %v3869_v15  ;;  %v3872_v50 = vunpack.c.l.bf16 %v4002_v38 }
 0x177   : > { %v3350_v39 = vpack.c.bf16 %v2187_v35, %v2187_v35  ;;  %v2188_v46 = vmul.f32 %v4491_v41, %v772_v11  ;;  %4504 = vpow2.f32 %v3098_v23  ;;  %v3099_v58 = vmul.f32 -1.442695, %v1301_v24 }
 0x178   : > { %4506 = vrcp.f32 %v1808_v33  ;;  %v1302_v49 = vadd.f32 %v5439_v60, %v1170_v44  ;;  %v1171_v57 = vmul.f32 %v5472_v40, %v3872_v50  ;;  %v775_v29 = vadd.f32 %v5495_v12, %v643_v27 }
 0x179   : > { %v4493_v47 = vpop.eup %4492  ;;  %2828 = vst.msk [vmem:[%s4722_s29 + $0x1c0] sm:$0xf] %vm2715_vm0, %v3350_v39  ;;  %v3351_v4 = vpack.c.bf16 %v2188_v46, %v2188_v46  ;;  %4508 = vpow2.f32 %v3099_v58  ;;  %v644_v62 = vmul.f32 %v5478_v45, %v3601_v42  ;;  %v3873_v0 = vunpack.c.h.bf16 %v4002_v38 }
 0x17a   : > { %v4495_v61 = vpop.eup %4494  ;;  %v2189_v52 = vmul.f32 %v4493_v47, %v773_v43  ;;  %v3100_v56 = vmul.f32 -1.442695, %v1302_v49  ;;  %v645_v8 = vmul.f32 %v5478_v45, %v3604_v48  ;;  %v1303_v9 = vadd.f32 %v5439_v60, %v1171_v57 }
 0x17b   : > { %v1809_v53 = vadd.f32 1.0, %v4495_v61  ;;  %v4497_v51 = vpop.eup %4496  ;;  %2829 = vst.msk [vmem:[%s4722_s29 + $0x1c4] sm:$0xf] %vm2715_vm0, %v3351_v4  ;;  %v3605_v10 = vunpack.c.h.bf16 %v3936_v36  ;;  %v1172_v5 = vmul.f32 %v5472_v40, %v3873_v0  ;;  %v3876_v14 = vunpack.c.l.bf16 %v4003_v2  ;;  %v3939_v61 = vld [vmem:[%s4639_s26 + $0x1f0] sm:$0xff]  }
 0x17c   : > { %v3352_v54 = vpack.c.bf16 %v2189_v52, %v2189_v52  ;;  %v4499_v3 = vpop.eup %4498  ;;  %v2190_v7 = vmul.f32 %v4497_v51, %v774_v32  ;;  %v3101_v63 = vmul.f32 -1.442695, %v1303_v9  ;;  %v776_v1 = vadd.f32 %v5495_v12, %v644_v62  ;;  %v3938_v32 = vld [vmem:[%s4639_s26 + $0x1e8] sm:$0xff]  }
 0x17d   : > { %4510 = vrcp.f32 %v1809_v53  ;;  %v1810_v55 = vadd.f32 1.0, %v4499_v3  ;;  %v1304_v59 = vadd.f32 %v5439_v60, %v1172_v5  ;;  %v3877_v18 = vunpack.c.h.bf16 %v4003_v2 }
 0x17e   : > { %2830 = vst.msk [vmem:[%s4722_s29 + $0x1c8] sm:$0xf] %vm2715_vm0, %v3352_v54  ;;  %4512 = vpow2.f32 %v3100_v56  ;;  %v3353_v13 = vpack.c.bf16 %v2190_v7, %v2190_v7  ;;  %v777_v21 = vadd.f32 %v5495_v12, %v645_v8  ;;  %v1173_v6 = vmul.f32 %v5472_v40, %v3876_v14 }
 0x17f   : > { %v4501_v17 = vpop.eup %4500  ;;  %4514 = vrcp.f32 %v1810_v55  ;;  %v646_v11 = vmul.f32 %v5478_v45, %v3605_v10  ;;  %v3102_v43 = vmul.f32 -1.442695, %v1304_v59  ;;  %v1174_v25 = vmul.f32 %v5472_v40, %v3877_v18 }
 0x180   : > { %v4503_v19 = vpop.eup %4502  ;;  %2831 = vst.msk [vmem:[%s4722_s29 + $0x1cc] sm:$0xf] %vm2715_vm0, %v3353_v13  ;;  %v2191_v20 = vmul.f32 %v4501_v17, %v775_v29  ;;  %4516 = vpow2.f32 %v3101_v63  ;;  %v3608_v30 = vunpack.c.l.bf16 %v3937_v16  ;;  %v1305_v23 = vadd.f32 %v5439_v60, %v1173_v6  ;;  %v3940_v13 = vld [vmem:[%s4639_s26 + $0x1f8] sm:$0xff]  }
 0x181   : > { %v4505_v22 = vpop.eup %4504  ;;  %v1811_v34 = vadd.f32 1.0, %v4503_v19  ;;  %v3609_v35 = vunpack.c.h.bf16 %v3937_v16  ;;  %v1306_v27 = vadd.f32 %v5439_v60, %v1174_v25  ;;  %v3612_v38 = vunpack.c.l.bf16 %v3938_v32 }
 0x182   : > { %v4507_v26 = vpop.eup %4506  ;;  %v3354_v28 = vpack.c.bf16 %v2191_v20, %v2191_v20  ;;  %v1812_v31 = vadd.f32 1.0, %v4505_v22  ;;  %v3103_v24 = vmul.f32 -1.442695, %v1305_v23  ;;  %v778_v33 = vadd.f32 %v5495_v12, %v646_v11 }
 0x183   : > { %v4509_v15 = vpop.eup %4508  ;;  %v2192_v37 = vmul.f32 %v4507_v26, %v776_v1  ;;  %4518 = vrcp.f32 %v1811_v34  ;;  %v3104_v41 = vmul.f32 -1.442695, %v1306_v27  ;;  %v647_v44 = vmul.f32 %v5478_v45, %v3608_v30 }
 0x184   : > { %2832 = vst.msk [vmem:[%s4722_s29 + $0x1d0] sm:$0xf] %vm2715_vm0, %v3354_v28  ;;  %4520 = vrcp.f32 %v1812_v31  ;;  %v1813_v36 = vadd.f32 1.0, %v4509_v15  ;;  %v648_v46 = vmul.f32 %v5478_v45, %v3609_v35  ;;  %v649_v49 = vmul.f32 %v5478_v45, %v3612_v38 }
 0x185   : > { %v3355_v40 = vpack.c.bf16 %v2192_v37, %v2192_v37  ;;  %4522 = vpow2.f32 %v3102_v43  ;;  %v3613_v50 = vunpack.c.h.bf16 %v3938_v32  ;;  %v779_v53 = vadd.f32 %v5495_v12, %v647_v44 }
 0x186   : > { %4524 = vrcp.f32 %v1813_v36  ;;  %v780_v56 = vadd.f32 %v5495_v12, %v648_v46  ;;  %v3616_v54 = vunpack.c.l.bf16 %v3939_v61  ;;  %v781_v62 = vadd.f32 %v5495_v12, %v649_v49 }
 0x187   : > { %v4511_v42 = vpop.eup %4510  ;;  %2833 = vst.msk [vmem:[%s4722_s29 + $0x1d4] sm:$0xf] %vm2715_vm0, %v3355_v40  ;;  %4526 = vpow2.f32 %v3103_v24  ;;  %v650_v0 = vmul.f32 %v5478_v45, %v3613_v50  ;;  %v3617_v16 = vunpack.c.h.bf16 %v3939_v61  ;;  %v3620_v20 = vunpack.c.l.bf16 %v3940_v13 }
 0x188   : > { %v4513_v39 = vpop.eup %4512  ;;  %v2193_v60 = vmul.f32 %v4511_v42, %v777_v21  ;;  %4528 = vpow2.f32 %v3104_v41  ;;  %v651_v55 = vmul.f32 %v5478_v45, %v3616_v54  ;;  %v3621_v11 = vunpack.c.h.bf16 %v3940_v13 }
 0x189   : > { %v1814_v58 = vadd.f32 1.0, %v4513_v39  ;;  %v4515_v47 = vpop.eup %4514  ;;  %v782_v1 = vadd.f32 %v5495_v12, %v650_v0  ;;  %v652_v43 = vmul.f32 %v5478_v45, %v3617_v16  ;;  %v653_v28 = vmul.f32 %v5478_v45, %v3620_v20 }
 0x18a   : > { %v3356_v48 = vpack.c.bf16 %v2193_v60, %v2193_v60  ;;  %v4517_v4 = vpop.eup %4516  ;;  %v2194_v52 = vmul.f32 %v4515_v47, %v778_v33  ;;  %v783_v22 = vadd.f32 %v5495_v12, %v651_v55  ;;  %v654_v31 = vmul.f32 %v5478_v45, %v3621_v11 }
 0x18b   : > { %4530 = vrcp.f32 %v1814_v58  ;;  %v1815_v57 = vadd.f32 1.0, %v4517_v4  ;;  %v784_v32 = vadd.f32 %v5495_v12, %v652_v43  ;;  %v785_v15 = vadd.f32 %v5495_v12, %v653_v28 }
 0x18c   : > { %2834 = vst.msk [vmem:[%s4722_s29 + $0x1d8] sm:$0xf] %vm2715_vm0, %v3356_v48  ;;  %v3357_v51 = vpack.c.bf16 %v2194_v52, %v2194_v52  ;;  %v786_v35 = vadd.f32 %v5495_v12, %v654_v31 }
 0x18d   : > { %v4519_v29 = vpop.eup %4518  ;;  %4532 = vrcp.f32 %v1815_v57 }
 0x18e   : > { %v4521_v2 = vpop.eup %4520  ;;  %2835 = vst.msk [vmem:[%s4722_s29 + $0x1dc] sm:$0xf] %vm2715_vm0, %v3357_v51  ;;  %v2195_v3 = vmul.f32 %v4519_v29, %v779_v53 }
 0x18f   : > { %v4523_v7 = vpop.eup %4522  ;;  %v2196_v8 = vmul.f32 %v4521_v2, %v780_v56 }
 0x190   : > { %v4525_v9 = vpop.eup %4524  ;;  %v3358_v10 = vpack.c.bf16 %v2195_v3, %v2195_v3  ;;  %v1816_v5 = vadd.f32 1.0, %v4523_v7 }
 0x191   : > { %v4527_v63 = vpop.eup %4526  ;;  %v3359_v14 = vpack.c.bf16 %v2196_v8, %v2196_v8  ;;  %v2197_v17 = vmul.f32 %v4525_v9, %v781_v62 }
 0x192   : > { %v4529_v59 = vpop.eup %4528  ;;  %2836 = vst.msk [vmem:[%s4722_s29 + $0x1e0] sm:$0xf] %vm2715_vm0, %v3358_v10  ;;  %4534 = vrcp.f32 %v1816_v5  ;;  %v1817_v18 = vadd.f32 1.0, %v4527_v63 }
 0x193   : > { %2837 = vst.msk [vmem:[%s4722_s29 + $0x1e4] sm:$0xf] %vm2715_vm0, %v3359_v14  ;;  %v3360_v19 = vpack.c.bf16 %v2197_v17, %v2197_v17  ;;  %v1818_v21 = vadd.f32 1.0, %v4529_v59 }
 0x194   : > { %4536 = vrcp.f32 %v1817_v18 }
 0x195   : > { %v4531_v6 = vpop.eup %4530  ;;  %2838 = vst.msk [vmem:[%s4722_s29 + $0x1e8] sm:$0xf] %vm2715_vm0, %v3360_v19  ;;  %4538 = vrcp.f32 %v1818_v21 }
 0x196   : > { %v2198_v34 = vmul.f32 %v4531_v6, %v782_v1 }
 0x197   : > { %v4533_v25 = vpop.eup %4532 }
 0x198   : > { %v3361_v26 = vpack.c.bf16 %v2198_v34, %v2198_v34  ;;  %v2199_v30 = vmul.f32 %v4533_v25, %v783_v22 }
 0x19a   : > { %2839 = vst.msk [vmem:[%s4722_s29 + $0x1ec] sm:$0xf] %vm2715_vm0, %v3361_v26  ;;  %v3362_v23 = vpack.c.bf16 %v2199_v30, %v2199_v30 }
 0x19c   : > { %v4535_v37 = vpop.eup %4534  ;;  %2840 = vst.msk [vmem:[%s4722_s29 + $0x1f0] sm:$0xf] %vm2715_vm0, %v3362_v23 }
 0x19d   : > { %v2200_v27 = vmul.f32 %v4535_v37, %v784_v32 }
 0x19e   : > { %v4537_v36 = vpop.eup %4536 }
 0x19f   : > { %v4539_v24 = vpop.eup %4538  ;;  %v3363_v40 = vpack.c.bf16 %v2200_v27, %v2200_v27  ;;  %v2201_v38 = vmul.f32 %v4537_v36, %v785_v15 }
 0x1a0   : > { %v2202_v45 = vmul.f32 %v4539_v24, %v786_v35 }
 0x1a1   : > { %2841 = vst.msk [vmem:[%s4722_s29 + $0x1f4] sm:$0xf] %vm2715_vm0, %v3363_v40  ;;  %v3364_v41 = vpack.c.bf16 %v2201_v38, %v2201_v38 }
 0x1a2   : > { %v3365_v42 = vpack.c.bf16 %v2202_v45, %v2202_v45 }
 0x1a3   : > { %2842 = vst.msk [vmem:[%s4722_s29 + $0x1f8] sm:$0xf] %vm2715_vm0, %v3364_v41 }
 0x1a4   : > { %2843 = vst.msk [vmem:[%s4722_s29 + $0x1fc] sm:$0xf] %vm2715_vm0, %v3365_v42 }
 0x1a5 PF: > { %s13_s14 = sadd.s32 1, %s4574_s14   ;;  %s5709_s12 = smov %s4570_s13 }
 0x1a6   : > { %p10_p5 = scmp.ge.s32.totalorder %s13_s14, 4   ;;  %s5710_s13 = smov %s5712_s15 }
 0x1a8   :  { %12 = sbr.rel (!%p10_p5) target bundleno = 2 (0x2), region = 68 }

// kernel: upblock_smallcond_forward.2
= control target key start
LH: loop header
LB: loop body
LE: loop exit
PB: predicated region body
PF: predicated region fallthrough
CT: control target
= control target key end

     0   :  { %s6732_s21 = smov 0   ;;  %s6734_s22 = smov 0   ;;  %s9769_s0 = inlined_call_operand.vmem [shape: bf16[2,1,272,16], index: 0, kind: input, shape index: {}]   ;;  %s9770_s1 = inlined_call_operand.vmem [shape: bf16[2,1,272,16], index: 1, kind: input, shape index: {}]   ;;  %s9771_s2 = inlined_call_operand.vmem [shape: bf16[4,1,16,4], index: 2, kind: input, shape index: {}]   ;;  %s9772_s3 = inlined_call_operand.vmem [shape: bf16[4,1,16,4], index: 3, kind: input, shape index: {}]   ;;  %s9773_s4 = inlined_call_operand.vmem [shape: bf16[2,4,256,4], index: 4, kind: output, shape index: {0}]   ;;  %s9774_s5 = inlined_call_operand.vmem [shape: bf16[2,4,256,4], index: 5, kind: output, shape index: {1}]   ;;  %s9775_s6 = inlined_call_operand.vmem [shape: f32[2,1,4,4], index: 6, kind: output, shape index: {2}]  }
   0x1   :  { %s6736_s23 = smov 0  }
   0x2 LB: > { %s29_s24 = sadd.s32 1, %s6691_s22  ;;  %p5240_p0 = scmp.ge.s32.totalorder %s6695_s23, 1  ;;  %s6695_s23 = sphi %s6736_s23, %s17_s23   ;;  %s6691_s22 = sphi %s6734_s22, %s10016_s22   ;;  %s6687_s21 = sphi %s6732_s21, %s10015_s21  }
   0x3   : > { %p31_p1 = scmp.ge.s32.totalorder %s29_s24, 2  ;;  %p257_p2 = scmp.lt.s32.totalorder %s6695_s23, 3 }
   0x5   : > { %s10018_s24 = smov (%p31_p1, %s29_s24), 0  ;;  %p258_p3 = pnand %p5240_p0, %p257_p2 }
   0x7   : > { %261 = sbr.rel (%p258_p3) target bundleno = 654 (0x28e), region = 36 }
   0xe   : > { %v6601_v0 = vld [vmem:[%s9771_s2] sm:$0xff]   ;;  %p320_p4 = scmp.lt.s32.totalorder %s6687_s21, 1  ;;  %v6604_v2 = vld [vmem:[%s9771_s2 + $0x8] sm:$0xff]   ;;  %vm486_vm0 = vcmask 130048   ;;  %v6774_v5 = vld [vmem:[%s9771_s2 + $0x10] sm:$0xff]   ;;  %vm993_vm1 = vcmask 27648  }
   0xf   : > { %v6602_v1 = vld [vmem:[%s9772_s3] sm:$0xff]   ;;  %6304 = vmatprep.subr.bf16.mxu0 %v6601_v0  ;;  %v6605_v3 = vld [vmem:[%s9772_s3 + $0x8] sm:$0xff]   ;;  %v6623_v6 = vld [vmem:[%s9772_s3 + $0x10] sm:$0xff]   ;;  %vm1186_vm2 = vcmask 31744   ;;  %vm5029_vm3 = vcmask 24576  }
  0x10   : > { %s10020_s21 = smov (!%p320_p4, %s6687_s21), 1  ;;  %6338 = vmatprep.subr.bf16.mxu1 %v6602_v1  ;;  %6305 = vmatpush3.bf16.msra.mxu0 %v6601_v0  ;;  %v6640_v25 = vld [vmem:[%s9771_s2 + $0x18] sm:$0xff]  }
  0x11   : > { %6339 = vmatpush3.bf16.msra.mxu1 %v6602_v1  ;;  %s6576_s9 = smul.u32 136, %s10020_s21  ;;  %6372 = vmatprep.subr.bf16.mxu0 %v6604_v2  ;;  %v6641_v26 = vld [vmem:[%s9772_s3 + $0x18] sm:$0xff]   ;;  %s5910_s28 = sshll.u32 %s10020_s21, 9 }
  0x12   : > { %6406 = vmatprep.subr.bf16.mxu1 %v6605_v3  ;;  %s6960_s7 = scalar_lea.vmem %s9773_s4, %s5910_s28  ;;  %s6965_s10 = scalar_lea.vmem %s9774_s5, %s5910_s28 }
  0x13   : > { %s6768_s12 = scalar_lea.vmem %s9769_s0, %s6576_s9  ;;  %s6797_s19 = scalar_lea.vmem %s9770_s1, %s6576_s9 }
  0x14   : > { %v6603_v4 = vld [vmem:[%s6768_s12] sm:$0xff]   ;;  %v6606_v7 = vld [vmem:[%s6768_s12 + $0x8] sm:$0xff]   ;;  %v6607_v8 = vld [vmem:[%s6768_s12 + $0x10] sm:$0xff]   ;;  %s5247_s11 = sshll.u32 %s10020_s21, 2 }
  0x15   : > { %6306 = vmatprep.mubr.msk.bf16.mxu0 %vm486_vm0, %v6603_v4  ;;  %6340 = vmatprep.mubr.msk.bf16.mxu1 %vm486_vm0, %v6603_v4  ;;  %v6608_v9 = vld [vmem:[%s6768_s12 + $0x18] sm:$0xff]   ;;  %v6609_v10 = vld [vmem:[%s6768_s12 + $0x20] sm:$0xff]   ;;  %v6610_v11 = vld [vmem:[%s6768_s12 + $0x28] sm:$0xff]   ;;  %s364_s14 = scalar_lea.vmem %s9775_s6, %s5247_s11 }
  0x16   : > { %6307 = vmatmul.mubr.msk.bf16.vlgmr.msra.gmra.mrb[0].mxu0 %vm486_vm0, %v6606_v7  ;;  %6341 = vmatmul.mubr.msk.bf16.vlgmr.msra.gmra.mrb[0].mxu1 %vm486_vm0, %v6606_v7  ;;  %v6611_v12 = vld [vmem:[%s6768_s12 + $0x30] sm:$0xff]   ;;  %v6612_v13 = vld [vmem:[%s6768_s12 + $0x38] sm:$0xff]   ;;  %v6613_v14 = vld [vmem:[%s6768_s12 + $0x40] sm:$0xff]  }
  0x17   : > { %6373 = vmatpush3.bf16.msra.mxu0 %v6604_v2  ;;  %6407 = vmatpush3.bf16.msra.mxu1 %v6605_v3  ;;  %v6614_v15 = vld [vmem:[%s6768_s12 + $0x48] sm:$0xff]   ;;  %v6615_v16 = vld [vmem:[%s6768_s12 + $0x50] sm:$0xff]   ;;  %v6616_v17 = vld [vmem:[%s6768_s12 + $0x58] sm:$0xff]  }
  0x18   : > { %6310 = vmatprep.mubr.msk.bf16.mxu0 %vm486_vm0, %v6607_v8  ;;  %6344 = vmatprep.mubr.msk.bf16.mxu1 %vm486_vm0, %v6607_v8  ;;  %v6617_v18 = vld [vmem:[%s6768_s12 + $0x60] sm:$0xff]   ;;  %v6618_v19 = vld [vmem:[%s6768_s12 + $0x68] sm:$0xff]   ;;  %v6619_v20 = vld [vmem:[%s6768_s12 + $0x70] sm:$0xff]  }
  0x19   : > { %6440 = vmatprep.subr.bf16.mxu0 %v6774_v5  ;;  %6474 = vmatprep.subr.bf16.mxu1 %v6623_v6  ;;  %v6620_v21 = vld [vmem:[%s6768_s12 + $0x78] sm:$0xff]   ;;  %v6621_v22 = vld [vmem:[%s6797_s19] sm:$0xff]   ;;  %v6624_v23 = vld [vmem:[%s6797_s19 + $0x8] sm:$0xff]  }
  0x1a   : > { %v6625_v24 = vld [vmem:[%s6797_s19 + $0x10] sm:$0xff]   ;;  %v6626_v27 = vld [vmem:[%s6797_s19 + $0x18] sm:$0xff]   ;;  %v6627_v28 = vld [vmem:[%s6797_s19 + $0x20] sm:$0xff]  }
  0x1b   : > { %v6628_v29 = vld [vmem:[%s6797_s19 + $0x28] sm:$0xff]   ;;  %v6629_v30 = vld [vmem:[%s6797_s19 + $0x30] sm:$0xff]   ;;  %v6630_v31 = vld [vmem:[%s6797_s19 + $0x38] sm:$0xff]  }
  0x1c   : > { %v6631_v32 = vld [vmem:[%s6797_s19 + $0x40] sm:$0xff]   ;;  %v6632_v33 = vld [vmem:[%s6797_s19 + $0x48] sm:$0xff]   ;;  %v6633_v34 = vld [vmem:[%s6797_s19 + $0x50] sm:$0xff]  }
  0x1d   : > { %v6634_v35 = vld [vmem:[%s6797_s19 + $0x58] sm:$0xff]   ;;  %v6635_v36 = vld [vmem:[%s6797_s19 + $0x60] sm:$0xff]   ;;  %v6636_v37 = vld [vmem:[%s6797_s19 + $0x68] sm:$0xff]  }
  0x1e   : > { %6311 = vmatmul.mubr.msk.bf16.gmra.mrb[4].mxu0 %vm486_vm0, %v6608_v9  ;;  %6345 = vmatmul.mubr.msk.bf16.gmra.mrb[4].mxu1 %vm486_vm0, %v6608_v9  ;;  %v6637_v38 = vld [vmem:[%s6797_s19 + $0x70] sm:$0xff]   ;;  %v6638_v39 = vld [vmem:[%s6797_s19 + $0x78] sm:$0xff]   ;;  %v6639_v40 = vld [vmem:[%s6768_s12 + $0x8] sm:$0xff]  }
  0x1f   : > { %6314 = vmatprep.mubr.msk.bf16.mxu0 %vm486_vm0, %v6609_v10  ;;  %6348 = vmatprep.mubr.msk.bf16.mxu1 %vm486_vm0, %v6609_v10  ;;  %v6642_v41 = vld [vmem:[%s6768_s12 + $0x10] sm:$0xff]   ;;  %v6643_v42 = vld [vmem:[%s6768_s12 + $0x18] sm:$0xff]   ;;  %v6644_v43 = vld [vmem:[%s6768_s12 + $0x20] sm:$0xff]  }
  0x20   : > { %v6645_v44 = vld [vmem:[%s6768_s12 + $0x28] sm:$0xff]   ;;  %v6646_v45 = vld [vmem:[%s6768_s12 + $0x30] sm:$0xff]   ;;  %v6647_v46 = vld [vmem:[%s6768_s12 + $0x38] sm:$0xff]  }
  0x21   : > { %v6648_v47 = vld [vmem:[%s6768_s12 + $0x40] sm:$0xff]   ;;  %v6649_v48 = vld [vmem:[%s6768_s12 + $0x48] sm:$0xff]   ;;  %v6650_v49 = vld [vmem:[%s6768_s12 + $0x50] sm:$0xff]  }
  0x22   : > { %v6651_v50 = vld [vmem:[%s6768_s12 + $0x58] sm:$0xff]   ;;  %v6652_v51 = vld [vmem:[%s6768_s12 + $0x60] sm:$0xff]   ;;  %v6653_v52 = vld [vmem:[%s6768_s12 + $0x68] sm:$0xff]  }
  0x23   : > { %v6654_v53 = vld [vmem:[%s6768_s12 + $0x70] sm:$0xff]   ;;  %v6655_v54 = vld [vmem:[%s6768_s12 + $0x78] sm:$0xff]   ;;  %v6656_v55 = vld [vmem:[%s6768_s12 + $0x80] sm:$0xff]  }
  0x24   : > { %v6657_v56 = vld [vmem:[%s6797_s19 + $0x8] sm:$0xff]   ;;  %v6658_v57 = vld [vmem:[%s6797_s19 + $0x10] sm:$0xff]   ;;  %v6659_v58 = vld [vmem:[%s6797_s19 + $0x18] sm:$0xff]  }
  0x25   : > { %v6660_v59 = vld [vmem:[%s6797_s19 + $0x20] sm:$0xff]   ;;  %v6661_v60 = vld [vmem:[%s6797_s19 + $0x28] sm:$0xff]   ;;  %v6662_v61 = vld [vmem:[%s6797_s19 + $0x30] sm:$0xff]  }
  0x26   : > { %6315 = vmatmul.mubr.msk.bf16.gmra.mrb[8].mxu0 %vm486_vm0, %v6610_v11  ;;  %6349 = vmatmul.mubr.msk.bf16.gmra.mrb[8].mxu1 %vm486_vm0, %v6610_v11  ;;  %v6663_v62 = vld [vmem:[%s6797_s19 + $0x38] sm:$0xff]   ;;  %v6665_v11 = vld [vmem:[%s6797_s19 + $0x48] sm:$0xff]  }
  0x27   : > { %6318 = vmatprep.mubr.msk.bf16.mxu0 %vm486_vm0, %v6611_v12  ;;  %6352 = vmatprep.mubr.msk.bf16.mxu1 %vm486_vm0, %v6611_v12 }
  0x2e   : > { %6319 = vmatmul.mubr.msk.bf16.gmra.mrb[12].mxu0 %vm486_vm0, %v6612_v13  ;;  %6353 = vmatmul.mubr.msk.bf16.gmra.mrb[12].mxu1 %vm486_vm0, %v6612_v13 }
  0x2f   : > { %6322 = vmatprep.mubr.msk.bf16.mxu0 %vm486_vm0, %v6613_v14  ;;  %6356 = vmatprep.mubr.msk.bf16.mxu1 %vm486_vm0, %v6613_v14 }
  0x36   : > { %6323 = vmatmul.mubr.msk.bf16.gmra.mrb[16].mxu0 %vm486_vm0, %v6614_v15  ;;  %6357 = vmatmul.mubr.msk.bf16.gmra.mrb[16].mxu1 %vm486_vm0, %v6614_v15 }
  0x37   : > { %6326 = vmatprep.mubr.msk.bf16.mxu0 %vm486_vm0, %v6615_v16  ;;  %6360 = vmatprep.mubr.msk.bf16.mxu1 %vm486_vm0, %v6615_v16 }
  0x3e   : > { %6327 = vmatmul.mubr.msk.bf16.gmra.mrb[20].mxu0 %vm486_vm0, %v6616_v17  ;;  %6361 = vmatmul.mubr.msk.bf16.gmra.mrb[20].mxu1 %vm486_vm0, %v6616_v17 }
  0x3f   : > { %6330 = vmatprep.mubr.msk.bf16.mxu0 %vm486_vm0, %v6617_v18  ;;  %6364 = vmatprep.mubr.msk.bf16.mxu1 %vm486_vm0, %v6617_v18 }
  0x46   : > { %6331 = vmatmul.mubr.msk.bf16.gmra.mrb[24].mxu0 %vm486_vm0, %v6618_v19  ;;  %6365 = vmatmul.mubr.msk.bf16.gmra.mrb[24].mxu1 %vm486_vm0, %v6618_v19 }
  0x47   : > { %6334 = vmatprep.mubr.msk.bf16.mxu0 %vm486_vm0, %v6619_v20  ;;  %6368 = vmatprep.mubr.msk.bf16.mxu1 %vm486_vm0, %v6619_v20 }
  0x4e   : > { %6335 = vmatmul.mubr.msk.bf16.gmra.mrb[28].mxu0 %vm486_vm0, %v6620_v21  ;;  %6369 = vmatmul.mubr.msk.bf16.gmra.mrb[28].mxu1 %vm486_vm0, %v6620_v21 }
  0x4f   : > { %6374 = vmatprep.mubr.msk.bf16.mxu0 %vm486_vm0, %v6621_v22  ;;  %6408 = vmatprep.mubr.msk.bf16.mxu1 %vm486_vm0, %v6621_v22 }
  0x56   : > { %6375 = vmatmul.mubr.msk.bf16.vlgmr.msra.gmra.mrb[32].mxu0 %vm486_vm0, %v6624_v23  ;;  %6409 = vmatmul.mubr.msk.bf16.vlgmr.msra.gmra.mrb[32].mxu1 %vm486_vm0, %v6624_v23 }
  0x57   : > { %6441 = vmatpush3.bf16.msra.mxu0 %v6774_v5  ;;  %6475 = vmatpush3.bf16.msra.mxu1 %v6623_v6  ;;  %v6664_v6 = vld [vmem:[%s6797_s19 + $0x40] sm:$0xff]  }
  0x58   : > { %6378 = vmatprep.mubr.msk.bf16.mxu0 %vm486_vm0, %v6625_v24  ;;  %6412 = vmatprep.mubr.msk.bf16.mxu1 %vm486_vm0, %v6625_v24 }
  0x59   : > { %6508 = vmatprep.subr.bf16.mxu0 %v6640_v25  ;;  %6542 = vmatprep.subr.bf16.mxu1 %v6641_v26 }
  0x5e   : > { %6379 = vmatmul.mubr.msk.bf16.gmra.mrb[36].mxu0 %vm486_vm0, %v6626_v27  ;;  %6413 = vmatmul.mubr.msk.bf16.gmra.mrb[36].mxu1 %vm486_vm0, %v6626_v27 }
  0x5f   : > { %6382 = vmatprep.mubr.msk.bf16.mxu0 %vm486_vm0, %v6627_v28  ;;  %6416 = vmatprep.mubr.msk.bf16.mxu1 %vm486_vm0, %v6627_v28 }
  0x66   : > { %6383 = vmatmul.mubr.msk.bf16.gmra.mrb[40].mxu0 %vm486_vm0, %v6628_v29  ;;  %6417 = vmatmul.mubr.msk.bf16.gmra.mrb[40].mxu1 %vm486_vm0, %v6628_v29 }
  0x67   : > { %6386 = vmatprep.mubr.msk.bf16.mxu0 %vm486_vm0, %v6629_v30  ;;  %6420 = vmatprep.mubr.msk.bf16.mxu1 %vm486_vm0, %v6629_v30 }
  0x6e   : > { %6387 = vmatmul.mubr.msk.bf16.gmra.mrb[44].mxu0 %vm486_vm0, %v6630_v31  ;;  %6421 = vmatmul.mubr.msk.bf16.gmra.mrb[44].mxu1 %vm486_vm0, %v6630_v31 }
  0x6f   : > { %6390 = vmatprep.mubr.msk.bf16.mxu0 %vm486_vm0, %v6631_v32  ;;  %6424 = vmatprep.mubr.msk.bf16.mxu1 %vm486_vm0, %v6631_v32 }
  0x76   : > { %6391 = vmatmul.mubr.msk.bf16.gmra.mrb[48].mxu0 %vm486_vm0, %v6632_v33  ;;  %6425 = vmatmul.mubr.msk.bf16.gmra.mrb[48].mxu1 %vm486_vm0, %v6632_v33 }
  0x77   : > { %6394 = vmatprep.mubr.msk.bf16.mxu0 %vm486_vm0, %v6633_v34  ;;  %6428 = vmatprep.mubr.msk.bf16.mxu1 %vm486_vm0, %v6633_v34 }
  0x7e   : > { %6395 = vmatmul.mubr.msk.bf16.gmra.mrb[52].mxu0 %vm486_vm0, %v6634_v35  ;;  %6429 = vmatmul.mubr.msk.bf16.gmra.mrb[52].mxu1 %vm486_vm0, %v6634_v35 }
  0x7f   : > { %6398 = vmatprep.mubr.msk.bf16.mxu0 %vm486_vm0, %v6635_v36  ;;  %6432 = vmatprep.mubr.msk.bf16.mxu1 %vm486_vm0, %v6635_v36 }
  0x86   : > { %6399 = vmatmul.mubr.msk.bf16.gmra.mrb[56].mxu0 %vm486_vm0, %v6636_v37  ;;  %6433 = vmatmul.mubr.msk.bf16.gmra.mrb[56].mxu1 %vm486_vm0, %v6636_v37 }
  0x87   : > { %6402 = vmatprep.mubr.msk.bf16.mxu0 %vm486_vm0, %v6637_v38  ;;  %6436 = vmatprep.mubr.msk.bf16.mxu1 %vm486_vm0, %v6637_v38 }
  0x8e   : > { %6403 = vmatmul.mubr.msk.bf16.gmra.mrb[60].mxu0 %vm486_vm0, %v6638_v39  ;;  %6437 = vmatmul.mubr.msk.bf16.gmra.mrb[60].mxu1 %vm486_vm0, %v6638_v39 }
  0x8f   : > { %6442 = vmatprep.mubr.msk.bf16.mxu0 %vm486_vm0, %v6639_v40  ;;  %6476 = vmatprep.mubr.msk.bf16.mxu1 %vm486_vm0, %v6639_v40 }
  0x96   : > { %6443 = vmatmul.mubr.msk.bf16.vlgmr.msra.gmra.mrb[64].mxu0 %vm486_vm0, %v6642_v41  ;;  %6477 = vmatmul.mubr.msk.bf16.vlgmr.msra.gmra.mrb[64].mxu1 %vm486_vm0, %v6642_v41 }
  0x97   : > { %6509 = vmatpush3.bf16.msra.mxu0 %v6640_v25  ;;  %6543 = vmatpush3.bf16.msra.mxu1 %v6641_v26 }
  0x98   : > { %6446 = vmatprep.mubr.msk.bf16.mxu0 %vm486_vm0, %v6643_v42  ;;  %6480 = vmatprep.mubr.msk.bf16.mxu1 %vm486_vm0, %v6643_v42 }
  0x9e   : > { %6447 = vmatmul.mubr.msk.bf16.gmra.mrb[68].mxu0 %vm486_vm0, %v6644_v43  ;;  %6481 = vmatmul.mubr.msk.bf16.gmra.mrb[68].mxu1 %vm486_vm0, %v6644_v43 }
  0x9f   : > { %6450 = vmatprep.mubr.msk.bf16.mxu0 %vm486_vm0, %v6645_v44  ;;  %6484 = vmatprep.mubr.msk.bf16.mxu1 %vm486_vm0, %v6645_v44  ;;  %v6666_v44 = vld [vmem:[%s6797_s19 + $0x50] sm:$0xff]  }
  0xa6   : > { %6451 = vmatmul.mubr.msk.bf16.gmra.mrb[72].mxu0 %vm486_vm0, %v6646_v45  ;;  %6485 = vmatmul.mubr.msk.bf16.gmra.mrb[72].mxu1 %vm486_vm0, %v6646_v45 }
  0xa7   : > { %6454 = vmatprep.mubr.msk.bf16.mxu0 %vm486_vm0, %v6647_v46  ;;  %6488 = vmatprep.mubr.msk.bf16.mxu1 %vm486_vm0, %v6647_v46 }
  0xae   : > { %6455 = vmatmul.mubr.msk.bf16.gmra.mrb[76].mxu0 %vm486_vm0, %v6648_v47  ;;  %6489 = vmatmul.mubr.msk.bf16.gmra.mrb[76].mxu1 %vm486_vm0, %v6648_v47 }
  0xaf   : > { %6458 = vmatprep.mubr.msk.bf16.mxu0 %vm486_vm0, %v6649_v48  ;;  %6492 = vmatprep.mubr.msk.bf16.mxu1 %vm486_vm0, %v6649_v48 }
  0xb6   : > { %6459 = vmatmul.mubr.msk.bf16.gmra.mrb[80].mxu0 %vm486_vm0, %v6650_v49  ;;  %6493 = vmatmul.mubr.msk.bf16.gmra.mrb[80].mxu1 %vm486_vm0, %v6650_v49 }
  0xb7   : > { %6462 = vmatprep.mubr.msk.bf16.mxu0 %vm486_vm0, %v6651_v50  ;;  %6496 = vmatprep.mubr.msk.bf16.mxu1 %vm486_vm0, %v6651_v50 }
  0xbe   : > { %6463 = vmatmul.mubr.msk.bf16.gmra.mrb[84].mxu0 %vm486_vm0, %v6652_v51  ;;  %6497 = vmatmul.mubr.msk.bf16.gmra.mrb[84].mxu1 %vm486_vm0, %v6652_v51  ;;  %v6667_v51 = vld [vmem:[%s6797_s19 + $0x58] sm:$0xff]  }
  0xbf   : > { %6466 = vmatprep.mubr.msk.bf16.mxu0 %vm486_vm0, %v6653_v52  ;;  %6500 = vmatprep.mubr.msk.bf16.mxu1 %vm486_vm0, %v6653_v52 }
  0xc6   : > { %6467 = vmatmul.mubr.msk.bf16.gmra.mrb[88].mxu0 %vm486_vm0, %v6654_v53  ;;  %6501 = vmatmul.mubr.msk.bf16.gmra.mrb[88].mxu1 %vm486_vm0, %v6654_v53 }
  0xc7   : > { %6470 = vmatprep.mubr.msk.bf16.mxu0 %vm486_vm0, %v6655_v54  ;;  %6504 = vmatprep.mubr.msk.bf16.mxu1 %vm486_vm0, %v6655_v54 }
  0xce   : > { %6471 = vmatmul.mubr.msk.bf16.gmra.mrb[92].mxu0 %vm486_vm0, %v6656_v55  ;;  %6505 = vmatmul.mubr.msk.bf16.gmra.mrb[92].mxu1 %vm486_vm0, %v6656_v55 }
  0xcf   : > { %6510 = vmatprep.mubr.msk.bf16.mxu0 %vm486_vm0, %v6657_v56  ;;  %6544 = vmatprep.mubr.msk.bf16.mxu1 %vm486_vm0, %v6657_v56 }
  0xd6   : > { %6511 = vmatmul.mubr.msk.bf16.vlgmr.msra.gmra.mrb[96].mxu0 %vm486_vm0, %v6658_v57  ;;  %6545 = vmatmul.mubr.msk.bf16.vlgmr.msra.gmra.mrb[96].mxu1 %vm486_vm0, %v6658_v57 }
  0xd7   : > { %6514 = vmatprep.mubr.msk.bf16.mxu0 %vm486_vm0, %v6659_v58  ;;  %6548 = vmatprep.mubr.msk.bf16.mxu1 %vm486_vm0, %v6659_v58 }
  0xde   : > { %6515 = vmatmul.mubr.msk.bf16.gmra.mrb[100].mxu0 %vm486_vm0, %v6660_v59  ;;  %6549 = vmatmul.mubr.msk.bf16.gmra.mrb[100].mxu1 %vm486_vm0, %v6660_v59 }
  0xdf   : > { %6518 = vmatprep.mubr.msk.bf16.mxu0 %vm486_vm0, %v6661_v60  ;;  %6552 = vmatprep.mubr.msk.bf16.mxu1 %vm486_vm0, %v6661_v60 }
  0xe6   : > { %6519 = vmatmul.mubr.msk.bf16.gmra.mrb[104].mxu0 %vm486_vm0, %v6662_v61  ;;  %6553 = vmatmul.mubr.msk.bf16.gmra.mrb[104].mxu1 %vm486_vm0, %v6662_v61 }
  0xe7   : > { %6522 = vmatprep.mubr.msk.bf16.mxu0 %vm486_vm0, %v6663_v62  ;;  %6556 = vmatprep.mubr.msk.bf16.mxu1 %vm486_vm0, %v6663_v62 }
  0xe9   : > { %v6308_v63 = vpop.f32.mrb[0].mxu0  ;;  %v6342_v0 = vpop.f32.mrb[0].mxu1 }
  0xea   : > { %v5914_v1 = vpack.c.bf16 %v6308_v63, %v6308_v63  ;;  %v1259_v2 = vmul.f32 %v6308_v63, %v6308_v63  ;;  %v5946_v3 = vpack.c.bf16 %v6342_v0, %v6342_v0  ;;  %v569_v4 = vpop.f32.mrb[1].mxu0  ;;  %v738_v5 = vpop.f32.mrb[1].mxu1  ;;  %v1431_v7 = vmul.f32 %v6342_v0, %v6342_v0 }
  0xeb   : > { %v5912_v8 = vpack.c.bf16 %v569_v4, %v569_v4  ;;  %v6309_v9 = vpop.f32.mrb[2].mxu0  ;;  %v6343_v10 = vpop.f32.mrb[2].mxu1  ;;  %v1190_v12 = vsel %vm1186_vm2, %v6308_v63, 0.0  ;;  %v5944_v13 = vpack.c.bf16 %v738_v5, %v738_v5  ;;  %v1362_v16 = vsel %vm1186_vm2, %v6342_v0, 0.0 }
  0xec   : > { %996 = vst.msk [vmem:[%s6960_s7 + $0x8] sm:$0xf] %vm993_vm1, %v5914_v1  ;;  %1156 = vst.msk [vmem:[%s6965_s10 + $0x8] sm:$0xf] %vm993_vm1, %v5946_v3  ;;  %v572_v14 = vpop.f32.mrb[3].mxu0  ;;  %v741_v15 = vpop.f32.mrb[3].mxu1  ;;  %v1257_v18 = vmul.f32 %v569_v4, %v569_v4  ;;  %v5915_v19 = vpack.c.bf16 %v6309_v9, %v6309_v9  ;;  %v5947_v23 = vpack.c.bf16 %v6343_v10, %v6343_v10 }
  0xed   : > { %994 = vst.msk [vmem:[%s6960_s7] sm:$0xf] %vm993_vm1, %v5912_v8  ;;  %v1187_v17 = vsel %vm1186_vm2, %v569_v4, 0.0  ;;  %v1292_v20 = vsel %vm1186_vm2, %v1259_v2, 0.0  ;;  %v1464_v21 = vsel %vm1186_vm2, %v1431_v7, 0.0  ;;  %v1359_v22 = vsel %vm1186_vm2, %v738_v5, 0.0 }
  0xee   : > { %1154 = vst.msk [vmem:[%s6965_s10] sm:$0xf] %vm993_vm1, %v5944_v13  ;;  %6523 = vmatmul.mubr.msk.bf16.gmra.mrb[108].mxu0 %vm486_vm0, %v6664_v6  ;;  %6557 = vmatmul.mubr.msk.bf16.gmra.mrb[108].mxu1 %vm486_vm0, %v6664_v6  ;;  %v1429_v24 = vmul.f32 %v738_v5, %v738_v5  ;;  %997 = vst.msk [vmem:[%s6960_s7 + $0xc] sm:$0xf] %vm993_vm1, %v5915_v19  ;;  %v1192_v25 = vsel %vm1186_vm2, %v6309_v9, 0.0  ;;  %v5913_v26 = vpack.c.bf16 %v572_v14, %v572_v14 }
  0xef   : > { %v1188_v27 = vsel %vm1186_vm2, %v572_v14, 0.0  ;;  %6526 = vmatprep.mubr.msk.bf16.mxu0 %vm486_vm0, %v6665_v11  ;;  %6560 = vmatprep.mubr.msk.bf16.mxu1 %vm486_vm0, %v6665_v11  ;;  %v1260_v28 = vmul.f32 %v6309_v9, %v6309_v9  ;;  %1157 = vst.msk [vmem:[%s6965_s10 + $0xc] sm:$0xf] %vm993_vm1, %v5947_v23  ;;  %v1258_v30 = vmul.f32 %v572_v14, %v572_v14  ;;  %v1289_v32 = vsel %vm1186_vm2, %v1257_v18, 0.0 }
  0xf0   : > { %v1189_v29 = vadd.f32 %v1188_v27, %v1187_v17  ;;  %v5945_v31 = vpack.c.bf16 %v741_v15, %v741_v15  ;;  %v1364_v33 = vsel %vm1186_vm2, %v6343_v10, 0.0  ;;  %995 = vst.msk [vmem:[%s6960_s7 + $0x4] sm:$0xf] %vm993_vm1, %v5913_v26  ;;  %v1360_v34 = vsel %vm1186_vm2, %v741_v15, 0.0 }
  0xf1   : > { %v1430_v35 = vmul.f32 %v741_v15, %v741_v15  ;;  %v6312_v36 = vpop.f32.mrb[4].mxu0  ;;  %v6346_v37 = vpop.f32.mrb[4].mxu1  ;;  %v1290_v39 = vsel %vm1186_vm2, %v1258_v30, 0.0  ;;  %v1361_v40 = vadd.f32 %v1360_v34, %v1359_v22  ;;  %v1461_v45 = vsel %vm1186_vm2, %v1429_v24, 0.0  ;;  %v6668_v22 = vld [vmem:[%s6797_s19 + $0x60] sm:$0xff]  }
  0xf2   : > { %v1191_v38 = vadd.f32 %v1190_v12, %v1189_v29  ;;  %1155 = vst.msk [vmem:[%s6965_s10 + $0x4] sm:$0xf] %vm993_vm1, %v5945_v31  ;;  %v5918_v41 = vpack.c.bf16 %v6312_v36, %v6312_v36  ;;  %v585_v42 = vpop.f32.mrb[5].mxu0  ;;  %v754_v43 = vpop.f32.mrb[5].mxu1  ;;  %v1432_v46 = vmul.f32 %v6343_v10, %v6343_v10  ;;  %v1291_v47 = vadd.f32 %v1290_v39, %v1289_v32  ;;  %v6669_v29 = vld [vmem:[%s6797_s19 + $0x68] sm:$0xff]  }
  0xf3   : > { %v1462_v48 = vsel %vm1186_vm2, %v1430_v35, 0.0  ;;  %v7004_v49 = vpop.f32.mrb[6].mxu0  ;;  %v7006_v50 = vpop.f32.mrb[6].mxu1  ;;  %v1294_v52 = vsel %vm1186_vm2, %v1260_v28, 0.0  ;;  %v1363_v53 = vadd.f32 %v1362_v16, %v1361_v40  ;;  %v5950_v55 = vpack.c.bf16 %v6346_v37, %v6346_v37 }
  0xf4   : > { %v1463_v54 = vadd.f32 %v1462_v48, %v1461_v45  ;;  %1000 = vst.msk [vmem:[%s6960_s7 + $0x18] sm:$0xf] %vm993_vm1, %v5918_v41  ;;  %v588_v56 = vpop.f32.mrb[7].mxu0  ;;  %v757_v57 = vpop.f32.mrb[7].mxu1  ;;  %v1293_v58 = vadd.f32 %v1292_v20, %v1291_v47  ;;  %v1263_v59 = vmul.f32 %v6312_v36, %v6312_v36  ;;  %v1435_v60 = vmul.f32 %v6346_v37, %v6346_v37 }
  0xf5   : > { %v5916_v61 = vpack.c.bf16 %v585_v42, %v585_v42  ;;  %1160 = vst.msk [vmem:[%s6965_s10 + $0x18] sm:$0xf] %vm993_vm1, %v5950_v55  ;;  %v1193_v63 = vadd.f32 %v1192_v25, %v1191_v38  ;;  %v1194_v0 = vsel %vm1186_vm2, %v585_v42, 0.0  ;;  %v1261_v1 = vmul.f32 %v585_v42, %v585_v42 }
  0xf6   : > { %v1465_v62 = vadd.f32 %v1464_v21, %v1463_v54  ;;  %6527 = vmatmul.mubr.msk.bf16.gmra.mrb[112].mxu0 %vm486_vm0, %v6666_v44  ;;  %6561 = vmatmul.mubr.msk.bf16.gmra.mrb[112].mxu1 %vm486_vm0, %v6666_v44  ;;  %v1466_v2 = vsel %vm1186_vm2, %v1432_v46, 0.0  ;;  %v1295_v3 = vadd.f32 %v1294_v52, %v1293_v58  ;;  %v5948_v4 = vpack.c.bf16 %v754_v43, %v754_v43 }
  0xf7   : > { %998 = vst.msk [vmem:[%s6960_s7 + $0x10] sm:$0xf] %vm993_vm1, %v5916_v61  ;;  %v1365_v5 = vadd.f32 %v1364_v33, %v1363_v53  ;;  %6530 = vmatprep.mubr.msk.bf16.mxu0 %vm486_vm0, %v6667_v51  ;;  %6564 = vmatprep.mubr.msk.bf16.mxu1 %vm486_vm0, %v6667_v51  ;;  %v1195_v6 = vadd.f32 %v1194_v0, %v1193_v63  ;;  %v1296_v7 = vsel %vm1186_vm2, %v1261_v1, 0.0  ;;  %v1366_v8 = vsel %vm1186_vm2, %v754_v43, 0.0  ;;  %v6670_v0 = vld [vmem:[%s6797_s19 + $0x70] sm:$0xff]  }
  0xf8   : > { %v1433_v9 = vmul.f32 %v754_v43, %v754_v43  ;;  %v1297_v10 = vadd.f32 %v1296_v7, %v1295_v3  ;;  %1158 = vst.msk [vmem:[%s6965_s10 + $0x10] sm:$0xf] %vm993_vm1, %v5948_v4  ;;  %v1467_v12 = vadd.f32 %v1466_v2, %v1465_v62  ;;  %v5919_v13 = vpack.c.bf16 %v7004_v49, %v7004_v49  ;;  %v6671_v7 = vld [vmem:[%s6797_s19 + $0x78] sm:$0xff]  }
  0xf9   : > { %v1367_v11 = vadd.f32 %v1366_v8, %v1365_v5  ;;  %v7028_v14 = vpop.f32.mrb[8].mxu0  ;;  %v7030_v15 = vpop.f32.mrb[8].mxu1  ;;  %v1198_v16 = vsel %vm1186_vm2, %v6312_v36, 0.0  ;;  %v1370_v17 = vsel %vm1186_vm2, %v6346_v37, 0.0  ;;  %v5951_v19 = vpack.c.bf16 %v7006_v50, %v7006_v50 }
  0xfa   : > { %v1468_v18 = vsel %vm1186_vm2, %v1433_v9, 0.0  ;;  %v601_v20 = vpop.f32.mrb[9].mxu0  ;;  %v7037_v21 = vpop.f32.mrb[9].mxu1  ;;  %v1300_v23 = vsel %vm1186_vm2, %v1263_v59, 0.0  ;;  %v1472_v24 = vsel %vm1186_vm2, %v1435_v60, 0.0  ;;  %v5917_v26 = vpack.c.bf16 %v588_v56, %v588_v56 }
  0xfb   : > { %v1469_v25 = vadd.f32 %v1468_v18, %v1467_v12  ;;  %1001 = vst.msk [vmem:[%s6960_s7 + $0x1c] sm:$0xf] %vm993_vm1, %v5919_v13  ;;  %v7044_v27 = vpop.f32.mrb[10].mxu0  ;;  %v7046_v28 = vpop.f32.mrb[10].mxu1  ;;  %v1264_v30 = vmul.f32 %v7004_v49, %v7004_v49  ;;  %1161 = vst.msk [vmem:[%s6965_s10 + $0x1c] sm:$0xf] %vm993_vm1, %v5951_v19  ;;  %v1262_v32 = vmul.f32 %v588_v56, %v588_v56 }
  0xfc   : > { %v1196_v31 = vsel %vm1186_vm2, %v588_v56, 0.0  ;;  %v5949_v33 = vpack.c.bf16 %v757_v57, %v757_v57  ;;  %v7054_v34 = vpop.f32.mrb[11].mxu0  ;;  %v7056_v35 = vpop.f32.mrb[11].mxu1  ;;  %v1436_v36 = vmul.f32 %v7006_v50, %v7006_v50  ;;  %999 = vst.msk [vmem:[%s6960_s7 + $0x14] sm:$0xf] %vm993_vm1, %v5917_v26  ;;  %v1368_v38 = vsel %vm1186_vm2, %v757_v57, 0.0 }
  0xfd   : > { %v1197_v37 = vadd.f32 %v1196_v31, %v1195_v6  ;;  %v1434_v39 = vmul.f32 %v757_v57, %v757_v57  ;;  %v1200_v40 = vsel %vm1186_vm2, %v7004_v49, 0.0  ;;  %v1298_v41 = vsel %vm1186_vm2, %v1262_v32, 0.0 }
  0xfe   : > { %1159 = vst.msk [vmem:[%s6965_s10 + $0x14] sm:$0xf] %vm993_vm1, %v5949_v33  ;;  %v1369_v42 = vadd.f32 %v1368_v38, %v1367_v11  ;;  %v5922_v43 = vpack.c.bf16 %v7028_v14, %v7028_v14  ;;  %6531 = vmatmul.mubr.msk.bf16.gmra.mrb[116].mxu0 %vm486_vm0, %v6668_v22  ;;  %6565 = vmatmul.mubr.msk.bf16.gmra.mrb[116].mxu1 %vm486_vm0, %v6668_v22  ;;  %v1372_v44 = vsel %vm1186_vm2, %v7006_v50, 0.0  ;;  %v1302_v48 = vsel %vm1186_vm2, %v1264_v30, 0.0 }
  0xff   : > { %v1199_v45 = vadd.f32 %v1198_v16, %v1197_v37  ;;  %v1299_v46 = vadd.f32 %v1298_v41, %v1297_v10  ;;  %v1470_v47 = vsel %vm1186_vm2, %v1434_v39, 0.0  ;;  %6534 = vmatprep.mubr.msk.bf16.mxu0 %vm486_vm0, %v6669_v29  ;;  %6568 = vmatprep.mubr.msk.bf16.mxu1 %vm486_vm0, %v6669_v29  ;;  %v5954_v52 = vpack.c.bf16 %v7030_v15, %v7030_v15 }
 0x100   : > { %v1371_v49 = vadd.f32 %v1370_v17, %v1369_v42  ;;  %v1471_v51 = vadd.f32 %v1470_v47, %v1469_v25  ;;  %1004 = vst.msk [vmem:[%s6960_s7 + $0x28] sm:$0xf] %vm993_vm1, %v5922_v43  ;;  %v1474_v50 = vsel %vm1186_vm2, %v1436_v36, 0.0  ;;  %v1267_v54 = vmul.f32 %v7028_v14, %v7028_v14 }
 0x101   : > { %v1301_v53 = vadd.f32 %v1300_v23, %v1299_v46  ;;  %v5920_v55 = vpack.c.bf16 %v601_v20, %v601_v20  ;;  %v7085_v56 = vpop.f32.mrb[12].mxu0  ;;  %v7087_v57 = vpop.f32.mrb[12].mxu1  ;;  %1164 = vst.msk [vmem:[%s6965_s10 + $0x28] sm:$0xf] %vm993_vm1, %v5954_v52  ;;  %v1201_v59 = vadd.f32 %v1200_v40, %v1199_v45  ;;  %v1202_v60 = vsel %vm1186_vm2, %v601_v20, 0.0 }
 0x102   : > { %v1473_v58 = vadd.f32 %v1472_v24, %v1471_v51  ;;  %v1265_v61 = vmul.f32 %v601_v20, %v601_v20  ;;  %v7092_v62 = vpop.f32.mrb[13].mxu0  ;;  %v7094_v63 = vpop.f32.mrb[13].mxu1  ;;  %v1439_v1 = vmul.f32 %v7030_v15, %v7030_v15  ;;  %v5952_v3 = vpack.c.bf16 %v7037_v21, %v7037_v21 }
 0x103   : > { %1002 = vst.msk [vmem:[%s6960_s7 + $0x20] sm:$0xf] %vm993_vm1, %v5920_v55  ;;  %v1303_v2 = vadd.f32 %v1302_v48, %v1301_v53  ;;  %v1373_v4 = vadd.f32 %v1372_v44, %v1371_v49  ;;  %v7103_v5 = vpop.f32.mrb[14].mxu0  ;;  %v7105_v6 = vpop.f32.mrb[14].mxu1  ;;  %v1203_v8 = vadd.f32 %v1202_v60, %v1201_v59  ;;  %v1374_v10 = vsel %vm1186_vm2, %v7037_v21, 0.0 }
 0x104   : > { %v1304_v9 = vsel %vm1186_vm2, %v1265_v61, 0.0  ;;  %v1437_v11 = vmul.f32 %v7037_v21, %v7037_v21  ;;  %v7113_v12 = vpop.f32.mrb[15].mxu0  ;;  %v7115_v13 = vpop.f32.mrb[15].mxu1  ;;  %1162 = vst.msk [vmem:[%s6965_s10 + $0x20] sm:$0xf] %vm993_vm1, %v5952_v3  ;;  %v1475_v18 = vadd.f32 %v1474_v50, %v1473_v58  ;;  %v5923_v19 = vpack.c.bf16 %v7044_v27, %v7044_v27 }
 0x105   : > { %v1305_v16 = vadd.f32 %v1304_v9, %v1303_v2  ;;  %v1375_v17 = vadd.f32 %v1374_v10, %v1373_v4  ;;  %v1206_v20 = vsel %vm1186_vm2, %v7028_v14, 0.0  ;;  %v1378_v21 = vsel %vm1186_vm2, %v7030_v15, 0.0 }
 0x106   : > { %v1476_v22 = vsel %vm1186_vm2, %v1437_v11, 0.0  ;;  %v5955_v23 = vpack.c.bf16 %v7046_v28, %v7046_v28  ;;  %6535 = vmatmul.mubr.msk.bf16.gmra.mrb[120].mxu0 %vm486_vm0, %v6670_v0  ;;  %6569 = vmatmul.mubr.msk.bf16.gmra.mrb[120].mxu1 %vm486_vm0, %v6670_v0  ;;  %v1308_v24 = vsel %vm1186_vm2, %v1267_v54, 0.0  ;;  %v1480_v25 = vsel %vm1186_vm2, %v1439_v1, 0.0  ;;  %1005 = vst.msk [vmem:[%s6960_s7 + $0x2c] sm:$0xf] %vm993_vm1, %v5923_v19 }
 0x107   : > { %v1477_v26 = vadd.f32 %v1476_v22, %v1475_v18  ;;  %v5921_v14 = vpack.c.bf16 %v7054_v34, %v7054_v34  ;;  %6538 = vmatprep.mubr.msk.bf16.mxu0 %vm486_vm0, %v6671_v7  ;;  %6572 = vmatprep.mubr.msk.bf16.mxu1 %vm486_vm0, %v6671_v7  ;;  %v1268_v15 = vmul.f32 %v7044_v27, %v7044_v27  ;;  %v1204_v29 = vsel %vm1186_vm2, %v7054_v34, 0.0 }
 0x108   : > { %1165 = vst.msk [vmem:[%s6965_s10 + $0x2c] sm:$0xf] %vm993_vm1, %v5955_v23  ;;  %v1266_v30 = vmul.f32 %v7054_v34, %v7054_v34  ;;  %v5953_v31 = vpack.c.bf16 %v7056_v35, %v7056_v35  ;;  %v1440_v32 = vmul.f32 %v7046_v28, %v7046_v28  ;;  %v1205_v33 = vadd.f32 %v1204_v29, %v1203_v8 }
 0x109   : > { %1003 = vst.msk [vmem:[%s6960_s7 + $0x24] sm:$0xf] %vm993_vm1, %v5921_v14  ;;  %v1376_v36 = vsel %vm1186_vm2, %v7056_v35, 0.0  ;;  %v1438_v37 = vmul.f32 %v7056_v35, %v7056_v35  ;;  %v7156_v38 = vpop.f32.mrb[16].mxu0  ;;  %v7158_v39 = vpop.f32.mrb[16].mxu1  ;;  %v1208_v34 = vsel %vm1186_vm2, %v7044_v27, 0.0  ;;  %v5926_v42 = vpack.c.bf16 %v7085_v56, %v7085_v56 }
 0x10a   : > { %v1306_v40 = vsel %vm1186_vm2, %v1266_v30, 0.0  ;;  %1163 = vst.msk [vmem:[%s6965_s10 + $0x24] sm:$0xf] %vm993_vm1, %v5953_v31  ;;  %v1377_v41 = vadd.f32 %v1376_v36, %v1375_v17  ;;  %v7167_v43 = vpop.f32.mrb[17].mxu0  ;;  %v7169_v44 = vpop.f32.mrb[17].mxu1  ;;  %v6672_v35 = vld [vmem:[%s6797_s19 + $0x80] sm:$0xff]   ;;  %v1207_v46 = vadd.f32 %v1206_v20, %v1205_v33  ;;  %v5958_v53 = vpack.c.bf16 %v7087_v57, %v7087_v57 }
 0x10b   : > { %v1380_v45 = vsel %vm1186_vm2, %v7046_v28, 0.0  ;;  %v1307_v47 = vadd.f32 %v1306_v40, %v1305_v16  ;;  %v1478_v27 = vsel %vm1186_vm2, %v1438_v37, 0.0  ;;  %v7175_v48 = vpop.f32.mrb[18].mxu0  ;;  %v7177_v49 = vpop.f32.mrb[18].mxu1  ;;  %v1310_v51 = vsel %vm1186_vm2, %v1268_v15, 0.0 }
 0x10c   : > { %v1379_v52 = vadd.f32 %v1378_v21, %v1377_v41  ;;  %v1479_v50 = vadd.f32 %v1478_v27, %v1477_v26  ;;  %1008 = vst.msk [vmem:[%s6960_s7 + $0x38] sm:$0xf] %vm993_vm1, %v5926_v42  ;;  %v7184_v28 = vpop.f32.mrb[19].mxu0  ;;  %v7186_v54 = vpop.f32.mrb[19].mxu1  ;;  %v1482_v55 = vsel %vm1186_vm2, %v1440_v32, 0.0  ;;  %v1271_v59 = vmul.f32 %v7085_v56, %v7085_v56 }
 0x10d   : > { %v1309_v58 = vadd.f32 %v1308_v24, %v1307_v47  ;;  %v5924_v60 = vpack.c.bf16 %v7092_v62, %v7092_v62  ;;  %1168 = vst.msk [vmem:[%s6965_s10 + $0x38] sm:$0xf] %vm993_vm1, %v5958_v53  ;;  %v1209_v0 = vadd.f32 %v1208_v34, %v1207_v46  ;;  %v1210_v1 = vsel %vm1186_vm2, %v7092_v62, 0.0 }
 0x10e   : > { %v1481_v61 = vadd.f32 %v1480_v25, %v1479_v50  ;;  %v1269_v2 = vmul.f32 %v7092_v62, %v7092_v62  ;;  %6539 = vmatmul.mubr.msk.bf16.gmra.mrb[124].mxu0 %vm486_vm0, %v6672_v35  ;;  %6573 = vmatmul.mubr.msk.bf16.gmra.mrb[124].mxu1 %vm486_vm0, %v6672_v35  ;;  %v1443_v3 = vmul.f32 %v7087_v57, %v7087_v57  ;;  %v1382_v62 = vsel %vm1186_vm2, %v7094_v63, 0.0 }
 0x10f   : > { %1006 = vst.msk [vmem:[%s6960_s7 + $0x30] sm:$0xf] %vm993_vm1, %v5924_v60  ;;  %v1311_v4 = vadd.f32 %v1310_v51, %v1309_v58  ;;  %v5956_v7 = vpack.c.bf16 %v7094_v63, %v7094_v63  ;;  %v1381_v8 = vadd.f32 %v1380_v45, %v1379_v52  ;;  %v1211_v9 = vadd.f32 %v1210_v1, %v1209_v0 }
 0x110   : > { %v1312_v10 = vsel %vm1186_vm2, %v1269_v2, 0.0  ;;  %v1441_v11 = vmul.f32 %v7094_v63, %v7094_v63  ;;  %v1483_v18 = vadd.f32 %v1482_v55, %v1481_v61  ;;  %v5927_v19 = vpack.c.bf16 %v7103_v5, %v7103_v5 }
 0x111   : > { %v1313_v16 = vadd.f32 %v1312_v10, %v1311_v4  ;;  %1166 = vst.msk [vmem:[%s6965_s10 + $0x30] sm:$0xf] %vm993_vm1, %v5956_v7  ;;  %v1383_v17 = vadd.f32 %v1382_v62, %v1381_v8  ;;  %v7216_v20 = vpop.f32.mrb[20].mxu0  ;;  %v7218_v21 = vpop.f32.mrb[20].mxu1  ;;  %v1214_v22 = vsel %vm1186_vm2, %v7085_v56, 0.0  ;;  %v1386_v63 = vsel %vm1186_vm2, %v7087_v57, 0.0 }
 0x112   : > { %v1484_v23 = vsel %vm1186_vm2, %v1441_v11, 0.0  ;;  %v5959_v24 = vpack.c.bf16 %v7105_v6, %v7105_v6  ;;  %v7227_v25 = vpop.f32.mrb[21].mxu0  ;;  %v7229_v26 = vpop.f32.mrb[21].mxu1  ;;  %v1316_v14 = vsel %vm1186_vm2, %v1271_v59, 0.0  ;;  %v1488_v15 = vsel %vm1186_vm2, %v1443_v3, 0.0 }
 0x113   : > { %v1485_v29 = vadd.f32 %v1484_v23, %v1483_v18  ;;  %1009 = vst.msk [vmem:[%s6960_s7 + $0x3c] sm:$0xf] %vm993_vm1, %v5927_v19  ;;  %v5925_v56 = vpack.c.bf16 %v7113_v12, %v7113_v12  ;;  %v7237_v57 = vpop.f32.mrb[22].mxu0  ;;  %v7239_v30 = vpop.f32.mrb[22].mxu1  ;;  %v1272_v31 = vmul.f32 %v7103_v5, %v7103_v5  ;;  %v1212_v32 = vsel %vm1186_vm2, %v7113_v12, 0.0 }
 0x114   : > { %1169 = vst.msk [vmem:[%s6965_s10 + $0x3c] sm:$0xf] %vm993_vm1, %v5959_v24  ;;  %v1270_v33 = vmul.f32 %v7113_v12, %v7113_v12  ;;  %v5957_v36 = vpack.c.bf16 %v7115_v13, %v7115_v13  ;;  %v7251_v37 = vpop.f32.mrb[23].mxu0  ;;  %v7253_v34 = vpop.f32.mrb[23].mxu1  ;;  %v1444_v40 = vmul.f32 %v7105_v6, %v7105_v6  ;;  %v1213_v41 = vadd.f32 %v1212_v32, %v1211_v9 }
 0x115   : > { %1007 = vst.msk [vmem:[%s6960_s7 + $0x34] sm:$0xf] %vm993_vm1, %v5925_v56  ;;  %v1384_v42 = vsel %vm1186_vm2, %v7115_v13, 0.0  ;;  %v1442_v12 = vmul.f32 %v7115_v13, %v7115_v13  ;;  %v1216_v35 = vsel %vm1186_vm2, %v7103_v5, 0.0  ;;  %v5930_v47 = vpack.c.bf16 %v7156_v38, %v7156_v38 }
 0x116   : > { %v1314_v45 = vsel %vm1186_vm2, %v1270_v33, 0.0  ;;  %1167 = vst.msk [vmem:[%s6965_s10 + $0x34] sm:$0xf] %vm993_vm1, %v5957_v36  ;;  %v1385_v46 = vadd.f32 %v1384_v42, %v1383_v17  ;;  %v1388_v27 = vsel %vm1186_vm2, %v7105_v6, 0.0  ;;  %v1215_v51 = vadd.f32 %v1214_v22, %v1213_v41 }
 0x117   : > { %v1315_v52 = vadd.f32 %v1314_v45, %v1313_v16  ;;  %v1486_v50 = vsel %vm1186_vm2, %v1442_v12, 0.0  ;;  %v1318_v13 = vsel %vm1186_vm2, %v1272_v31, 0.0  ;;  %1012 = vst.msk [vmem:[%s6960_s7 + $0x48] sm:$0xf] %vm993_vm1, %v5930_v47  ;;  %v5962_v55 = vpack.c.bf16 %v7158_v39, %v7158_v39 }
 0x118   : > { %v1387_v53 = vadd.f32 %v1386_v63, %v1385_v46  ;;  %v1487_v5 = vadd.f32 %v1486_v50, %v1485_v29  ;;  %v1490_v58 = vsel %vm1186_vm2, %v1444_v40, 0.0  ;;  %v1275_v6 = vmul.f32 %v7156_v38, %v7156_v38 }
 0x119   : > { %v1317_v59 = vadd.f32 %v1316_v14, %v1315_v52  ;;  %v5928_v60 = vpack.c.bf16 %v7167_v43, %v7167_v43  ;;  %v7283_v61 = vpop.f32.mrb[24].mxu0  ;;  %v7285_v0 = vpop.f32.mrb[24].mxu1  ;;  %1172 = vst.msk [vmem:[%s6965_s10 + $0x48] sm:$0xf] %vm993_vm1, %v5962_v55  ;;  %v1217_v2 = vadd.f32 %v1216_v35, %v1215_v51  ;;  %v1218_v3 = vsel %vm1186_vm2, %v7167_v43, 0.0 }
 0x11a   : > { %v1489_v1 = vadd.f32 %v1488_v15, %v1487_v5  ;;  %v1273_v4 = vmul.f32 %v7167_v43, %v7167_v43  ;;  %v7293_v7 = vpop.f32.mrb[25].mxu0  ;;  %v7295_v8 = vpop.f32.mrb[25].mxu1  ;;  %v1447_v9 = vmul.f32 %v7158_v39, %v7158_v39  ;;  %v5960_v62 = vpack.c.bf16 %v7169_v44, %v7169_v44 }
 0x11b   : > { %1010 = vst.msk [vmem:[%s6960_s7 + $0x40] sm:$0xf] %vm993_vm1, %v5928_v60  ;;  %v1319_v10 = vadd.f32 %v1318_v13, %v1317_v59  ;;  %v1389_v11 = vadd.f32 %v1388_v27, %v1387_v53  ;;  %v7303_v16 = vpop.f32.mrb[26].mxu0  ;;  %v7305_v17 = vpop.f32.mrb[26].mxu1  ;;  %v1219_v43 = vadd.f32 %v1218_v3, %v1217_v2  ;;  %v1390_v19 = vsel %vm1186_vm2, %v7169_v44, 0.0 }
 0x11c   : > { %v1320_v18 = vsel %vm1186_vm2, %v1273_v4, 0.0  ;;  %v1445_v22 = vmul.f32 %v7169_v44, %v7169_v44  ;;  %v7312_v63 = vpop.f32.mrb[27].mxu0  ;;  %v7314_v23 = vpop.f32.mrb[27].mxu1  ;;  %1170 = vst.msk [vmem:[%s6965_s10 + $0x40] sm:$0xf] %vm993_vm1, %v5960_v62  ;;  %v1491_v15 = vadd.f32 %v1490_v58, %v1489_v1  ;;  %v5931_v29 = vpack.c.bf16 %v7175_v48, %v7175_v48 }
 0x11d   : > { %v1321_v24 = vadd.f32 %v1320_v18, %v1319_v10  ;;  %v1391_v14 = vadd.f32 %v1390_v19, %v1389_v11  ;;  %v1222_v56 = vsel %vm1186_vm2, %v7156_v38, 0.0  ;;  %v1394_v44 = vsel %vm1186_vm2, %v7158_v39, 0.0 }
 0x11e   : > { %v1492_v31 = vsel %vm1186_vm2, %v1445_v22, 0.0  ;;  %v5963_v32 = vpack.c.bf16 %v7177_v49, %v7177_v49  ;;  %v1324_v33 = vsel %vm1186_vm2, %v1275_v6, 0.0  ;;  %v1496_v36 = vsel %vm1186_vm2, %v1447_v9, 0.0  ;;  %1013 = vst.msk [vmem:[%s6960_s7 + $0x4c] sm:$0xf] %vm993_vm1, %v5931_v29 }
 0x11f   : > { %v1493_v40 = vadd.f32 %v1492_v31, %v1491_v15  ;;  %v5929_v41 = vpack.c.bf16 %v7184_v28, %v7184_v28  ;;  %v1276_v38 = vmul.f32 %v7175_v48, %v7175_v48  ;;  %v1220_v39 = vsel %vm1186_vm2, %v7184_v28, 0.0 }
 0x120   : > { %1173 = vst.msk [vmem:[%s6965_s10 + $0x4c] sm:$0xf] %vm993_vm1, %v5963_v32  ;;  %v1274_v42 = vmul.f32 %v7184_v28, %v7184_v28  ;;  %v5961_v12 = vpack.c.bf16 %v7186_v54, %v7186_v54  ;;  %v1448_v35 = vmul.f32 %v7177_v49, %v7177_v49  ;;  %v1221_v45 = vadd.f32 %v1220_v39, %v1219_v43 }
 0x121   : > { %1011 = vst.msk [vmem:[%s6960_s7 + $0x44] sm:$0xf] %vm993_vm1, %v5929_v41  ;;  %v1392_v46 = vsel %vm1186_vm2, %v7186_v54, 0.0  ;;  %v1446_v47 = vmul.f32 %v7186_v54, %v7186_v54  ;;  %v7351_v27 = vpop.f32.mrb[28].mxu0  ;;  %v7353_v51 = vpop.f32.mrb[28].mxu1  ;;  %v1224_v28 = vsel %vm1186_vm2, %v7175_v48, 0.0  ;;  %v5934_v13 = vpack.c.bf16 %v7216_v20, %v7216_v20 }
 0x122   : > { %v1322_v52 = vsel %vm1186_vm2, %v1274_v42, 0.0  ;;  %1171 = vst.msk [vmem:[%s6965_s10 + $0x44] sm:$0xf] %vm993_vm1, %v5961_v12  ;;  %v1393_v50 = vadd.f32 %v1392_v46, %v1391_v14  ;;  %v7362_v53 = vpop.f32.mrb[29].mxu0  ;;  %v7364_v5 = vpop.f32.mrb[29].mxu1  ;;  %v1396_v54 = vsel %vm1186_vm2, %v7177_v49, 0.0  ;;  %v1223_v55 = vadd.f32 %v1222_v56, %v1221_v45 }
 0x123   : > { %v1323_v58 = vadd.f32 %v1322_v52, %v1321_v24  ;;  %v1494_v48 = vsel %vm1186_vm2, %v1446_v47, 0.0  ;;  %v7369_v59 = vpop.f32.mrb[30].mxu0  ;;  %v7371_v6 = vpop.f32.mrb[30].mxu1  ;;  %v1326_v60 = vsel %vm1186_vm2, %v1276_v38, 0.0  ;;  %1016 = vst.msk [vmem:[%s6960_s7 + $0x58] sm:$0xf] %vm993_vm1, %v5934_v13  ;;  %v5966_v3 = vpack.c.bf16 %v7218_v21, %v7218_v21 }
 0x124   : > { %v1395_v1 = vadd.f32 %v1394_v44, %v1393_v50  ;;  %v1495_v2 = vadd.f32 %v1494_v48, %v1493_v40  ;;  %v7378_v49 = vpop.f32.mrb[31].mxu0  ;;  %v7380_v4 = vpop.f32.mrb[31].mxu1  ;;  %v1498_v9 = vsel %vm1186_vm2, %v1448_v35, 0.0  ;;  %v1279_v62 = vmul.f32 %v7216_v20, %v7216_v20 }
 0x125   : > { %v1325_v10 = vadd.f32 %v1324_v33, %v1323_v58  ;;  %v5932_v11 = vpack.c.bf16 %v7227_v25, %v7227_v25  ;;  %1176 = vst.msk [vmem:[%s6965_s10 + $0x58] sm:$0xf] %vm993_vm1, %v5966_v3  ;;  %v1225_v18 = vadd.f32 %v1224_v28, %v1223_v55  ;;  %v1226_v19 = vsel %vm1186_vm2, %v7227_v25, 0.0 }
 0x126   : > { %v1497_v43 = vadd.f32 %v1496_v36, %v1495_v2  ;;  %v1277_v22 = vmul.f32 %v7227_v25, %v7227_v25  ;;  %v1451_v24 = vmul.f32 %v7218_v21, %v7218_v21  ;;  %v5964_v15 = vpack.c.bf16 %v7229_v26, %v7229_v26 }
 0x127   : > { %1014 = vst.msk [vmem:[%s6960_s7 + $0x50] sm:$0xf] %vm993_vm1, %v5932_v11  ;;  %v1327_v14 = vadd.f32 %v1326_v60, %v1325_v10  ;;  %v1397_v29 = vadd.f32 %v1396_v54, %v1395_v1  ;;  %v1227_v56 = vadd.f32 %v1226_v19, %v1225_v18  ;;  %v1398_v31 = vsel %vm1186_vm2, %v7229_v26, 0.0 }
 0x128   : > { %v1328_v44 = vsel %vm1186_vm2, %v1277_v22, 0.0  ;;  %v1449_v32 = vmul.f32 %v7229_v26, %v7229_v26  ;;  %1174 = vst.msk [vmem:[%s6965_s10 + $0x50] sm:$0xf] %vm993_vm1, %v5964_v15  ;;  %v1499_v36 = vadd.f32 %v1498_v9, %v1497_v43  ;;  %v5935_v40 = vpack.c.bf16 %v7237_v57, %v7237_v57 }
 0x129   : > { %v1329_v25 = vadd.f32 %v1328_v44, %v1327_v14  ;;  %v1399_v33 = vadd.f32 %v1398_v31, %v1397_v29  ;;  %v7408_v41 = vpop.f32.mrb[32].mxu0  ;;  %v7410_v38 = vpop.f32.mrb[32].mxu1  ;;  %v1230_v39 = vsel %vm1186_vm2, %v7216_v20, 0.0  ;;  %v1402_v26 = vsel %vm1186_vm2, %v7218_v21, 0.0 }
 0x12a   : > { %v1500_v42 = vsel %vm1186_vm2, %v1449_v32, 0.0  ;;  %v5967_v12 = vpack.c.bf16 %v7239_v30, %v7239_v30  ;;  %v7419_v35 = vpop.f32.mrb[33].mxu0  ;;  %v7421_v45 = vpop.f32.mrb[33].mxu1  ;;  %v1332_v46 = vsel %vm1186_vm2, %v1279_v62, 0.0  ;;  %v1504_v47 = vsel %vm1186_vm2, %v1451_v24, 0.0 }
 0x12b   : > { %v1501_v28 = vadd.f32 %v1500_v42, %v1499_v36  ;;  %1017 = vst.msk [vmem:[%s6960_s7 + $0x5c] sm:$0xf] %vm993_vm1, %v5935_v40  ;;  %v5933_v20 = vpack.c.bf16 %v7251_v37, %v7251_v37  ;;  %v7429_v21 = vpop.f32.mrb[34].mxu0  ;;  %v7431_v52 = vpop.f32.mrb[34].mxu1  ;;  %v1280_v50 = vmul.f32 %v7237_v57, %v7237_v57  ;;  %v1228_v13 = vsel %vm1186_vm2, %v7251_v37, 0.0 }
 0x12c   : > { %1177 = vst.msk [vmem:[%s6965_s10 + $0x5c] sm:$0xf] %vm993_vm1, %v5967_v12  ;;  %v1278_v54 = vmul.f32 %v7251_v37, %v7251_v37  ;;  %v5965_v55 = vpack.c.bf16 %v7253_v34, %v7253_v34  ;;  %v7443_v58 = vpop.f32.mrb[35].mxu0  ;;  %v7445_v48 = vpop.f32.mrb[35].mxu1  ;;  %v1452_v60 = vmul.f32 %v7239_v30, %v7239_v30  ;;  %v1229_v1 = vadd.f32 %v1228_v13, %v1227_v56 }
 0x12d   : > { %1015 = vst.msk [vmem:[%s6960_s7 + $0x54] sm:$0xf] %vm993_vm1, %v5933_v20  ;;  %v1400_v2 = vsel %vm1186_vm2, %v7253_v34, 0.0  ;;  %v1450_v37 = vmul.f32 %v7253_v34, %v7253_v34  ;;  %v1232_v3 = vsel %vm1186_vm2, %v7237_v57, 0.0  ;;  %v5938_v62 = vpack.c.bf16 %v7283_v61, %v7283_v61 }
 0x12e   : > { %v1330_v9 = vsel %vm1186_vm2, %v1278_v54, 0.0  ;;  %1175 = vst.msk [vmem:[%s6965_s10 + $0x54] sm:$0xf] %vm993_vm1, %v5965_v55  ;;  %v1401_v10 = vadd.f32 %v1400_v2, %v1399_v33  ;;  %v1404_v11 = vsel %vm1186_vm2, %v7239_v30, 0.0  ;;  %v1231_v43 = vadd.f32 %v1230_v39, %v1229_v1 }
 0x12f   : > { %v1331_v18 = vadd.f32 %v1330_v9, %v1329_v25  ;;  %v1502_v19 = vsel %vm1186_vm2, %v1450_v37, 0.0  ;;  %v1334_v34 = vsel %vm1186_vm2, %v1280_v50, 0.0  ;;  %1020 = vst.msk [vmem:[%s6960_s7 + $0x68] sm:$0xf] %vm993_vm1, %v5938_v62  ;;  %v5970_v24 = vpack.c.bf16 %v7285_v0, %v7285_v0 }
 0x130   : > { %v1403_v22 = vadd.f32 %v1402_v26, %v1401_v10  ;;  %v1503_v57 = vadd.f32 %v1502_v19, %v1501_v28  ;;  %v1506_v14 = vsel %vm1186_vm2, %v1452_v60, 0.0  ;;  %v1283_v30 = vmul.f32 %v7283_v61, %v7283_v61 }
 0x131   : > { %v1333_v15 = vadd.f32 %v1332_v46, %v1331_v18  ;;  %v5936_v29 = vpack.c.bf16 %v7293_v7, %v7293_v7  ;;  %v7475_v56 = vpop.f32.mrb[36].mxu0  ;;  %v7477_v44 = vpop.f32.mrb[36].mxu1  ;;  %1180 = vst.msk [vmem:[%s6965_s10 + $0x68] sm:$0xf] %vm993_vm1, %v5970_v24  ;;  %v1233_v32 = vadd.f32 %v1232_v3, %v1231_v43  ;;  %v1234_v25 = vsel %vm1186_vm2, %v7293_v7, 0.0 }
 0x132   : > { %v1505_v31 = vadd.f32 %v1504_v47, %v1503_v57  ;;  %v1281_v33 = vmul.f32 %v7293_v7, %v7293_v7  ;;  %v7485_v36 = vpop.f32.mrb[37].mxu0  ;;  %v7487_v40 = vpop.f32.mrb[37].mxu1  ;;  %v1455_v39 = vmul.f32 %v7285_v0, %v7285_v0  ;;  %v5968_v42 = vpack.c.bf16 %v7295_v8, %v7295_v8 }
 0x133   : > { %1018 = vst.msk [vmem:[%s6960_s7 + $0x60] sm:$0xf] %vm993_vm1, %v5936_v29  ;;  %v1335_v26 = vadd.f32 %v1334_v34, %v1333_v15  ;;  %v1405_v12 = vadd.f32 %v1404_v11, %v1403_v22  ;;  %v7495_v46 = vpop.f32.mrb[38].mxu0  ;;  %v7497_v47 = vpop.f32.mrb[38].mxu1  ;;  %v1235_v7 = vadd.f32 %v1234_v25, %v1233_v32  ;;  %v1406_v20 = vsel %vm1186_vm2, %v7295_v8, 0.0 }
 0x134   : > { %v1336_v28 = vsel %vm1186_vm2, %v1281_v33, 0.0  ;;  %v1453_v50 = vmul.f32 %v7295_v8, %v7295_v8  ;;  %v7504_v13 = vpop.f32.mrb[39].mxu0  ;;  %v7506_v54 = vpop.f32.mrb[39].mxu1  ;;  %1178 = vst.msk [vmem:[%s6965_s10 + $0x60] sm:$0xf] %vm993_vm1, %v5968_v42  ;;  %v1507_v1 = vadd.f32 %v1506_v14, %v1505_v31  ;;  %v5939_v2 = vpack.c.bf16 %v7303_v16, %v7303_v16 }
 0x135   : > { %v1337_v55 = vadd.f32 %v1336_v28, %v1335_v26  ;;  %v1407_v60 = vadd.f32 %v1406_v20, %v1405_v12  ;;  %v1238_v37 = vsel %vm1186_vm2, %v7283_v61, 0.0  ;;  %v1410_v8 = vsel %vm1186_vm2, %v7285_v0, 0.0 }
 0x136   : > { %v1508_v3 = vsel %vm1186_vm2, %v1453_v50, 0.0  ;;  %v5971_v9 = vpack.c.bf16 %v7305_v17, %v7305_v17  ;;  %v1340_v10 = vsel %vm1186_vm2, %v1283_v30, 0.0  ;;  %v1512_v62 = vsel %vm1186_vm2, %v1455_v39, 0.0  ;;  %1021 = vst.msk [vmem:[%s6960_s7 + $0x6c] sm:$0xf] %vm993_vm1, %v5939_v2 }
 0x137   : > { %v1509_v11 = vadd.f32 %v1508_v3, %v1507_v1  ;;  %v5937_v43 = vpack.c.bf16 %v7312_v63, %v7312_v63  ;;  %v1284_v61 = vmul.f32 %v7303_v16, %v7303_v16  ;;  %v1236_v0 = vsel %vm1186_vm2, %v7312_v63, 0.0 }
 0x138   : > { %1181 = vst.msk [vmem:[%s6965_s10 + $0x6c] sm:$0xf] %vm993_vm1, %v5971_v9  ;;  %v1282_v18 = vmul.f32 %v7312_v63, %v7312_v63  ;;  %v5969_v19 = vpack.c.bf16 %v7314_v23, %v7314_v23  ;;  %v1456_v34 = vmul.f32 %v7305_v17, %v7305_v17  ;;  %v1237_v22 = vadd.f32 %v1236_v0, %v1235_v7 }
 0x139   : > { %1019 = vst.msk [vmem:[%s6960_s7 + $0x64] sm:$0xf] %vm993_vm1, %v5937_v43  ;;  %v1408_v57 = vsel %vm1186_vm2, %v7314_v23, 0.0  ;;  %v1454_v24 = vmul.f32 %v7314_v23, %v7314_v23  ;;  %v7543_v14 = vpop.f32.mrb[40].mxu0  ;;  %v7545_v15 = vpop.f32.mrb[40].mxu1  ;;  %v1240_v63 = vsel %vm1186_vm2, %v7303_v16, 0.0  ;;  %v5942_v31 = vpack.c.bf16 %v7351_v27, %v7351_v27 }
 0x13a   : > { %v1338_v30 = vsel %vm1186_vm2, %v1282_v18, 0.0  ;;  %1179 = vst.msk [vmem:[%s6965_s10 + $0x64] sm:$0xf] %vm993_vm1, %v5969_v19  ;;  %v1409_v29 = vadd.f32 %v1408_v57, %v1407_v60  ;;  %v7554_v32 = vpop.f32.mrb[41].mxu0  ;;  %v7556_v25 = vpop.f32.mrb[41].mxu1  ;;  %v1412_v23 = vsel %vm1186_vm2, %v7305_v17, 0.0  ;;  %v1239_v33 = vadd.f32 %v1238_v37, %v1237_v22 }
 0x13b   : > { %v1339_v39 = vadd.f32 %v1338_v30, %v1337_v55  ;;  %v1510_v16 = vsel %vm1186_vm2, %v1454_v24, 0.0  ;;  %v7561_v26 = vpop.f32.mrb[42].mxu0  ;;  %v7563_v42 = vpop.f32.mrb[42].mxu1  ;;  %v1342_v12 = vsel %vm1186_vm2, %v1284_v61, 0.0  ;;  %1024 = vst.msk [vmem:[%s6960_s7 + $0x78] sm:$0xf] %vm993_vm1, %v5942_v31  ;;  %v5974_v20 = vpack.c.bf16 %v7353_v51, %v7353_v51 }
 0x13c   : > { %v1411_v7 = vadd.f32 %v1410_v8, %v1409_v29  ;;  %v1511_v28 = vadd.f32 %v1510_v16, %v1509_v11  ;;  %v7570_v17 = vpop.f32.mrb[43].mxu0  ;;  %v7572_v50 = vpop.f32.mrb[43].mxu1  ;;  %v1514_v55 = vsel %vm1186_vm2, %v1456_v34, 0.0  ;;  %v1287_v1 = vmul.f32 %v7351_v27, %v7351_v27 }
 0x13d   : > { %v1341_v60 = vadd.f32 %v1340_v10, %v1339_v39  ;;  %v5940_v2 = vpack.c.bf16 %v7362_v53, %v7362_v53  ;;  %1184 = vst.msk [vmem:[%s6965_s10 + $0x78] sm:$0xf] %vm993_vm1, %v5974_v20  ;;  %v1241_v8 = vadd.f32 %v1240_v63, %v1239_v33  ;;  %v1242_v3 = vsel %vm1186_vm2, %v7362_v53, 0.0 }
 0x13e   : > { %v1513_v37 = vadd.f32 %v1512_v62, %v1511_v28  ;;  %v1285_v9 = vmul.f32 %v7362_v53, %v7362_v53  ;;  %v1459_v10 = vmul.f32 %v7353_v51, %v7353_v51  ;;  %v5972_v43 = vpack.c.bf16 %v7364_v5, %v7364_v5 }
 0x13f   : > { %1022 = vst.msk [vmem:[%s6960_s7 + $0x70] sm:$0xf] %vm993_vm1, %v5940_v2  ;;  %v1343_v11 = vadd.f32 %v1342_v12, %v1341_v60  ;;  %v1413_v61 = vadd.f32 %v1412_v23, %v1411_v7  ;;  %v1243_v62 = vadd.f32 %v1242_v3, %v1241_v8  ;;  %v1414_v18 = vsel %vm1186_vm2, %v7364_v5, 0.0 }
 0x140   : > { %v1344_v0 = vsel %vm1186_vm2, %v1285_v9, 0.0  ;;  %v1457_v19 = vmul.f32 %v7364_v5, %v7364_v5  ;;  %1182 = vst.msk [vmem:[%s6965_s10 + $0x70] sm:$0xf] %vm993_vm1, %v5972_v43  ;;  %v1515_v22 = vadd.f32 %v1514_v55, %v1513_v37  ;;  %v5943_v57 = vpack.c.bf16 %v7369_v59, %v7369_v59 }
 0x141   : > { %v1345_v53 = vadd.f32 %v1344_v0, %v1343_v11  ;;  %v1415_v34 = vadd.f32 %v1414_v18, %v1413_v61  ;;  %v7600_v24 = vpop.f32.mrb[44].mxu0  ;;  %v7602_v63 = vpop.f32.mrb[44].mxu1  ;;  %v1246_v30 = vsel %vm1186_vm2, %v7351_v27, 0.0  ;;  %v1418_v5 = vsel %vm1186_vm2, %v7353_v51, 0.0 }
 0x142   : > { %v1516_v29 = vsel %vm1186_vm2, %v1457_v19, 0.0  ;;  %v5975_v31 = vpack.c.bf16 %v7371_v6, %v7371_v6  ;;  %v7611_v23 = vpop.f32.mrb[45].mxu0  ;;  %v7613_v33 = vpop.f32.mrb[45].mxu1  ;;  %v1348_v39 = vsel %vm1186_vm2, %v1287_v1, 0.0  ;;  %v1520_v16 = vsel %vm1186_vm2, %v1459_v10, 0.0 }
 0x143   : > { %v1517_v12 = vadd.f32 %v1516_v29, %v1515_v22  ;;  %1025 = vst.msk [vmem:[%s6960_s7 + $0x7c] sm:$0xf] %vm993_vm1, %v5943_v57  ;;  %v5941_v27 = vpack.c.bf16 %v7378_v49, %v7378_v49  ;;  %v7621_v51 = vpop.f32.mrb[46].mxu0  ;;  %v7623_v7 = vpop.f32.mrb[46].mxu1  ;;  %v1288_v28 = vmul.f32 %v7369_v59, %v7369_v59  ;;  %v1244_v20 = vsel %vm1186_vm2, %v7378_v49, 0.0 }
 0x144   : > { %1185 = vst.msk [vmem:[%s6965_s10 + $0x7c] sm:$0xf] %vm993_vm1, %v5975_v31  ;;  %v1286_v55 = vmul.f32 %v7378_v49, %v7378_v49  ;;  %v5973_v60 = vpack.c.bf16 %v7380_v4, %v7380_v4  ;;  %v7635_v1 = vpop.f32.mrb[47].mxu0  ;;  %v7637_v2 = vpop.f32.mrb[47].mxu1  ;;  %v1460_v37 = vmul.f32 %v7371_v6, %v7371_v6  ;;  %v1245_v8 = vadd.f32 %v1244_v20, %v1243_v62 }
 0x145   : > { %1023 = vst.msk [vmem:[%s6960_s7 + $0x74] sm:$0xf] %vm993_vm1, %v5941_v27  ;;  %v1416_v3 = vsel %vm1186_vm2, %v7380_v4, 0.0  ;;  %v1458_v49 = vmul.f32 %v7380_v4, %v7380_v4  ;;  %v1248_v9 = vsel %vm1186_vm2, %v7369_v59, 0.0  ;;  %v5978_v43 = vpack.c.bf16 %v7408_v41, %v7408_v41 }
 0x146   : > { %v1346_v10 = vsel %vm1186_vm2, %v1286_v55, 0.0  ;;  %1183 = vst.msk [vmem:[%s6965_s10 + $0x74] sm:$0xf] %vm993_vm1, %v5973_v60  ;;  %v1417_v11 = vadd.f32 %v1416_v3, %v1415_v34  ;;  %v1420_v61 = vsel %vm1186_vm2, %v7371_v6, 0.0  ;;  %v1247_v62 = vadd.f32 %v1246_v30, %v1245_v8 }
 0x147   : > { %v1347_v0 = vadd.f32 %v1346_v10, %v1345_v53  ;;  %v1518_v18 = vsel %vm1186_vm2, %v1458_v49, 0.0  ;;  %v1350_v4 = vsel %vm1186_vm2, %v1288_v28, 0.0  ;;  %5450 = vst.msk [vmem:[%s6960_s7 + $0x88] sm:$0xf] %vm993_vm1, %v5978_v43  ;;  %v6010_v34 = vpack.c.bf16 %v7410_v38, %v7410_v38 }
 0x148   : > { %v1419_v19 = vadd.f32 %v1418_v5, %v1417_v11  ;;  %v1519_v59 = vadd.f32 %v1518_v18, %v1517_v12  ;;  %v1522_v22 = vsel %vm1186_vm2, %v1460_v37, 0.0  ;;  %v1249_v57 = vadd.f32 %v1248_v9, %v1247_v62 }
 0x149   : > { %v1349_v29 = vadd.f32 %v1348_v39, %v1347_v0  ;;  %v2425_v6 = vmul.f32 %v7408_v41, %v7408_v41  ;;  %v7665_v30 = vpop.f32.mrb[48].mxu0  ;;  %v7667_v53 = vpop.f32.mrb[48].mxu1  ;;  %5514 = vst.msk [vmem:[%s6965_s10 + $0x88] sm:$0xf] %vm993_vm1, %v6010_v34  ;;  %v2597_v12 = vmul.f32 %v7410_v38, %v7410_v38  ;;  %v5976_v27 = vpack.c.bf16 %v7419_v35, %v7419_v35 }
 0x14a   : > { %v1421_v31 = vadd.f32 %v1420_v61, %v1419_v19  ;;  %v1521_v5 = vadd.f32 %v1520_v16, %v1519_v59  ;;  %v7675_v28 = vpop.f32.mrb[49].mxu0  ;;  %v7677_v39 = vpop.f32.mrb[49].mxu1  ;;  %v1250_v20 = vrot.slane %v1249_v57, 4  ;;  %v2356_v60 = vsel %vm1186_vm2, %v7408_v41, 0.0 }
 0x14b   : > { %v1351_v55 = vadd.f32 %v1350_v4, %v1349_v29  ;;  %v2423_v16 = vmul.f32 %v7419_v35, %v7419_v35  ;;  %v7683_v37 = vpop.f32.mrb[50].mxu0  ;;  %v7685_v8 = vpop.f32.mrb[50].mxu1  ;;  %v7689_v9 = vsel %vm1186_vm2, %v7410_v38, 0.0  ;;  %5448 = vst.msk [vmem:[%s6960_s7 + $0x80] sm:$0xf] %vm993_vm1, %v5976_v27  ;;  %v6008_v10 = vpack.c.bf16 %v7421_v45, %v7421_v45 }
 0x14c   : > { %v1422_v3 = vrot.slane %v1421_v31, 4  ;;  %v1523_v49 = vadd.f32 %v1522_v22, %v1521_v5  ;;  %v7695_v41 = vpop.f32.mrb[51].mxu0  ;;  %v7697_v11 = vpop.f32.mrb[51].mxu1  ;;  %v1251_v43 = vadd.f32 %v1250_v20, %v1249_v57  ;;  %v2458_v62 = vsel %vm1186_vm2, %v2425_v6, 0.0 }
 0x14d   : > { %v1352_v61 = vrot.slane %v1351_v55, 4  ;;  %v2353_v0 = vsel %vm1186_vm2, %v7419_v35, 0.0  ;;  %v7703_v4 = vsel %vm1186_vm2, %v2597_v12, 0.0  ;;  %5512 = vst.msk [vmem:[%s6965_s10 + $0x80] sm:$0xf] %vm993_vm1, %v6008_v10  ;;  %v5979_v19 = vpack.c.bf16 %v7429_v21, %v7429_v21 }
 0x14e   : > { %v1423_v18 = vadd.f32 %v1422_v3, %v1421_v31  ;;  %v1524_v38 = vrot.slane %v1523_v49, 4  ;;  %v1252_v59 = vrot.slane %v1251_v43, 2  ;;  %v2455_v22 = vsel %vm1186_vm2, %v2423_v16, 0.0 }
 0x14f   : > { %v1353_v34 = vadd.f32 %v1352_v61, %v1351_v55  ;;  %v2525_v57 = vsel %vm1186_vm2, %v7421_v45, 0.0  ;;  %v2595_v6 = vmul.f32 %v7421_v45, %v7421_v45  ;;  %5451 = vst.msk [vmem:[%s6960_s7 + $0x8c] sm:$0xf] %vm993_vm1, %v5979_v19  ;;  %v6011_v31 = vpack.c.bf16 %v7431_v52, %v7431_v52 }
 0x150   : > { %v1424_v29 = vrot.slane %v1423_v18, 2  ;;  %v1525_v35 = vadd.f32 %v1524_v38, %v1523_v49  ;;  %v1253_v5 = vadd.f32 %v1252_v59, %v1251_v43  ;;  %v2358_v27 = vsel %vm1186_vm2, %v7429_v21, 0.0 }
 0x151   : > { %v1354_v12 = vrot.slane %v1353_v34, 2  ;;  %v2426_v20 = vmul.f32 %v7429_v21, %v7429_v21  ;;  %v7722_v55 = vpop.f32.mrb[52].mxu0  ;;  %v7724_v16 = vpop.f32.mrb[52].mxu1  ;;  %5515 = vst.msk [vmem:[%s6965_s10 + $0x8c] sm:$0xf] %vm993_vm1, %v6011_v31  ;;  %v5977_v49 = vpack.c.bf16 %v7443_v58, %v7443_v58  ;;  %v2354_v10 = vsel %vm1186_vm2, %v7443_v58, 0.0 }
 0x152   : > { %9853 = vst [vmem:[#allocation2_spill] sm:$0xff] %v7722_v55  ;;  %9854 = vst [vmem:[#allocation3_spill] sm:$0xff] %v7724_v16  ;;  %v1425_v3 = vadd.f32 %v1424_v29, %v1423_v18  ;;  %v1526_v45 = vrot.slane %v1525_v35, 2  ;;  %v7732_v43 = vpop.f32.mrb[53].mxu0  ;;  %v7734_v61 = vpop.f32.mrb[53].mxu1  ;;  %v1254_v21 = vrot.slane %v1253_v5, 1  ;;  %v2598_v19 = vmul.f32 %v7431_v52, %v7431_v52 }
 0x153   : > { %9855 = vst [vmem:[#allocation4_spill] sm:$0xff] %v7732_v43  ;;  %9856 = vst [vmem:[#allocation5_spill] sm:$0xff] %v7734_v61  ;;  %v1355_v38 = vadd.f32 %v1354_v12, %v1353_v34  ;;  %v2355_v59 = vadd.f32 %v2354_v10, %v2353_v0  ;;  %v7738_v18 = vpop.f32.mrb[54].mxu0  ;;  %v7740_v29 = vpop.f32.mrb[54].mxu1  ;;  %v2424_v43 = vmul.f32 %v7443_v58, %v7443_v58  ;;  %v2627_v10 = vsel %vm1186_vm2, %v2595_v6, 0.0 }
 0x154   : > { %9857 = vst [vmem:[#allocation6_spill] sm:$0xff] %v7738_v18  ;;  %9858 = vst [vmem:[#allocation7_spill] sm:$0xff] %v7740_v29  ;;  %v1426_v31 = vrot.slane %v1425_v3, 1  ;;  %v1527_v16 = vadd.f32 %v1526_v45, %v1525_v35  ;;  %v6009_v61 = vpack.c.bf16 %v7445_v48, %v7445_v48  ;;  %v7748_v34 = vpop.f32.mrb[55].mxu0  ;;  %v7750_v12 = vpop.f32.mrb[55].mxu1  ;;  %v2526_v29 = vsel %vm1186_vm2, %v7445_v48, 0.0 }
 0x155   : > { %5449 = vst.msk [vmem:[%s6960_s7 + $0x84] sm:$0xf] %vm993_vm1, %v5977_v49  ;;  %9859 = vst [vmem:[#allocation8_spill] sm:$0xff] %v7748_v34  ;;  %v1356_v0 = vrot.slane %v1355_v38, 1  ;;  %v2357_v18 = vadd.f32 %v2356_v60, %v2355_v59  ;;  %v2530_v45 = vsel %vm1186_vm2, %v7431_v52, 0.0  ;;  %v2456_v58 = vsel %vm1186_vm2, %v2424_v43, 0.0 }
 0x156   : > { %9860 = vst [vmem:[#allocation9_spill] sm:$0xff] %v7750_v12  ;;  %v1528_v35 = vrot.slane %v1527_v16, 1  ;;  %5513 = vst.msk [vmem:[%s6965_s10 + $0x84] sm:$0xf] %vm993_vm1, %v6009_v61  ;;  %v2527_v49 = vadd.f32 %v2526_v29, %v2525_v57  ;;  %v2460_v34 = vsel %vm1186_vm2, %v2426_v20, 0.0  ;;  %v2457_v12 = vadd.f32 %v2456_v58, %v2455_v22 }
 0x157   : > { %v2596_v6 = vmul.f32 %v7445_v48, %v7445_v48  ;;  %v5982_v60 = vpack.c.bf16 %v7475_v56, %v7475_v56  ;;  %v7765_v59 = vadd.f32 %v1254_v21, %v1253_v5  ;;  %v7767_v55 = vadd.f32 %v1426_v31, %v1425_v3 }
 0x158   : > { %v2632_v52 = vsel %vm1186_vm2, %v2598_v19, 0.0  ;;  %v2529_v43 = vadd.f32 %v7689_v9, %v2527_v49  ;;  %v7771_v61 = vadd.f32 %v1356_v0, %v1355_v38  ;;  %v2459_v57 = vadd.f32 %v2458_v62, %v2457_v12 }
 0x159   : > { %9861 = vst [vmem:[#allocation10_spill] sm:$0xff] %v7765_v59  ;;  %9862 = vst [vmem:[#allocation11_spill] sm:$0xff] %v7767_v55  ;;  %v2628_v22 = vsel %vm1186_vm2, %v2596_v6, 0.0  ;;  %v6014_v48 = vpack.c.bf16 %v7477_v44, %v7477_v44  ;;  %v7778_v20 = vpop.f32.mrb[56].mxu0  ;;  %v7780_v5 = vpop.f32.mrb[56].mxu1  ;;  %v7782_v3 = vadd.f32 %v1528_v35, %v1527_v16  ;;  %v2429_v9 = vmul.f32 %v7475_v56, %v7475_v56 }
 0x15a   : > { %9863 = vst [vmem:[#allocation12_spill] sm:$0xff] %v7771_v61  ;;  %5454 = vst.msk [vmem:[%s6960_s7 + $0x98] sm:$0xf] %vm993_vm1, %v5982_v60  ;;  %v2629_v21 = vadd.f32 %v2628_v22, %v2627_v10  ;;  %v5980_v62 = vpack.c.bf16 %v7485_v36, %v7485_v36  ;;  %v7788_v38 = vpop.f32.mrb[57].mxu0  ;;  %v7790_v19 = vpop.f32.mrb[57].mxu1  ;;  %v2359_v29 = vadd.f32 %v2358_v27, %v2357_v18  ;;  %v2360_v31 = vsel %vm1186_vm2, %v7485_v36, 0.0 }
 0x15b   : > { %9864 = vst [vmem:[#allocation13_spill] sm:$0xff] %v7782_v3  ;;  %5518 = vst.msk [vmem:[%s6965_s10 + $0x98] sm:$0xf] %vm993_vm1, %v6014_v48  ;;  %v2427_v16 = vmul.f32 %v7485_v36, %v7485_v36  ;;  %v2461_v12 = vadd.f32 %v2460_v34, %v2459_v57  ;;  %v7798_v0 = vpop.f32.mrb[58].mxu0  ;;  %v7800_v10 = vpop.f32.mrb[58].mxu1  ;;  %v2601_v58 = vmul.f32 %v7477_v44, %v7477_v44  ;;  %v2364_v48 = vsel %vm1186_vm2, %v7475_v56, 0.0 }
 0x15c   : > { %v2631_v35 = vadd.f32 %v7703_v4, %v2629_v21  ;;  %5452 = vst.msk [vmem:[%s6960_s7 + $0x90] sm:$0xf] %vm993_vm1, %v5980_v62  ;;  %v6012_v27 = vpack.c.bf16 %v7487_v40, %v7487_v40  ;;  %v2531_v18 = vadd.f32 %v2530_v45, %v2529_v43  ;;  %v7809_v49 = vpop.f32.mrb[59].mxu0  ;;  %v7811_v36 = vpop.f32.mrb[59].mxu1  ;;  %v2361_v34 = vadd.f32 %v2360_v31, %v2359_v29 }
 0x15d   : > { %v2462_v6 = vsel %vm1186_vm2, %v2427_v16, 0.0  ;;  %v2532_v4 = vsel %vm1186_vm2, %v7487_v40, 0.0  ;;  %v2599_v60 = vmul.f32 %v7487_v40, %v7487_v40  ;;  %v5983_v43 = vpack.c.bf16 %v7495_v46, %v7495_v46 }
 0x15e   : > { %v2463_v57 = vadd.f32 %v2462_v6, %v2461_v12  ;;  %5516 = vst.msk [vmem:[%s6965_s10 + $0x90] sm:$0xf] %vm993_vm1, %v6012_v27  ;;  %v2533_v22 = vadd.f32 %v2532_v4, %v2531_v18  ;;  %v2633_v45 = vadd.f32 %v2632_v52, %v2631_v35  ;;  %v2536_v21 = vsel %vm1186_vm2, %v7477_v44, 0.0 }
 0x15f   : > { %v2634_v62 = vsel %vm1186_vm2, %v2599_v60, 0.0  ;;  %v6015_v40 = vpack.c.bf16 %v7497_v47, %v7497_v47  ;;  %v2466_v29 = vsel %vm1186_vm2, %v2429_v9, 0.0  ;;  %v2638_v31 = vsel %vm1186_vm2, %v2601_v58, 0.0  ;;  %5455 = vst.msk [vmem:[%s6960_s7 + $0x9c] sm:$0xf] %vm993_vm1, %v5983_v43 }
 0x160   : > { %v2635_v52 = vadd.f32 %v2634_v62, %v2633_v45  ;;  %v5981_v16 = vpack.c.bf16 %v7504_v13, %v7504_v13  ;;  %v2430_v56 = vmul.f32 %v7495_v46, %v7495_v46  ;;  %v2362_v44 = vsel %vm1186_vm2, %v7504_v13, 0.0 }
 0x161   : > { %5519 = vst.msk [vmem:[%s6965_s10 + $0x9c] sm:$0xf] %vm993_vm1, %v6015_v40  ;;  %v2428_v9 = vmul.f32 %v7504_v13, %v7504_v13  ;;  %v6013_v12 = vpack.c.bf16 %v7506_v54, %v7506_v54  ;;  %v7845_v35 = vpop.f32.mrb[60].mxu0  ;;  %v7847_v58 = vpop.f32.mrb[60].mxu1  ;;  %v2602_v27 = vmul.f32 %v7497_v47, %v7497_v47  ;;  %v2363_v18 = vadd.f32 %v2362_v44, %v2361_v34 }
 0x162   : > { %5453 = vst.msk [vmem:[%s6960_s7 + $0x94] sm:$0xf] %vm993_vm1, %v5981_v16  ;;  %v2534_v6 = vsel %vm1186_vm2, %v7506_v54, 0.0  ;;  %v2600_v4 = vmul.f32 %v7506_v54, %v7506_v54  ;;  %v7857_v13 = vpop.f32.mrb[61].mxu0  ;;  %v7859_v60 = vpop.f32.mrb[61].mxu1  ;;  %v2366_v45 = vsel %vm1186_vm2, %v7495_v46, 0.0  ;;  %v5986_v34 = vpack.c.bf16 %v7543_v14, %v7543_v14 }
 0x163   : > { %v2464_v43 = vsel %vm1186_vm2, %v2428_v9, 0.0  ;;  %5517 = vst.msk [vmem:[%s6965_s10 + $0x94] sm:$0xf] %vm993_vm1, %v6013_v12  ;;  %v2535_v62 = vadd.f32 %v2534_v6, %v2533_v22  ;;  %v7868_v40 = vpop.f32.mrb[62].mxu0  ;;  %v7870_v16 = vpop.f32.mrb[62].mxu1  ;;  %v2538_v54 = vsel %vm1186_vm2, %v7497_v47, 0.0  ;;  %v2365_v44 = vadd.f32 %v2364_v48, %v2363_v18 }
 0x164   : > { %v2465_v3 = vadd.f32 %v2464_v43, %v2463_v57  ;;  %v2636_v46 = vsel %vm1186_vm2, %v2600_v4, 0.0  ;;  %v7875_v61 = vpop.f32.mrb[63].mxu0  ;;  %v7877_v9 = vpop.f32.mrb[63].mxu1  ;;  %v2468_v22 = vsel %vm1186_vm2, %v2430_v56, 0.0  ;;  %5458 = vst.msk [vmem:[%s6960_s7 + $0xa8] sm:$0xf] %vm993_vm1, %v5986_v34  ;;  %v6018_v55 = vpack.c.bf16 %v7545_v15, %v7545_v15 }
 0x165   : > { %v2537_v12 = vadd.f32 %v2536_v21, %v2535_v62  ;;  %v2637_v6 = vadd.f32 %v2636_v46, %v2635_v52  ;;  %v2640_v47 = vsel %vm1186_vm2, %v2602_v27, 0.0  ;;  %v2433_v57 = vmul.f32 %v7543_v14, %v7543_v14 }
 0x166   : > { %v2467_v48 = vadd.f32 %v2466_v29, %v2465_v3  ;;  %v5984_v18 = vpack.c.bf16 %v7554_v32, %v7554_v32  ;;  %5522 = vst.msk [vmem:[%s6965_s10 + $0xa8] sm:$0xf] %vm993_vm1, %v6018_v55  ;;  %v2367_v21 = vadd.f32 %v2366_v45, %v2365_v44  ;;  %v2368_v52 = vsel %vm1186_vm2, %v7554_v32, 0.0 }
 0x167   : > { %v2639_v4 = vadd.f32 %v2638_v31, %v2637_v6  ;;  %v2431_v56 = vmul.f32 %v7554_v32, %v7554_v32  ;;  %v2605_v3 = vmul.f32 %v7545_v15, %v7545_v15  ;;  %v6016_v27 = vpack.c.bf16 %v7556_v25, %v7556_v25 }
 0x168   : > { %5456 = vst.msk [vmem:[%s6960_s7 + $0xa0] sm:$0xf] %vm993_vm1, %v5984_v18  ;;  %v2469_v29 = vadd.f32 %v2468_v22, %v2467_v48  ;;  %v2539_v31 = vadd.f32 %v2538_v54, %v2537_v12  ;;  %v2369_v43 = vadd.f32 %v2368_v52, %v2367_v21  ;;  %v2540_v45 = vsel %vm1186_vm2, %v7556_v25, 0.0 }
 0x169   : > { %v2470_v55 = vsel %vm1186_vm2, %v2431_v56, 0.0  ;;  %v2603_v62 = vmul.f32 %v7556_v25, %v7556_v25  ;;  %v7906_v32 = vpop.f32.mrb[64].mxu0  ;;  %v7908_v34 = vpop.f32.mrb[64].mxu1  ;;  %5520 = vst.msk [vmem:[%s6965_s10 + $0xa0] sm:$0xf] %vm993_vm1, %v6016_v27  ;;  %v2641_v22 = vadd.f32 %v2640_v47, %v2639_v4  ;;  %v5987_v54 = vpack.c.bf16 %v7561_v26, %v7561_v26 }
 0x16a   : > { %v2471_v44 = vadd.f32 %v2470_v55, %v2469_v29  ;;  %v2541_v46 = vadd.f32 %v2540_v45, %v2539_v31  ;;  %v7914_v12 = vpop.f32.mrb[65].mxu0  ;;  %v7916_v6 = vpop.f32.mrb[65].mxu1  ;;  %v2372_v25 = vsel %vm1186_vm2, %v7543_v14, 0.0  ;;  %v2544_v48 = vsel %vm1186_vm2, %v7545_v15, 0.0 }
 0x16b   : > { %v2642_v18 = vsel %vm1186_vm2, %v2603_v62, 0.0  ;;  %v6019_v21 = vpack.c.bf16 %v7563_v42, %v7563_v42  ;;  %v7925_v47 = vpop.f32.mrb[66].mxu0  ;;  %v7927_v4 = vpop.f32.mrb[66].mxu1  ;;  %v2474_v52 = vsel %vm1186_vm2, %v2433_v57, 0.0  ;;  %v2646_v56 = vsel %vm1186_vm2, %v2605_v3, 0.0 }
 0x16c   : > { %v2643_v29 = vadd.f32 %v2642_v18, %v2641_v22  ;;  %5459 = vst.msk [vmem:[%s6960_s7 + $0xac] sm:$0xf] %vm993_vm1, %v5987_v54  ;;  %v5985_v14 = vpack.c.bf16 %v7570_v17, %v7570_v17  ;;  %v7935_v15 = vpop.f32.mrb[67].mxu0  ;;  %v7937_v27 = vpop.f32.mrb[67].mxu1  ;;  %v2434_v31 = vmul.f32 %v7561_v26, %v7561_v26  ;;  %v2370_v57 = vsel %vm1186_vm2, %v7570_v17, 0.0 }
 0x16d   : > { %9865 = vst [vmem:[#allocation14_spill] sm:$0xff] %v7935_v15  ;;  %9866 = vst [vmem:[#allocation15_spill] sm:$0xff] %v7937_v27  ;;  %v2432_v3 = vmul.f32 %v7570_v17, %v7570_v17  ;;  %v6017_v55 = vpack.c.bf16 %v7572_v50, %v7572_v50  ;;  %v2606_v45 = vmul.f32 %v7563_v42, %v7563_v42  ;;  %v2542_v22 = vsel %vm1186_vm2, %v7572_v50, 0.0 }
 0x16e   : > { %5523 = vst.msk [vmem:[%s6965_s10 + $0xac] sm:$0xf] %vm993_vm1, %v6019_v21  ;;  %5457 = vst.msk [vmem:[%s6960_s7 + $0xa4] sm:$0xf] %vm993_vm1, %v5985_v14  ;;  %v2371_v62 = vadd.f32 %v2370_v57, %v2369_v43  ;;  %v2604_v54 = vmul.f32 %v7572_v50, %v7572_v50  ;;  %v2374_v18 = vsel %vm1186_vm2, %v7561_v26, 0.0  ;;  %v2543_v21 = vadd.f32 %v2542_v22, %v2541_v46 }
 0x16f   : > { %v2472_v17 = vsel %vm1186_vm2, %v2432_v3, 0.0  ;;  %5521 = vst.msk [vmem:[%s6965_s10 + $0xa4] sm:$0xf] %vm993_vm1, %v6017_v55  ;;  %v5990_v59 = vpack.c.bf16 %v7600_v24, %v7600_v24  ;;  %v2546_v43 = vsel %vm1186_vm2, %v7563_v42, 0.0  ;;  %v2476_v50 = vsel %vm1186_vm2, %v2434_v31, 0.0 }
 0x170   : > { %v2373_v14 = vadd.f32 %v2372_v25, %v2371_v62  ;;  %v2473_v57 = vadd.f32 %v2472_v17, %v2471_v44  ;;  %v2644_v27 = vsel %vm1186_vm2, %v2604_v54, 0.0  ;;  %v2545_v15 = vadd.f32 %v2544_v48, %v2543_v21 }
 0x171   : > { %v2645_v26 = vadd.f32 %v2644_v27, %v2643_v29  ;;  %5462 = vst.msk [vmem:[%s6960_s7 + $0xb8] sm:$0xf] %vm993_vm1, %v5990_v59  ;;  %v6022_v46 = vpack.c.bf16 %v7602_v63, %v7602_v63  ;;  %v7972_v3 = vpop.f32.mrb[68].mxu0  ;;  %v7974_v55 = vpop.f32.mrb[68].mxu1  ;;  %v2648_v42 = vsel %vm1186_vm2, %v2606_v45, 0.0  ;;  %v2437_v25 = vmul.f32 %v7600_v24, %v7600_v24 }
 0x172   : > { %v2475_v44 = vadd.f32 %v2474_v52, %v2473_v57  ;;  %v5988_v48 = vpack.c.bf16 %v7611_v23, %v7611_v23  ;;  %v7981_v29 = vpop.f32.mrb[69].mxu0  ;;  %v7983_v59 = vpop.f32.mrb[69].mxu1  ;;  %v2375_v31 = vadd.f32 %v2374_v18, %v2373_v14  ;;  %v2376_v62 = vsel %vm1186_vm2, %v7611_v23, 0.0 }
 0x173   : > { %v2647_v27 = vadd.f32 %v2646_v56, %v2645_v26  ;;  %5526 = vst.msk [vmem:[%s6965_s10 + $0xb8] sm:$0xf] %vm993_vm1, %v6022_v46  ;;  %v2435_v52 = vmul.f32 %v7611_v23, %v7611_v23  ;;  %v7991_v45 = vpop.f32.mrb[70].mxu0  ;;  %v7993_v22 = vpop.f32.mrb[70].mxu1  ;;  %v2609_v54 = vmul.f32 %v7602_v63, %v7602_v63  ;;  %v6020_v18 = vpack.c.bf16 %v7613_v33, %v7613_v33 }
 0x174   : > { %5460 = vst.msk [vmem:[%s6960_s7 + $0xb0] sm:$0xf] %vm993_vm1, %v5988_v48  ;;  %v2477_v56 = vadd.f32 %v2476_v50, %v2475_v44  ;;  %v2547_v17 = vadd.f32 %v2546_v43, %v2545_v15  ;;  %v8001_v21 = vpop.f32.mrb[71].mxu0  ;;  %v8003_v14 = vpop.f32.mrb[71].mxu1  ;;  %v2377_v57 = vadd.f32 %v2376_v62, %v2375_v31  ;;  %v2548_v26 = vsel %vm1186_vm2, %v7613_v33, 0.0 }
 0x175   : > { %v2478_v23 = vsel %vm1186_vm2, %v2435_v52, 0.0  ;;  %v2607_v46 = vmul.f32 %v7613_v33, %v7613_v33  ;;  %5524 = vst.msk [vmem:[%s6965_s10 + $0xb0] sm:$0xf] %vm993_vm1, %v6020_v18  ;;  %v2649_v15 = vadd.f32 %v2648_v42, %v2647_v27  ;;  %v5991_v43 = vpack.c.bf16 %v7621_v51, %v7621_v51 }
 0x176   : > { %v2479_v50 = vadd.f32 %v2478_v23, %v2477_v56  ;;  %v2549_v44 = vadd.f32 %v2548_v26, %v2547_v17  ;;  %v2380_v48 = vsel %vm1186_vm2, %v7600_v24, 0.0  ;;  %v2552_v31 = vsel %vm1186_vm2, %v7602_v63, 0.0 }
 0x177   : > { %v2650_v62 = vsel %vm1186_vm2, %v2607_v46, 0.0  ;;  %v6023_v33 = vpack.c.bf16 %v7623_v7, %v7623_v7  ;;  %v2482_v52 = vsel %vm1186_vm2, %v2437_v25, 0.0  ;;  %v2654_v56 = vsel %vm1186_vm2, %v2609_v54, 0.0  ;;  %5463 = vst.msk [vmem:[%s6960_s7 + $0xbc] sm:$0xf] %vm993_vm1, %v5991_v43 }
 0x178   : > { %v2651_v42 = vadd.f32 %v2650_v62, %v2649_v15  ;;  %v5989_v27 = vpack.c.bf16 %v7635_v1, %v7635_v1  ;;  %v2438_v24 = vmul.f32 %v7621_v51, %v7621_v51  ;;  %v2378_v63 = vsel %vm1186_vm2, %v7635_v1, 0.0 }
 0x179   : > { %5527 = vst.msk [vmem:[%s6965_s10 + $0xbc] sm:$0xf] %vm993_vm1, %v6023_v33  ;;  %v2436_v25 = vmul.f32 %v7635_v1, %v7635_v1  ;;  %v6021_v54 = vpack.c.bf16 %v7637_v2, %v7637_v2  ;;  %v8037_v18 = vpop.f32.mrb[72].mxu0  ;;  %v8039_v17 = vpop.f32.mrb[72].mxu1  ;;  %v2610_v23 = vmul.f32 %v7623_v7, %v7623_v7  ;;  %v2379_v26 = vadd.f32 %v2378_v63, %v2377_v57 }
 0x17a   : > { %9867 = vst [vmem:[#allocation16_spill] sm:$0xff] %v8037_v18  ;;  %9868 = vst [vmem:[#allocation17_spill] sm:$0xff] %v8039_v17  ;;  %v2550_v46 = vsel %vm1186_vm2, %v7637_v2, 0.0  ;;  %v2608_v15 = vmul.f32 %v7637_v2, %v7637_v2  ;;  %v8049_v1 = vpop.f32.mrb[73].mxu0  ;;  %v8051_v43 = vpop.f32.mrb[73].mxu1  ;;  %v2382_v62 = vsel %vm1186_vm2, %v7621_v51, 0.0  ;;  %v5994_v57 = vpack.c.bf16 %v7665_v30, %v7665_v30 }
 0x17b   : > { %5461 = vst.msk [vmem:[%s6960_s7 + $0xb4] sm:$0xf] %vm993_vm1, %v5989_v27  ;;  %9869 = vst [vmem:[#allocation18_spill] sm:$0xff] %v8049_v1  ;;  %v2480_v33 = vsel %vm1186_vm2, %v2436_v25, 0.0  ;;  %v2551_v27 = vadd.f32 %v2550_v46, %v2549_v44  ;;  %v8060_v63 = vpop.f32.mrb[74].mxu0  ;;  %v8062_v17 = vpop.f32.mrb[74].mxu1 }
 0x17c   : > { %9870 = vst [vmem:[#allocation19_spill] sm:$0xff] %v8051_v43  ;;  %5525 = vst.msk [vmem:[%s6965_s10 + $0xb4] sm:$0xf] %vm993_vm1, %v6021_v54  ;;  %v2554_v2 = vsel %vm1186_vm2, %v7623_v7, 0.0  ;;  %v2381_v43 = vadd.f32 %v2380_v48, %v2379_v26  ;;  %v2481_v1 = vadd.f32 %v2480_v33, %v2479_v50  ;;  %v2652_v51 = vsel %vm1186_vm2, %v2608_v15, 0.0  ;;  %v8067_v18 = vpop.f32.mrb[75].mxu0 }
 0x17d   : > { %9871 = vst [vmem:[#allocation20_spill] sm:$0xff] %v8062_v17  ;;  %v8069_v25 = vpop.f32.mrb[75].mxu1  ;;  %v2484_v44 = vsel %vm1186_vm2, %v2438_v24, 0.0  ;;  %v2553_v54 = vadd.f32 %v2552_v31, %v2551_v27  ;;  %v2653_v46 = vadd.f32 %v2652_v51, %v2651_v42  ;;  %5466 = vst.msk [vmem:[%s6960_s7 + $0xc8] sm:$0xf] %vm993_vm1, %v5994_v57  ;;  %v6026_v17 = vpack.c.bf16 %v7667_v53, %v7667_v53 }
 0x17e   : > { %v2656_v7 = vsel %vm1186_vm2, %v2610_v23, 0.0  ;;  %v2483_v48 = vadd.f32 %v2482_v52, %v2481_v1  ;;  %v2441_v50 = vmul.f32 %v7665_v30, %v7665_v30  ;;  %v5992_v26 = vpack.c.bf16 %v7675_v28, %v7675_v28 }
 0x17f   : > { %v2655_v15 = vadd.f32 %v2654_v56, %v2653_v46  ;;  %5530 = vst.msk [vmem:[%s6965_s10 + $0xc8] sm:$0xf] %vm993_vm1, %v6026_v17  ;;  %v2383_v31 = vadd.f32 %v2382_v62, %v2381_v43  ;;  %v2384_v42 = vsel %vm1186_vm2, %v7675_v28, 0.0  ;;  %v2439_v24 = vmul.f32 %v7675_v28, %v7675_v28 }
 0x180   : > { %v2613_v52 = vmul.f32 %v7667_v53, %v7667_v53  ;;  %5464 = vst.msk [vmem:[%s6960_s7 + $0xc0] sm:$0xf] %vm993_vm1, %v5992_v26  ;;  %v2485_v23 = vadd.f32 %v2484_v44, %v2483_v48  ;;  %v6024_v1 = vpack.c.bf16 %v7677_v39, %v7677_v39  ;;  %v2555_v56 = vadd.f32 %v2554_v2, %v2553_v54 }
 0x181   : > { %v2385_v33 = vadd.f32 %v2384_v42, %v2383_v31  ;;  %v2486_v17 = vsel %vm1186_vm2, %v2439_v24, 0.0  ;;  %v2556_v43 = vsel %vm1186_vm2, %v7677_v39, 0.0  ;;  %v2611_v62 = vmul.f32 %v7677_v39, %v7677_v39  ;;  %v8098_v28 = vpop.f32.mrb[76].mxu0  ;;  %v8100_v27 = vpop.f32.mrb[76].mxu1 }
 0x182   : > { %v2487_v57 = vadd.f32 %v2486_v17, %v2485_v23  ;;  %5528 = vst.msk [vmem:[%s6965_s10 + $0xc0] sm:$0xf] %vm993_vm1, %v6024_v1  ;;  %v2557_v51 = vadd.f32 %v2556_v43, %v2555_v56  ;;  %v2657_v44 = vadd.f32 %v2656_v7, %v2655_v15  ;;  %v5995_v2 = vpack.c.bf16 %v7683_v37, %v7683_v37  ;;  %v8106_v54 = vpop.f32.mrb[77].mxu0  ;;  %v8108_v46 = vpop.f32.mrb[77].mxu1 }
 0x183   : > { %v2388_v39 = vsel %vm1186_vm2, %v7665_v30, 0.0  ;;  %v2560_v48 = vsel %vm1186_vm2, %v7667_v53, 0.0  ;;  %v2658_v26 = vsel %vm1186_vm2, %v2611_v62, 0.0  ;;  %v6027_v31 = vpack.c.bf16 %v7685_v8, %v7685_v8  ;;  %v8117_v7 = vpop.f32.mrb[78].mxu0  ;;  %v8119_v15 = vpop.f32.mrb[78].mxu1 }
 0x184   : > { %9872 = vst [vmem:[#allocation21_spill] sm:$0xff] %v8117_v7  ;;  %9873 = vst [vmem:[#allocation22_spill] sm:$0xff] %v8119_v15  ;;  %v2490_v42 = vsel %vm1186_vm2, %v2441_v50, 0.0  ;;  %v2662_v24 = vsel %vm1186_vm2, %v2613_v52, 0.0  ;;  %v2659_v23 = vadd.f32 %v2658_v26, %v2657_v44  ;;  %v5993_v30 = vpack.c.bf16 %v7695_v41, %v7695_v41  ;;  %v8127_v53 = vpop.f32.mrb[79].mxu0  ;;  %v8129_v1 = vpop.f32.mrb[79].mxu1 }
 0x185   : > { %5467 = vst.msk [vmem:[%s6960_s7 + $0xcc] sm:$0xf] %vm993_vm1, %v5995_v2  ;;  %9874 = vst [vmem:[#allocation23_spill] sm:$0xff] %v8127_v53  ;;  %v2442_v56 = vmul.f32 %v7683_v37, %v7683_v37  ;;  %v2386_v50 = vsel %vm1186_vm2, %v7695_v41, 0.0  ;;  %v2440_v52 = vmul.f32 %v7695_v41, %v7695_v41  ;;  %v6025_v17 = vpack.c.bf16 %v7697_v11, %v7697_v11 }
 0x186   : > { %9875 = vst [vmem:[#allocation24_spill] sm:$0xff] %v8129_v1  ;;  %5531 = vst.msk [vmem:[%s6965_s10 + $0xcc] sm:$0xf] %vm993_vm1, %v6027_v31  ;;  %v2614_v43 = vmul.f32 %v7685_v8, %v7685_v8  ;;  %v2387_v62 = vadd.f32 %v2386_v50, %v2385_v33  ;;  %v2558_v44 = vsel %vm1186_vm2, %v7697_v11, 0.0  ;;  %v2612_v2 = vmul.f32 %v7697_v11, %v7697_v11  ;;  %v9876_v1 = vld [vmem:[#allocation2_spill] sm:$0xff] }
 0x187   : > { %5465 = vst.msk [vmem:[%s6960_s7 + $0xc4] sm:$0xf] %vm993_vm1, %v5993_v30  ;;  %v2390_v26 = vsel %vm1186_vm2, %v7683_v37, 0.0  ;;  %v2488_v41 = vsel %vm1186_vm2, %v2440_v52, 0.0  ;;  %5529 = vst.msk [vmem:[%s6965_s10 + $0xc4] sm:$0xf] %vm993_vm1, %v6025_v17  ;;  %v2559_v31 = vadd.f32 %v2558_v44, %v2557_v51  ;;  %v5998_v53 = vpack.c.bf16 %v9876_v1, %v9876_v1 }
 0x188   : > { %v2562_v33 = vsel %vm1186_vm2, %v7685_v8, 0.0  ;;  %v2389_v30 = vadd.f32 %v2388_v39, %v2387_v62  ;;  %v2489_v50 = vadd.f32 %v2488_v41, %v2487_v57  ;;  %v2660_v15 = vsel %vm1186_vm2, %v2612_v2, 0.0  ;;  %v9877_v52 = vld [vmem:[#allocation3_spill] sm:$0xff]  ;;  %v9879_v62 = vld [vmem:[#allocation4_spill] sm:$0xff] }
 0x189   : > { %v2492_v11 = vsel %vm1186_vm2, %v2442_v56, 0.0  ;;  %v2561_v7 = vadd.f32 %v2560_v48, %v2559_v31  ;;  %v2661_v37 = vadd.f32 %v2660_v15, %v2659_v23  ;;  %5470 = vst.msk [vmem:[%s6960_s7 + $0xd8] sm:$0xf] %vm993_vm1, %v5998_v53  ;;  %v6030_v51 = vpack.c.bf16 %v9877_v52, %v9877_v52  ;;  %v8164_v17 = vpop.f32.mrb[80].mxu0  ;;  %v8166_v44 = vpop.f32.mrb[80].mxu1 }
 0x18a   : > { %9878 = vst [vmem:[#allocation2_spill] sm:$0xff] %v8166_v44  ;;  %v2664_v8 = vsel %vm1186_vm2, %v2614_v43, 0.0  ;;  %v2491_v57 = vadd.f32 %v2490_v42, %v2489_v50  ;;  %v2445_v39 = vmul.f32 %v9876_v1, %v9876_v1  ;;  %v5996_v48 = vpack.c.bf16 %v9879_v62, %v9879_v62  ;;  %v8173_v15 = vpop.f32.mrb[81].mxu0  ;;  %v8175_v23 = vpop.f32.mrb[81].mxu1  ;;  %v9884_v50 = vld [vmem:[#allocation5_spill] sm:$0xff] }
 0x18b   : > { %9880 = vst [vmem:[#allocation3_spill] sm:$0xff] %v8173_v15  ;;  %9881 = vst [vmem:[#allocation4_spill] sm:$0xff] %v8175_v23  ;;  %v2663_v53 = vadd.f32 %v2662_v24, %v2661_v37  ;;  %v2391_v56 = vadd.f32 %v2390_v26, %v2389_v30  ;;  %v2392_v2 = vsel %vm1186_vm2, %v9879_v62, 0.0  ;;  %v2443_v42 = vmul.f32 %v9879_v62, %v9879_v62  ;;  %v8183_v43 = vpop.f32.mrb[82].mxu0  ;;  %v8185_v41 = vpop.f32.mrb[82].mxu1 }
 0x18c   : > { %5534 = vst.msk [vmem:[%s6965_s10 + $0xd8] sm:$0xf] %vm993_vm1, %v6030_v51  ;;  %9882 = vst [vmem:[#allocation25_spill] sm:$0xff] %v8183_v43  ;;  %v2617_v31 = vmul.f32 %v9877_v52, %v9877_v52  ;;  %v2493_v24 = vadd.f32 %v2492_v11, %v2491_v57  ;;  %v6028_v26 = vpack.c.bf16 %v9884_v50, %v9884_v50  ;;  %v8193_v37 = vpop.f32.mrb[83].mxu0  ;;  %v8195_v51 = vpop.f32.mrb[83].mxu1 }
 0x18d   : > { %9883 = vst [vmem:[#allocation26_spill] sm:$0xff] %v8185_v41  ;;  %5468 = vst.msk [vmem:[%s6960_s7 + $0xd0] sm:$0xf] %vm993_vm1, %v5996_v48  ;;  %v2563_v30 = vadd.f32 %v2562_v33, %v2561_v7  ;;  %v2393_v23 = vadd.f32 %v2392_v2, %v2391_v56  ;;  %v2494_v62 = vsel %vm1186_vm2, %v2443_v42, 0.0  ;;  %v2564_v41 = vsel %vm1186_vm2, %v9884_v50, 0.0  ;;  %v9887_v33 = vld [vmem:[#allocation6_spill] sm:$0xff] }
 0x18e   : > { %9885 = vst [vmem:[#allocation5_spill] sm:$0xff] %v8193_v37  ;;  %9886 = vst [vmem:[#allocation27_spill] sm:$0xff] %v8195_v51  ;;  %v2615_v43 = vmul.f32 %v9884_v50, %v9884_v50  ;;  %v2495_v11 = vadd.f32 %v2494_v62, %v2493_v24  ;;  %v2665_v7 = vadd.f32 %v2664_v8, %v2663_v53  ;;  %v2396_v56 = vsel %vm1186_vm2, %v9876_v1, 0.0  ;;  %v9888_v51 = vld [vmem:[#allocation7_spill] sm:$0xff]  ;;  %v9889_v53 = vld [vmem:[#allocation8_spill] sm:$0xff] }
 0x18f   : > { %5532 = vst.msk [vmem:[%s6965_s10 + $0xd0] sm:$0xf] %vm993_vm1, %v6028_v26  ;;  %v2565_v57 = vadd.f32 %v2564_v41, %v2563_v30  ;;  %v5999_v48 = vpack.c.bf16 %v9887_v33, %v9887_v33  ;;  %v2568_v2 = vsel %vm1186_vm2, %v9877_v52, 0.0  ;;  %v6031_v50 = vpack.c.bf16 %v9888_v51, %v9888_v51 }
 0x190   : > { %v2666_v42 = vsel %vm1186_vm2, %v2615_v43, 0.0  ;;  %v2498_v24 = vsel %vm1186_vm2, %v2445_v39, 0.0  ;;  %v2670_v41 = vsel %vm1186_vm2, %v2617_v31, 0.0  ;;  %v5997_v26 = vpack.c.bf16 %v9889_v53, %v9889_v53  ;;  %v9890_v43 = vld [vmem:[#allocation9_spill] sm:$0xff] }
 0x191   : > { %v2667_v8 = vadd.f32 %v2666_v42, %v2665_v7  ;;  %5471 = vst.msk [vmem:[%s6960_s7 + $0xdc] sm:$0xf] %vm993_vm1, %v5999_v48  ;;  %v2446_v1 = vmul.f32 %v9887_v33, %v9887_v33  ;;  %5535 = vst.msk [vmem:[%s6965_s10 + $0xdc] sm:$0xf] %vm993_vm1, %v6031_v50  ;;  %v2394_v52 = vsel %vm1186_vm2, %v9889_v53, 0.0  ;;  %v2444_v39 = vmul.f32 %v9889_v53, %v9889_v53  ;;  %v8229_v30 = vpop.f32.mrb[84].mxu0 }
 0x192   : > { %v6029_v31 = vpack.c.bf16 %v9890_v43, %v9890_v43  ;;  %9891 = vst [vmem:[#allocation6_spill] sm:$0xff] %v8229_v30  ;;  %v8231_v62 = vpop.f32.mrb[84].mxu1  ;;  %v2618_v7 = vmul.f32 %v9888_v51, %v9888_v51  ;;  %5469 = vst.msk [vmem:[%s6960_s7 + $0xd4] sm:$0xf] %vm993_vm1, %v5997_v26  ;;  %v2395_v48 = vadd.f32 %v2394_v52, %v2393_v23  ;;  %v2566_v42 = vsel %vm1186_vm2, %v9890_v43, 0.0  ;;  %v8241_v53 = vpop.f32.mrb[85].mxu0 }
 0x193   : > { %9892 = vst [vmem:[#allocation7_spill] sm:$0xff] %v8231_v62  ;;  %v2616_v50 = vmul.f32 %v9890_v43, %v9890_v43  ;;  %9893 = vst [vmem:[#allocation8_spill] sm:$0xff] %v8241_v53  ;;  %v8243_v37 = vpop.f32.mrb[85].mxu1  ;;  %v2398_v30 = vsel %vm1186_vm2, %v9887_v33, 0.0  ;;  %v2496_v62 = vsel %vm1186_vm2, %v2444_v39, 0.0  ;;  %v2567_v26 = vadd.f32 %v2566_v42, %v2565_v57  ;;  %v8252_v52 = vpop.f32.mrb[86].mxu0 }
 0x194   : > { %9894 = vst [vmem:[#allocation9_spill] sm:$0xff] %v8243_v37  ;;  %5533 = vst.msk [vmem:[%s6965_s10 + $0xd4] sm:$0xf] %vm993_vm1, %v6029_v31  ;;  %v6002_v23 = vpack.c.bf16 %v7778_v20, %v7778_v20  ;;  %v8254_v15 = vpop.f32.mrb[86].mxu1  ;;  %v2570_v43 = vsel %vm1186_vm2, %v9888_v51, 0.0  ;;  %v2397_v37 = vadd.f32 %v2396_v56, %v2395_v48  ;;  %v2497_v53 = vadd.f32 %v2496_v62, %v2495_v11  ;;  %v8259_v44 = vpop.f32.mrb[87].mxu0 }
 0x195   : > { %9895 = vst [vmem:[#allocation28_spill] sm:$0xff] %v8254_v15  ;;  %v2668_v33 = vsel %vm1186_vm2, %v2616_v50, 0.0  ;;  %v8261_v39 = vpop.f32.mrb[87].mxu1  ;;  %v2500_v57 = vsel %vm1186_vm2, %v2446_v1, 0.0  ;;  %v2569_v31 = vadd.f32 %v2568_v2, %v2567_v26  ;;  %v6034_v15 = vpack.c.bf16 %v7780_v5, %v7780_v5 }
 0x196   : > { %v2669_v42 = vadd.f32 %v2668_v33, %v2667_v8  ;;  %5474 = vst.msk [vmem:[%s6960_s7 + $0xe8] sm:$0xf] %vm993_vm1, %v6002_v23  ;;  %v2672_v51 = vsel %vm1186_vm2, %v2618_v7, 0.0  ;;  %v2499_v56 = vadd.f32 %v2498_v24, %v2497_v53  ;;  %v2449_v11 = vmul.f32 %v7778_v20, %v7778_v20 }
 0x197   : > { %v6000_v62 = vpack.c.bf16 %v7788_v38, %v7788_v38  ;;  %5538 = vst.msk [vmem:[%s6965_s10 + $0xe8] sm:$0xf] %vm993_vm1, %v6034_v15  ;;  %v2399_v2 = vadd.f32 %v2398_v30, %v2397_v37  ;;  %v2400_v8 = vsel %vm1186_vm2, %v7788_v38, 0.0  ;;  %v2447_v1 = vmul.f32 %v7788_v38, %v7788_v38 }
 0x198   : > { %v2671_v48 = vadd.f32 %v2670_v41, %v2669_v42  ;;  %v2621_v24 = vmul.f32 %v7780_v5, %v7780_v5  ;;  %v2501_v7 = vadd.f32 %v2500_v57, %v2499_v56  ;;  %v6032_v50 = vpack.c.bf16 %v7790_v19, %v7790_v19 }
 0x199   : > { %5472 = vst.msk [vmem:[%s6960_s7 + $0xe0] sm:$0xf] %vm993_vm1, %v6000_v62  ;;  %v2571_v41 = vadd.f32 %v2570_v43, %v2569_v31  ;;  %v2401_v53 = vadd.f32 %v2400_v8, %v2399_v2  ;;  %v2502_v15 = vsel %vm1186_vm2, %v2447_v1, 0.0  ;;  %v2572_v37 = vsel %vm1186_vm2, %v7790_v19, 0.0  ;;  %v8290_v38 = vpop.f32.mrb[88].mxu0  ;;  %v8292_v26 = vpop.f32.mrb[88].mxu1 }
 0x19a   : > { %v2619_v30 = vmul.f32 %v7790_v19, %v7790_v19  ;;  %v2503_v23 = vadd.f32 %v2502_v15, %v2501_v7  ;;  %5536 = vst.msk [vmem:[%s6965_s10 + $0xe0] sm:$0xf] %vm993_vm1, %v6032_v50  ;;  %v2673_v57 = vadd.f32 %v2672_v51, %v2671_v48  ;;  %v6003_v43 = vpack.c.bf16 %v7798_v0, %v7798_v0  ;;  %v8298_v31 = vpop.f32.mrb[89].mxu0  ;;  %v8300_v42 = vpop.f32.mrb[89].mxu1 }
 0x19b   : > { %v2573_v33 = vadd.f32 %v2572_v37, %v2571_v41  ;;  %v2404_v19 = vsel %vm1186_vm2, %v7778_v20, 0.0  ;;  %v2576_v56 = vsel %vm1186_vm2, %v7780_v5, 0.0  ;;  %v6035_v2 = vpack.c.bf16 %v7800_v10, %v7800_v10  ;;  %v8309_v51 = vpop.f32.mrb[90].mxu0  ;;  %v8311_v48 = vpop.f32.mrb[90].mxu1 }
 0x19c   : > { %v2674_v62 = vsel %vm1186_vm2, %v2619_v30, 0.0  ;;  %9896 = vst [vmem:[#allocation29_spill] sm:$0xff] %v8311_v48  ;;  %v2506_v8 = vsel %vm1186_vm2, %v2449_v11, 0.0  ;;  %v2678_v1 = vsel %vm1186_vm2, %v2621_v24, 0.0  ;;  %5475 = vst.msk [vmem:[%s6960_s7 + $0xec] sm:$0xf] %vm993_vm1, %v6003_v43  ;;  %v6001_v20 = vpack.c.bf16 %v7809_v49, %v7809_v49 }
 0x19d   : > { %v2675_v7 = vadd.f32 %v2674_v62, %v2673_v57  ;;  %v8319_v5 = vpop.f32.mrb[91].mxu0  ;;  %v8321_v50 = vpop.f32.mrb[91].mxu1  ;;  %v2450_v41 = vmul.f32 %v7798_v0, %v7798_v0  ;;  %5539 = vst.msk [vmem:[%s6965_s10 + $0xec] sm:$0xf] %vm993_vm1, %v6035_v2  ;;  %v2402_v11 = vsel %vm1186_vm2, %v7809_v49, 0.0  ;;  %v2448_v24 = vmul.f32 %v7809_v49, %v7809_v49 }
 0x19e   : > { %9897 = vst [vmem:[#allocation30_spill] sm:$0xff] %v8319_v5  ;;  %9898 = vst [vmem:[#allocation31_spill] sm:$0xff] %v8321_v50  ;;  %v6033_v15 = vpack.c.bf16 %v7811_v36, %v7811_v36  ;;  %v2622_v37 = vmul.f32 %v7800_v10, %v7800_v10  ;;  %v2403_v30 = vadd.f32 %v2402_v11, %v2401_v53  ;;  %v2574_v57 = vsel %vm1186_vm2, %v7811_v36, 0.0 }
 0x19f   : > { %5473 = vst.msk [vmem:[%s6960_s7 + $0xe4] sm:$0xf] %vm993_vm1, %v6001_v20  ;;  %v2620_v43 = vmul.f32 %v7811_v36, %v7811_v36  ;;  %v2406_v62 = vsel %vm1186_vm2, %v7798_v0, 0.0  ;;  %v2504_v49 = vsel %vm1186_vm2, %v2448_v24, 0.0  ;;  %v2575_v2 = vadd.f32 %v2574_v57, %v2573_v33 }
 0x1a0   : > { %5537 = vst.msk [vmem:[%s6965_s10 + $0xe4] sm:$0xf] %vm993_vm1, %v6033_v15  ;;  %v6006_v50 = vpack.c.bf16 %v7845_v35, %v7845_v35  ;;  %v2578_v53 = vsel %vm1186_vm2, %v7800_v10, 0.0  ;;  %v2405_v20 = vadd.f32 %v2404_v19, %v2403_v30  ;;  %v2505_v11 = vadd.f32 %v2504_v49, %v2503_v23 }
 0x1a1   : > { %v2676_v5 = vsel %vm1186_vm2, %v2620_v43, 0.0  ;;  %v2508_v36 = vsel %vm1186_vm2, %v2450_v41, 0.0  ;;  %v2577_v48 = vadd.f32 %v2576_v56, %v2575_v2  ;;  %v6038_v33 = vpack.c.bf16 %v7847_v58, %v7847_v58  ;;  %v8356_v24 = vpop.f32.mrb[92].mxu0  ;;  %v8358_v15 = vpop.f32.mrb[92].mxu1 }
 0x1a2   : > { %v2677_v0 = vadd.f32 %v2676_v5, %v2675_v7  ;;  %5478 = vst.msk [vmem:[%s6960_s7 + $0xf8] sm:$0xf] %vm993_vm1, %v6006_v50  ;;  %v2680_v10 = vsel %vm1186_vm2, %v2622_v37, 0.0  ;;  %v2507_v23 = vadd.f32 %v2506_v8, %v2505_v11  ;;  %v2453_v19 = vmul.f32 %v7845_v35, %v7845_v35  ;;  %v8365_v7 = vpop.f32.mrb[93].mxu0  ;;  %v8367_v5 = vpop.f32.mrb[93].mxu1 }
 0x1a3   : > { %v6004_v56 = vpack.c.bf16 %v7857_v13, %v7857_v13  ;;  %5542 = vst.msk [vmem:[%s6965_s10 + $0xf8] sm:$0xf] %vm993_vm1, %v6038_v33  ;;  %v2407_v41 = vadd.f32 %v2406_v62, %v2405_v20  ;;  %v2408_v30 = vsel %vm1186_vm2, %v7857_v13, 0.0  ;;  %v2451_v8 = vmul.f32 %v7857_v13, %v7857_v13  ;;  %v8375_v37 = vpop.f32.mrb[94].mxu0  ;;  %v8377_v57 = vpop.f32.mrb[94].mxu1 }
 0x1a4   : > { %v2679_v50 = vadd.f32 %v2678_v1, %v2677_v0  ;;  %v2625_v43 = vmul.f32 %v7847_v58, %v7847_v58  ;;  %v2509_v1 = vadd.f32 %v2508_v36, %v2507_v23  ;;  %v6036_v62 = vpack.c.bf16 %v7859_v60, %v7859_v60  ;;  %v8385_v2 = vpop.f32.mrb[95].mxu0  ;;  %v8387_v20 = vpop.f32.mrb[95].mxu1 }
 0x1a5   : > { %5476 = vst.msk [vmem:[%s6960_s7 + $0xf0] sm:$0xf] %vm993_vm1, %v6004_v56  ;;  %v2579_v49 = vadd.f32 %v2578_v53, %v2577_v48  ;;  %9899 = vst [vmem:[#allocation32_spill] sm:$0xff] %v8387_v20  ;;  %v2409_v11 = vadd.f32 %v2408_v30, %v2407_v41  ;;  %v2510_v13 = vsel %vm1186_vm2, %v2451_v8, 0.0  ;;  %v2580_v0 = vsel %vm1186_vm2, %v7859_v60, 0.0 }
 0x1a6   : > { %v2623_v33 = vmul.f32 %v7859_v60, %v7859_v60  ;;  %v2511_v36 = vadd.f32 %v2510_v13, %v2509_v1  ;;  %5540 = vst.msk [vmem:[%s6965_s10 + $0xf0] sm:$0xf] %vm993_vm1, %v6036_v62  ;;  %v2681_v48 = vadd.f32 %v2680_v10, %v2679_v50  ;;  %v6007_v53 = vpack.c.bf16 %v7868_v40, %v7868_v40 }
 0x1a7   : > { %v2581_v23 = vadd.f32 %v2580_v0, %v2579_v49  ;;  %v2412_v56 = vsel %vm1186_vm2, %v7845_v35, 0.0  ;;  %v2584_v41 = vsel %vm1186_vm2, %v7847_v58, 0.0  ;;  %v6039_v60 = vpack.c.bf16 %v7870_v16, %v7870_v16 }
 0x1a8   : > { %v2682_v30 = vsel %vm1186_vm2, %v2623_v33, 0.0  ;;  %v2514_v8 = vsel %vm1186_vm2, %v2453_v19, 0.0  ;;  %v2686_v1 = vsel %vm1186_vm2, %v2625_v43, 0.0  ;;  %5479 = vst.msk [vmem:[%s6960_s7 + $0xfc] sm:$0xf] %vm993_vm1, %v6007_v53  ;;  %v6005_v50 = vpack.c.bf16 %v7875_v61, %v7875_v61 }
 0x1a9   : > { %v2683_v10 = vadd.f32 %v2682_v30, %v2681_v48  ;;  %v2454_v35 = vmul.f32 %v7868_v40, %v7868_v40  ;;  %5543 = vst.msk [vmem:[%s6965_s10 + $0xfc] sm:$0xf] %vm993_vm1, %v6039_v60  ;;  %v2410_v58 = vsel %vm1186_vm2, %v7875_v61, 0.0  ;;  %v2452_v19 = vmul.f32 %v7875_v61, %v7875_v61  ;;  %v8421_v62 = vpop.f32.mrb[96].mxu0  ;;  %v8423_v49 = vpop.f32.mrb[96].mxu1 }
 0x1aa   : > { %v6037_v43 = vpack.c.bf16 %v7877_v9, %v7877_v9  ;;  %9900 = vst [vmem:[#allocation33_spill] sm:$0xff] %v8421_v62  ;;  %9901 = vst [vmem:[#allocation34_spill] sm:$0xff] %v8423_v49  ;;  %v2626_v13 = vmul.f32 %v7870_v16, %v7870_v16  ;;  %v2411_v0 = vadd.f32 %v2410_v58, %v2409_v11  ;;  %v2582_v33 = vsel %vm1186_vm2, %v7877_v9, 0.0  ;;  %v8433_v61 = vpop.f32.mrb[97].mxu0  ;;  %v8435_v53 = vpop.f32.mrb[97].mxu1 }
 0x1ab   : > { %5477 = vst.msk [vmem:[%s6960_s7 + $0xf4] sm:$0xf] %vm993_vm1, %v6005_v50  ;;  %v2624_v48 = vmul.f32 %v7877_v9, %v7877_v9  ;;  %9902 = vst [vmem:[#allocation35_spill] sm:$0xff] %v8433_v61  ;;  %v2414_v30 = vsel %vm1186_vm2, %v7868_v40, 0.0  ;;  %v2512_v60 = vsel %vm1186_vm2, %v2452_v19, 0.0  ;;  %v2583_v50 = vadd.f32 %v2582_v33, %v2581_v23  ;;  %v8444_v58 = vpop.f32.mrb[98].mxu0 }
 0x1ac   : > { %9903 = vst [vmem:[#allocation36_spill] sm:$0xff] %v8435_v53  ;;  %5541 = vst.msk [vmem:[%s6965_s10 + $0xf4] sm:$0xf] %vm993_vm1, %v6037_v43  ;;  %v6042_v11 = vpack.c.bf16 %v7906_v32, %v7906_v32  ;;  %v8446_v49 = vpop.f32.mrb[98].mxu1  ;;  %v2586_v9 = vsel %vm1186_vm2, %v7870_v16, 0.0  ;;  %v2413_v53 = vadd.f32 %v2412_v56, %v2411_v0  ;;  %v2513_v61 = vadd.f32 %v2512_v60, %v2511_v36  ;;  %v8451_v62 = vpop.f32.mrb[99].mxu0 }
 0x1ad   : > { %9904 = vst [vmem:[#allocation37_spill] sm:$0xff] %v8444_v58  ;;  %9905 = vst [vmem:[#allocation38_spill] sm:$0xff] %v8446_v49  ;;  %v2684_v40 = vsel %vm1186_vm2, %v2624_v48, 0.0  ;;  %v8453_v19 = vpop.f32.mrb[99].mxu1  ;;  %v2516_v23 = vsel %vm1186_vm2, %v2454_v35, 0.0  ;;  %v2585_v43 = vadd.f32 %v2584_v41, %v2583_v50  ;;  %v6074_v49 = vpack.c.bf16 %v7908_v34, %v7908_v34 }
 0x1ae   : > { %9906 = vst [vmem:[#allocation39_spill] sm:$0xff] %v8451_v62  ;;  %9907 = vst [vmem:[#allocation40_spill] sm:$0xff] %v8453_v19  ;;  %v2685_v33 = vadd.f32 %v2684_v40, %v2683_v10  ;;  %v2688_v16 = vsel %vm1186_vm2, %v2626_v13, 0.0  ;;  %v2415_v56 = vadd.f32 %v2414_v30, %v2413_v53  ;;  %v2515_v36 = vadd.f32 %v2514_v8, %v2513_v61 }
 0x1af   : > { %5632 = vst.msk [vmem:[%s6960_s7 + $0x108] sm:$0xf] %vm993_vm1, %v6042_v11  ;;  %v3591_v0 = vmul.f32 %v7906_v32, %v7906_v32  ;;  %v2587_v48 = vadd.f32 %v2586_v9, %v2585_v43  ;;  %5696 = vst.msk [vmem:[%s6965_s10 + $0x108] sm:$0xf] %vm993_vm1, %v6074_v49  ;;  %v3763_v41 = vmul.f32 %v7908_v34, %v7908_v34  ;;  %v3522_v13 = vsel %vm1186_vm2, %v7906_v32, 0.0 }
 0x1b0   : > { %v2687_v60 = vadd.f32 %v2686_v1, %v2685_v33  ;;  %v6040_v10 = vpack.c.bf16 %v7914_v12, %v7914_v12  ;;  %v2416_v35 = vrot.slane %v2415_v56, 4  ;;  %v2517_v50 = vadd.f32 %v2516_v23, %v2515_v36 }
 0x1b1   : > { %v3589_v8 = vmul.f32 %v7914_v12, %v7914_v12  ;;  %v2588_v61 = vrot.slane %v2587_v48, 4  ;;  %v8475_v1 = vsel %vm1186_vm2, %v7908_v34, 0.0  ;;  %v6072_v49 = vpack.c.bf16 %v7916_v6, %v7916_v6  ;;  %v8481_v30 = vpop.f32.mrb[100].mxu0  ;;  %v8483_v11 = vpop.f32.mrb[100].mxu1 }
 0x1b2   : > { %v2689_v53 = vadd.f32 %v2688_v16, %v2687_v60  ;;  %5630 = vst.msk [vmem:[%s6960_s7 + $0x100] sm:$0xf] %vm993_vm1, %v6040_v10  ;;  %9908 = vst [vmem:[#allocation41_spill] sm:$0xff] %v8481_v30  ;;  %v2417_v32 = vadd.f32 %v2416_v35, %v2415_v56  ;;  %v2518_v9 = vrot.slane %v2517_v50, 4  ;;  %v8486_v40 = vsel %vm1186_vm2, %v3591_v0, 0.0  ;;  %v8490_v43 = vpop.f32.mrb[101].mxu0 }
 0x1b3   : > { %9909 = vst [vmem:[#allocation42_spill] sm:$0xff] %v8483_v11  ;;  %v3519_v23 = vsel %vm1186_vm2, %v7914_v12, 0.0  ;;  %9910 = vst [vmem:[#allocation43_spill] sm:$0xff] %v8490_v43  ;;  %v8492_v34 = vpop.f32.mrb[101].mxu1  ;;  %v2589_v33 = vadd.f32 %v2588_v61, %v2587_v48  ;;  %v8495_v36 = vsel %vm1186_vm2, %v3763_v41, 0.0  ;;  %v6043_v56 = vpack.c.bf16 %v7925_v47, %v7925_v47  ;;  %v8501_v0 = vpop.f32.mrb[102].mxu0 }
 0x1b4   : > { %9911 = vst [vmem:[#allocation44_spill] sm:$0xff] %v8492_v34  ;;  %v2690_v16 = vrot.slane %v2689_v53, 4  ;;  %5694 = vst.msk [vmem:[%s6965_s10 + $0x100] sm:$0xf] %vm993_vm1, %v6072_v49  ;;  %v8503_v60 = vpop.f32.mrb[102].mxu1  ;;  %v2418_v12 = vrot.slane %v2417_v32, 2  ;;  %v2519_v10 = vadd.f32 %v2518_v9, %v2517_v50  ;;  %v3761_v43 = vmul.f32 %v7916_v6, %v7916_v6 }
 0x1b5   : > { %9912 = vst [vmem:[#allocation45_spill] sm:$0xff] %v8501_v0  ;;  %9913 = vst [vmem:[#allocation46_spill] sm:$0xff] %v8503_v60  ;;  %v3621_v35 = vsel %vm1186_vm2, %v3589_v8, 0.0  ;;  %v3691_v48 = vsel %vm1186_vm2, %v7916_v6, 0.0  ;;  %v8508_v61 = vpop.f32.mrb[103].mxu0  ;;  %v8510_v41 = vpop.f32.mrb[103].mxu1  ;;  %v6075_v50 = vpack.c.bf16 %v7927_v4, %v7927_v4 }
 0x1b6   : > { %9914 = vst [vmem:[#allocation47_spill] sm:$0xff] %v8508_v61  ;;  %9915 = vst [vmem:[#allocation48_spill] sm:$0xff] %v8510_v41  ;;  %v2590_v49 = vrot.slane %v2589_v33, 2  ;;  %v2691_v34 = vadd.f32 %v2690_v16, %v2689_v53  ;;  %v2419_v9 = vadd.f32 %v2418_v12, %v2417_v32  ;;  %v2520_v8 = vrot.slane %v2519_v10, 2  ;;  %v9916_v53 = vld [vmem:[#allocation14_spill] sm:$0xff] }
 0x1b7   : > { %5633 = vst.msk [vmem:[%s6960_s7 + $0x10c] sm:$0xf] %vm993_vm1, %v6043_v56  ;;  %v3524_v60 = vsel %vm1186_vm2, %v7925_v47, 0.0  ;;  %v3592_v61 = vmul.f32 %v7925_v47, %v7925_v47  ;;  %5697 = vst.msk [vmem:[%s6965_s10 + $0x10c] sm:$0xf] %vm993_vm1, %v6075_v50  ;;  %v6041_v6 = vpack.c.bf16 %v9916_v53, %v9916_v53  ;;  %v3520_v16 = vsel %vm1186_vm2, %v9916_v53, 0.0 }
 0x1b8   : > { %v2591_v41 = vadd.f32 %v2590_v49, %v2589_v33  ;;  %v2692_v0 = vrot.slane %v2691_v34, 2  ;;  %v2420_v56 = vrot.slane %v2419_v9, 1  ;;  %v2521_v11 = vadd.f32 %v2520_v8, %v2519_v10  ;;  %v9917_v33 = vld [vmem:[#allocation15_spill] sm:$0xff] }
 0x1b9   : > { %v3764_v32 = vmul.f32 %v7927_v4, %v7927_v4  ;;  %v3521_v12 = vadd.f32 %v3520_v16, %v3519_v23  ;;  %5631 = vst.msk [vmem:[%s6960_s7 + $0x104] sm:$0xf] %vm993_vm1, %v6041_v6  ;;  %v3590_v47 = vmul.f32 %v9916_v53, %v9916_v53  ;;  %v6073_v49 = vpack.c.bf16 %v9917_v33, %v9917_v33  ;;  %v8536_v50 = vpop.f32.mrb[104].mxu0  ;;  %v8538_v62 = vpop.f32.mrb[104].mxu1 }
 0x1ba   : > { %v2592_v30 = vrot.slane %v2591_v41, 1  ;;  %v2693_v19 = vadd.f32 %v2692_v0, %v2691_v34  ;;  %9918 = vst [vmem:[#allocation14_spill] sm:$0xff] %v8536_v50  ;;  %9919 = vst [vmem:[#allocation15_spill] sm:$0xff] %v8538_v62  ;;  %v2421_v10 = vadd.f32 %v2420_v56, %v2419_v9  ;;  %v2522_v8 = vrot.slane %v2521_v11, 1  ;;  %v8542_v16 = vpop.f32.mrb[105].mxu0  ;;  %v8544_v34 = vpop.f32.mrb[105].mxu1 }
 0x1bb   : > { %v3523_v58 = vadd.f32 %v3522_v13, %v3521_v12  ;;  %v3692_v23 = vsel %vm1186_vm2, %v9917_v33, 0.0  ;;  %9920 = vst [vmem:[#allocation49_spill] sm:$0xff] %v8544_v34  ;;  %v3622_v53 = vsel %vm1186_vm2, %v3590_v47, 0.0  ;;  %5695 = vst.msk [vmem:[%s6965_s10 + $0x104] sm:$0xf] %vm993_vm1, %v6073_v49  ;;  %v8549_v50 = vpop.f32.mrb[106].mxu0  ;;  %v3762_v34 = vmul.f32 %v9917_v33, %v9917_v33 }
 0x1bc   : > { %v2593_v0 = vadd.f32 %v2592_v30, %v2591_v41  ;;  %v2694_v6 = vrot.slane %v2693_v19, 1  ;;  %v3693_v20 = vadd.f32 %v3692_v23, %v3691_v48  ;;  %v8551_v62 = vpop.f32.mrb[106].mxu1  ;;  %v9921_v9 = vld [vmem:[#allocation10_spill] sm:$0xff]  ;;  %v2523_v56 = vadd.f32 %v2522_v8, %v2521_v11  ;;  %v8558_v30 = vpop.f32.mrb[107].mxu0  ;;  %v9923_v47 = vld [vmem:[#allocation11_spill] sm:$0xff] }
 0x1bd   : > { %v8554_v13 = vadd.f32 %v2421_v10, %v9921_v9  ;;  %v3623_v12 = vadd.f32 %v3622_v53, %v3621_v35  ;;  %v8560_v41 = vpop.f32.mrb[107].mxu1  ;;  %v6046_v10 = vpack.c.bf16 %v7972_v3, %v7972_v3  ;;  %v9924_v9 = vld [vmem:[#allocation12_spill] sm:$0xff]  ;;  %v3793_v35 = vsel %vm1186_vm2, %v3761_v43, 0.0  ;;  %v9925_v53 = vld [vmem:[#allocation13_spill] sm:$0xff] }
 0x1be   : > { %9922 = vst [vmem:[#allocation10_spill] sm:$0xff] %v8560_v41  ;;  %v8563_v49 = vadd.f32 %v2593_v0, %v9923_v47  ;;  %v2695_v48 = vadd.f32 %v2694_v6, %v2693_v19  ;;  %v3695_v23 = vadd.f32 %v8475_v1, %v3693_v20  ;;  %v8569_v11 = vadd.f32 %v2523_v56, %v9924_v9 }
 0x1bf   : > { %v3625_v33 = vadd.f32 %v8486_v40, %v3623_v12  ;;  %v3794_v8 = vsel %vm1186_vm2, %v3762_v34, 0.0  ;;  %v3696_v19 = vsel %vm1186_vm2, %v7927_v4, 0.0  ;;  %5636 = vst.msk [vmem:[%s6960_s7 + $0x118] sm:$0xf] %vm993_vm1, %v6046_v10  ;;  %v6078_v1 = vpack.c.bf16 %v7974_v55, %v7974_v55 }
 0x1c0   : > { %v8575_v41 = vadd.f32 %v2695_v48, %v9925_v53  ;;  %v3795_v20 = vadd.f32 %v3794_v8, %v3793_v35  ;;  %v3626_v0 = vsel %vm1186_vm2, %v3592_v61, 0.0  ;;  %v3798_v43 = vsel %vm1186_vm2, %v3764_v32, 0.0 }
 0x1c1   : > { %v6044_v40 = vpack.c.bf16 %v7981_v29, %v7981_v29  ;;  %v3525_v34 = vadd.f32 %v3524_v60, %v3523_v58  ;;  %v3595_v4 = vmul.f32 %v7972_v3, %v7972_v3  ;;  %5700 = vst.msk [vmem:[%s6965_s10 + $0x118] sm:$0xf] %vm993_vm1, %v6078_v1  ;;  %v3526_v56 = vsel %vm1186_vm2, %v7981_v29, 0.0  ;;  %v8596_v61 = vpop.f32.mrb[108].mxu0  ;;  %v8598_v32 = vpop.f32.mrb[108].mxu1 }
 0x1c2   : > { %v3797_v6 = vadd.f32 %v8495_v36, %v3795_v20  ;;  %v3593_v12 = vmul.f32 %v7981_v29, %v7981_v29  ;;  %v3767_v58 = vmul.f32 %v7974_v55, %v7974_v55  ;;  %v3627_v60 = vadd.f32 %v3626_v0, %v3625_v33  ;;  %v8606_v48 = vpop.f32.mrb[109].mxu0  ;;  %v8608_v10 = vpop.f32.mrb[109].mxu1 }
 0x1c3   : > { %5634 = vst.msk [vmem:[%s6960_s7 + $0x110] sm:$0xf] %vm993_vm1, %v6044_v40  ;;  %v3527_v36 = vadd.f32 %v3526_v56, %v3525_v34  ;;  %v6076_v47 = vpack.c.bf16 %v7983_v59, %v7983_v59  ;;  %v3697_v9 = vadd.f32 %v3696_v19, %v3695_v23  ;;  %v3698_v35 = vsel %vm1186_vm2, %v7983_v59, 0.0  ;;  %v8615_v53 = vpop.f32.mrb[110].mxu0  ;;  %v8617_v33 = vpop.f32.mrb[110].mxu1 }
 0x1c4   : > { %v3628_v29 = vsel %vm1186_vm2, %v3593_v12, 0.0  ;;  %v3765_v8 = vmul.f32 %v7983_v59, %v7983_v59  ;;  %v3530_v20 = vsel %vm1186_vm2, %v7972_v3, 0.0  ;;  %v3799_v0 = vadd.f32 %v3798_v43, %v3797_v6  ;;  %v8625_v19 = vpop.f32.mrb[111].mxu0  ;;  %v8627_v40 = vpop.f32.mrb[111].mxu1 }
 0x1c5   : > { %v3629_v1 = vadd.f32 %v3628_v29, %v3627_v60  ;;  %5698 = vst.msk [vmem:[%s6965_s10 + $0x110] sm:$0xf] %vm993_vm1, %v6076_v47  ;;  %v6047_v23 = vpack.c.bf16 %v7991_v45, %v7991_v45  ;;  %9926 = vst [vmem:[#allocation11_spill] sm:$0xff] %v8625_v19  ;;  %v3702_v59 = vsel %vm1186_vm2, %v7974_v55, 0.0  ;;  %v3699_v34 = vadd.f32 %v3698_v35, %v3697_v9 }
 0x1c6   : > { %9927 = vst [vmem:[#allocation12_spill] sm:$0xff] %v8627_v40  ;;  %v3800_v56 = vsel %vm1186_vm2, %v3765_v8, 0.0  ;;  %v6079_v3 = vpack.c.bf16 %v7993_v22, %v7993_v22  ;;  %v3632_v12 = vsel %vm1186_vm2, %v3595_v4, 0.0  ;;  %v3804_v43 = vsel %vm1186_vm2, %v3767_v58, 0.0 }
 0x1c7   : > { %v3801_v6 = vadd.f32 %v3800_v56, %v3799_v0  ;;  %5637 = vst.msk [vmem:[%s6960_s7 + $0x11c] sm:$0xf] %vm993_vm1, %v6047_v23  ;;  %v6045_v60 = vpack.c.bf16 %v8001_v21, %v8001_v21  ;;  %v3596_v55 = vmul.f32 %v7991_v45, %v7991_v45  ;;  %v3528_v47 = vsel %vm1186_vm2, %v8001_v21, 0.0  ;;  %v9928_v56 = vld [vmem:[#allocation16_spill] sm:$0xff] }
 0x1c8   : > { %5701 = vst.msk [vmem:[%s6965_s10 + $0x11c] sm:$0xf] %vm993_vm1, %v6079_v3  ;;  %v3594_v4 = vmul.f32 %v8001_v21, %v8001_v21  ;;  %v6077_v58 = vpack.c.bf16 %v8003_v14, %v8003_v14  ;;  %v3768_v29 = vmul.f32 %v7993_v22, %v7993_v22  ;;  %v3529_v9 = vadd.f32 %v3528_v47, %v3527_v36 }
 0x1c9   : > { %5635 = vst.msk [vmem:[%s6960_s7 + $0x114] sm:$0xf] %vm993_vm1, %v6045_v60  ;;  %v3700_v35 = vsel %vm1186_vm2, %v8003_v14, 0.0  ;;  %v3766_v8 = vmul.f32 %v8003_v14, %v8003_v14  ;;  %v3532_v0 = vsel %vm1186_vm2, %v7991_v45, 0.0  ;;  %v6050_v3 = vpack.c.bf16 %v9928_v56, %v9928_v56  ;;  %v8668_v14 = vpop.f32.mrb[112].mxu0  ;;  %v8670_v19 = vpop.f32.mrb[112].mxu1 }
 0x1ca   : > { %v3630_v21 = vsel %vm1186_vm2, %v3594_v4, 0.0  ;;  %5699 = vst.msk [vmem:[%s6965_s10 + $0x114] sm:$0xf] %vm993_vm1, %v6077_v58  ;;  %v3701_v23 = vadd.f32 %v3700_v35, %v3699_v34  ;;  %v3704_v36 = vsel %vm1186_vm2, %v7993_v22, 0.0  ;;  %v3531_v60 = vadd.f32 %v3530_v20, %v3529_v9  ;;  %v9929_v34 = vld [vmem:[#allocation17_spill] sm:$0xff]  ;;  %v8677_v22 = vpop.f32.mrb[113].mxu0 }
 0x1cb   : > { %v3631_v47 = vadd.f32 %v3630_v21, %v3629_v1  ;;  %v3802_v40 = vsel %vm1186_vm2, %v3766_v8, 0.0  ;;  %v3634_v45 = vsel %vm1186_vm2, %v3596_v55, 0.0  ;;  %5640 = vst.msk [vmem:[%s6960_s7 + $0x128] sm:$0xf] %vm993_vm1, %v6050_v3  ;;  %v6082_v35 = vpack.c.bf16 %v9929_v34, %v9929_v34  ;;  %v8679_v20 = vpop.f32.mrb[113].mxu1  ;;  %v9931_v21 = vld [vmem:[#allocation18_spill] sm:$0xff] }
 0x1cc   : > { %v3703_v4 = vadd.f32 %v3702_v59, %v3701_v23  ;;  %v3803_v58 = vadd.f32 %v3802_v40, %v3801_v6  ;;  %9930 = vst [vmem:[#allocation13_spill] sm:$0xff] %v8679_v20  ;;  %v3806_v1 = vsel %vm1186_vm2, %v3768_v29, 0.0  ;;  %v3599_v8 = vmul.f32 %v9928_v56, %v9928_v56  ;;  %v8692_v3 = vpop.f32.mrb[114].mxu0 }
 0x1cd   : > { %v3633_v9 = vadd.f32 %v3632_v12, %v3631_v47  ;;  %v6048_v59 = vpack.c.bf16 %v9931_v21, %v9931_v21  ;;  %5704 = vst.msk [vmem:[%s6965_s10 + $0x128] sm:$0xf] %vm993_vm1, %v6082_v35  ;;  %v3533_v6 = vadd.f32 %v3532_v0, %v3531_v60  ;;  %v3534_v55 = vsel %vm1186_vm2, %v9931_v21, 0.0  ;;  %9932 = vst [vmem:[#allocation16_spill] sm:$0xff] %v8692_v3  ;;  %v9933_v47 = vld [vmem:[#allocation19_spill] sm:$0xff]  ;;  %v8700_v35 = vpop.f32.mrb[114].mxu1 }
 0x1ce   : > { %v3805_v40 = vadd.f32 %v3804_v43, %v3803_v58  ;;  %v3597_v23 = vmul.f32 %v9931_v21, %v9931_v21  ;;  %v3771_v12 = vmul.f32 %v9929_v34, %v9929_v34  ;;  %v6080_v43 = vpack.c.bf16 %v9933_v47, %v9933_v47 }
 0x1cf   : > { %5638 = vst.msk [vmem:[%s6960_s7 + $0x120] sm:$0xf] %vm993_vm1, %v6048_v59  ;;  %v3635_v29 = vadd.f32 %v3634_v45, %v3633_v9  ;;  %v3705_v58 = vadd.f32 %v3704_v36, %v3703_v4  ;;  %v3535_v0 = vadd.f32 %v3534_v55, %v3533_v6  ;;  %v3706_v21 = vsel %vm1186_vm2, %v9933_v47, 0.0  ;;  %v8711_v4 = vpop.f32.mrb[115].mxu0  ;;  %v8713_v59 = vpop.f32.mrb[115].mxu1 }
 0x1d0   : > { %v3636_v60 = vsel %vm1186_vm2, %v3597_v23, 0.0  ;;  %v3769_v3 = vmul.f32 %v9933_v47, %v9933_v47  ;;  %5702 = vst.msk [vmem:[%s6965_s10 + $0x120] sm:$0xf] %vm993_vm1, %v6080_v43  ;;  %v3807_v9 = vadd.f32 %v3806_v1, %v3805_v40  ;;  %v6051_v36 = vpack.c.bf16 %v8060_v63, %v8060_v63  ;;  %9934 = vst [vmem:[#allocation17_spill] sm:$0xff] %v8711_v4 }
 0x1d1   : > { %v3637_v20 = vadd.f32 %v3636_v60, %v3635_v29  ;;  %v3707_v45 = vadd.f32 %v3706_v21, %v3705_v58  ;;  %9935 = vst [vmem:[#allocation18_spill] sm:$0xff] %v8713_v59  ;;  %v3538_v6 = vsel %vm1186_vm2, %v9928_v56, 0.0  ;;  %v3710_v55 = vsel %vm1186_vm2, %v9929_v34, 0.0  ;;  %v9936_v29 = vld [vmem:[#allocation20_spill] sm:$0xff]  ;;  %v8758_v4 = vpop.f32.mrb[116].mxu1 }
 0x1d2   : > { %v3808_v23 = vsel %vm1186_vm2, %v3769_v3, 0.0  ;;  %v6083_v47 = vpack.c.bf16 %v9936_v29, %v9936_v29  ;;  %v3640_v1 = vsel %vm1186_vm2, %v3599_v8, 0.0  ;;  %v3812_v40 = vsel %vm1186_vm2, %v3771_v12, 0.0  ;;  %5641 = vst.msk [vmem:[%s6960_s7 + $0x12c] sm:$0xf] %vm993_vm1, %v6051_v36 }
 0x1d3   : > { %v3809_v43 = vadd.f32 %v3808_v23, %v3807_v9  ;;  %v6049_v58 = vpack.c.bf16 %v8067_v18, %v8067_v18  ;;  %v3600_v56 = vmul.f32 %v8060_v63, %v8060_v63  ;;  %v3536_v34 = vsel %vm1186_vm2, %v8067_v18, 0.0 }
 0x1d4   : > { %5705 = vst.msk [vmem:[%s6965_s10 + $0x12c] sm:$0xf] %vm993_vm1, %v6083_v47  ;;  %v3598_v8 = vmul.f32 %v8067_v18, %v8067_v18  ;;  %v6081_v3 = vpack.c.bf16 %v8069_v25, %v8069_v25  ;;  %v3772_v12 = vmul.f32 %v9936_v29, %v9936_v29  ;;  %v3537_v60 = vadd.f32 %v3536_v34, %v3535_v0 }
 0x1d5   : > { %5639 = vst.msk [vmem:[%s6960_s7 + $0x124] sm:$0xf] %vm993_vm1, %v6049_v58  ;;  %v3708_v21 = vsel %vm1186_vm2, %v8069_v25, 0.0  ;;  %v3770_v9 = vmul.f32 %v8069_v25, %v8069_v25  ;;  %v3540_v36 = vsel %vm1186_vm2, %v8060_v63, 0.0  ;;  %v6054_v47 = vpack.c.bf16 %v8098_v28, %v8098_v28  ;;  %v8756_v25 = vpop.f32.mrb[116].mxu0 }
 0x1d6   : > { %v3638_v18 = vsel %vm1186_vm2, %v3598_v8, 0.0  ;;  %5703 = vst.msk [vmem:[%s6965_s10 + $0x124] sm:$0xf] %vm993_vm1, %v6081_v3  ;;  %v3709_v23 = vadd.f32 %v3708_v21, %v3707_v45  ;;  %v3712_v0 = vsel %vm1186_vm2, %v9936_v29, 0.0  ;;  %v3539_v58 = vadd.f32 %v3538_v6, %v3537_v60  ;;  %v8765_v29 = vpop.f32.mrb[117].mxu0 }
 0x1d7   : > { %v3639_v34 = vadd.f32 %v3638_v18, %v3637_v20  ;;  %v3810_v59 = vsel %vm1186_vm2, %v3770_v9, 0.0  ;;  %v3642_v63 = vsel %vm1186_vm2, %v3600_v56, 0.0  ;;  %5644 = vst.msk [vmem:[%s6960_s7 + $0x138] sm:$0xf] %vm993_vm1, %v6054_v47  ;;  %v6086_v45 = vpack.c.bf16 %v8100_v27, %v8100_v27  ;;  %v8767_v20 = vpop.f32.mrb[117].mxu1  ;;  %v8780_v18 = vpop.f32.mrb[118].mxu0 }
 0x1d8   : > { %v3711_v8 = vadd.f32 %v3710_v55, %v3709_v23  ;;  %v3811_v3 = vadd.f32 %v3810_v59, %v3809_v43  ;;  %v3814_v6 = vsel %vm1186_vm2, %v3772_v12, 0.0  ;;  %v3603_v21 = vmul.f32 %v8098_v28, %v8098_v28  ;;  %9937 = vst [vmem:[#allocation19_spill] sm:$0xff] %v8780_v18  ;;  %v8788_v47 = vpop.f32.mrb[118].mxu1 }
 0x1d9   : > { %v3641_v60 = vadd.f32 %v3640_v1, %v3639_v34  ;;  %v6052_v55 = vpack.c.bf16 %v8106_v54, %v8106_v54  ;;  %5708 = vst.msk [vmem:[%s6965_s10 + $0x138] sm:$0xf] %vm993_vm1, %v6086_v45  ;;  %v3541_v43 = vadd.f32 %v3540_v36, %v3539_v58  ;;  %v3542_v56 = vsel %vm1186_vm2, %v8106_v54, 0.0  ;;  %9938 = vst [vmem:[#allocation20_spill] sm:$0xff] %v8788_v47 }
 0x1da   : > { %v3813_v59 = vadd.f32 %v3812_v40, %v3811_v3  ;;  %v3601_v9 = vmul.f32 %v8106_v54, %v8106_v54  ;;  %v3775_v1 = vmul.f32 %v8100_v27, %v8100_v27  ;;  %v6084_v40 = vpack.c.bf16 %v8108_v46, %v8108_v46 }
 0x1db   : > { %5642 = vst.msk [vmem:[%s6960_s7 + $0x130] sm:$0xf] %vm993_vm1, %v6052_v55  ;;  %v3643_v12 = vadd.f32 %v3642_v63, %v3641_v60  ;;  %v3713_v23 = vadd.f32 %v3712_v0, %v3711_v8  ;;  %v3543_v36 = vadd.f32 %v3542_v56, %v3541_v43  ;;  %v3714_v54 = vsel %vm1186_vm2, %v8108_v46, 0.0  ;;  %v9939_v60 = vld [vmem:[#allocation21_spill] sm:$0xff]  ;;  %v8799_v8 = vpop.f32.mrb[119].mxu0  ;;  %v8801_v55 = vpop.f32.mrb[119].mxu1 }
 0x1dc   : > { %v3644_v58 = vsel %vm1186_vm2, %v3601_v9, 0.0  ;;  %v3773_v34 = vmul.f32 %v8108_v46, %v8108_v46  ;;  %5706 = vst.msk [vmem:[%s6965_s10 + $0x130] sm:$0xf] %vm993_vm1, %v6084_v40  ;;  %v3815_v45 = vadd.f32 %v3814_v6, %v3813_v59  ;;  %v6055_v0 = vpack.c.bf16 %v9939_v60, %v9939_v60  ;;  %9940 = vst [vmem:[#allocation21_spill] sm:$0xff] %v8799_v8  ;;  %v9942_v9 = vld [vmem:[#allocation22_spill] sm:$0xff]  ;;  %v8846_v18 = vpop.f32.mrb[120].mxu1 }
 0x1dd   : > { %v3645_v3 = vadd.f32 %v3644_v58, %v3643_v12  ;;  %v3715_v63 = vadd.f32 %v3714_v54, %v3713_v23  ;;  %9941 = vst [vmem:[#allocation50_spill] sm:$0xff] %v8801_v55  ;;  %v3546_v43 = vsel %vm1186_vm2, %v8098_v28, 0.0  ;;  %v3718_v46 = vsel %vm1186_vm2, %v8100_v27, 0.0  ;;  %v9943_v23 = vld [vmem:[#allocation23_spill] sm:$0xff]  ;;  %v9944_v54 = vld [vmem:[#allocation24_spill] sm:$0xff] }
 0x1de   : > { %v3816_v56 = vsel %vm1186_vm2, %v3773_v34, 0.0  ;;  %v6087_v12 = vpack.c.bf16 %v9942_v9, %v9942_v9  ;;  %v3648_v6 = vsel %vm1186_vm2, %v3603_v21, 0.0  ;;  %v3820_v59 = vsel %vm1186_vm2, %v3775_v1, 0.0  ;;  %5645 = vst.msk [vmem:[%s6960_s7 + $0x13c] sm:$0xf] %vm993_vm1, %v6055_v0  ;;  %9946 = vst [vmem:[#allocation23_spill] sm:$0xff] %v8846_v18 }
 0x1df   : > { %v3817_v40 = vadd.f32 %v3816_v56, %v3815_v45  ;;  %v6053_v58 = vpack.c.bf16 %v9943_v23, %v9943_v23  ;;  %v3604_v28 = vmul.f32 %v9939_v60, %v9939_v60  ;;  %v3544_v27 = vsel %vm1186_vm2, %v9943_v23, 0.0 }
 0x1e0   : > { %5709 = vst.msk [vmem:[%s6965_s10 + $0x13c] sm:$0xf] %vm993_vm1, %v6087_v12  ;;  %v3602_v21 = vmul.f32 %v9943_v23, %v9943_v23  ;;  %v6085_v1 = vpack.c.bf16 %v9944_v54, %v9944_v54  ;;  %v3776_v34 = vmul.f32 %v9942_v9, %v9942_v9  ;;  %v3545_v45 = vadd.f32 %v3544_v27, %v3543_v36 }
 0x1e1   : > { %5643 = vst.msk [vmem:[%s6960_s7 + $0x134] sm:$0xf] %vm993_vm1, %v6053_v58  ;;  %v3716_v0 = vsel %vm1186_vm2, %v9944_v54, 0.0  ;;  %v3774_v56 = vmul.f32 %v9944_v54, %v9944_v54  ;;  %v3548_v12 = vsel %vm1186_vm2, %v9939_v60, 0.0  ;;  %v6058_v8 = vpack.c.bf16 %v8164_v17, %v8164_v17  ;;  %v8844_v54 = vpop.f32.mrb[120].mxu0 }
 0x1e2   : > { %v3646_v23 = vsel %vm1186_vm2, %v3602_v21, 0.0  ;;  %5707 = vst.msk [vmem:[%s6965_s10 + $0x134] sm:$0xf] %vm993_vm1, %v6085_v1  ;;  %v3717_v55 = vadd.f32 %v3716_v0, %v3715_v63  ;;  %v3720_v36 = vsel %vm1186_vm2, %v9942_v9, 0.0  ;;  %v3547_v58 = vadd.f32 %v3546_v43, %v3545_v45  ;;  %9945 = vst [vmem:[#allocation22_spill] sm:$0xff] %v8844_v54  ;;  %v9947_v63 = vld [vmem:[#allocation2_spill] sm:$0xff] }
 0x1e3   : > { %v3647_v27 = vadd.f32 %v3646_v23, %v3645_v3  ;;  %v3818_v47 = vsel %vm1186_vm2, %v3774_v56, 0.0  ;;  %v3650_v60 = vsel %vm1186_vm2, %v3604_v28, 0.0  ;;  %5648 = vst.msk [vmem:[%s6960_s7 + $0x148] sm:$0xf] %vm993_vm1, %v6058_v8  ;;  %v6090_v0 = vpack.c.bf16 %v9947_v63, %v9947_v63  ;;  %v8853_v9 = vpop.f32.mrb[121].mxu0  ;;  %v8855_v3 = vpop.f32.mrb[121].mxu1 }
 0x1e4   : > { %v3719_v21 = vadd.f32 %v3718_v46, %v3717_v55  ;;  %v3819_v1 = vadd.f32 %v3818_v47, %v3817_v40  ;;  %9948 = vst [vmem:[#allocation24_spill] sm:$0xff] %v8853_v9  ;;  %9949 = vst [vmem:[#allocation2_spill] sm:$0xff] %v8855_v3  ;;  %v3822_v43 = vsel %vm1186_vm2, %v3776_v34, 0.0  ;;  %v3607_v56 = vmul.f32 %v8164_v17, %v8164_v17  ;;  %v9950_v23 = vld [vmem:[#allocation3_spill] sm:$0xff]  ;;  %v8868_v28 = vpop.f32.mrb[122].mxu0 }
 0x1e5   : > { %v3649_v45 = vadd.f32 %v3648_v6, %v3647_v27  ;;  %v6056_v55 = vpack.c.bf16 %v9950_v23, %v9950_v23  ;;  %5712 = vst.msk [vmem:[%s6965_s10 + $0x148] sm:$0xf] %vm993_vm1, %v6090_v0  ;;  %v3549_v8 = vadd.f32 %v3548_v12, %v3547_v58  ;;  %v3550_v46 = vsel %vm1186_vm2, %v9950_v23, 0.0  ;;  %9951 = vst [vmem:[#allocation3_spill] sm:$0xff] %v8868_v28  ;;  %v9952_v27 = vld [vmem:[#allocation4_spill] sm:$0xff]  ;;  %v8876_v0 = vpop.f32.mrb[122].mxu1 }
 0x1e6   : > { %v3821_v47 = vadd.f32 %v3820_v59, %v3819_v1  ;;  %v3605_v40 = vmul.f32 %v9950_v23, %v9950_v23  ;;  %v3779_v6 = vmul.f32 %v9947_v63, %v9947_v63  ;;  %v6088_v59 = vpack.c.bf16 %v9952_v27, %v9952_v27  ;;  %9953 = vst [vmem:[#allocation4_spill] sm:$0xff] %v8876_v0  ;;  %v9960_v0 = vld [vmem:[#allocation6_spill] sm:$0xff] }
 0x1e7   : > { %5646 = vst.msk [vmem:[%s6960_s7 + $0x140] sm:$0xf] %vm993_vm1, %v6056_v55  ;;  %v3651_v34 = vadd.f32 %v3650_v60, %v3649_v45  ;;  %v3721_v1 = vadd.f32 %v3720_v36, %v3719_v21  ;;  %v3551_v12 = vadd.f32 %v3550_v46, %v3549_v8  ;;  %v3722_v23 = vsel %vm1186_vm2, %v9952_v27, 0.0  ;;  %v9954_v55 = vld [vmem:[#allocation25_spill] sm:$0xff]  ;;  %v8887_v21 = vpop.f32.mrb[123].mxu0  ;;  %v8889_v8 = vpop.f32.mrb[123].mxu1 }
 0x1e8   : > { %v3652_v58 = vsel %vm1186_vm2, %v3605_v40, 0.0  ;;  %v3777_v28 = vmul.f32 %v9952_v27, %v9952_v27  ;;  %5710 = vst.msk [vmem:[%s6965_s10 + $0x140] sm:$0xf] %vm993_vm1, %v6088_v59  ;;  %v3823_v45 = vadd.f32 %v3822_v43, %v3821_v47  ;;  %v6059_v36 = vpack.c.bf16 %v9954_v55, %v9954_v55  ;;  %9955 = vst [vmem:[#allocation25_spill] sm:$0xff] %v8887_v21  ;;  %v9957_v27 = vld [vmem:[#allocation26_spill] sm:$0xff]  ;;  %v8934_v54 = vpop.f32.mrb[124].mxu1 }
 0x1e9   : > { %v3653_v3 = vadd.f32 %v3652_v58, %v3651_v34  ;;  %v3723_v60 = vadd.f32 %v3722_v23, %v3721_v1  ;;  %9956 = vst [vmem:[#allocation51_spill] sm:$0xff] %v8889_v8  ;;  %v3554_v46 = vsel %vm1186_vm2, %v8164_v17, 0.0  ;;  %v3726_v40 = vsel %vm1186_vm2, %v9947_v63, 0.0  ;;  %v9958_v58 = vld [vmem:[#allocation5_spill] sm:$0xff] }
 0x1ea   : > { %v3824_v34 = vsel %vm1186_vm2, %v3777_v28, 0.0  ;;  %v6091_v59 = vpack.c.bf16 %v9957_v27, %v9957_v27  ;;  %v3656_v43 = vsel %vm1186_vm2, %v3607_v56, 0.0  ;;  %v3828_v47 = vsel %vm1186_vm2, %v3779_v6, 0.0  ;;  %5649 = vst.msk [vmem:[%s6960_s7 + $0x14c] sm:$0xf] %vm993_vm1, %v6059_v36  ;;  %v9959_v28 = vld [vmem:[#allocation27_spill] sm:$0xff] }
 0x1eb   : > { %v3825_v1 = vadd.f32 %v3824_v34, %v3823_v45  ;;  %v6057_v23 = vpack.c.bf16 %v9958_v58, %v9958_v58  ;;  %v3608_v17 = vmul.f32 %v9954_v55, %v9954_v55  ;;  %v3552_v63 = vsel %vm1186_vm2, %v9958_v58, 0.0 }
 0x1ec   : > { %5713 = vst.msk [vmem:[%s6965_s10 + $0x14c] sm:$0xf] %vm993_vm1, %v6091_v59  ;;  %v3606_v56 = vmul.f32 %v9958_v58, %v9958_v58  ;;  %v6089_v6 = vpack.c.bf16 %v9959_v28, %v9959_v28  ;;  %v3780_v45 = vmul.f32 %v9957_v27, %v9957_v27  ;;  %v3553_v36 = vadd.f32 %v3552_v63, %v3551_v12 }
 0x1ed   : > { %5647 = vst.msk [vmem:[%s6960_s7 + $0x144] sm:$0xf] %vm993_vm1, %v6057_v23  ;;  %v3724_v34 = vsel %vm1186_vm2, %v9959_v28, 0.0  ;;  %v3778_v59 = vmul.f32 %v9959_v28, %v9959_v28  ;;  %v3556_v8 = vsel %vm1186_vm2, %v9954_v55, 0.0  ;;  %v6062_v9 = vpack.c.bf16 %v9960_v0, %v9960_v0  ;;  %v8932_v28 = vpop.f32.mrb[124].mxu0 }
 0x1ee   : > { %v3654_v58 = vsel %vm1186_vm2, %v3606_v56, 0.0  ;;  %5711 = vst.msk [vmem:[%s6965_s10 + $0x144] sm:$0xf] %vm993_vm1, %v6089_v6  ;;  %v3725_v21 = vadd.f32 %v3724_v34, %v3723_v60  ;;  %v3728_v12 = vsel %vm1186_vm2, %v9957_v27, 0.0  ;;  %v3555_v23 = vadd.f32 %v3554_v46, %v3553_v36  ;;  %v9961_v60 = vld [vmem:[#allocation7_spill] sm:$0xff]  ;;  %v8941_v27 = vpop.f32.mrb[125].mxu0 }
 0x1ef   : > { %v3655_v63 = vadd.f32 %v3654_v58, %v3653_v3  ;;  %v3826_v18 = vsel %vm1186_vm2, %v3778_v59, 0.0  ;;  %v3658_v55 = vsel %vm1186_vm2, %v3608_v17, 0.0  ;;  %5652 = vst.msk [vmem:[%s6960_s7 + $0x158] sm:$0xf] %vm993_vm1, %v6062_v9  ;;  %v6094_v34 = vpack.c.bf16 %v9961_v60, %v9961_v60  ;;  %v8943_v3 = vpop.f32.mrb[125].mxu1  ;;  %v9963_v58 = vld [vmem:[#allocation8_spill] sm:$0xff] }
 0x1f0   : > { %v3727_v56 = vadd.f32 %v3726_v40, %v3725_v21  ;;  %v3827_v6 = vadd.f32 %v3826_v18, %v3825_v1  ;;  %9962 = vst [vmem:[#allocation26_spill] sm:$0xff] %v8943_v3  ;;  %v3830_v46 = vsel %vm1186_vm2, %v3780_v45, 0.0  ;;  %v3611_v59 = vmul.f32 %v9960_v0, %v9960_v0  ;;  %v8956_v17 = vpop.f32.mrb[126].mxu0 }
 0x1f1   : > { %v3657_v36 = vadd.f32 %v3656_v43, %v3655_v63  ;;  %v6060_v21 = vpack.c.bf16 %v9963_v58, %v9963_v58  ;;  %5716 = vst.msk [vmem:[%s6965_s10 + $0x158] sm:$0xf] %vm993_vm1, %v6094_v34  ;;  %v3557_v9 = vadd.f32 %v3556_v8, %v3555_v23  ;;  %v3558_v40 = vsel %vm1186_vm2, %v9963_v58, 0.0  ;;  %9964 = vst [vmem:[#allocation5_spill] sm:$0xff] %v8956_v17  ;;  %v9965_v63 = vld [vmem:[#allocation9_spill] sm:$0xff]  ;;  %v8964_v34 = vpop.f32.mrb[126].mxu1 }
 0x1f2   : > { %v3829_v18 = vadd.f32 %v3828_v47, %v3827_v6  ;;  %v3609_v1 = vmul.f32 %v9963_v58, %v9963_v58  ;;  %v3783_v43 = vmul.f32 %v9961_v60, %v9961_v60  ;;  %v6092_v47 = vpack.c.bf16 %v9965_v63, %v9965_v63 }
 0x1f3   : > { %5650 = vst.msk [vmem:[%s6960_s7 + $0x150] sm:$0xf] %vm993_vm1, %v6060_v21  ;;  %v3659_v45 = vadd.f32 %v3658_v55, %v3657_v36  ;;  %v3729_v6 = vadd.f32 %v3728_v12, %v3727_v56  ;;  %v3559_v8 = vadd.f32 %v3558_v40, %v3557_v9  ;;  %v3730_v58 = vsel %vm1186_vm2, %v9965_v63, 0.0  ;;  %v8975_v56 = vpop.f32.mrb[127].mxu0  ;;  %v8977_v21 = vpop.f32.mrb[127].mxu1 }
 0x1f4   : > { %v3660_v23 = vsel %vm1186_vm2, %v3609_v1, 0.0  ;;  %v3781_v17 = vmul.f32 %v9965_v63, %v9965_v63  ;;  %5714 = vst.msk [vmem:[%s6965_s10 + $0x150] sm:$0xf] %vm993_vm1, %v6092_v47  ;;  %v3831_v36 = vadd.f32 %v3830_v46, %v3829_v18  ;;  %v6063_v12 = vpack.c.bf16 %v8252_v52, %v8252_v52  ;;  %9966 = vst [vmem:[#allocation27_spill] sm:$0xff] %v8975_v56 }
 0x1f5   : > { %v3661_v3 = vadd.f32 %v3660_v23, %v3659_v45  ;;  %v3731_v55 = vadd.f32 %v3730_v58, %v3729_v6  ;;  %9967 = vst [vmem:[#allocation6_spill] sm:$0xff] %v8977_v21  ;;  %v3562_v9 = vsel %vm1186_vm2, %v9960_v0, 0.0  ;;  %v3734_v40 = vsel %vm1186_vm2, %v9961_v60, 0.0  ;;  %v9968_v45 = vld [vmem:[#allocation28_spill] sm:$0xff] }
 0x1f6   : > { %v3832_v1 = vsel %vm1186_vm2, %v3781_v17, 0.0  ;;  %v6095_v63 = vpack.c.bf16 %v9968_v45, %v9968_v45  ;;  %v3664_v46 = vsel %vm1186_vm2, %v3611_v59, 0.0  ;;  %v3836_v18 = vsel %vm1186_vm2, %v3783_v43, 0.0  ;;  %5653 = vst.msk [vmem:[%s6960_s7 + $0x15c] sm:$0xf] %vm993_vm1, %v6063_v12 }
 0x1f7   : > { %v3833_v47 = vadd.f32 %v3832_v1, %v3831_v36  ;;  %v6061_v6 = vpack.c.bf16 %v8259_v44, %v8259_v44  ;;  %v3612_v0 = vmul.f32 %v8252_v52, %v8252_v52  ;;  %v3560_v60 = vsel %vm1186_vm2, %v8259_v44, 0.0 }
 0x1f8   : > { %5717 = vst.msk [vmem:[%s6965_s10 + $0x15c] sm:$0xf] %vm993_vm1, %v6095_v63  ;;  %v3610_v59 = vmul.f32 %v8259_v44, %v8259_v44  ;;  %v6093_v17 = vpack.c.bf16 %v8261_v39, %v8261_v39  ;;  %v3784_v43 = vmul.f32 %v9968_v45, %v9968_v45  ;;  %v3561_v23 = vadd.f32 %v3560_v60, %v3559_v8 }
 0x1f9   : > { %5651 = vst.msk [vmem:[%s6960_s7 + $0x154] sm:$0xf] %vm993_vm1, %v6061_v6  ;;  %v3732_v58 = vsel %vm1186_vm2, %v8261_v39, 0.0  ;;  %v3782_v36 = vmul.f32 %v8261_v39, %v8261_v39  ;;  %v3564_v12 = vsel %vm1186_vm2, %v8252_v52, 0.0  ;;  %v6066_v63 = vpack.c.bf16 %v8290_v38, %v8290_v38 }
 0x1fa   : > { %v3662_v44 = vsel %vm1186_vm2, %v3610_v59, 0.0  ;;  %5715 = vst.msk [vmem:[%s6965_s10 + $0x154] sm:$0xf] %vm993_vm1, %v6093_v17  ;;  %v3733_v1 = vadd.f32 %v3732_v58, %v3731_v55  ;;  %v3736_v8 = vsel %vm1186_vm2, %v9968_v45, 0.0  ;;  %v3563_v6 = vadd.f32 %v3562_v9, %v3561_v23 }
 0x1fb   : > { %v3663_v60 = vadd.f32 %v3662_v44, %v3661_v3  ;;  %v3834_v21 = vsel %vm1186_vm2, %v3782_v36, 0.0  ;;  %v3666_v39 = vsel %vm1186_vm2, %v3612_v0, 0.0  ;;  %5656 = vst.msk [vmem:[%s6960_s7 + $0x168] sm:$0xf] %vm993_vm1, %v6066_v63  ;;  %v6098_v55 = vpack.c.bf16 %v8292_v26, %v8292_v26 }
 0x1fc   : > { %v3735_v52 = vadd.f32 %v3734_v40, %v3733_v1  ;;  %v3835_v56 = vadd.f32 %v3834_v21, %v3833_v47  ;;  %v3838_v59 = vsel %vm1186_vm2, %v3784_v43, 0.0  ;;  %v3615_v45 = vmul.f32 %v8290_v38, %v8290_v38 }
 0x1fd   : > { %v3665_v17 = vadd.f32 %v3664_v46, %v3663_v60  ;;  %v6064_v3 = vpack.c.bf16 %v8298_v31, %v8298_v31  ;;  %5720 = vst.msk [vmem:[%s6965_s10 + $0x168] sm:$0xf] %vm993_vm1, %v6098_v55  ;;  %v3565_v40 = vadd.f32 %v3564_v12, %v3563_v6  ;;  %v3566_v21 = vsel %vm1186_vm2, %v8298_v31, 0.0  ;;  %v9969_v60 = vld [vmem:[#allocation29_spill] sm:$0xff] }
 0x1fe   : > { %v3837_v9 = vadd.f32 %v3836_v18, %v3835_v56  ;;  %v3613_v47 = vmul.f32 %v8298_v31, %v8298_v31  ;;  %v3787_v46 = vmul.f32 %v8292_v26, %v8292_v26  ;;  %v6096_v43 = vpack.c.bf16 %v8300_v42, %v8300_v42 }
 0x1ff   : > { %5654 = vst.msk [vmem:[%s6960_s7 + $0x160] sm:$0xf] %vm993_vm1, %v6064_v3  ;;  %v3667_v0 = vadd.f32 %v3666_v39, %v3665_v17  ;;  %v3737_v23 = vadd.f32 %v3736_v8, %v3735_v52  ;;  %v3567_v56 = vadd.f32 %v3566_v21, %v3565_v40  ;;  %v3738_v58 = vsel %vm1186_vm2, %v8300_v42, 0.0  ;;  %v9971_v3 = vld [vmem:[#allocation31_spill] sm:$0xff] }
 0x200   : > { %v3668_v18 = vsel %vm1186_vm2, %v3613_v47, 0.0  ;;  %v3785_v31 = vmul.f32 %v8300_v42, %v8300_v42  ;;  %5718 = vst.msk [vmem:[%s6965_s10 + $0x160] sm:$0xf] %vm993_vm1, %v6096_v43  ;;  %v3839_v44 = vadd.f32 %v3838_v59, %v3837_v9  ;;  %v6067_v1 = vpack.c.bf16 %v8309_v51, %v8309_v51  ;;  %v9970_v59 = vld [vmem:[#allocation30_spill] sm:$0xff] }
 0x201   : > { %v3669_v36 = vadd.f32 %v3668_v18, %v3667_v0  ;;  %v3739_v12 = vadd.f32 %v3738_v58, %v3737_v23  ;;  %v3570_v63 = vsel %vm1186_vm2, %v8290_v38, 0.0  ;;  %v3742_v8 = vsel %vm1186_vm2, %v8292_v26, 0.0 }
 0x202   : > { %v3840_v6 = vsel %vm1186_vm2, %v3785_v31, 0.0  ;;  %v6099_v42 = vpack.c.bf16 %v9969_v60, %v9969_v60  ;;  %v3672_v39 = vsel %vm1186_vm2, %v3615_v45, 0.0  ;;  %v3844_v52 = vsel %vm1186_vm2, %v3787_v46, 0.0  ;;  %5657 = vst.msk [vmem:[%s6960_s7 + $0x16c] sm:$0xf] %vm993_vm1, %v6067_v1 }
 0x203   : > { %v3841_v55 = vadd.f32 %v3840_v6, %v3839_v44  ;;  %v6065_v17 = vpack.c.bf16 %v9970_v59, %v9970_v59  ;;  %v3616_v38 = vmul.f32 %v8309_v51, %v8309_v51  ;;  %v3568_v26 = vsel %vm1186_vm2, %v9970_v59, 0.0 }
 0x204   : > { %5721 = vst.msk [vmem:[%s6965_s10 + $0x16c] sm:$0xf] %vm993_vm1, %v6099_v42  ;;  %v3614_v45 = vmul.f32 %v9970_v59, %v9970_v59  ;;  %v6097_v9 = vpack.c.bf16 %v9971_v3, %v9971_v3  ;;  %v3788_v40 = vmul.f32 %v9969_v60, %v9969_v60  ;;  %v3569_v21 = vadd.f32 %v3568_v26, %v3567_v56 }
 0x205   : > { %5655 = vst.msk [vmem:[%s6960_s7 + $0x164] sm:$0xf] %vm993_vm1, %v6065_v17  ;;  %v3740_v47 = vsel %vm1186_vm2, %v9971_v3, 0.0  ;;  %v3786_v46 = vmul.f32 %v9971_v3, %v9971_v3  ;;  %v3572_v0 = vsel %vm1186_vm2, %v8309_v51, 0.0  ;;  %v6070_v18 = vpack.c.bf16 %v8356_v24, %v8356_v24 }
 0x206   : > { %v3670_v43 = vsel %vm1186_vm2, %v3614_v45, 0.0  ;;  %5719 = vst.msk [vmem:[%s6965_s10 + $0x164] sm:$0xf] %vm993_vm1, %v6097_v9  ;;  %v3741_v23 = vadd.f32 %v3740_v47, %v3739_v12  ;;  %v3744_v56 = vsel %vm1186_vm2, %v9969_v60, 0.0  ;;  %v3571_v58 = vadd.f32 %v3570_v63, %v3569_v21 }
 0x207   : > { %v3671_v31 = vadd.f32 %v3670_v43, %v3669_v36  ;;  %v3842_v44 = vsel %vm1186_vm2, %v3786_v46, 0.0  ;;  %v3674_v1 = vsel %vm1186_vm2, %v3616_v38, 0.0  ;;  %5660 = vst.msk [vmem:[%s6960_s7 + $0x178] sm:$0xf] %vm993_vm1, %v6070_v18  ;;  %v6102_v12 = vpack.c.bf16 %v8358_v15, %v8358_v15 }
 0x208   : > { %v3743_v51 = vadd.f32 %v3742_v8, %v3741_v23  ;;  %v3843_v6 = vadd.f32 %v3842_v44, %v3841_v55  ;;  %v3846_v42 = vsel %vm1186_vm2, %v3788_v40, 0.0  ;;  %v3619_v60 = vmul.f32 %v8356_v24, %v8356_v24 }
 0x209   : > { %v3673_v59 = vadd.f32 %v3672_v39, %v3671_v31  ;;  %v6068_v36 = vpack.c.bf16 %v8365_v7, %v8365_v7  ;;  %5724 = vst.msk [vmem:[%s6965_s10 + $0x178] sm:$0xf] %vm993_vm1, %v6102_v12  ;;  %v3573_v8 = vadd.f32 %v3572_v0, %v3571_v58  ;;  %v3574_v55 = vsel %vm1186_vm2, %v8365_v7, 0.0 }
 0x20a   : > { %v3845_v63 = vadd.f32 %v3844_v52, %v3843_v6  ;;  %v3617_v17 = vmul.f32 %v8365_v7, %v8365_v7  ;;  %v3791_v39 = vmul.f32 %v8358_v15, %v8358_v15  ;;  %v6100_v26 = vpack.c.bf16 %v8367_v5, %v8367_v5 }
 0x20b   : > { %5658 = vst.msk [vmem:[%s6960_s7 + $0x170] sm:$0xf] %vm993_vm1, %v6068_v36  ;;  %v3675_v38 = vadd.f32 %v3674_v1, %v3673_v59  ;;  %v3745_v45 = vadd.f32 %v3744_v56, %v3743_v51  ;;  %v3575_v52 = vadd.f32 %v3574_v55, %v3573_v8  ;;  %v3746_v9 = vsel %vm1186_vm2, %v8367_v5, 0.0  ;;  %v9972_v1 = vld [vmem:[#allocation32_spill] sm:$0xff]  ;;  %v9973_v36 = vld [vmem:[#allocation33_spill] sm:$0xff] }
 0x20c   : > { %v3676_v3 = vsel %vm1186_vm2, %v3617_v17, 0.0  ;;  %v3789_v7 = vmul.f32 %v8367_v5, %v8367_v5  ;;  %5722 = vst.msk [vmem:[%s6965_s10 + $0x170] sm:$0xf] %vm993_vm1, %v6100_v26  ;;  %v3847_v47 = vadd.f32 %v3846_v42, %v3845_v63  ;;  %v6071_v46 = vpack.c.bf16 %v8375_v37, %v8375_v37 }
 0x20d   : > { %v3677_v40 = vadd.f32 %v3676_v3, %v3675_v38  ;;  %v3747_v21 = vadd.f32 %v3746_v9, %v3745_v45  ;;  %v3578_v0 = vsel %vm1186_vm2, %v8356_v24, 0.0  ;;  %v6103_v23 = vpack.c.bf16 %v8377_v57, %v8377_v57 }
 0x20e   : > { %v3848_v43 = vsel %vm1186_vm2, %v3789_v7, 0.0  ;;  %v3680_v18 = vsel %vm1186_vm2, %v3619_v60, 0.0  ;;  %v3750_v5 = vsel %vm1186_vm2, %v8358_v15, 0.0  ;;  %5661 = vst.msk [vmem:[%s6960_s7 + $0x17c] sm:$0xf] %vm993_vm1, %v6071_v46  ;;  %v6069_v58 = vpack.c.bf16 %v8385_v2, %v8385_v2 }
 0x20f   : > { %v3849_v56 = vadd.f32 %v3848_v43, %v3847_v47  ;;  %v3852_v31 = vsel %vm1186_vm2, %v3791_v39, 0.0  ;;  %5725 = vst.msk [vmem:[%s6965_s10 + $0x17c] sm:$0xf] %vm993_vm1, %v6103_v23  ;;  %v3576_v24 = vsel %vm1186_vm2, %v8385_v2, 0.0  ;;  %v3618_v44 = vmul.f32 %v8385_v2, %v8385_v2 }
 0x210   : > { %v6101_v15 = vpack.c.bf16 %v9972_v1, %v9972_v1  ;;  %v3620_v51 = vmul.f32 %v8375_v37, %v8375_v37  ;;  %5659 = vst.msk [vmem:[%s6960_s7 + $0x174] sm:$0xf] %vm993_vm1, %v6069_v58  ;;  %v3577_v6 = vadd.f32 %v3576_v24, %v3575_v52  ;;  %v3748_v12 = vsel %vm1186_vm2, %v9972_v1, 0.0  ;;  %v9974_v52 = vld [vmem:[#allocation34_spill] sm:$0xff]  ;;  %v9976_v24 = vld [vmem:[#allocation36_spill] sm:$0xff] }
 0x211   : > { %v3790_v42 = vmul.f32 %v9972_v1, %v9972_v1  ;;  %v3792_v59 = vmul.f32 %v8377_v57, %v8377_v57  ;;  %v3678_v2 = vsel %vm1186_vm2, %v3618_v44, 0.0  ;;  %v3749_v60 = vadd.f32 %v3748_v12, %v3747_v21 }
 0x212   : > { %5723 = vst.msk [vmem:[%s6965_s10 + $0x174] sm:$0xf] %vm993_vm1, %v6101_v15  ;;  %v6106_v63 = vpack.c.bf16 %v9973_v36, %v9973_v36  ;;  %v3580_v8 = vsel %vm1186_vm2, %v8375_v37, 0.0  ;;  %v3579_v55 = vadd.f32 %v3578_v0, %v3577_v6  ;;  %v3679_v17 = vadd.f32 %v3678_v2, %v3677_v40  ;;  %v9977_v2 = vld [vmem:[#allocation37_spill] sm:$0xff] }
 0x213   : > { %v3850_v39 = vsel %vm1186_vm2, %v3790_v42, 0.0  ;;  %v3752_v38 = vsel %vm1186_vm2, %v8377_v57, 0.0  ;;  %v3751_v26 = vadd.f32 %v3750_v5, %v3749_v60  ;;  %v6138_v3 = vpack.c.bf16 %v9974_v52, %v9974_v52  ;;  %v9975_v57 = vld [vmem:[#allocation35_spill] sm:$0xff] }
 0x214   : > { %v3851_v45 = vadd.f32 %v3850_v39, %v3849_v56  ;;  %5814 = vst.msk [vmem:[%s6960_s7 + $0x188] sm:$0xf] %vm993_vm1, %v6106_v63  ;;  %v3682_v9 = vsel %vm1186_vm2, %v3620_v51, 0.0  ;;  %v3581_v7 = vadd.f32 %v3580_v8, %v3579_v55  ;;  %v3681_v37 = vadd.f32 %v3680_v18, %v3679_v17 }
 0x215   : > { %v4757_v40 = vmul.f32 %v9973_v36, %v9973_v36  ;;  %v3854_v21 = vsel %vm1186_vm2, %v3792_v59, 0.0  ;;  %v3753_v47 = vadd.f32 %v3752_v38, %v3751_v26  ;;  %5878 = vst.msk [vmem:[%s6965_s10 + $0x188] sm:$0xf] %vm993_vm1, %v6138_v3  ;;  %v6104_v0 = vpack.c.bf16 %v9975_v57, %v9975_v57  ;;  %v9978_v26 = vld [vmem:[#allocation38_spill] sm:$0xff] }
 0x216   : > { %v3853_v46 = vadd.f32 %v3852_v31, %v3851_v45  ;;  %v3582_v43 = vrot.slane %v3581_v7, 4  ;;  %v3683_v23 = vadd.f32 %v3682_v9, %v3681_v37  ;;  %v4688_v5 = vsel %vm1186_vm2, %v9973_v36, 0.0 }
 0x217   : > { %v4929_v18 = vmul.f32 %v9974_v52, %v9974_v52  ;;  %v3754_v56 = vrot.slane %v3753_v47, 4  ;;  %5812 = vst.msk [vmem:[%s6960_s7 + $0x180] sm:$0xf] %vm993_vm1, %v6104_v0  ;;  %v4755_v31 = vmul.f32 %v9975_v57, %v9975_v57  ;;  %v6136_v44 = vpack.c.bf16 %v9976_v24, %v9976_v24 }
 0x218   : > { %v3855_v58 = vadd.f32 %v3854_v21, %v3853_v46  ;;  %v3583_v1 = vadd.f32 %v3582_v43, %v3581_v7  ;;  %v3684_v15 = vrot.slane %v3683_v23, 4  ;;  %v4790_v51 = vsel %vm1186_vm2, %v4757_v40, 0.0  ;;  %v9979_v21 = vld [vmem:[#allocation39_spill] sm:$0xff] }
 0x219   : > { %v4860_v6 = vsel %vm1186_vm2, %v9974_v52, 0.0  ;;  %v3755_v12 = vadd.f32 %v3754_v56, %v3753_v47  ;;  %v4685_v59 = vsel %vm1186_vm2, %v9975_v57, 0.0  ;;  %5876 = vst.msk [vmem:[%s6965_s10 + $0x180] sm:$0xf] %vm993_vm1, %v6136_v44  ;;  %v6107_v60 = vpack.c.bf16 %v9977_v2, %v9977_v2 }
 0x21a   : > { %v3856_v42 = vrot.slane %v3855_v58, 4  ;;  %v3584_v36 = vrot.slane %v3583_v1, 2  ;;  %v3685_v63 = vadd.f32 %v3684_v15, %v3683_v23  ;;  %v4962_v8 = vsel %vm1186_vm2, %v4929_v18, 0.0 }
 0x21b   : > { %v4857_v55 = vsel %vm1186_vm2, %v9976_v24, 0.0  ;;  %v3756_v17 = vrot.slane %v3755_v12, 2  ;;  %v4787_v38 = vsel %vm1186_vm2, %v4755_v31, 0.0  ;;  %5815 = vst.msk [vmem:[%s6960_s7 + $0x18c] sm:$0xf] %vm993_vm1, %v6107_v60  ;;  %v6139_v45 = vpack.c.bf16 %v9978_v26, %v9978_v26  ;;  %v9980_v31 = vld [vmem:[#allocation40_spill] sm:$0xff] }
 0x21c   : > { %v3857_v39 = vadd.f32 %v3856_v42, %v3855_v58  ;;  %v3585_v52 = vadd.f32 %v3584_v36, %v3583_v1  ;;  %v3686_v3 = vrot.slane %v3685_v63, 2  ;;  %v4927_v9 = vmul.f32 %v9976_v24, %v9976_v24 }
 0x21d   : > { %v4758_v7 = vmul.f32 %v9977_v2, %v9977_v2  ;;  %v3757_v37 = vadd.f32 %v3756_v17, %v3755_v12  ;;  %5879 = vst.msk [vmem:[%s6965_s10 + $0x18c] sm:$0xf] %vm993_vm1, %v6139_v45  ;;  %v6105_v47 = vpack.c.bf16 %v9979_v21, %v9979_v21  ;;  %v4686_v46 = vsel %vm1186_vm2, %v9979_v21, 0.0 }
 0x21e   : > { %v3858_v40 = vrot.slane %v3857_v39, 2  ;;  %v3586_v57 = vrot.slane %v3585_v52, 1  ;;  %v3687_v0 = vadd.f32 %v3686_v3, %v3685_v63  ;;  %v4930_v43 = vmul.f32 %v9978_v26, %v9978_v26 }
 0x21f   : > { %v4687_v23 = vadd.f32 %v4686_v46, %v4685_v59  ;;  %v3758_v18 = vrot.slane %v3757_v37, 1  ;;  %5813 = vst.msk [vmem:[%s6960_s7 + $0x184] sm:$0xf] %vm993_vm1, %v6105_v47  ;;  %v4756_v58 = vmul.f32 %v9979_v21, %v9979_v21  ;;  %v6137_v24 = vpack.c.bf16 %v9980_v31, %v9980_v31  ;;  %v9982_v46 = vld [vmem:[#allocation42_spill] sm:$0xff] }
 0x220   : > { %v3859_v56 = vadd.f32 %v3858_v40, %v3857_v39  ;;  %v3587_v44 = vadd.f32 %v3586_v57, %v3585_v52  ;;  %v3688_v1 = vrot.slane %v3687_v0, 1  ;;  %v4858_v12 = vsel %vm1186_vm2, %v9980_v31, 0.0 }
 0x221   : > { %v4689_v15 = vadd.f32 %v4688_v5, %v4687_v23  ;;  %v3759_v42 = vadd.f32 %v3758_v18, %v3757_v37  ;;  %v4788_v59 = vsel %vm1186_vm2, %v4756_v58, 0.0  ;;  %5877 = vst.msk [vmem:[%s6965_s10 + $0x184] sm:$0xf] %vm993_vm1, %v6137_v24  ;;  %v4859_v36 = vadd.f32 %v4858_v12, %v4857_v55  ;;  %v9981_v37 = vld [vmem:[#allocation41_spill] sm:$0xff] }
 0x222   : > { %v3860_v60 = vrot.slane %v3859_v56, 1  ;;  %v9227_v63 = vadd.f32 %v3587_v44, %v8554_v13  ;;  %v3689_v17 = vadd.f32 %v3688_v1, %v3687_v0  ;;  %v4789_v39 = vadd.f32 %v4788_v59, %v4787_v38 }
 0x223   : > { %v4928_v45 = vmul.f32 %v9980_v31, %v9980_v31  ;;  %v9232_v5 = vadd.f32 %v3759_v42, %v8563_v49  ;;  %v4861_v3 = vadd.f32 %v4860_v6, %v4859_v36  ;;  %v6110_v40 = vpack.c.bf16 %v9981_v37, %v9981_v37  ;;  %v9984_v31 = vld [vmem:[#allocation44_spill] sm:$0xff] }
 0x224   : > { %v3861_v52 = vadd.f32 %v3860_v60, %v3859_v56  ;;  %v9237_v55 = vadd.f32 %v3689_v17, %v8569_v11  ;;  %v4959_v13 = vsel %vm1186_vm2, %v4927_v9, 0.0  ;;  %v4791_v21 = vadd.f32 %v4790_v51, %v4789_v39  ;;  %v9983_v9 = vld [vmem:[#allocation43_spill] sm:$0xff]  ;;  %v9985_v60 = vld [vmem:[#allocation45_spill] sm:$0xff] }
 0x225   : > { %v4960_v38 = vsel %vm1186_vm2, %v4928_v45, 0.0  ;;  %v4690_v49 = vsel %vm1186_vm2, %v9977_v2, 0.0  ;;  %5818 = vst.msk [vmem:[%s6960_s7 + $0x198] sm:$0xf] %vm993_vm1, %v6110_v40  ;;  %v6142_v57 = vpack.c.bf16 %v9982_v46, %v9982_v46  ;;  %v4792_v11 = vsel %vm1186_vm2, %v4758_v7, 0.0  ;;  %v9986_v45 = vld [vmem:[#allocation46_spill] sm:$0xff] }
 0x226   : > { %v9242_v47 = vadd.f32 %v3861_v52, %v8575_v41  ;;  %v4961_v6 = vadd.f32 %v4960_v38, %v4959_v13  ;;  %v4862_v51 = vsel %vm1186_vm2, %v9978_v26, 0.0  ;;  %v6108_v0 = vpack.c.bf16 %v9983_v9, %v9983_v9  ;;  %v9987_v13 = vld [vmem:[#allocation47_spill] sm:$0xff] }
 0x227   : > { %v4691_v23 = vadd.f32 %v4690_v49, %v4689_v15  ;;  %v4964_v41 = vsel %vm1186_vm2, %v4930_v43, 0.0  ;;  %5882 = vst.msk [vmem:[%s6965_s10 + $0x198] sm:$0xf] %vm993_vm1, %v6142_v57  ;;  %v4692_v2 = vsel %vm1186_vm2, %v9983_v9, 0.0  ;;  %v4759_v56 = vmul.f32 %v9983_v9, %v9983_v9  ;;  %v9988_v57 = vld [vmem:[#allocation48_spill] sm:$0xff] }
 0x228   : > { %v4963_v18 = vadd.f32 %v4962_v8, %v4961_v6  ;;  %v4761_v7 = vmul.f32 %v9981_v37, %v9981_v37  ;;  %5816 = vst.msk [vmem:[%s6960_s7 + $0x190] sm:$0xf] %vm993_vm1, %v6108_v0  ;;  %v4793_v58 = vadd.f32 %v4792_v11, %v4791_v21  ;;  %v6140_v43 = vpack.c.bf16 %v9984_v31, %v9984_v31 }
 0x229   : > { %v4693_v26 = vadd.f32 %v4692_v2, %v4691_v23  ;;  %v4794_v8 = vsel %vm1186_vm2, %v4759_v56, 0.0  ;;  %v4863_v24 = vadd.f32 %v4862_v51, %v4861_v3  ;;  %v4864_v44 = vsel %vm1186_vm2, %v9984_v31, 0.0  ;;  %v9989_v2 = vld [vmem:[#allocation14_spill] sm:$0xff] }
 0x22a   : > { %v4931_v1 = vmul.f32 %v9984_v31, %v9984_v31  ;;  %v4696_v15 = vsel %vm1186_vm2, %v9981_v37, 0.0  ;;  %v4795_v12 = vadd.f32 %v4794_v8, %v4793_v58  ;;  %5880 = vst.msk [vmem:[%s6965_s10 + $0x190] sm:$0xf] %vm993_vm1, %v6140_v43  ;;  %v4965_v42 = vadd.f32 %v4964_v41, %v4963_v18 }
 0x22b   : > { %v6111_v59 = vpack.c.bf16 %v9985_v60, %v9985_v60  ;;  %v4933_v36 = vmul.f32 %v9982_v46, %v9982_v46  ;;  %v4865_v17 = vadd.f32 %v4864_v44, %v4863_v24  ;;  %v6143_v52 = vpack.c.bf16 %v9986_v45, %v9986_v45  ;;  %v9990_v44 = vld [vmem:[#allocation15_spill] sm:$0xff] }
 0x22c   : > { %v4966_v39 = vsel %vm1186_vm2, %v4931_v1, 0.0  ;;  %v4798_v3 = vsel %vm1186_vm2, %v4761_v7, 0.0  ;;  %v4868_v37 = vsel %vm1186_vm2, %v9982_v46, 0.0  ;;  %v6109_v21 = vpack.c.bf16 %v9987_v13, %v9987_v13 }
 0x22d   : > { %v4967_v40 = vadd.f32 %v4966_v39, %v4965_v42  ;;  %5819 = vst.msk [vmem:[%s6960_s7 + $0x19c] sm:$0xf] %vm993_vm1, %v6111_v59  ;;  %v4762_v38 = vmul.f32 %v9985_v60, %v9985_v60  ;;  %5883 = vst.msk [vmem:[%s6965_s10 + $0x19c] sm:$0xf] %vm993_vm1, %v6143_v52  ;;  %v4694_v49 = vsel %vm1186_vm2, %v9987_v13, 0.0  ;;  %v4760_v6 = vmul.f32 %v9987_v13, %v9987_v13 }
 0x22e   : > { %v6141_v46 = vpack.c.bf16 %v9988_v57, %v9988_v57  ;;  %v4934_v11 = vmul.f32 %v9986_v45, %v9986_v45  ;;  %5817 = vst.msk [vmem:[%s6960_s7 + $0x194] sm:$0xf] %vm993_vm1, %v6109_v21  ;;  %v4695_v51 = vadd.f32 %v4694_v49, %v4693_v26  ;;  %v4866_v9 = vsel %vm1186_vm2, %v9988_v57, 0.0 }
 0x22f   : > { %v4932_v0 = vmul.f32 %v9988_v57, %v9988_v57  ;;  %v4970_v23 = vsel %vm1186_vm2, %v4933_v36, 0.0  ;;  %v4796_v41 = vsel %vm1186_vm2, %v4760_v6, 0.0  ;;  %v4867_v18 = vadd.f32 %v4866_v9, %v4865_v17 }
 0x230   : > { %5881 = vst.msk [vmem:[%s6965_s10 + $0x194] sm:$0xf] %vm993_vm1, %v6141_v46  ;;  %v6114_v56 = vpack.c.bf16 %v9989_v2, %v9989_v2  ;;  %v4698_v7 = vsel %vm1186_vm2, %v9985_v60, 0.0  ;;  %v4697_v26 = vadd.f32 %v4696_v15, %v4695_v51  ;;  %v4797_v58 = vadd.f32 %v4796_v41, %v4795_v12 }
 0x231   : > { %v4968_v31 = vsel %vm1186_vm2, %v4932_v0, 0.0  ;;  %v4870_v43 = vsel %vm1186_vm2, %v9986_v45, 0.0  ;;  %v4869_v8 = vadd.f32 %v4868_v37, %v4867_v18  ;;  %v6146_v1 = vpack.c.bf16 %v9990_v44, %v9990_v44 }
 0x232   : > { %v4969_v24 = vadd.f32 %v4968_v31, %v4967_v40  ;;  %5822 = vst.msk [vmem:[%s6960_s7 + $0x1a8] sm:$0xf] %vm993_vm1, %v6114_v56  ;;  %v4800_v42 = vsel %vm1186_vm2, %v4762_v38, 0.0  ;;  %v4972_v59 = vsel %vm1186_vm2, %v4934_v11, 0.0  ;;  %v4799_v60 = vadd.f32 %v4798_v3, %v4797_v58  ;;  %v9991_v3 = vld [vmem:[#allocation49_spill] sm:$0xff]  ;;  %v9992_v58 = vld [vmem:[#allocation10_spill] sm:$0xff] }
 0x233   : > { %v6112_v15 = vpack.c.bf16 %v8542_v16, %v8542_v16  ;;  %5886 = vst.msk [vmem:[%s6965_s10 + $0x1a8] sm:$0xf] %vm993_vm1, %v6146_v1  ;;  %v4699_v36 = vadd.f32 %v4698_v7, %v4697_v26  ;;  %v4700_v17 = vsel %vm1186_vm2, %v8542_v16, 0.0  ;;  %v4763_v39 = vmul.f32 %v8542_v16, %v8542_v16 }
 0x234   : > { %v4971_v12 = vadd.f32 %v4970_v23, %v4969_v24  ;;  %v4765_v45 = vmul.f32 %v9989_v2, %v9989_v2  ;;  %v4801_v52 = vadd.f32 %v4800_v42, %v4799_v60  ;;  %v6144_v37 = vpack.c.bf16 %v9991_v3, %v9991_v3 }
 0x235   : > { %5820 = vst.msk [vmem:[%s6960_s7 + $0x1a0] sm:$0xf] %vm993_vm1, %v6112_v15  ;;  %v4871_v40 = vadd.f32 %v4870_v43, %v4869_v8  ;;  %v4701_v13 = vadd.f32 %v4700_v17, %v4699_v36  ;;  %v4802_v21 = vsel %vm1186_vm2, %v4763_v39, 0.0  ;;  %v4872_v38 = vsel %vm1186_vm2, %v9991_v3, 0.0 }
 0x236   : > { %v4935_v16 = vmul.f32 %v9991_v3, %v9991_v3  ;;  %v4803_v49 = vadd.f32 %v4802_v21, %v4801_v52  ;;  %5884 = vst.msk [vmem:[%s6965_s10 + $0x1a0] sm:$0xf] %vm993_vm1, %v6144_v37  ;;  %v4973_v57 = vadd.f32 %v4972_v59, %v4971_v12  ;;  %v6115_v46 = vpack.c.bf16 %v8549_v50, %v8549_v50 }
 0x237   : > { %v4873_v6 = vadd.f32 %v4872_v38, %v4871_v40  ;;  %v4704_v11 = vsel %vm1186_vm2, %v9989_v2, 0.0  ;;  %v4937_v51 = vmul.f32 %v9990_v44, %v9990_v44  ;;  %v6147_v0 = vpack.c.bf16 %v8551_v62, %v8551_v62 }
 0x238   : > { %v4974_v9 = vsel %vm1186_vm2, %v4935_v16, 0.0  ;;  %v4806_v23 = vsel %vm1186_vm2, %v4765_v45, 0.0  ;;  %v4876_v41 = vsel %vm1186_vm2, %v9990_v44, 0.0  ;;  %5823 = vst.msk [vmem:[%s6960_s7 + $0x1ac] sm:$0xf] %vm993_vm1, %v6115_v46  ;;  %v6113_v2 = vpack.c.bf16 %v8558_v30, %v8558_v30 }
 0x239   : > { %v4975_v18 = vadd.f32 %v4974_v9, %v4973_v57  ;;  %v4766_v56 = vmul.f32 %v8549_v50, %v8549_v50  ;;  %5887 = vst.msk [vmem:[%s6965_s10 + $0x1ac] sm:$0xf] %vm993_vm1, %v6147_v0  ;;  %v4702_v7 = vsel %vm1186_vm2, %v8558_v30, 0.0  ;;  %v4764_v26 = vmul.f32 %v8558_v30, %v8558_v30 }
 0x23a   : > { %v6145_v31 = vpack.c.bf16 %v9992_v58, %v9992_v58  ;;  %v4938_v43 = vmul.f32 %v8551_v62, %v8551_v62  ;;  %5821 = vst.msk [vmem:[%s6960_s7 + $0x1a4] sm:$0xf] %vm993_vm1, %v6113_v2  ;;  %v4703_v8 = vadd.f32 %v4702_v7, %v4701_v13  ;;  %v4874_v24 = vsel %vm1186_vm2, %v9992_v58, 0.0 }
 0x23b   : > { %v4936_v44 = vmul.f32 %v9992_v58, %v9992_v58  ;;  %v4978_v1 = vsel %vm1186_vm2, %v4937_v51, 0.0  ;;  %v4804_v30 = vsel %vm1186_vm2, %v4764_v26, 0.0  ;;  %v4875_v42 = vadd.f32 %v4874_v24, %v4873_v6 }
 0x23c   : > { %5885 = vst.msk [vmem:[%s6965_s10 + $0x1a4] sm:$0xf] %vm993_vm1, %v6145_v31  ;;  %v6118_v59 = vpack.c.bf16 %v8596_v61, %v8596_v61  ;;  %v4706_v60 = vsel %vm1186_vm2, %v8549_v50, 0.0  ;;  %v4705_v15 = vadd.f32 %v4704_v11, %v4703_v8  ;;  %v4805_v12 = vadd.f32 %v4804_v30, %v4803_v49  ;;  %v9993_v31 = vld [vmem:[#allocation11_spill] sm:$0xff] }
 0x23d   : > { %v4976_v36 = vsel %vm1186_vm2, %v4936_v44, 0.0  ;;  %v4878_v17 = vsel %vm1186_vm2, %v8551_v62, 0.0  ;;  %v4877_v39 = vadd.f32 %v4876_v41, %v4875_v42  ;;  %v6150_v52 = vpack.c.bf16 %v8598_v32, %v8598_v32  ;;  %v9994_v44 = vld [vmem:[#allocation12_spill] sm:$0xff] }
 0x23e   : > { %v4977_v45 = vadd.f32 %v4976_v36, %v4975_v18  ;;  %5826 = vst.msk [vmem:[%s6960_s7 + $0x1b8] sm:$0xf] %vm993_vm1, %v6118_v59  ;;  %v4808_v3 = vsel %vm1186_vm2, %v4766_v56, 0.0  ;;  %v4980_v37 = vsel %vm1186_vm2, %v4938_v43, 0.0  ;;  %v4807_v50 = vadd.f32 %v4806_v23, %v4805_v12 }
 0x23f   : > { %v6116_v40 = vpack.c.bf16 %v8606_v48, %v8606_v48  ;;  %5890 = vst.msk [vmem:[%s6965_s10 + $0x1b8] sm:$0xf] %vm993_vm1, %v6150_v52  ;;  %v4707_v62 = vadd.f32 %v4706_v60, %v4705_v15  ;;  %v4708_v21 = vsel %vm1186_vm2, %v8606_v48, 0.0  ;;  %v4767_v38 = vmul.f32 %v8606_v48, %v8606_v48 }
 0x240   : > { %v4979_v13 = vadd.f32 %v4978_v1, %v4977_v45  ;;  %v4769_v16 = vmul.f32 %v8596_v61, %v8596_v61  ;;  %v4809_v49 = vadd.f32 %v4808_v3, %v4807_v50  ;;  %v6148_v6 = vpack.c.bf16 %v8608_v10, %v8608_v10 }
 0x241   : > { %5824 = vst.msk [vmem:[%s6960_s7 + $0x1b0] sm:$0xf] %vm993_vm1, %v6116_v40  ;;  %v4879_v57 = vadd.f32 %v4878_v17, %v4877_v39  ;;  %v4709_v46 = vadd.f32 %v4708_v21, %v4707_v62  ;;  %v4810_v11 = vsel %vm1186_vm2, %v4767_v38, 0.0  ;;  %v4880_v51 = vsel %vm1186_vm2, %v8608_v10, 0.0 }
 0x242   : > { %v4939_v48 = vmul.f32 %v8608_v10, %v8608_v10  ;;  %v4811_v9 = vadd.f32 %v4810_v11, %v4809_v49  ;;  %5888 = vst.msk [vmem:[%s6965_s10 + $0x1b0] sm:$0xf] %vm993_vm1, %v6148_v6  ;;  %v4981_v23 = vadd.f32 %v4980_v37, %v4979_v13  ;;  %v6119_v41 = vpack.c.bf16 %v8615_v53, %v8615_v53 }
 0x243   : > { %v4881_v0 = vadd.f32 %v4880_v51, %v4879_v57  ;;  %v4712_v18 = vsel %vm1186_vm2, %v8596_v61, 0.0  ;;  %v4941_v2 = vmul.f32 %v8598_v32, %v8598_v32  ;;  %v6151_v10 = vpack.c.bf16 %v8617_v33, %v8617_v33 }
 0x244   : > { %v4982_v56 = vsel %vm1186_vm2, %v4939_v48, 0.0  ;;  %v4814_v7 = vsel %vm1186_vm2, %v4769_v16, 0.0  ;;  %v4884_v26 = vsel %vm1186_vm2, %v8598_v32, 0.0  ;;  %5827 = vst.msk [vmem:[%s6960_s7 + $0x1bc] sm:$0xf] %vm993_vm1, %v6119_v41  ;;  %v6117_v61 = vpack.c.bf16 %v9993_v31, %v9993_v31 }
 0x245   : > { %v4983_v58 = vadd.f32 %v4982_v56, %v4981_v23  ;;  %v4770_v43 = vmul.f32 %v8615_v53, %v8615_v53  ;;  %5891 = vst.msk [vmem:[%s6965_s10 + $0x1bc] sm:$0xf] %vm993_vm1, %v6151_v10  ;;  %v4710_v8 = vsel %vm1186_vm2, %v9993_v31, 0.0  ;;  %v4768_v24 = vmul.f32 %v9993_v31, %v9993_v31 }
 0x246   : > { %v6149_v32 = vpack.c.bf16 %v9994_v44, %v9994_v44  ;;  %v4942_v1 = vmul.f32 %v8617_v33, %v8617_v33  ;;  %5825 = vst.msk [vmem:[%s6960_s7 + $0x1b4] sm:$0xf] %vm993_vm1, %v6117_v61  ;;  %v4711_v30 = vadd.f32 %v4710_v8, %v4709_v46  ;;  %v4882_v42 = vsel %vm1186_vm2, %v9994_v44, 0.0  ;;  %v9995_v46 = vld [vmem:[#allocation13_spill] sm:$0xff] }
 0x247   : > { %v4940_v59 = vmul.f32 %v9994_v44, %v9994_v44  ;;  %v4986_v60 = vsel %vm1186_vm2, %v4941_v2, 0.0  ;;  %v4812_v15 = vsel %vm1186_vm2, %v4768_v24, 0.0  ;;  %v4883_v12 = vadd.f32 %v4882_v42, %v4881_v0  ;;  %v9996_v2 = vld [vmem:[#allocation16_spill] sm:$0xff]  ;;  %v9997_v8 = vld [vmem:[#allocation17_spill] sm:$0xff] }
 0x248   : > { %5889 = vst.msk [vmem:[%s6965_s10 + $0x1b4] sm:$0xf] %vm993_vm1, %v6149_v32  ;;  %v6122_v36 = vpack.c.bf16 %v8668_v14, %v8668_v14  ;;  %v4714_v17 = vsel %vm1186_vm2, %v8615_v53, 0.0  ;;  %v4713_v39 = vadd.f32 %v4712_v18, %v4711_v30  ;;  %v4813_v45 = vadd.f32 %v4812_v15, %v4811_v9 }
 0x249   : > { %v4984_v52 = vsel %vm1186_vm2, %v4940_v59, 0.0  ;;  %v4886_v3 = vsel %vm1186_vm2, %v8617_v33, 0.0  ;;  %v4885_v37 = vadd.f32 %v4884_v26, %v4883_v12  ;;  %v6154_v40 = vpack.c.bf16 %v8670_v19, %v8670_v19 }
 0x24a   : > { %v4985_v50 = vadd.f32 %v4984_v52, %v4983_v58  ;;  %5830 = vst.msk [vmem:[%s6960_s7 + $0x1c8] sm:$0xf] %vm993_vm1, %v6122_v36  ;;  %v4816_v13 = vsel %vm1186_vm2, %v4770_v43, 0.0  ;;  %v4988_v62 = vsel %vm1186_vm2, %v4942_v1, 0.0  ;;  %v4815_v53 = vadd.f32 %v4814_v7, %v4813_v45  ;;  %v9998_v1 = vld [vmem:[#allocation18_spill] sm:$0xff] }
 0x24b   : > { %v6120_v21 = vpack.c.bf16 %v8677_v22, %v8677_v22  ;;  %5894 = vst.msk [vmem:[%s6965_s10 + $0x1c8] sm:$0xf] %vm993_vm1, %v6154_v40  ;;  %v4715_v33 = vadd.f32 %v4714_v17, %v4713_v39  ;;  %v4716_v16 = vsel %vm1186_vm2, %v8677_v22, 0.0  ;;  %v4771_v49 = vmul.f32 %v8677_v22, %v8677_v22 }
 0x24c   : > { %v4987_v38 = vadd.f32 %v4986_v60, %v4985_v50  ;;  %v4773_v6 = vmul.f32 %v8668_v14, %v8668_v14  ;;  %v4817_v57 = vadd.f32 %v4816_v13, %v4815_v53  ;;  %v6152_v11 = vpack.c.bf16 %v9995_v46, %v9995_v46 }
 0x24d   : > { %5828 = vst.msk [vmem:[%s6960_s7 + $0x1c0] sm:$0xf] %vm993_vm1, %v6120_v21  ;;  %v4887_v51 = vadd.f32 %v4886_v3, %v4885_v37  ;;  %v4717_v48 = vadd.f32 %v4716_v16, %v4715_v33  ;;  %v4818_v9 = vsel %vm1186_vm2, %v4771_v49, 0.0  ;;  %v4888_v0 = vsel %vm1186_vm2, %v9995_v46, 0.0 }
 0x24e   : > { %v4943_v22 = vmul.f32 %v9995_v46, %v9995_v46  ;;  %v4819_v23 = vadd.f32 %v4818_v9, %v4817_v57  ;;  %5892 = vst.msk [vmem:[%s6965_s10 + $0x1c0] sm:$0xf] %vm993_vm1, %v6152_v11  ;;  %v4989_v18 = vadd.f32 %v4988_v62, %v4987_v38  ;;  %v6123_v56 = vpack.c.bf16 %v9996_v2, %v9996_v2 }
 0x24f   : > { %v4889_v41 = vadd.f32 %v4888_v0, %v4887_v51  ;;  %v4720_v10 = vsel %vm1186_vm2, %v8668_v14, 0.0  ;;  %v4945_v7 = vmul.f32 %v8670_v19, %v8670_v19  ;;  %v6155_v58 = vpack.c.bf16 %v8700_v35, %v8700_v35 }
 0x250   : > { %v4990_v26 = vsel %vm1186_vm2, %v4943_v22, 0.0  ;;  %v4822_v31 = vsel %vm1186_vm2, %v4773_v6, 0.0  ;;  %v4892_v61 = vsel %vm1186_vm2, %v8670_v19, 0.0  ;;  %5831 = vst.msk [vmem:[%s6960_s7 + $0x1cc] sm:$0xf] %vm993_vm1, %v6123_v56  ;;  %v6121_v14 = vpack.c.bf16 %v9997_v8, %v9997_v8 }
 0x251   : > { %v4991_v43 = vadd.f32 %v4990_v26, %v4989_v18  ;;  %v4774_v24 = vmul.f32 %v9996_v2, %v9996_v2  ;;  %5895 = vst.msk [vmem:[%s6965_s10 + $0x1cc] sm:$0xf] %vm993_vm1, %v6155_v58  ;;  %v4718_v44 = vsel %vm1186_vm2, %v9997_v8, 0.0  ;;  %v4772_v32 = vmul.f32 %v9997_v8, %v9997_v8 }
 0x252   : > { %v6153_v19 = vpack.c.bf16 %v9998_v1, %v9998_v1  ;;  %v4946_v30 = vmul.f32 %v8700_v35, %v8700_v35  ;;  %5829 = vst.msk [vmem:[%s6960_s7 + $0x1c4] sm:$0xf] %vm993_vm1, %v6121_v14  ;;  %v4719_v42 = vadd.f32 %v4718_v44, %v4717_v48  ;;  %v4890_v59 = vsel %vm1186_vm2, %v9998_v1, 0.0 }
 0x253   : > { %v4944_v60 = vmul.f32 %v9998_v1, %v9998_v1  ;;  %v4994_v15 = vsel %vm1186_vm2, %v4945_v7, 0.0  ;;  %v4820_v12 = vsel %vm1186_vm2, %v4772_v32, 0.0  ;;  %v4891_v36 = vadd.f32 %v4890_v59, %v4889_v41  ;;  %v9999_v41 = vld [vmem:[#allocation19_spill] sm:$0xff]  ;;  %v10000_v7 = vld [vmem:[#allocation20_spill] sm:$0xff] }
 0x254   : > { %5893 = vst.msk [vmem:[%s6965_s10 + $0x1c4] sm:$0xf] %vm993_vm1, %v6153_v19  ;;  %v6126_v17 = vpack.c.bf16 %v8756_v25, %v8756_v25  ;;  %v4722_v39 = vsel %vm1186_vm2, %v9996_v2, 0.0  ;;  %v4721_v45 = vadd.f32 %v4720_v10, %v4719_v42  ;;  %v4821_v52 = vadd.f32 %v4820_v12, %v4819_v23 }
 0x255   : > { %v4992_v3 = vsel %vm1186_vm2, %v4944_v60, 0.0  ;;  %v4894_v37 = vsel %vm1186_vm2, %v8700_v35, 0.0  ;;  %v4893_v50 = vadd.f32 %v4892_v61, %v4891_v36  ;;  %v6158_v13 = vpack.c.bf16 %v8758_v4, %v8758_v4  ;;  %v10001_v61 = vld [vmem:[#allocation21_spill] sm:$0xff]  ;;  %v10003_v60 = vld [vmem:[#allocation22_spill] sm:$0xff] }
 0x256   : > { %v4993_v40 = vadd.f32 %v4992_v3, %v4991_v43  ;;  %5834 = vst.msk [vmem:[%s6960_s7 + $0x1d8] sm:$0xf] %vm993_vm1, %v6126_v17  ;;  %v4824_v62 = vsel %vm1186_vm2, %v4774_v24, 0.0  ;;  %v4996_v53 = vsel %vm1186_vm2, %v4946_v30, 0.0  ;;  %v4823_v21 = vadd.f32 %v4822_v31, %v4821_v52  ;;  %v10002_v24 = vld [vmem:[#allocation50_spill] sm:$0xff] }
 0x257   : > { %v6124_v38 = vpack.c.bf16 %v8765_v29, %v8765_v29  ;;  %5898 = vst.msk [vmem:[%s6965_s10 + $0x1d8] sm:$0xf] %vm993_vm1, %v6158_v13  ;;  %v4723_v35 = vadd.f32 %v4722_v39, %v4721_v45  ;;  %v4724_v16 = vsel %vm1186_vm2, %v8765_v29, 0.0  ;;  %v4775_v49 = vmul.f32 %v8765_v29, %v8765_v29 }
 0x258   : > { %v4995_v33 = vadd.f32 %v4994_v15, %v4993_v40  ;;  %v4777_v6 = vmul.f32 %v8756_v25, %v8756_v25  ;;  %v4825_v57 = vadd.f32 %v4824_v62, %v4823_v21  ;;  %v6156_v46 = vpack.c.bf16 %v8767_v20, %v8767_v20 }
 0x259   : > { %5832 = vst.msk [vmem:[%s6960_s7 + $0x1d0] sm:$0xf] %vm993_vm1, %v6124_v38  ;;  %v4895_v11 = vadd.f32 %v4894_v37, %v4893_v50  ;;  %v4725_v51 = vadd.f32 %v4724_v16, %v4723_v35  ;;  %v4826_v48 = vsel %vm1186_vm2, %v4775_v49, 0.0  ;;  %v4896_v9 = vsel %vm1186_vm2, %v8767_v20, 0.0  ;;  %v10004_v37 = vld [vmem:[#allocation23_spill] sm:$0xff] }
 0x25a   : > { %v4947_v29 = vmul.f32 %v8767_v20, %v8767_v20  ;;  %v4827_v0 = vadd.f32 %v4826_v48, %v4825_v57  ;;  %5896 = vst.msk [vmem:[%s6965_s10 + $0x1d0] sm:$0xf] %vm993_vm1, %v6156_v46  ;;  %v4997_v23 = vadd.f32 %v4996_v53, %v4995_v33  ;;  %v6127_v18 = vpack.c.bf16 %v9999_v41, %v9999_v41  ;;  %v10005_v53 = vld [vmem:[#allocation24_spill] sm:$0xff]  ;;  %v10006_v57 = vld [vmem:[#allocation2_spill] sm:$0xff] }
 0x25b   : > { %v4897_v22 = vadd.f32 %v4896_v9, %v4895_v11  ;;  %v4728_v2 = vsel %vm1186_vm2, %v8756_v25, 0.0  ;;  %v4949_v56 = vmul.f32 %v8758_v4, %v8758_v4  ;;  %v6159_v20 = vpack.c.bf16 %v10000_v7, %v10000_v7 }
 0x25c   : > { %v4998_v10 = vsel %vm1186_vm2, %v4947_v29, 0.0  ;;  %v4830_v26 = vsel %vm1186_vm2, %v4777_v6, 0.0  ;;  %v4900_v58 = vsel %vm1186_vm2, %v8758_v4, 0.0  ;;  %5835 = vst.msk [vmem:[%s6960_s7 + $0x1dc] sm:$0xf] %vm993_vm1, %v6127_v18  ;;  %v6125_v25 = vpack.c.bf16 %v10001_v61, %v10001_v61 }
 0x25d   : > { %v4999_v31 = vadd.f32 %v4998_v10, %v4997_v23  ;;  %v4778_v43 = vmul.f32 %v9999_v41, %v9999_v41  ;;  %5899 = vst.msk [vmem:[%s6965_s10 + $0x1dc] sm:$0xf] %vm993_vm1, %v6159_v20  ;;  %v4726_v8 = vsel %vm1186_vm2, %v10001_v61, 0.0  ;;  %v4776_v14 = vmul.f32 %v10001_v61, %v10001_v61  ;;  %v10008_v10 = vld [vmem:[#allocation4_spill] sm:$0xff] }
 0x25e   : > { %v6157_v4 = vpack.c.bf16 %v10002_v24, %v10002_v24  ;;  %v4950_v44 = vmul.f32 %v10000_v7, %v10000_v7  ;;  %5833 = vst.msk [vmem:[%s6960_s7 + $0x1d4] sm:$0xf] %vm993_vm1, %v6125_v25  ;;  %v4727_v32 = vadd.f32 %v4726_v8, %v4725_v51  ;;  %v4898_v1 = vsel %vm1186_vm2, %v10002_v24, 0.0 }
 0x25f   : > { %v4948_v19 = vmul.f32 %v10002_v24, %v10002_v24  ;;  %v5002_v30 = vsel %vm1186_vm2, %v4949_v56, 0.0  ;;  %v4828_v42 = vsel %vm1186_vm2, %v4776_v14, 0.0  ;;  %v4899_v59 = vadd.f32 %v4898_v1, %v4897_v22  ;;  %v10010_v14 = vld [vmem:[#allocation51_spill] sm:$0xff] }
 0x260   : > { %5897 = vst.msk [vmem:[%s6965_s10 + $0x1d4] sm:$0xf] %vm993_vm1, %v6157_v4  ;;  %v6130_v15 = vpack.c.bf16 %v10003_v60, %v10003_v60  ;;  %v4730_v12 = vsel %vm1186_vm2, %v9999_v41, 0.0  ;;  %v4729_v36 = vadd.f32 %v4728_v2, %v4727_v32  ;;  %v4829_v17 = vadd.f32 %v4828_v42, %v4827_v0  ;;  %v10007_v41 = vld [vmem:[#allocation3_spill] sm:$0xff] }
 0x261   : > { %v5000_v39 = vsel %vm1186_vm2, %v4948_v19, 0.0  ;;  %v4902_v45 = vsel %vm1186_vm2, %v10000_v7, 0.0  ;;  %v4901_v52 = vadd.f32 %v4900_v58, %v4899_v59  ;;  %v6162_v50 = vpack.c.bf16 %v10004_v37, %v10004_v37 }
 0x262   : > { %v5001_v3 = vadd.f32 %v5000_v39, %v4999_v31  ;;  %5838 = vst.msk [vmem:[%s6960_s7 + $0x1e8] sm:$0xf] %vm993_vm1, %v6130_v15  ;;  %v4832_v40 = vsel %vm1186_vm2, %v4778_v43, 0.0  ;;  %v5004_v13 = vsel %vm1186_vm2, %v4950_v44, 0.0  ;;  %v4831_v62 = vadd.f32 %v4830_v26, %v4829_v17  ;;  %v10009_v31 = vld [vmem:[#allocation25_spill] sm:$0xff] }
 0x263   : > { %v6128_v21 = vpack.c.bf16 %v10005_v53, %v10005_v53  ;;  %5902 = vst.msk [vmem:[%s6965_s10 + $0x1e8] sm:$0xf] %vm993_vm1, %v6162_v50  ;;  %v4731_v33 = vadd.f32 %v4730_v12, %v4729_v36  ;;  %v4732_v35 = vsel %vm1186_vm2, %v10005_v53, 0.0  ;;  %v4779_v16 = vmul.f32 %v10005_v53, %v10005_v53 }
 0x264   : > { %v5003_v38 = vadd.f32 %v5002_v30, %v5001_v3  ;;  %v4781_v49 = vmul.f32 %v10003_v60, %v10003_v60  ;;  %v4833_v6 = vadd.f32 %v4832_v40, %v4831_v62  ;;  %v6160_v46 = vpack.c.bf16 %v10006_v57, %v10006_v57 }
 0x265   : > { %5836 = vst.msk [vmem:[%s6960_s7 + $0x1e0] sm:$0xf] %vm993_vm1, %v6128_v21  ;;  %v4903_v11 = vadd.f32 %v4902_v45, %v4901_v52  ;;  %v4733_v51 = vadd.f32 %v4732_v35, %v4731_v33  ;;  %v4834_v48 = vsel %vm1186_vm2, %v4779_v16, 0.0  ;;  %v4904_v9 = vsel %vm1186_vm2, %v10006_v57, 0.0  ;;  %v10011_v35 = vld [vmem:[#allocation26_spill] sm:$0xff] }
 0x266   : > { %v4951_v29 = vmul.f32 %v10006_v57, %v10006_v57  ;;  %v4835_v0 = vadd.f32 %v4834_v48, %v4833_v6  ;;  %5900 = vst.msk [vmem:[%s6965_s10 + $0x1e0] sm:$0xf] %vm993_vm1, %v6160_v46  ;;  %v5005_v23 = vadd.f32 %v5004_v13, %v5003_v38  ;;  %v6131_v18 = vpack.c.bf16 %v10007_v41, %v10007_v41 }
 0x267   : > { %v4905_v22 = vadd.f32 %v4904_v9, %v4903_v11  ;;  %v4953_v2 = vmul.f32 %v10004_v37, %v10004_v37  ;;  %v6163_v7 = vpack.c.bf16 %v10008_v10, %v10008_v10  ;;  %v4736_v20 = vsel %vm1186_vm2, %v10003_v60, 0.0  ;;  %v10012_v9 = vld [vmem:[#allocation5_spill] sm:$0xff] }
 0x268   : > { %v5006_v56 = vsel %vm1186_vm2, %v4951_v29, 0.0  ;;  %v4908_v26 = vsel %vm1186_vm2, %v10004_v37, 0.0  ;;  %5839 = vst.msk [vmem:[%s6960_s7 + $0x1ec] sm:$0xf] %vm993_vm1, %v6131_v18  ;;  %v6129_v61 = vpack.c.bf16 %v10009_v31, %v10009_v31  ;;  %v4838_v25 = vsel %vm1186_vm2, %v4781_v49, 0.0  ;;  %v10013_v18 = vld [vmem:[#allocation27_spill] sm:$0xff] }
 0x269   : > { %v5007_v58 = vadd.f32 %v5006_v56, %v5005_v23  ;;  %5903 = vst.msk [vmem:[%s6965_s10 + $0x1ec] sm:$0xf] %vm993_vm1, %v6163_v7  ;;  %v4734_v43 = vsel %vm1186_vm2, %v10009_v31, 0.0  ;;  %v4780_v8 = vmul.f32 %v10009_v31, %v10009_v31  ;;  %v6161_v24 = vpack.c.bf16 %v10010_v14, %v10010_v14 }
 0x26a   : > { %v4782_v4 = vmul.f32 %v10007_v41, %v10007_v41  ;;  %5837 = vst.msk [vmem:[%s6960_s7 + $0x1e4] sm:$0xf] %vm993_vm1, %v6129_v61  ;;  %v4735_v44 = vadd.f32 %v4734_v43, %v4733_v51  ;;  %v4906_v32 = vsel %vm1186_vm2, %v10010_v14, 0.0  ;;  %v4952_v1 = vmul.f32 %v10010_v14, %v10010_v14 }
 0x26b   : > { %v5010_v19 = vsel %vm1186_vm2, %v4953_v2, 0.0  ;;  %v4836_v30 = vsel %vm1186_vm2, %v4780_v8, 0.0  ;;  %5901 = vst.msk [vmem:[%s6965_s10 + $0x1e4] sm:$0xf] %vm993_vm1, %v6161_v24  ;;  %v4907_v42 = vadd.f32 %v4906_v32, %v4905_v22  ;;  %v6134_v59 = vpack.c.bf16 %v8932_v28, %v8932_v28 }
 0x26c   : > { %v4954_v60 = vmul.f32 %v10008_v10, %v10008_v10  ;;  %v4737_v15 = vadd.f32 %v4736_v20, %v4735_v44  ;;  %v4837_v12 = vadd.f32 %v4836_v30, %v4835_v0  ;;  %v5008_v36 = vsel %vm1186_vm2, %v4952_v1, 0.0 }
 0x26d   : > { %v4738_v17 = vsel %vm1186_vm2, %v10007_v41, 0.0  ;;  %v4909_v39 = vadd.f32 %v4908_v26, %v4907_v42  ;;  %v5009_v45 = vadd.f32 %v5008_v36, %v5007_v58  ;;  %5842 = vst.msk [vmem:[%s6960_s7 + $0x1f8] sm:$0xf] %vm993_vm1, %v6134_v59  ;;  %v6166_v52 = vpack.c.bf16 %v8934_v54, %v8934_v54  ;;  %v10014_v58 = vld [vmem:[#allocation6_spill] sm:$0xff] }
 0x26e   : > { %v4840_v3 = vsel %vm1186_vm2, %v4782_v4, 0.0  ;;  %v4910_v37 = vsel %vm1186_vm2, %v10008_v10, 0.0  ;;  %v4839_v50 = vadd.f32 %v4838_v25, %v4837_v12  ;;  %v6132_v40 = vpack.c.bf16 %v8941_v27, %v8941_v27 }
 0x26f   : > { %v5011_v13 = vadd.f32 %v5010_v19, %v5009_v45  ;;  %5906 = vst.msk [vmem:[%s6965_s10 + $0x1f8] sm:$0xf] %vm993_vm1, %v6166_v52  ;;  %v4739_v62 = vadd.f32 %v4738_v17, %v4737_v15  ;;  %v4740_v53 = vsel %vm1186_vm2, %v8941_v27, 0.0  ;;  %v4783_v21 = vmul.f32 %v8941_v27, %v8941_v27 }
 0x270   : > { %v5012_v38 = vsel %vm1186_vm2, %v4954_v60, 0.0  ;;  %5840 = vst.msk [vmem:[%s6960_s7 + $0x1f0] sm:$0xf] %vm993_vm1, %v6132_v40  ;;  %v4841_v33 = vadd.f32 %v4840_v3, %v4839_v50  ;;  %v6164_v16 = vpack.c.bf16 %v10011_v35, %v10011_v35  ;;  %v4911_v49 = vadd.f32 %v4910_v37, %v4909_v39 }
 0x271   : > { %v4741_v6 = vadd.f32 %v4740_v53, %v4739_v62  ;;  %v4842_v57 = vsel %vm1186_vm2, %v4783_v21, 0.0  ;;  %v4912_v46 = vsel %vm1186_vm2, %v10011_v35, 0.0  ;;  %v4955_v27 = vmul.f32 %v10011_v35, %v10011_v35 }
 0x272   : > { %v4843_v11 = vadd.f32 %v4842_v57, %v4841_v33  ;;  %5904 = vst.msk [vmem:[%s6965_s10 + $0x1f0] sm:$0xf] %vm993_vm1, %v6164_v16  ;;  %v4913_v51 = vadd.f32 %v4912_v46, %v4911_v49  ;;  %v5013_v48 = vadd.f32 %v5012_v38, %v5011_v13  ;;  %v6135_v29 = vpack.c.bf16 %v10012_v9, %v10012_v9 }
 0x273   : > { %v5014_v0 = vsel %vm1186_vm2, %v4955_v27, 0.0  ;;  %v6167_v22 = vpack.c.bf16 %v8964_v34, %v8964_v34  ;;  %v4785_v23 = vmul.f32 %v8932_v28, %v8932_v28  ;;  %v6133_v2 = vpack.c.bf16 %v10013_v18, %v10013_v18 }
 0x274   : > { %v5015_v41 = vadd.f32 %v5014_v0, %v5013_v48  ;;  %5843 = vst.msk [vmem:[%s6960_s7 + $0x1fc] sm:$0xf] %vm993_vm1, %v6135_v29  ;;  %v4744_v56 = vsel %vm1186_vm2, %v8932_v28, 0.0  ;;  %v4742_v10 = vsel %vm1186_vm2, %v10013_v18, 0.0  ;;  %v4784_v7 = vmul.f32 %v10013_v18, %v10013_v18 }
 0x275   : > { %5907 = vst.msk [vmem:[%s6965_s10 + $0x1fc] sm:$0xf] %vm993_vm1, %v6167_v22  ;;  %v4957_v20 = vmul.f32 %v8934_v54, %v8934_v54  ;;  %5841 = vst.msk [vmem:[%s6960_s7 + $0x1f4] sm:$0xf] %vm993_vm1, %v6133_v2  ;;  %v4743_v26 = vadd.f32 %v4742_v10, %v4741_v6  ;;  %v6165_v31 = vpack.c.bf16 %v10014_v58, %v10014_v58  ;;  %v4914_v28 = vsel %vm1186_vm2, %v10014_v58, 0.0 }
 0x276   : > { %v4786_v61 = vmul.f32 %v10012_v9, %v10012_v9  ;;  %v4844_v25 = vsel %vm1186_vm2, %v4784_v7, 0.0  ;;  %v4915_v43 = vadd.f32 %v4914_v28, %v4913_v51  ;;  %v4956_v8 = vmul.f32 %v10014_v58, %v10014_v58 }
 0x277   : > { %v4846_v14 = vsel %vm1186_vm2, %v4785_v23, 0.0  ;;  %v4916_v24 = vsel %vm1186_vm2, %v8934_v54, 0.0  ;;  %v4745_v4 = vadd.f32 %v4744_v56, %v4743_v26  ;;  %v4845_v44 = vadd.f32 %v4844_v25, %v4843_v11  ;;  %5905 = vst.msk [vmem:[%s6965_s10 + $0x1f4] sm:$0xf] %vm993_vm1, %v6165_v31 }
 0x278   : > { %v4746_v32 = vsel %vm1186_vm2, %v10012_v9, 0.0  ;;  %v4958_v1 = vmul.f32 %v8964_v34, %v8964_v34  ;;  %v4917_v19 = vadd.f32 %v4916_v24, %v4915_v43  ;;  %v5016_v30 = vsel %vm1186_vm2, %v4956_v8, 0.0 }
 0x279   : > { %v4918_v42 = vsel %vm1186_vm2, %v8964_v34, 0.0  ;;  %v4747_v59 = vadd.f32 %v4746_v32, %v4745_v4  ;;  %v4847_v60 = vadd.f32 %v4846_v14, %v4845_v44  ;;  %v5017_v15 = vadd.f32 %v5016_v30, %v5015_v41 }
 0x27a   : > { %v5018_v54 = vsel %vm1186_vm2, %v4957_v20, 0.0  ;;  %v4848_v12 = vsel %vm1186_vm2, %v4786_v61, 0.0  ;;  %v4919_v36 = vadd.f32 %v4918_v42, %v4917_v19  ;;  %v5020_v52 = vsel %vm1186_vm2, %v4958_v1, 0.0 }
 0x27b   : > { %v4748_v17 = vrot.slane %v4747_v59, 4  ;;  %v4849_v39 = vadd.f32 %v4848_v12, %v4847_v60  ;;  %v5019_v45 = vadd.f32 %v5018_v54, %v5017_v15 }
 0x27c   : > { %v4920_v3 = vrot.slane %v4919_v36, 4 }
 0x27d   : > { %v4749_v37 = vadd.f32 %v4748_v17, %v4747_v59  ;;  %v4850_v50 = vrot.slane %v4849_v39, 4  ;;  %v5021_v40 = vadd.f32 %v5020_v52, %v5019_v45 }
 0x27e   : > { %v4921_v13 = vadd.f32 %v4920_v3, %v4919_v36 }
 0x27f   : > { %v4750_v34 = vrot.slane %v4749_v37, 2  ;;  %v4851_v62 = vadd.f32 %v4850_v50, %v4849_v39  ;;  %v5022_v53 = vrot.slane %v5021_v40, 4 }
 0x280   : > { %v4922_v21 = vrot.slane %v4921_v13, 2 }
 0x281   : > { %v4751_v38 = vadd.f32 %v4750_v34, %v4749_v37  ;;  %v4852_v33 = vrot.slane %v4851_v62, 2  ;;  %v5023_v35 = vadd.f32 %v5022_v53, %v5021_v40 }
 0x282   : > { %v4923_v16 = vadd.f32 %v4922_v21, %v4921_v13 }
 0x283   : > { %v4752_v49 = vrot.slane %v4751_v38, 1  ;;  %v4853_v6 = vadd.f32 %v4852_v33, %v4851_v62  ;;  %v5024_v57 = vrot.slane %v5023_v35, 2 }
 0x284   : > { %v4924_v46 = vrot.slane %v4923_v16, 1 }
 0x285   : > { %v4753_v27 = vadd.f32 %v4752_v49, %v4751_v38  ;;  %v4854_v11 = vrot.slane %v4853_v6, 1  ;;  %v5025_v51 = vadd.f32 %v5024_v57, %v5023_v35 }
 0x286   : > { %v4925_v48 = vadd.f32 %v4924_v46, %v4923_v16 }
 0x287   : > { %v4754_v9 = vadd.f32 %v4753_v27, %v9227_v63  ;;  %v4855_v29 = vadd.f32 %v4854_v11, %v4853_v6  ;;  %v5026_v0 = vrot.slane %v5025_v51, 1 }
 0x288   : > { %v4926_v22 = vadd.f32 %v4925_v48, %v9232_v5 }
 0x289   : > { %v4856_v23 = vadd.f32 %v4855_v29, %v9237_v55  ;;  %5030 = vst.msk [vmem:[%s364_s14] sm:$0x1] %vm5029_vm3, %v4754_v9  ;;  %v5027_v41 = vadd.f32 %v5026_v0, %v5025_v51 }
 0x28a   : > { %5032 = vst.msk [vmem:[%s364_s14 + $0x2] sm:$0x1] %vm5029_vm3, %v4926_v22 }
 0x28b   : > { %5031 = vst.msk [vmem:[%s364_s14 + $0x1] sm:$0x1] %vm5029_vm3, %v4856_v23  ;;  %v5028_v18 = vadd.f32 %v5027_v41, %v9242_v47 }
 0x28d   : > { %5033 = vst.msk [vmem:[%s364_s14 + $0x3] sm:$0x1] %vm5029_vm3, %v5028_v18 }
 0x28e PF: > { %s17_s23 = sadd.s32 1, %s6695_s23   ;;  %s10015_s21 = smov %s6691_s22 }
 0x28f   : > { %p14_p5 = scmp.ge.s32.totalorder %s17_s23, 4   ;;  %s10016_s22 = smov %s10018_s24 }
 0x291   :  { %16 = sbr.rel (!%p14_p5) target bundleno = 2 (0x2), region = 105 }

</bundles_post_ra>
